<compile_context>
chip_gen: v7x
topology: tpu7x:2x2x1
jax: 0.10.0
libtpu: 0.0.40
codegen_flags: <defaults>
</compile_context>

<pallas_src>
import functools

import jax
import jax.numpy as jnp
from jax.experimental import pallas as pl
from jax.experimental.pallas import tpu as pltpu


# ----------------------- ConvTranspose(k=2, s=2) + ReLU ----------------------
#
# kernel==stride==2 => no overlap:
#   out[b, 2h+kh, 2w+kw, co] = relu( sum_ci x[b,h,w,ci] * W[ci,co,kh,kw] + bias[co] )
# One merged matmul per grid step: columns ordered (kh, kw, co).  Each kh half is a
# lane-aligned slice written into an output block shaped (TH, 2, W, 2*Cout), which is
# exactly row-major NHWC interleaved -> the follow-up jnp.reshape is free.

def _convt_kernel(a_ref, w_ref, b_ref, o_ref, *, TH, W, N2):
    # a_ref: (TH*W, Cin)   w_ref: (Cin, 2*N2)   b_ref: (1, 2*N2)   o_ref: (TH, 2, W, N2)
    r = jnp.dot(a_ref[...], w_ref[...], preferred_element_type=jnp.float32)
    r = jnp.maximum(r + b_ref[...], 0.0)                    # (TH*W, 4*Cout)
    for kh in range(2):
        chunk = r[:, kh * N2:(kh + 1) * N2]                 # lane-aligned (N2 % 128 == 0)
        if W % 8 == 0:
            o_ref[:, kh, :, :] = chunk.reshape(TH, W, N2)   # leading-dim split, no relayout
        else:
            # tiny first layer (W=4): per-row-group stores avoid odd reshapes
            for t in range(TH):
                o_ref[t, kh, :, :] = chunk[t * W:(t + 1) * W, :]


def conv_transpose_2x2_relu(x_nhwc, wk4, bias4):
    """x_nhwc:(B,H,W,Cin); wk4:(Cin,4*Cout) cols ordered (kh,kw,co); bias4:(1,4*Cout)."""
    B, H, W, Cin = x_nhwc.shape
    N4 = wk4.shape[1]
    N2 = N4 // 2
    Cout = N4 // 4

    # whole image per step when it fits (<=1024 matmul rows), else halve along H
    TH = H
    while TH * W > 1024 and TH % 2 == 0:
        TH //= 2
    BH = B * H

    a = x_nhwc.reshape(BH * W, Cin)                          # free reshape (contiguous)
    kernel = functools.partial(_convt_kernel, TH=TH, W=W, N2=N2)
    out = pl.pallas_call(
        kernel,
        out_shape=jax.ShapeDtypeStruct((BH, 2, W, N2), jnp.float32),
        grid=(BH // TH,),
        in_specs=[
            pl.BlockSpec((TH * W, Cin), lambda i: (i, 0)),
            pl.BlockSpec((Cin, N4), lambda i: (0, 0)),       # resident across steps
            pl.BlockSpec((1, N4), lambda i: (0, 0)),
        ],
        out_specs=pl.BlockSpec((TH, 2, W, N2), lambda i: (i, 0, 0, 0)),
        compiler_params=pltpu.CompilerParams(
            dimension_semantics=("parallel",)),
    )(a, wk4, bias4)
    # (BH, 2, W, 2*Cout) == (B, H, 2, W, 2, Cout) == (B, 2H, 2W, Cout): free reshape
    return out.reshape(B, 2 * H, 2 * W, Cout)


# ------------- fused tail: 1x1 conv + sigmoid + bilinear resize --------------
#
# Per batch image (grid over B), looping over small groups of G w-positions:
#   x_g = x[:, g*G*C4:(g+1)*G*C4]                (H4, G*C4)   lane-aligned slice
#   y_g = sigmoid(x_g @ Wg + bg)                 (H4, 3*G)    cols ordered (c, w_local)
#   t_g = Mh @ y_g                               (OH, 3*G)    height resize
#   out += t_g @ MWg                             (OH, 3*OWP)  width resize; MWg absorbs
#                                                 the (c, w_local) ordering, maps channel c
#                                                 into its own 128-padded lane block
#   o_ref[0, c] = out[:, c*OWP : c*OWP+OW]       NCHW store, 128-aligned lane offsets

def _tail_kernel(x_ref, wg_ref, bg_ref, mh_ref, mwg_ref, o_ref, *, G, C4, OW, OWP):
    ng = mwg_ref.shape[0]
    wg = wg_ref[...]
    bg = bg_ref[...]
    mh = mh_ref[...]
    out = None
    for g in range(ng):
        xg = x_ref[0, :, g * G * C4:(g + 1) * G * C4]                      # (H4, G*C4)
        yg = jnp.dot(xg, wg, preferred_element_type=jnp.float32)
        yg = jax.nn.sigmoid(yg + bg)                                       # (H4, 3*G)
        tg = jnp.dot(mh, yg, preferred_element_type=jnp.float32)           # (OH, 3*G)
        zg = jnp.dot(tg, mwg_ref[g], preferred_element_type=jnp.float32)   # (OH, 3*OWP)
        out = zg if out is None else out + zg
    for c in range(3):
        o_ref[0, c, :, :] = out[:, c * OWP:c * OWP + OW].astype(o_ref.dtype)


def conv1x1_sigmoid_resize(x_nhwc, wg, bg, mh, mwg_all, original_size):
    B, H4, W4, C4 = x_nhwc.shape
    OH, OW = original_size
    G = wg.shape[1] // 3
    OWP = mwg_all.shape[2] // 3
    ng = mwg_all.shape[0]
    x2 = x_nhwc.reshape(B, H4, W4 * C4)                      # free reshape
    kernel = functools.partial(_tail_kernel, G=G, C4=C4, OW=OW, OWP=OWP)
    return pl.pallas_call(
        kernel,
        out_shape=jax.ShapeDtypeStruct((B, 3, OH, OW), jnp.float32),
        grid=(B,),
        in_specs=[
            pl.BlockSpec((1, H4, W4 * C4), lambda b: (b, 0, 0)),
            pl.BlockSpec((G * C4, 3 * G), lambda b: (0, 0)),
            pl.BlockSpec((1, 3 * G), lambda b: (0, 0)),
            pl.BlockSpec((OH, H4), lambda b: (0, 0)),
            pl.BlockSpec((ng, 3 * G, 3 * OWP), lambda b: (0, 0, 0)),
        ],
        out_specs=pl.BlockSpec((1, 3, OH, OW), lambda b: (b, 0, 0, 0)),
        compiler_params=pltpu.CompilerParams(
            dimension_semantics=("parallel",)),
    )(x2, wg, bg, mh, mwg_all)


# --------------------------- parameter preparation ---------------------------

def bilinear_matrix(out_size, in_size):
    """Row-stochastic interpolation matrix matching PyTorch bilinear, align_corners=False."""
    scale = in_size / out_size
    o = jnp.arange(out_size, dtype=jnp.float32)
    src = jnp.maximum((o + 0.5) * scale - 0.5, 0.0)
    i0 = jnp.minimum(jnp.floor(src).astype(jnp.int32), in_size - 1)
    i1 = jnp.minimum(i0 + 1, in_size - 1)
    w1 = src - i0.astype(jnp.float32)
    w0 = 1.0 - w1
    return (jax.nn.one_hot(i0, in_size, dtype=jnp.float32) * w0[:, None]
            + jax.nn.one_hot(i1, in_size, dtype=jnp.float32) * w1[:, None])  # (out, in)


def init_decoder_params(key, encoded_channels):
    """PyTorch-layout params: ConvTranspose2d weight (Cin,Cout,kh,kw), bias (Cout,)."""
    specs = [(encoded_channels, 512, 2), (512, 256, 2), (256, 128, 2),
             (128, 64, 2), (64, 3, 1)]
    params = []
    for i, (cin, cout, k) in enumerate(specs):
        kw_, kb_ = jax.random.split(jax.random.fold_in(key, i))
        fan = cin * k * k
        w = jax.random.normal(kw_, (cin, cout, k, k), jnp.float32) / jnp.sqrt(float(fan))
        b = 0.01 * jax.random.normal(kb_, (cout,), jnp.float32)
        params.append((w, b))
    return params


def prepare_decoder_params(params, original_size, final_hw):
    """One-time conversion of PyTorch-layout params into kernel-ready constants."""
    prepared = {"convt": []}
    for (w, b) in params[:4]:
        cin, cout = w.shape[0], w.shape[1]
        # merged weight: (Cin, 4*Cout) with columns ordered (kh, kw, co)
        wk4 = jnp.transpose(w, (0, 2, 3, 1)).reshape(cin, 4 * cout)
        bias4 = jnp.tile(b, 4).reshape(1, 4 * cout)
        prepared["convt"].append((wk4, bias4))

    wc, bc = params[4]
    w5 = wc[:, :, 0, 0]                                      # (C4, 3)
    C4 = w5.shape[0]
    H4, W4 = final_hw
    OH, OW = original_size
    OWP = ((OW + 127) // 128) * 128                          # 128-padded per-channel lanes

    G = 1
    for cand in (16, 8, 4, 2, 1):                            # small group of w positions
        if W4 % cand == 0:
            G = cand
            break
    ng = W4 // G

    # grouped block-diagonal 1x1-conv weight: (G*C4, 3*G), output columns (c, w_local)
    eyeG = jnp.eye(G, dtype=jnp.float32)
    wg = jnp.einsum('ic,wu->wicu', w5, eyeG).reshape(G * C4, 3 * G)
    bg = jnp.repeat(bc, G).reshape(1, 3 * G)

    mh = bilinear_matrix(OH, H4)                             # (OH, H4)
    mw = bilinear_matrix(OW, W4)                             # (OW, W4)
    eye3 = jnp.eye(3, dtype=jnp.float32)
    mwg_list = []
    for g in range(ng):
        # per-group width-resize matrix: rows ordered (c, w_local), cols (c, ow padded to OWP)
        mw_pad = jnp.zeros((OWP, G), jnp.float32).at[:OW, :].set(mw[:, g * G:(g + 1) * G])
        mwg = jnp.einsum('cp,ow->cwpo', eye3, mw_pad).reshape(3 * G, 3 * OWP)
        mwg_list.append(mwg)
    prepared["tail"] = (wg, bg, mh, jnp.stack(mwg_list))     # mwg_all: (ng, 3G, 3*OWP)
    return prepared


# ------------------------------ Decoder forward ------------------------------

def decoder_forward(prepared, x_nchw, original_size):
    x = jnp.transpose(x_nchw, (0, 2, 3, 1))                  # NCHW -> NHWC (tiny, 1 KiB)
    for (wk4, bias4) in prepared["convt"]:
        x = conv_transpose_2x2_relu(x, wk4, bias4)
    wg, bg, mh, mwg_all = prepared["tail"]
    return conv1x1_sigmoid_resize(x, wg, bg, mh, mwg_all, original_size)  # (B, 3, OH, OW)


# --------------------------- pure-JAX reference ------------------------------

def ref_forward(params, x_nchw, original_size):
    x = jnp.transpose(x_nchw, (0, 2, 3, 1))
    for (w, b) in params[:4]:
        y = jnp.einsum('bhwi,iokl->bhwklo', x, w) + b
        B, H, W, _, _, Co = y.shape
        x = jnp.maximum(
            y.transpose(0, 1, 3, 2, 4, 5).reshape(B, 2 * H, 2 * W, Co), 0.0)
    w, b = params[4]
    x = jax.nn.sigmoid(jnp.einsum('bhwi,io->bhwo', x, w[:, :, 0, 0]) + b)
    mh = bilinear_matrix(original_size[0], x.shape[1])
    mw = bilinear_matrix(original_size[1], x.shape[2])
    x = jnp.einsum('oh,bhwc->bowc', mh, x)
    x = jnp.einsum('ow,bhwc->bhoc', mw, x)
    return jnp.transpose(x, (0, 3, 1, 2))


# ----------------------------------- main ------------------------------------

if __name__ == "__main__":
    key = jax.random.PRNGKey(0)
    encoded_channels = 8
    params = init_decoder_params(jax.random.fold_in(key, 100), encoded_channels)

    # small input: (batch=2, enc_channels=8, 4, 4) -> decoder output 64x64 -> resized to 72x72
    x = jax.random.normal(jax.random.fold_in(key, 200),
                          (2, encoded_channels, 4, 4), jnp.float32)
    original_size = (72, 72)
    final_hw = (x.shape[2] * 16, x.shape[3] * 16)            # spatial size after 4 ConvT layers

    prepared = prepare_decoder_params(params, original_size, final_hw)

    fwd = jax.jit(decoder_forward, static_argnames=("original_size",))
    out = jax.block_until_ready(fwd(prepared, x, original_size=original_size))
    assert out.shape == (2, 3, 72, 72), out.shape

    ref = ref_forward(params, x, original_size)
    max_err = float(jnp.max(jnp.abs(out - ref)))
    assert max_err < 1e-3, f"max error {max_err}"

    print("KERNEL_OK")
</pallas_src>

<mosaic_0001>
module attributes {stable_mosaic.version = 11 : i64} {
  func.func @_convt_kernel(%arg0: i32, %arg1: memref<16x8xf32, #tpu.memory_space<vmem>>, %arg2: memref<8x2048xf32, #tpu.memory_space<vmem>>, %arg3: memref<1x2048xf32, #tpu.memory_space<vmem>>, %arg4: memref<4x2x4x1024xf32, #tpu.memory_space<vmem>>) attributes {dimension_semantics = [#tpu.dimension_semantics<parallel>], iteration_bounds = array<i64: 2>, scalar_prefetch = 0 : i64, scratch_operands = 0 : i64, tpu.core_type = #tpu.core_type<tc>, window_params = [{transform_indices = @transform_0, window_bounds = array<i64: 16, 8>}, {pipeline_mode = #tpu.pipeline_mode<synchronous>, transform_indices = @transform_1, window_bounds = array<i64: 8, 2048>}, {pipeline_mode = #tpu.pipeline_mode<synchronous>, transform_indices = @transform_2, window_bounds = array<i64: 1, 2048>}, {transform_indices = @transform_3, window_bounds = array<i64: 4, 2, 4, 1024>}]} {
    %c0 = arith.constant 0 : index
    %c0_0 = arith.constant 0 : index
    %0 = vector.load %arg1[%c0, %c0_0] : memref<16x8xf32, #tpu.memory_space<vmem>>, vector<16x8xf32>
    %c0_1 = arith.constant 0 : index
    %c0_2 = arith.constant 0 : index
    %1 = vector.load %arg2[%c0_1, %c0_2] : memref<8x2048xf32, #tpu.memory_space<vmem>>, vector<8x2048xf32>
    %cst = arith.constant dense<0.000000e+00> : vector<16x2048xf32>
    %2 = tpu.matmul %0, %1, %cst {dimension_numbers = #tpu.dot_dimension_numbers<[1], [0], [0], [1], [0, 0, 1, 1], [], []>} : vector<16x8xf32>, vector<8x2048xf32>, vector<16x2048xf32> -> vector<16x2048xf32>
    %c0_3 = arith.constant 0 : index
    %c0_4 = arith.constant 0 : index
    %3 = vector.load %arg3[%c0_3, %c0_4] : memref<1x2048xf32, #tpu.memory_space<vmem>>, vector<1x2048xf32>
    %4 = vector.broadcast %3 : vector<1x2048xf32> to vector<16x2048xf32>
    %5 = arith.addf %2, %4 : vector<16x2048xf32>
    %cst_5 = arith.constant 0.000000e+00 : f32
    %6 = vector.broadcast %cst_5 : f32 to vector<16x2048xf32>
    %7 = arith.maximumf %5, %6 : vector<16x2048xf32>
    %8 = vector.extract_strided_slice %7 {offsets = [0, 0], sizes = [16, 1024], strides = [1, 1]} : vector<16x2048xf32> to vector<16x1024xf32>
    %9 = vector.extract_strided_slice %8 {offsets = [0, 0], sizes = [4, 1024], strides = [1, 1]} : vector<16x1024xf32> to vector<4x1024xf32>
    %c0_6 = arith.constant 0 : index
    %c0_7 = arith.constant 0 : index
    %c0_8 = arith.constant 0 : index
    %c0_9 = arith.constant 0 : index
    %10 = vector.load %arg4[%c0_6, %c0_7, %c0_8, %c0_9] : memref<4x2x4x1024xf32, #tpu.memory_space<vmem>>, vector<1x1x4x1024xf32>
    %11 = vector.shape_cast %10 : vector<1x1x4x1024xf32> to vector<4x1024xf32>
    %12 = vector.shape_cast %9 : vector<4x1024xf32> to vector<1x1x4x1024xf32>
    tpu.vector_store %arg4[%c0_6, %c0_7, %c0_8, %c0_9], %12 {strides = array<i32>} : memref<4x2x4x1024xf32, #tpu.memory_space<vmem>>, vector<1x1x4x1024xf32>,
    %13 = vector.extract_strided_slice %8 {offsets = [4, 0], sizes = [4, 1024], strides = [1, 1]} : vector<16x1024xf32> to vector<4x1024xf32>
    %c1 = arith.constant 1 : index
    %c0_10 = arith.constant 0 : index
    %c0_11 = arith.constant 0 : index
    %c0_12 = arith.constant 0 : index
    %14 = vector.load %arg4[%c1, %c0_10, %c0_11, %c0_12] : memref<4x2x4x1024xf32, #tpu.memory_space<vmem>>, vector<1x1x4x1024xf32>
    %15 = vector.shape_cast %14 : vector<1x1x4x1024xf32> to vector<4x1024xf32>
    %16 = vector.shape_cast %13 : vector<4x1024xf32> to vector<1x1x4x1024xf32>
    tpu.vector_store %arg4[%c1, %c0_10, %c0_11, %c0_12], %16 {strides = array<i32>} : memref<4x2x4x1024xf32, #tpu.memory_space<vmem>>, vector<1x1x4x1024xf32>,
    %17 = vector.extract_strided_slice %8 {offsets = [8, 0], sizes = [4, 1024], strides = [1, 1]} : vector<16x1024xf32> to vector<4x1024xf32>
    %c2 = arith.constant 2 : index
    %c0_13 = arith.constant 0 : index
    %c0_14 = arith.constant 0 : index
    %c0_15 = arith.constant 0 : index
    %18 = vector.load %arg4[%c2, %c0_13, %c0_14, %c0_15] : memref<4x2x4x1024xf32, #tpu.memory_space<vmem>>, vector<1x1x4x1024xf32>
    %19 = vector.shape_cast %18 : vector<1x1x4x1024xf32> to vector<4x1024xf32>
    %20 = vector.shape_cast %17 : vector<4x1024xf32> to vector<1x1x4x1024xf32>
    tpu.vector_store %arg4[%c2, %c0_13, %c0_14, %c0_15], %20 {strides = array<i32>} : memref<4x2x4x1024xf32, #tpu.memory_space<vmem>>, vector<1x1x4x1024xf32>,
    %21 = vector.extract_strided_slice %8 {offsets = [12, 0], sizes = [4, 1024], strides = [1, 1]} : vector<16x1024xf32> to vector<4x1024xf32>
    %c3 = arith.constant 3 : index
    %c0_16 = arith.constant 0 : index
    %c0_17 = arith.constant 0 : index
    %c0_18 = arith.constant 0 : index
    %22 = vector.load %arg4[%c3, %c0_16, %c0_17, %c0_18] : memref<4x2x4x1024xf32, #tpu.memory_space<vmem>>, vector<1x1x4x1024xf32>
    %23 = vector.shape_cast %22 : vector<1x1x4x1024xf32> to vector<4x1024xf32>
    %24 = vector.shape_cast %21 : vector<4x1024xf32> to vector<1x1x4x1024xf32>
    tpu.vector_store %arg4[%c3, %c0_16, %c0_17, %c0_18], %24 {strides = array<i32>} : memref<4x2x4x1024xf32, #tpu.memory_space<vmem>>, vector<1x1x4x1024xf32>,
    %25 = vector.extract_strided_slice %7 {offsets = [0, 1024], sizes = [16, 1024], strides = [1, 1]} : vector<16x2048xf32> to vector<16x1024xf32>
    %26 = vector.extract_strided_slice %25 {offsets = [0, 0], sizes = [4, 1024], strides = [1, 1]} : vector<16x1024xf32> to vector<4x1024xf32>
    %c0_19 = arith.constant 0 : index
    %c1_20 = arith.constant 1 : index
    %c0_21 = arith.constant 0 : index
    %c0_22 = arith.constant 0 : index
    %27 = vector.load %arg4[%c0_19, %c1_20, %c0_21, %c0_22] : memref<4x2x4x1024xf32, #tpu.memory_space<vmem>>, vector<1x1x4x1024xf32>
    %28 = vector.shape_cast %27 : vector<1x1x4x1024xf32> to vector<4x1024xf32>
    %29 = vector.shape_cast %26 : vector<4x1024xf32> to vector<1x1x4x1024xf32>
    tpu.vector_store %arg4[%c0_19, %c1_20, %c0_21, %c0_22], %29 {strides = array<i32>} : memref<4x2x4x1024xf32, #tpu.memory_space<vmem>>, vector<1x1x4x1024xf32>,
    %30 = vector.extract_strided_slice %25 {offsets = [4, 0], sizes = [4, 1024], strides = [1, 1]} : vector<16x1024xf32> to vector<4x1024xf32>
    %c1_23 = arith.constant 1 : index
    %c1_24 = arith.constant 1 : index
    %c0_25 = arith.constant 0 : index
    %c0_26 = arith.constant 0 : index
    %31 = vector.load %arg4[%c1_23, %c1_24, %c0_25, %c0_26] : memref<4x2x4x1024xf32, #tpu.memory_space<vmem>>, vector<1x1x4x1024xf32>
    %32 = vector.shape_cast %31 : vector<1x1x4x1024xf32> to vector<4x1024xf32>
    %33 = vector.shape_cast %30 : vector<4x1024xf32> to vector<1x1x4x1024xf32>
    tpu.vector_store %arg4[%c1_23, %c1_24, %c0_25, %c0_26], %33 {strides = array<i32>} : memref<4x2x4x1024xf32, #tpu.memory_space<vmem>>, vector<1x1x4x1024xf32>,
    %34 = vector.extract_strided_slice %25 {offsets = [8, 0], sizes = [4, 1024], strides = [1, 1]} : vector<16x1024xf32> to vector<4x1024xf32>
    %c2_27 = arith.constant 2 : index
    %c1_28 = arith.constant 1 : index
    %c0_29 = arith.constant 0 : index
    %c0_30 = arith.constant 0 : index
    %35 = vector.load %arg4[%c2_27, %c1_28, %c0_29, %c0_30] : memref<4x2x4x1024xf32, #tpu.memory_space<vmem>>, vector<1x1x4x1024xf32>
    %36 = vector.shape_cast %35 : vector<1x1x4x1024xf32> to vector<4x1024xf32>
    %37 = vector.shape_cast %34 : vector<4x1024xf32> to vector<1x1x4x1024xf32>
    tpu.vector_store %arg4[%c2_27, %c1_28, %c0_29, %c0_30], %37 {strides = array<i32>} : memref<4x2x4x1024xf32, #tpu.memory_space<vmem>>, vector<1x1x4x1024xf32>,
    %38 = vector.extract_strided_slice %25 {offsets = [12, 0], sizes = [4, 1024], strides = [1, 1]} : vector<16x1024xf32> to vector<4x1024xf32>
    %c3_31 = arith.constant 3 : index
    %c1_32 = arith.constant 1 : index
    %c0_33 = arith.constant 0 : index
    %c0_34 = arith.constant 0 : index
    %39 = vector.load %arg4[%c3_31, %c1_32, %c0_33, %c0_34] : memref<4x2x4x1024xf32, #tpu.memory_space<vmem>>, vector<1x1x4x1024xf32>
    %40 = vector.shape_cast %39 : vector<1x1x4x1024xf32> to vector<4x1024xf32>
    %41 = vector.shape_cast %38 : vector<4x1024xf32> to vector<1x1x4x1024xf32>
    tpu.vector_store %arg4[%c3_31, %c1_32, %c0_33, %c0_34], %41 {strides = array<i32>} : memref<4x2x4x1024xf32, #tpu.memory_space<vmem>>, vector<1x1x4x1024xf32>,
    return
  }
  func.func @transform_0(%arg0: i32) -> (i32, i32) {
    %c0_i32 = arith.constant 0 : i32
    %c0_i32_0 = arith.constant 0 : i32
    return %arg0, %c0_i32 : i32, i32
  }
  func.func @transform_1(%arg0: i32) -> (i32, i32) {
    %c0_i32 = arith.constant 0 : i32
    %c0_i32_0 = arith.constant 0 : i32
    %c0_i32_1 = arith.constant 0 : i32
    return %c0_i32, %c0_i32_0 : i32, i32
  }
  func.func @transform_2(%arg0: i32) -> (i32, i32) {
    %c0_i32 = arith.constant 0 : i32
    %c0_i32_0 = arith.constant 0 : i32
    %c0_i32_1 = arith.constant 0 : i32
    return %c0_i32, %c0_i32_0 : i32, i32
  }
  func.func @transform_3(%arg0: i32) -> (i32, i32, i32, i32) {
    %c0_i32 = arith.constant 0 : i32
    %c0_i32_0 = arith.constant 0 : i32
    %c0_i32_1 = arith.constant 0 : i32
    %c0_i32_2 = arith.constant 0 : i32
    return %arg0, %c0_i32, %c0_i32_0, %c0_i32_1 : i32, i32, i32, i32
  }
}

module attributes {stable_mosaic.version = 11 : i64} {
  func.func @_convt_kernel(%arg0: i32, %arg1: memref<64x512xf32, #tpu.memory_space<vmem>>, %arg2: memref<512x1024xf32, #tpu.memory_space<vmem>>, %arg3: memref<1x1024xf32, #tpu.memory_space<vmem>>, %arg4: memref<8x2x8x512xf32, #tpu.memory_space<vmem>>) attributes {dimension_semantics = [#tpu.dimension_semantics<parallel>], iteration_bounds = array<i64: 2>, scalar_prefetch = 0 : i64, scratch_operands = 0 : i64, tpu.core_type = #tpu.core_type<tc>, window_params = [{transform_indices = @transform_0, window_bounds = array<i64: 64, 512>}, {pipeline_mode = #tpu.pipeline_mode<synchronous>, transform_indices = @transform_1, window_bounds = array<i64: 512, 1024>}, {pipeline_mode = #tpu.pipeline_mode<synchronous>, transform_indices = @transform_2, window_bounds = array<i64: 1, 1024>}, {transform_indices = @transform_3, window_bounds = array<i64: 8, 2, 8, 512>}]} {
    %c0 = arith.constant 0 : index
    %c0_0 = arith.constant 0 : index
    %0 = vector.load %arg1[%c0, %c0_0] : memref<64x512xf32, #tpu.memory_space<vmem>>, vector<64x512xf32>
    %c0_1 = arith.constant 0 : index
    %c0_2 = arith.constant 0 : index
    %1 = vector.load %arg2[%c0_1, %c0_2] : memref<512x1024xf32, #tpu.memory_space<vmem>>, vector<512x1024xf32>
    %cst = arith.constant dense<0.000000e+00> : vector<64x1024xf32>
    %2 = tpu.matmul %0, %1, %cst {dimension_numbers = #tpu.dot_dimension_numbers<[1], [0], [0], [1], [0, 0, 1, 1], [], []>} : vector<64x512xf32>, vector<512x1024xf32>, vector<64x1024xf32> -> vector<64x1024xf32>
    %c0_3 = arith.constant 0 : index
    %c0_4 = arith.constant 0 : index
    %3 = vector.load %arg3[%c0_3, %c0_4] : memref<1x1024xf32, #tpu.memory_space<vmem>>, vector<1x1024xf32>
    %4 = vector.broadcast %3 : vector<1x1024xf32> to vector<64x1024xf32>
    %5 = arith.addf %2, %4 : vector<64x1024xf32>
    %cst_5 = arith.constant 0.000000e+00 : f32
    %6 = vector.broadcast %cst_5 : f32 to vector<64x1024xf32>
    %7 = arith.maximumf %5, %6 : vector<64x1024xf32>
    %8 = vector.extract_strided_slice %7 {offsets = [0, 0], sizes = [64, 512], strides = [1, 1]} : vector<64x1024xf32> to vector<64x512xf32>
    %9 = vector.shape_cast %8 : vector<64x512xf32> to vector<8x8x512xf32>
    %c0_6 = arith.constant 0 : index
    %c0_7 = arith.constant 0 : index
    %c0_8 = arith.constant 0 : index
    %c0_9 = arith.constant 0 : index
    %10 = vector.load %arg4[%c0_6, %c0_7, %c0_8, %c0_9] : memref<8x2x8x512xf32, #tpu.memory_space<vmem>>, vector<8x1x8x512xf32>
    %11 = vector.shape_cast %10 : vector<8x1x8x512xf32> to vector<8x8x512xf32>
    %12 = vector.shape_cast %9 : vector<8x8x512xf32> to vector<8x1x8x512xf32>
    tpu.vector_store %arg4[%c0_6, %c0_7, %c0_8, %c0_9], %12 {strides = array<i32>} : memref<8x2x8x512xf32, #tpu.memory_space<vmem>>, vector<8x1x8x512xf32>,
    %13 = vector.extract_strided_slice %7 {offsets = [0, 512], sizes = [64, 512], strides = [1, 1]} : vector<64x1024xf32> to vector<64x512xf32>
    %14 = vector.shape_cast %13 : vector<64x512xf32> to vector<8x8x512xf32>
    %c0_10 = arith.constant 0 : index
    %c1 = arith.constant 1 : index
    %c0_11 = arith.constant 0 : index
    %c0_12 = arith.constant 0 : index
    %15 = vector.load %arg4[%c0_10, %c1, %c0_11, %c0_12] : memref<8x2x8x512xf32, #tpu.memory_space<vmem>>, vector<8x1x8x512xf32>
    %16 = vector.shape_cast %15 : vector<8x1x8x512xf32> to vector<8x8x512xf32>
    %17 = vector.shape_cast %14 : vector<8x8x512xf32> to vector<8x1x8x512xf32>
    tpu.vector_store %arg4[%c0_10, %c1, %c0_11, %c0_12], %17 {strides = array<i32>} : memref<8x2x8x512xf32, #tpu.memory_space<vmem>>, vector<8x1x8x512xf32>,
    return
  }
  func.func @transform_0(%arg0: i32) -> (i32, i32) {
    %c0_i32 = arith.constant 0 : i32
    %c0_i32_0 = arith.constant 0 : i32
    return %arg0, %c0_i32 : i32, i32
  }
  func.func @transform_1(%arg0: i32) -> (i32, i32) {
    %c0_i32 = arith.constant 0 : i32
    %c0_i32_0 = arith.constant 0 : i32
    %c0_i32_1 = arith.constant 0 : i32
    return %c0_i32, %c0_i32_0 : i32, i32
  }
  func.func @transform_2(%arg0: i32) -> (i32, i32) {
    %c0_i32 = arith.constant 0 : i32
    %c0_i32_0 = arith.constant 0 : i32
    %c0_i32_1 = arith.constant 0 : i32
    return %c0_i32, %c0_i32_0 : i32, i32
  }
  func.func @transform_3(%arg0: i32) -> (i32, i32, i32, i32) {
    %c0_i32 = arith.constant 0 : i32
    %c0_i32_0 = arith.constant 0 : i32
    %c0_i32_1 = arith.constant 0 : i32
    %c0_i32_2 = arith.constant 0 : i32
    return %arg0, %c0_i32, %c0_i32_0, %c0_i32_1 : i32, i32, i32, i32
  }
}

module attributes {stable_mosaic.version = 11 : i64} {
  func.func @_convt_kernel(%arg0: i32, %arg1: memref<256x256xf32, #tpu.memory_space<vmem>>, %arg2: memref<256x512xf32, #tpu.memory_space<vmem>>, %arg3: memref<1x512xf32, #tpu.memory_space<vmem>>, %arg4: memref<16x2x16x256xf32, #tpu.memory_space<vmem>>) attributes {dimension_semantics = [#tpu.dimension_semantics<parallel>], iteration_bounds = array<i64: 2>, scalar_prefetch = 0 : i64, scratch_operands = 0 : i64, tpu.core_type = #tpu.core_type<tc>, window_params = [{transform_indices = @transform_0, window_bounds = array<i64: 256, 256>}, {pipeline_mode = #tpu.pipeline_mode<synchronous>, transform_indices = @transform_1, window_bounds = array<i64: 256, 512>}, {pipeline_mode = #tpu.pipeline_mode<synchronous>, transform_indices = @transform_2, window_bounds = array<i64: 1, 512>}, {transform_indices = @transform_3, window_bounds = array<i64: 16, 2, 16, 256>}]} {
    %c0 = arith.constant 0 : index
    %c0_0 = arith.constant 0 : index
    %0 = vector.load %arg1[%c0, %c0_0] : memref<256x256xf32, #tpu.memory_space<vmem>>, vector<256x256xf32>
    %c0_1 = arith.constant 0 : index
    %c0_2 = arith.constant 0 : index
    %1 = vector.load %arg2[%c0_1, %c0_2] : memref<256x512xf32, #tpu.memory_space<vmem>>, vector<256x512xf32>
    %cst = arith.constant dense<0.000000e+00> : vector<256x512xf32>
    %2 = tpu.matmul %0, %1, %cst {dimension_numbers = #tpu.dot_dimension_numbers<[1], [0], [0], [1], [0, 0, 1, 1], [], []>} : vector<256x256xf32>, vector<256x512xf32>, vector<256x512xf32> -> vector<256x512xf32>
    %c0_3 = arith.constant 0 : index
    %c0_4 = arith.constant 0 : index
    %3 = vector.load %arg3[%c0_3, %c0_4] : memref<1x512xf32, #tpu.memory_space<vmem>>, vector<1x512xf32>
    %4 = vector.broadcast %3 : vector<1x512xf32> to vector<256x512xf32>
    %5 = arith.addf %2, %4 : vector<256x512xf32>
    %cst_5 = arith.constant 0.000000e+00 : f32
    %6 = vector.broadcast %cst_5 : f32 to vector<256x512xf32>
    %7 = arith.maximumf %5, %6 : vector<256x512xf32>
    %8 = vector.extract_strided_slice %7 {offsets = [0, 0], sizes = [256, 256], strides = [1, 1]} : vector<256x512xf32> to vector<256x256xf32>
    %9 = vector.shape_cast %8 : vector<256x256xf32> to vector<16x16x256xf32>
    %c0_6 = arith.constant 0 : index
    %c0_7 = arith.constant 0 : index
    %c0_8 = arith.constant 0 : index
    %c0_9 = arith.constant 0 : index
    %10 = vector.load %arg4[%c0_6, %c0_7, %c0_8, %c0_9] : memref<16x2x16x256xf32, #tpu.memory_space<vmem>>, vector<16x1x16x256xf32>
    %11 = vector.shape_cast %10 : vector<16x1x16x256xf32> to vector<16x16x256xf32>
    %12 = vector.shape_cast %9 : vector<16x16x256xf32> to vector<16x1x16x256xf32>
    tpu.vector_store %arg4[%c0_6, %c0_7, %c0_8, %c0_9], %12 {strides = array<i32>} : memref<16x2x16x256xf32, #tpu.memory_space<vmem>>, vector<16x1x16x256xf32>,
    %13 = vector.extract_strided_slice %7 {offsets = [0, 256], sizes = [256, 256], strides = [1, 1]} : vector<256x512xf32> to vector<256x256xf32>
    %14 = vector.shape_cast %13 : vector<256x256xf32> to vector<16x16x256xf32>
    %c0_10 = arith.constant 0 : index
    %c1 = arith.constant 1 : index
    %c0_11 = arith.constant 0 : index
    %c0_12 = arith.constant 0 : index
    %15 = vector.load %arg4[%c0_10, %c1, %c0_11, %c0_12] : memref<16x2x16x256xf32, #tpu.memory_space<vmem>>, vector<16x1x16x256xf32>
    %16 = vector.shape_cast %15 : vector<16x1x16x256xf32> to vector<16x16x256xf32>
    %17 = vector.shape_cast %14 : vector<16x16x256xf32> to vector<16x1x16x256xf32>
    tpu.vector_store %arg4[%c0_10, %c1, %c0_11, %c0_12], %17 {strides = array<i32>} : memref<16x2x16x256xf32, #tpu.memory_space<vmem>>, vector<16x1x16x256xf32>,
    return
  }
  func.func @transform_0(%arg0: i32) -> (i32, i32) {
    %c0_i32 = arith.constant 0 : i32
    %c0_i32_0 = arith.constant 0 : i32
    return %arg0, %c0_i32 : i32, i32
  }
  func.func @transform_1(%arg0: i32) -> (i32, i32) {
    %c0_i32 = arith.constant 0 : i32
    %c0_i32_0 = arith.constant 0 : i32
    %c0_i32_1 = arith.constant 0 : i32
    return %c0_i32, %c0_i32_0 : i32, i32
  }
  func.func @transform_2(%arg0: i32) -> (i32, i32) {
    %c0_i32 = arith.constant 0 : i32
    %c0_i32_0 = arith.constant 0 : i32
    %c0_i32_1 = arith.constant 0 : i32
    return %c0_i32, %c0_i32_0 : i32, i32
  }
  func.func @transform_3(%arg0: i32) -> (i32, i32, i32, i32) {
    %c0_i32 = arith.constant 0 : i32
    %c0_i32_0 = arith.constant 0 : i32
    %c0_i32_1 = arith.constant 0 : i32
    %c0_i32_2 = arith.constant 0 : i32
    return %arg0, %c0_i32, %c0_i32_0, %c0_i32_1 : i32, i32, i32, i32
  }
}

module attributes {stable_mosaic.version = 11 : i64} {
  func.func @_convt_kernel(%arg0: i32, %arg1: memref<1024x128xf32, #tpu.memory_space<vmem>>, %arg2: memref<128x256xf32, #tpu.memory_space<vmem>>, %arg3: memref<1x256xf32, #tpu.memory_space<vmem>>, %arg4: memref<32x2x32x128xf32, #tpu.memory_space<vmem>>) attributes {dimension_semantics = [#tpu.dimension_semantics<parallel>], iteration_bounds = array<i64: 2>, scalar_prefetch = 0 : i64, scratch_operands = 0 : i64, tpu.core_type = #tpu.core_type<tc>, window_params = [{transform_indices = @transform_0, window_bounds = array<i64: 1024, 128>}, {pipeline_mode = #tpu.pipeline_mode<synchronous>, transform_indices = @transform_1, window_bounds = array<i64: 128, 256>}, {pipeline_mode = #tpu.pipeline_mode<synchronous>, transform_indices = @transform_2, window_bounds = array<i64: 1, 256>}, {transform_indices = @transform_3, window_bounds = array<i64: 32, 2, 32, 128>}]} {
    %c0 = arith.constant 0 : index
    %c0_0 = arith.constant 0 : index
    %0 = vector.load %arg1[%c0, %c0_0] : memref<1024x128xf32, #tpu.memory_space<vmem>>, vector<1024x128xf32>
    %c0_1 = arith.constant 0 : index
    %c0_2 = arith.constant 0 : index
    %1 = vector.load %arg2[%c0_1, %c0_2] : memref<128x256xf32, #tpu.memory_space<vmem>>, vector<128x256xf32>
    %cst = arith.constant dense<0.000000e+00> : vector<1024x256xf32>
    %2 = tpu.matmul %0, %1, %cst {dimension_numbers = #tpu.dot_dimension_numbers<[1], [0], [0], [1], [0, 0, 1, 1], [], []>} : vector<1024x128xf32>, vector<128x256xf32>, vector<1024x256xf32> -> vector<1024x256xf32>
    %c0_3 = arith.constant 0 : index
    %c0_4 = arith.constant 0 : index
    %3 = vector.load %arg3[%c0_3, %c0_4] : memref<1x256xf32, #tpu.memory_space<vmem>>, vector<1x256xf32>
    %4 = vector.broadcast %3 : vector<1x256xf32> to vector<1024x256xf32>
    %5 = arith.addf %2, %4 : vector<1024x256xf32>
    %cst_5 = arith.constant 0.000000e+00 : f32
    %6 = vector.broadcast %cst_5 : f32 to vector<1024x256xf32>
    %7 = arith.maximumf %5, %6 : vector<1024x256xf32>
    %8 = vector.extract_strided_slice %7 {offsets = [0, 0], sizes = [1024, 128], strides = [1, 1]} : vector<1024x256xf32> to vector<1024x128xf32>
    %9 = vector.shape_cast %8 : vector<1024x128xf32> to vector<32x32x128xf32>
    %c0_6 = arith.constant 0 : index
    %c0_7 = arith.constant 0 : index
    %c0_8 = arith.constant 0 : index
    %c0_9 = arith.constant 0 : index
    %10 = vector.load %arg4[%c0_6, %c0_7, %c0_8, %c0_9] : memref<32x2x32x128xf32, #tpu.memory_space<vmem>>, vector<32x1x32x128xf32>
    %11 = vector.shape_cast %10 : vector<32x1x32x128xf32> to vector<32x32x128xf32>
    %12 = vector.shape_cast %9 : vector<32x32x128xf32> to vector<32x1x32x128xf32>
    tpu.vector_store %arg4[%c0_6, %c0_7, %c0_8, %c0_9], %12 {strides = array<i32>} : memref<32x2x32x128xf32, #tpu.memory_space<vmem>>, vector<32x1x32x128xf32>,
    %13 = vector.extract_strided_slice %7 {offsets = [0, 128], sizes = [1024, 128], strides = [1, 1]} : vector<1024x256xf32> to vector<1024x128xf32>
    %14 = vector.shape_cast %13 : vector<1024x128xf32> to vector<32x32x128xf32>
    %c0_10 = arith.constant 0 : index
    %c1 = arith.constant 1 : index
    %c0_11 = arith.constant 0 : index
    %c0_12 = arith.constant 0 : index
    %15 = vector.load %arg4[%c0_10, %c1, %c0_11, %c0_12] : memref<32x2x32x128xf32, #tpu.memory_space<vmem>>, vector<32x1x32x128xf32>
    %16 = vector.shape_cast %15 : vector<32x1x32x128xf32> to vector<32x32x128xf32>
    %17 = vector.shape_cast %14 : vector<32x32x128xf32> to vector<32x1x32x128xf32>
    tpu.vector_store %arg4[%c0_10, %c1, %c0_11, %c0_12], %17 {strides = array<i32>} : memref<32x2x32x128xf32, #tpu.memory_space<vmem>>, vector<32x1x32x128xf32>,
    return
  }
  func.func @transform_0(%arg0: i32) -> (i32, i32) {
    %c0_i32 = arith.constant 0 : i32
    %c0_i32_0 = arith.constant 0 : i32
    return %arg0, %c0_i32 : i32, i32
  }
  func.func @transform_1(%arg0: i32) -> (i32, i32) {
    %c0_i32 = arith.constant 0 : i32
    %c0_i32_0 = arith.constant 0 : i32
    %c0_i32_1 = arith.constant 0 : i32
    return %c0_i32, %c0_i32_0 : i32, i32
  }
  func.func @transform_2(%arg0: i32) -> (i32, i32) {
    %c0_i32 = arith.constant 0 : i32
    %c0_i32_0 = arith.constant 0 : i32
    %c0_i32_1 = arith.constant 0 : i32
    return %c0_i32, %c0_i32_0 : i32, i32
  }
  func.func @transform_3(%arg0: i32) -> (i32, i32, i32, i32) {
    %c0_i32 = arith.constant 0 : i32
    %c0_i32_0 = arith.constant 0 : i32
    %c0_i32_1 = arith.constant 0 : i32
    %c0_i32_2 = arith.constant 0 : i32
    return %arg0, %c0_i32, %c0_i32_0, %c0_i32_1 : i32, i32, i32, i32
  }
}

module attributes {stable_mosaic.version = 11 : i64} {
  func.func @_tail_kernel(%arg0: i32, %arg1: memref<1x64x4096xf32, #tpu.memory_space<vmem>>, %arg2: memref<1024x48xf32, #tpu.memory_space<vmem>>, %arg3: memref<1x48xf32, #tpu.memory_space<vmem>>, %arg4: memref<72x64xf32, #tpu.memory_space<vmem>>, %arg5: memref<4x48x384xf32, #tpu.memory_space<vmem>>, %arg6: memref<1x3x72x72xf32, #tpu.memory_space<vmem>>) attributes {dimension_semantics = [#tpu.dimension_semantics<parallel>], iteration_bounds = array<i64: 2>, scalar_prefetch = 0 : i64, scratch_operands = 0 : i64, tpu.core_type = #tpu.core_type<tc>, window_params = [{transform_indices = @transform_0, window_bounds = array<i64: 1, 64, 4096>}, {pipeline_mode = #tpu.pipeline_mode<synchronous>, transform_indices = @transform_1, window_bounds = array<i64: 1024, 48>}, {pipeline_mode = #tpu.pipeline_mode<synchronous>, transform_indices = @transform_2, window_bounds = array<i64: 1, 48>}, {pipeline_mode = #tpu.pipeline_mode<synchronous>, transform_indices = @transform_3, window_bounds = array<i64: 72, 64>}, {pipeline_mode = #tpu.pipeline_mode<synchronous>, transform_indices = @transform_4, window_bounds = array<i64: 4, 48, 384>}, {transform_indices = @transform_5, window_bounds = array<i64: 1, 3, 72, 72>}]} {
    %c0 = arith.constant 0 : index
    %c0_0 = arith.constant 0 : index
    %0 = vector.load %arg2[%c0, %c0_0] : memref<1024x48xf32, #tpu.memory_space<vmem>>, vector<1024x48xf32>
    %c0_1 = arith.constant 0 : index
    %c0_2 = arith.constant 0 : index
    %1 = vector.load %arg3[%c0_1, %c0_2] : memref<1x48xf32, #tpu.memory_space<vmem>>, vector<1x48xf32>
    %c0_3 = arith.constant 0 : index
    %c0_4 = arith.constant 0 : index
    %2 = vector.load %arg4[%c0_3, %c0_4] : memref<72x64xf32, #tpu.memory_space<vmem>>, vector<72x64xf32>
    %c0_5 = arith.constant 0 : index
    %c0_6 = arith.constant 0 : index
    %c0_7 = arith.constant 0 : index
    %3 = vector.load %arg1[%c0_5, %c0_6, %c0_7] : memref<1x64x4096xf32, #tpu.memory_space<vmem>>, vector<1x64x1024xf32>
    %4 = vector.shape_cast %3 : vector<1x64x1024xf32> to vector<64x1024xf32>
    %cst = arith.constant dense<0.000000e+00> : vector<64x48xf32>
    %5 = tpu.matmul %4, %0, %cst {dimension_numbers = #tpu.dot_dimension_numbers<[1], [0], [0], [1], [0, 0, 1, 1], [], []>} : vector<64x1024xf32>, vector<1024x48xf32>, vector<64x48xf32> -> vector<64x48xf32>
    %6 = vector.broadcast %1 : vector<1x48xf32> to vector<64x48xf32>
    %7 = arith.addf %5, %6 : vector<64x48xf32>
    %8 = arith.negf %7 : vector<64x48xf32>
    %9 = math.exp %8 : vector<64x48xf32>
    %cst_8 = arith.constant 1.000000e+00 : f32
    %10 = vector.broadcast %cst_8 : f32 to vector<64x48xf32>
    %11 = arith.addf %10, %9 : vector<64x48xf32>
    %12 = arith.divf %10, %11 : vector<64x48xf32>
    %cst_9 = arith.constant dense<0.000000e+00> : vector<72x48xf32>
    %13 = tpu.matmul %2, %12, %cst_9 {dimension_numbers = #tpu.dot_dimension_numbers<[1], [0], [0], [1], [0, 0, 1, 1], [], []>} : vector<72x64xf32>, vector<64x48xf32>, vector<72x48xf32> -> vector<72x48xf32>
    %c0_10 = arith.constant 0 : index
    %c0_11 = arith.constant 0 : index
    %c0_12 = arith.constant 0 : index
    %14 = vector.load %arg5[%c0_10, %c0_11, %c0_12] : memref<4x48x384xf32, #tpu.memory_space<vmem>>, vector<1x48x384xf32>
    %15 = vector.shape_cast %14 : vector<1x48x384xf32> to vector<48x384xf32>
    %cst_13 = arith.constant dense<0.000000e+00> : vector<72x384xf32>
    %16 = tpu.matmul %13, %15, %cst_13 {dimension_numbers = #tpu.dot_dimension_numbers<[1], [0], [0], [1], [0, 0, 1, 1], [], []>} : vector<72x48xf32>, vector<48x384xf32>, vector<72x384xf32> -> vector<72x384xf32>
    %c0_14 = arith.constant 0 : index
    %c0_15 = arith.constant 0 : index
    %c1024 = arith.constant 1024 : index
    %17 = vector.load %arg1[%c0_14, %c0_15, %c1024] : memref<1x64x4096xf32, #tpu.memory_space<vmem>>, vector<1x64x1024xf32>
    %18 = vector.shape_cast %17 : vector<1x64x1024xf32> to vector<64x1024xf32>
    %cst_16 = arith.constant dense<0.000000e+00> : vector<64x48xf32>
    %19 = tpu.matmul %18, %0, %cst_16 {dimension_numbers = #tpu.dot_dimension_numbers<[1], [0], [0], [1], [0, 0, 1, 1], [], []>} : vector<64x1024xf32>, vector<1024x48xf32>, vector<64x48xf32> -> vector<64x48xf32>
    %20 = vector.broadcast %1 : vector<1x48xf32> to vector<64x48xf32>
    %21 = arith.addf %19, %20 : vector<64x48xf32>
    %22 = arith.negf %21 : vector<64x48xf32>
    %23 = math.exp %22 : vector<64x48xf32>
    %cst_17 = arith.constant 1.000000e+00 : f32
    %24 = vector.broadcast %cst_17 : f32 to vector<64x48xf32>
    %25 = arith.addf %24, %23 : vector<64x48xf32>
    %26 = arith.divf %24, %25 : vector<64x48xf32>
    %cst_18 = arith.constant dense<0.000000e+00> : vector<72x48xf32>
    %27 = tpu.matmul %2, %26, %cst_18 {dimension_numbers = #tpu.dot_dimension_numbers<[1], [0], [0], [1], [0, 0, 1, 1], [], []>} : vector<72x64xf32>, vector<64x48xf32>, vector<72x48xf32> -> vector<72x48xf32>
    %c1 = arith.constant 1 : index
    %c0_19 = arith.constant 0 : index
    %c0_20 = arith.constant 0 : index
    %28 = vector.load %arg5[%c1, %c0_19, %c0_20] : memref<4x48x384xf32, #tpu.memory_space<vmem>>, vector<1x48x384xf32>
    %29 = vector.shape_cast %28 : vector<1x48x384xf32> to vector<48x384xf32>
    %cst_21 = arith.constant dense<0.000000e+00> : vector<72x384xf32>
    %30 = tpu.matmul %27, %29, %cst_21 {dimension_numbers = #tpu.dot_dimension_numbers<[1], [0], [0], [1], [0, 0, 1, 1], [], []>} : vector<72x48xf32>, vector<48x384xf32>, vector<72x384xf32> -> vector<72x384xf32>
    %31 = arith.addf %16, %30 : vector<72x384xf32>
    %c0_22 = arith.constant 0 : index
    %c0_23 = arith.constant 0 : index
    %c2048 = arith.constant 2048 : index
    %32 = vector.load %arg1[%c0_22, %c0_23, %c2048] : memref<1x64x4096xf32, #tpu.memory_space<vmem>>, vector<1x64x1024xf32>
    %33 = vector.shape_cast %32 : vector<1x64x1024xf32> to vector<64x1024xf32>
    %cst_24 = arith.constant dense<0.000000e+00> : vector<64x48xf32>
    %34 = tpu.matmul %33, %0, %cst_24 {dimension_numbers = #tpu.dot_dimension_numbers<[1], [0], [0], [1], [0, 0, 1, 1], [], []>} : vector<64x1024xf32>, vector<1024x48xf32>, vector<64x48xf32> -> vector<64x48xf32>
    %35 = vector.broadcast %1 : vector<1x48xf32> to vector<64x48xf32>
    %36 = arith.addf %34, %35 : vector<64x48xf32>
    %37 = arith.negf %36 : vector<64x48xf32>
    %38 = math.exp %37 : vector<64x48xf32>
    %cst_25 = arith.constant 1.000000e+00 : f32
    %39 = vector.broadcast %cst_25 : f32 to vector<64x48xf32>
    %40 = arith.addf %39, %38 : vector<64x48xf32>
    %41 = arith.divf %39, %40 : vector<64x48xf32>
    %cst_26 = arith.constant dense<0.000000e+00> : vector<72x48xf32>
    %42 = tpu.matmul %2, %41, %cst_26 {dimension_numbers = #tpu.dot_dimension_numbers<[1], [0], [0], [1], [0, 0, 1, 1], [], []>} : vector<72x64xf32>, vector<64x48xf32>, vector<72x48xf32> -> vector<72x48xf32>
    %c2 = arith.constant 2 : index
    %c0_27 = arith.constant 0 : index
    %c0_28 = arith.constant 0 : index
    %43 = vector.load %arg5[%c2, %c0_27, %c0_28] : memref<4x48x384xf32, #tpu.memory_space<vmem>>, vector<1x48x384xf32>
    %44 = vector.shape_cast %43 : vector<1x48x384xf32> to vector<48x384xf32>
    %cst_29 = arith.constant dense<0.000000e+00> : vector<72x384xf32>
    %45 = tpu.matmul %42, %44, %cst_29 {dimension_numbers = #tpu.dot_dimension_numbers<[1], [0], [0], [1], [0, 0, 1, 1], [], []>} : vector<72x48xf32>, vector<48x384xf32>, vector<72x384xf32> -> vector<72x384xf32>
    %46 = arith.addf %31, %45 : vector<72x384xf32>
    %c0_30 = arith.constant 0 : index
    %c0_31 = arith.constant 0 : index
    %c3072 = arith.constant 3072 : index
    %47 = vector.load %arg1[%c0_30, %c0_31, %c3072] : memref<1x64x4096xf32, #tpu.memory_space<vmem>>, vector<1x64x1024xf32>
    %48 = vector.shape_cast %47 : vector<1x64x1024xf32> to vector<64x1024xf32>
    %cst_32 = arith.constant dense<0.000000e+00> : vector<64x48xf32>
    %49 = tpu.matmul %48, %0, %cst_32 {dimension_numbers = #tpu.dot_dimension_numbers<[1], [0], [0], [1], [0, 0, 1, 1], [], []>} : vector<64x1024xf32>, vector<1024x48xf32>, vector<64x48xf32> -> vector<64x48xf32>
    %50 = vector.broadcast %1 : vector<1x48xf32> to vector<64x48xf32>
    %51 = arith.addf %49, %50 : vector<64x48xf32>
    %52 = arith.negf %51 : vector<64x48xf32>
    %53 = math.exp %52 : vector<64x48xf32>
    %cst_33 = arith.constant 1.000000e+00 : f32
    %54 = vector.broadcast %cst_33 : f32 to vector<64x48xf32>
    %55 = arith.addf %54, %53 : vector<64x48xf32>
    %56 = arith.divf %54, %55 : vector<64x48xf32>
    %cst_34 = arith.constant dense<0.000000e+00> : vector<72x48xf32>
    %57 = tpu.matmul %2, %56, %cst_34 {dimension_numbers = #tpu.dot_dimension_numbers<[1], [0], [0], [1], [0, 0, 1, 1], [], []>} : vector<72x64xf32>, vector<64x48xf32>, vector<72x48xf32> -> vector<72x48xf32>
    %c3 = arith.constant 3 : index
    %c0_35 = arith.constant 0 : index
    %c0_36 = arith.constant 0 : index
    %58 = vector.load %arg5[%c3, %c0_35, %c0_36] : memref<4x48x384xf32, #tpu.memory_space<vmem>>, vector<1x48x384xf32>
    %59 = vector.shape_cast %58 : vector<1x48x384xf32> to vector<48x384xf32>
    %cst_37 = arith.constant dense<0.000000e+00> : vector<72x384xf32>
    %60 = tpu.matmul %57, %59, %cst_37 {dimension_numbers = #tpu.dot_dimension_numbers<[1], [0], [0], [1], [0, 0, 1, 1], [], []>} : vector<72x48xf32>, vector<48x384xf32>, vector<72x384xf32> -> vector<72x384xf32>
    %61 = arith.addf %46, %60 : vector<72x384xf32>
    %62 = vector.extract_strided_slice %61 {offsets = [0, 0], sizes = [72, 72], strides = [1, 1]} : vector<72x384xf32> to vector<72x72xf32>
    %c0_38 = arith.constant 0 : index
    %c0_39 = arith.constant 0 : index
    %c0_40 = arith.constant 0 : index
    %c0_41 = arith.constant 0 : index
    %63 = vector.load %arg6[%c0_38, %c0_39, %c0_40, %c0_41] : memref<1x3x72x72xf32, #tpu.memory_space<vmem>>, vector<1x1x72x72xf32>
    %64 = vector.shape_cast %63 : vector<1x1x72x72xf32> to vector<72x72xf32>
    %65 = vector.shape_cast %62 : vector<72x72xf32> to vector<1x1x72x72xf32>
    tpu.vector_store %arg6[%c0_38, %c0_39, %c0_40, %c0_41], %65 {strides = array<i32>} : memref<1x3x72x72xf32, #tpu.memory_space<vmem>>, vector<1x1x72x72xf32>,
    %66 = vector.extract_strided_slice %61 {offsets = [0, 128], sizes = [72, 72], strides = [1, 1]} : vector<72x384xf32> to vector<72x72xf32>
    %c0_42 = arith.constant 0 : index
    %c1_43 = arith.constant 1 : index
    %c0_44 = arith.constant 0 : index
    %c0_45 = arith.constant 0 : index
    %67 = vector.load %arg6[%c0_42, %c1_43, %c0_44, %c0_45] : memref<1x3x72x72xf32, #tpu.memory_space<vmem>>, vector<1x1x72x72xf32>
    %68 = vector.shape_cast %67 : vector<1x1x72x72xf32> to vector<72x72xf32>
    %69 = vector.shape_cast %66 : vector<72x72xf32> to vector<1x1x72x72xf32>
    tpu.vector_store %arg6[%c0_42, %c1_43, %c0_44, %c0_45], %69 {strides = array<i32>} : memref<1x3x72x72xf32, #tpu.memory_space<vmem>>, vector<1x1x72x72xf32>,
    %70 = vector.extract_strided_slice %61 {offsets = [0, 256], sizes = [72, 72], strides = [1, 1]} : vector<72x384xf32> to vector<72x72xf32>
    %c0_46 = arith.constant 0 : index
    %c2_47 = arith.constant 2 : index
    %c0_48 = arith.constant 0 : index
    %c0_49 = arith.constant 0 : index
    %71 = vector.load %arg6[%c0_46, %c2_47, %c0_48, %c0_49] : memref<1x3x72x72xf32, #tpu.memory_space<vmem>>, vector<1x1x72x72xf32>
    %72 = vector.shape_cast %71 : vector<1x1x72x72xf32> to vector<72x72xf32>
    %73 = vector.shape_cast %70 : vector<72x72xf32> to vector<1x1x72x72xf32>
    tpu.vector_store %arg6[%c0_46, %c2_47, %c0_48, %c0_49], %73 {strides = array<i32>} : memref<1x3x72x72xf32, #tpu.memory_space<vmem>>, vector<1x1x72x72xf32>,
    return
  }
  func.func @transform_0(%arg0: i32) -> (i32, i32, i32) {
    %c0_i32 = arith.constant 0 : i32
    %c0_i32_0 = arith.constant 0 : i32
    %c0_i32_1 = arith.constant 0 : i32
    return %arg0, %c0_i32, %c0_i32_0 : i32, i32, i32
  }
  func.func @transform_1(%arg0: i32) -> (i32, i32) {
    %c0_i32 = arith.constant 0 : i32
    %c0_i32_0 = arith.constant 0 : i32
    %c0_i32_1 = arith.constant 0 : i32
    return %c0_i32, %c0_i32_0 : i32, i32
  }
  func.func @transform_2(%arg0: i32) -> (i32, i32) {
    %c0_i32 = arith.constant 0 : i32
    %c0_i32_0 = arith.constant 0 : i32
    %c0_i32_1 = arith.constant 0 : i32
    return %c0_i32, %c0_i32_0 : i32, i32
  }
  func.func @transform_3(%arg0: i32) -> (i32, i32) {
    %c0_i32 = arith.constant 0 : i32
    %c0_i32_0 = arith.constant 0 : i32
    %c0_i32_1 = arith.constant 0 : i32
    return %c0_i32, %c0_i32_0 : i32, i32
  }
  func.func @transform_4(%arg0: i32) -> (i32, i32, i32) {
    %c0_i32 = arith.constant 0 : i32
    %c0_i32_0 = arith.constant 0 : i32
    %c0_i32_1 = arith.constant 0 : i32
    %c0_i32_2 = arith.constant 0 : i32
    return %c0_i32, %c0_i32_0, %c0_i32_1 : i32, i32, i32
  }
  func.func @transform_5(%arg0: i32) -> (i32, i32, i32, i32) {
    %c0_i32 = arith.constant 0 : i32
    %c0_i32_0 = arith.constant 0 : i32
    %c0_i32_1 = arith.constant 0 : i32
    %c0_i32_2 = arith.constant 0 : i32
    return %arg0, %c0_i32, %c0_i32_0, %c0_i32_1 : i32, i32, i32, i32
  }
}

</mosaic_0001>

<bundles_post_ra>
// kernel: decoder_forward.5
= control target key start
LH: loop header
LB: loop body
LE: loop exit
PB: predicated region body
PF: predicated region fallthrough
CT: control target
= control target key end

     0   :  { %8 = vsyncpa [#allocation3], 0  ;;  %s1777_s0 = inlined_call_operand.hbm [shape: f32[32,8], index: 0, kind: input, shape index: {}]   ;;  %s1778_s1 = inlined_call_operand.hbm [shape: f32[8,2048], index: 1, kind: input, shape index: {}]   ;;  %s1779_s2 = inlined_call_operand.hbm [shape: f32[1,2048], index: 2, kind: input, shape index: {}]   ;;  %s1780_s3 = inlined_call_operand.vmem [shape: f32[8,2,4,1024], index: 3, kind: output, shape index: {}]  }
   0x1   :  { %10 = vsyncpa [#allocation3 + $0x1], 0 }
   0x2   :  { %11 = vsyncpa [#allocation5], 0  ;;  %s1479_s12 = smov 0   ;;  %s1481_s13 = smov 0  }
   0x3   :  { %s1483_s14 = smov 0   ;;  %s1485_s15 = smov 0  }
   0x4 LB: > { %s1200_s16 = sadd.s32 4294967295, %s1451_s15   ;;  %s1499_s17 = sadd.s32 1, %s1451_s15   ;;  %s1451_s15 = sphi %s1485_s15, %s1799_s15   ;;  %s1447_s14 = sphi %s1483_s14, %s1798_s14   ;;  %s1443_s13 = sphi %s1481_s13, %s1797_s13   ;;  %s1439_s12 = sphi %s1479_s12, %s1796_s12  }
   0x5   : > { %s21_s18 = ssub.s32 %s1451_s15, %s1499_s17  ;;  %s24_s19 = sadd.s32 1, %s1447_s14 }
   0x6   : > { %p22_p0 = scmp.eq.s32.totalorder %s21_s18, 0  ;;  %p31_p1 = scmp.ne.s32.totalorder %s1447_s14, %s1443_s13 }
   0x7   : > { %p32_p2 = scmp.eq.s32.totalorder %s1451_s15, 0  ;;  %p37_p3 = scmp.ne.s32.totalorder %s1443_s13, %s1439_s12 }
   0x8   : > { %s1509_s20 = scalar_select %p22_p0, %s1447_s14, %s24_s19  }
   0x9   : > { %p1511_p4 = por %p32_p2, %p31_p1  ;;  %p1517_p5 = scmp.eq.s32.totalorder %s1200_s16, 0 }
   0xa   : > { %p1202_p6 = scmp.ge.s32.totalorder %s1451_s15, 1  ;;  %p116_p7 = scmp.lt.s32.totalorder %s1451_s15, 3 }
   0xb   : > { %s1787_s22 = scalar_select %p1517_p5, 1, 0 }
   0xc   : > { %p1525_p8 = por %p1517_p5, %p37_p3  ;;  %p1529_p9 = pnand %p1202_p6, %p116_p7 }
   0xd   : > { %s1453_s25 = smov [#allocation4]   ;;  %p1287_p11 = scmp.lt.s32.totalorder %s1451_s15, 2 }
   0xe   : > { %s1788_s23 = scalar_select %p1525_p8, 1, 0 }
   0xf   : > { %s1789_s24 = scalar_select %p1529_p9, 1, 0 }
  0x10   : > { %s129_s26 = sshll.u32 %s1453_s25, 4  ;;  %p1274_p10 = pneg %p1529_p9  ;;  %s130_s26 = int_to_ptr.vmem [resolvable:$true] %s129_s26 }
  0x11   : > { %s1454_s28 = smov [#allocation6]   ;;  %p1544_p13 = pnand %p1287_p11, %p1511_p4 }
  0x12   : > { %p1538_p12 = pnand %p1274_p10, %p1517_p5  ;;  %s140_s29 = sshll.u32 %s1454_s28, 4  ;;  %s1548_s29 = int_to_ptr.vmem [resolvable:$true] %s140_s29 }
  0x13   : > { %s1791_s30 = scalar_select %p1544_p13, 1, 0 }
  0x14   : > { %s151_s4 = sand.u32 1, %s1447_s14   ;;  %s1327_s7 = scalar_lea.hbm %s1778_s1, 2048 }
  0x15   : > { %p1328_p0 = scmp.ne.s32.totalorder %s1778_s1, %s1327_s7  ;;  %p1329_p1 = pneg %p1538_p12 }
  0x16   : > { %p1334_p4 = scmp.lt.u32.totalorder %s1327_s7, %s1778_s1 }
  0x17   : > { %p1330_p2 = pnand %p1329_p1, %p1328_p0 }
  0x19   : > { %p1331_p3 = pneg %p1330_p2 }
  0x1b   : > { %p1336_p6 = pnand %p1334_p4, %p1331_p3 }
  0x1d   : > { %1339 = shalt.err (!%p1336_p6)
}
  0x1e   : > { %s1340_s12 = scalar_lea.vmem %s130_s26, 2048  ;;  %p1348_p5 = scmp.lt.s32.totalorder %s130_s26, %s130_s26 }
  0x1f   : > { %p1341_p7 = scmp.ne.s32.totalorder %s130_s26, %s1340_s12  ;;  %p1349_p8 = scmp.lt.s32.totalorder %s1340_s12, %s1340_s12 }
  0x21   : > { %p1343_p10 = pnand %p1341_p7, %p1329_p1  ;;  %p1350_p9 = por %p1349_p8, %p1348_p5 }
  0x23   : > { %p1344_p11 = pneg %p1343_p10 }
  0x25   : > { %p1351_p13 = pnand %p1350_p9, %p1344_p11 }
  0x27   : > { %1354 = shalt.err (!%p1351_p13)
}
  0x28   : > { %1277 = dma.hbm_to_vmem [thread:$0]  (!%p1538_p12), %s1778_s1, 2048, %s130_s26, [#allocation5]  }
  0x29   : > { %s1355_s28 = scalar_lea.hbm %s1779_s2, 256 }
  0x2a   : > { %p1356_p0 = scmp.ne.s32.totalorder %s1779_s2, %s1355_s28  ;;  %p1362_p9 = scmp.lt.u32.totalorder %s1355_s28, %s1779_s2 }
  0x2c   : > { %p1358_p5 = pnand %p1356_p0, %p1329_p1 }
  0x2e   : > { %p1359_p8 = pneg %p1358_p5 }
  0x30   : > { %p1364_p13 = pnand %p1362_p9, %p1359_p8 }
  0x32   : > { %1367 = shalt.err (!%p1364_p13)
}
  0x33   : > { %s1368_s26 = scalar_lea.vmem %s1548_s29, 256  ;;  %p1376_p6 = scmp.lt.s32.totalorder %s1548_s29, %s1548_s29 }
  0x34   : > { %p1369_p2 = scmp.ne.s32.totalorder %s1548_s29, %s1368_s26  ;;  %p1377_p7 = scmp.lt.s32.totalorder %s1368_s26, %s1368_s26 }
  0x36   : > { %p1371_p3 = pnand %p1369_p2, %p1329_p1  ;;  %p1378_p10 = por %p1377_p7, %p1376_p6 }
  0x38   : > { %p1372_p4 = pneg %p1371_p3 }
  0x3a   : > { %p1379_p11 = pnand %p1378_p10, %p1372_p4 }
  0x3c   : > { %1382 = shalt.err (!%p1379_p11)
}
  0x3d   : > { %1280 = dma.hbm_to_vmem [thread:$0]  (!%p1538_p12), %s1779_s2, 256, %s1548_s29, [#allocation5]  }
  0x3e   : > { %s1206_s11 = sshll.u32 %s151_s4, 4  ;;  %s1262_s12 = sshll.u32 %s1451_s15, 8 }
  0x3f   : > { %s1604_s21 = scalar_lea.hbm %s1777_s0, %s1262_s12  ;;  %s155_s27 = scalar_lea.vmem [#allocation2], %s1206_s11 }
  0x40   : > { %s162_s25 = sshll.u32 %s155_s27, 4  ;;  %s1610_s28 = scalar_lea.sflag [#allocation3], %s151_s4  ;;  %s1606_s25 = int_to_ptr.vmem [resolvable:$true] %s162_s25 }
  0x41   : > { %s1383_s29 = scalar_lea.hbm %s1604_s21, 256  ;;  %p1792_p1 = scmp.ne.s32.totalorder %s1791_s30, 0 }
  0x42   : > { %p1384_p12 = scmp.ne.s32.totalorder %s1604_s21, %s1383_s29  ;;  %s1388_s7 = scalar_lea.hbm %s1777_s0, 512 }
  0x43   : > { %p1385_p0 = pneg %p1792_p1  ;;  %p1389_p9 = scmp.lt.u32.totalorder %s1604_s21, %s1777_s0 }
  0x44   : > { %p1390_p13 = scmp.lt.u32.totalorder %s1388_s7, %s1383_s29  ;;  %p1392_p3 = scmp.lt.u32.totalorder %s1383_s29, %s1604_s21 }
  0x45   : > { %p1386_p5 = pnand %p1385_p0, %p1384_p12 }
  0x46   : > { %p1391_p2 = por %p1390_p13, %p1389_p9 }
  0x47   : > { %p1387_p8 = pneg %p1386_p5 }
  0x48   : > { %p1393_p4 = por %p1392_p3, %p1391_p2 }
  0x4a   : > { %p1394_p6 = pnand %p1393_p4, %p1387_p8 }
  0x4c   : > { %1397 = shalt.err (!%p1394_p6)
}
  0x4d   : > { %s1398_s4 = scalar_lea.vmem %s1606_s25, 256  ;;  %s1455_s9 = smov [#allocation2]  }
  0x4e   : > { %p1399_p7 = scmp.ne.s32.totalorder %s1606_s25, %s1398_s4  ;;  %s1403_s10 = sshll.u32 %s1455_s9, 4  ;;  %s1404_s10 = int_to_ptr.vmem [resolvable:$false] %s1403_s10 }
  0x4f   : > { %s1405_s11 = scalar_lea.vmem %s1404_s10, 512  ;;  %p1406_p12 = scmp.lt.s32.totalorder %s1606_s25, %s1404_s10 }
  0x50   : > { %p1401_p10 = pnand %p1399_p7, %p1385_p0  ;;  %p1407_p5 = scmp.lt.s32.totalorder %s1405_s11, %s1398_s4 }
  0x52   : > { %p1402_p11 = pneg %p1401_p10  ;;  %p1408_p9 = por %p1407_p5, %p1406_p12 }
  0x54   : > { %p1409_p13 = pnand %p1408_p9, %p1402_p11 }
  0x56   : > { %1412 = shalt.err (!%p1409_p13)
}
  0x57   : > { %s1456_s12 = smov 128   ;;  %s1457_s18 = smov 8  }
  0x58   : > { %1284 = dma.hbm_to_vmem [thread:$0]  (!%p1792_p1), %s1604_s21, 256, %s1606_s25, %s1610_s28, %s1456_s12, %s1456_s12, %s1457_s18  }
  0x59   : > { %p1793_p0 = scmp.ne.s32.totalorder %s1789_s24, 0 }
  0x5a   : > { %s176_s19 = sand.u32 (!%p1793_p0), 1, %s1443_s13   ;;  %p1794_p8 = scmp.ne.s32.totalorder (!%p1793_p0), %s1788_s23, 0 }
  0x5b   : > { %174 = sbr.rel (%p1793_p0) target bundleno = 356 (0x164), region = 32  ;;  %s1210_s27 = sshll.u32 (!%p1793_p0), %s176_s19, 4 }
  0x5c   : > { %s177_s29 = scalar_lea.sflag (!%p1793_p0), [#allocation3], %s176_s19  ;;  %s180_s5 = scalar_lea.vmem (!%p1793_p0), [#allocation2], %s1210_s27 }
  0x62   : > { %1430 = dma.done.wait (%p1794_p8), %s177_s29, 256  }
  0x63   : > { %1432 = vsyncadd (%p1794_p8), %s177_s29, 4294967040  ;;  %p1795_p2 = scmp.ne.s32.totalorder %s1787_s22, 0 }
  0x65   : > { %1434 = dma.done.wait (%p1795_p2), [#allocation5], 2304  }
  0x66   : > { %1436 = vsyncadd (%p1795_p2), [#allocation5], 4294964992  ;;  %v1458_v0 = vmov 0.0   ;;  %v223_v1 = vld [vmem:[#allocation4 + $0x8] sm:$0xff]  ;;  %v225_v2 = vld [vmem:[#allocation4 + $0x18] sm:$0xff]  ;;  %vm322_vm0 = vcmask 64512   ;;  %v242_v19 = vlaneseq }
  0x67   : > { %393 = vmatprep.mubr.f32.mxu0 %v1458_v0  ;;  %470 = vmatprep.mubr.f32.mxu1 %v1458_v0  ;;  %v222_v3 = vld [vmem:[#allocation4] sm:$0xff]  ;;  %v224_v4 = vld [vmem:[#allocation4 + $0x10] sm:$0xff]  ;;  %v227_v6 = vld [vmem:[#allocation4 + $0x28] sm:$0xff]  ;;  %s1213_s22 = sshll.u32 %s1200_s16, 2 }
  0x68   : > { %329 = vmatprep.subr.mxu0 %v223_v1  ;;  %406 = vmatprep.subr.mxu1 %v225_v2  ;;  %v220_v5 = vld [vmem:[%s180_s5] sm:$0xff]  ;;  %v229_v7 = vld [vmem:[#allocation4 + $0x38] sm:$0xff]  ;;  %v231_v11 = vld [vmem:[#allocation4 + $0x48] sm:$0xff]  ;;  %v1681_v20 = vshrl.u32 %v242_v19, 7  ;;  %p214_p1 = scmp.lt.s32.totalorder %s1213_s22, 7 }
  0x69   : > { %330 = vmatpush1.msra.mxu0 %v222_v3  ;;  %407 = vmatpush1.msra.mxu1 %v224_v4  ;;  %v226_v8 = vld [vmem:[#allocation4 + $0x20] sm:$0xff]  ;;  %v228_v9 = vld [vmem:[#allocation4 + $0x30] sm:$0xff]  ;;  %v221_v10 = vld [vmem:[%s180_s5 + $0x8] sm:$0xff] }
  0x6a   : > { %1216 = vmatmul.mubr.msk.f32.vlgmr.msra.gmra.mrb[0].mxu0 %vm322_vm0, %v220_v5  ;;  %1218 = vmatmul.mubr.msk.f32.vlgmr.msra.gmra.mrb[0].mxu1 %vm322_vm0, %v220_v5  ;;  %v233_v12 = vld [vmem:[#allocation4 + $0x58] sm:$0xff]  ;;  %v230_v13 = vld [vmem:[#allocation4 + $0x40] sm:$0xff]  ;;  %v232_v14 = vld [vmem:[#allocation4 + $0x50] sm:$0xff]  ;;  %v244_v21 = vsub.s32 0, %v1681_v20  ;;  %v252_v22 = vsub.s32 2, %v1681_v20  ;;  %v248_v24 = vsub.s32 1, %v1681_v20 }
  0x6b   : > { %483 = vmatprep.subr.mxu0 %v227_v6  ;;  %560 = vmatprep.subr.mxu1 %v229_v7  ;;  %v235_v15 = vld [vmem:[#allocation4 + $0x68] sm:$0xff]  ;;  %v237_v16 = vld [vmem:[#allocation4 + $0x78] sm:$0xff]  ;;  %v234_v17 = vld [vmem:[#allocation4 + $0x60] sm:$0xff]  ;;  %v256_v25 = vsub.s32 3, %v1681_v20  ;;  %s1801_s22 = smov (!%p214_p1, %s1213_s22), 7  ;;  %v260_v32 = vsub.s32 4, %v1681_v20 }
  0x6c   : > { %484 = vmatpush1.msra.mxu0 %v226_v8  ;;  %561 = vmatpush1.msra.mxu1 %v228_v9  ;;  %v236_v18 = vld [vmem:[#allocation4 + $0x70] sm:$0xff]  ;;  %v238_v23 = vld [vmem:[#allocation6] sm:$0xff]  ;;  %v268_v33 = vsub.s32 6, %v1681_v20  ;;  %v264_v38 = vsub.s32 5, %v1681_v20  ;;  %v272_v39 = vsub.s32 7, %v1681_v20  ;;  %s1263_s15 = sshll.u32 %s1801_s22, 6 }
  0x6d   : > { %399 = vmatprep.mubr.f32.mxu0 %v1458_v0  ;;  %476 = vmatprep.mubr.f32.mxu1 %v1458_v0  ;;  %v245_v26 = vrot.slane %v238_v23, %v244_v21  ;;  %v253_v27 = vrot.slane %v238_v23, %v252_v22  ;;  %v249_v28 = vrot.slane %v238_v23, %v248_v24  ;;  %s1704_s24 = scalar_lea.vmem %s1780_s3, %s1263_s15 }
  0x6e   : > { %1217 = vmatmul.mubr.msk.f32.gmra.mrb[2].mxu0 %vm322_vm0, %v221_v10  ;;  %1219 = vmatmul.mubr.msk.f32.gmra.mrb[2].mxu1 %vm322_vm0, %v221_v10  ;;  %v257_v29 = vrot.slane %v238_v23, %v256_v25  ;;  %v261_v48 = vrot.slane %v238_v23, %v260_v32  ;;  %v269_v49 = vrot.slane %v238_v23, %v268_v33 }
  0x6f   : > { %547 = vmatprep.mubr.f32.mxu0 %v1458_v0  ;;  %624 = vmatprep.mubr.f32.mxu1 %v1458_v0  ;;  %v265_v54 = vrot.slane %v238_v23, %v264_v38  ;;  %v273_v55 = vrot.slane %v238_v23, %v272_v39 }
  0x70   : > { %637 = vmatprep.subr.mxu0 %v231_v11  ;;  %714 = vmatprep.subr.mxu1 %v233_v12 }
  0x72   : > { %1220 = vmatmul.mubr.msk.f32.vlgmr.msra.gmra.mrb[4].mxu0 %vm322_vm0, %v220_v5  ;;  %1222 = vmatmul.mubr.msk.f32.vlgmr.msra.gmra.mrb[4].mxu1 %vm322_vm0, %v220_v5 }
  0x73   : > { %638 = vmatpush1.msra.mxu0 %v230_v13  ;;  %715 = vmatpush1.msra.mxu1 %v232_v14 }
  0x74   : > { %553 = vmatprep.mubr.f32.mxu0 %v1458_v0  ;;  %630 = vmatprep.mubr.f32.mxu1 %v1458_v0 }
  0x75   : > { %791 = vmatprep.subr.mxu0 %v235_v15  ;;  %868 = vmatprep.subr.mxu1 %v237_v16 }
  0x76   : > { %1221 = vmatmul.mubr.msk.f32.gmra.mrb[6].mxu0 %vm322_vm0, %v221_v10  ;;  %1223 = vmatmul.mubr.msk.f32.gmra.mrb[6].mxu1 %vm322_vm0, %v221_v10 }
  0x77   : > { %701 = vmatprep.mubr.f32.mxu0 %v1458_v0  ;;  %778 = vmatprep.mubr.f32.mxu1 %v1458_v0 }
  0x7a   : > { %1224 = vmatmul.mubr.msk.f32.vlgmr.msra.gmra.mrb[8].mxu0 %vm322_vm0, %v220_v5  ;;  %1226 = vmatmul.mubr.msk.f32.vlgmr.msra.gmra.mrb[8].mxu1 %vm322_vm0, %v220_v5 }
  0x7b   : > { %792 = vmatpush1.msra.mxu0 %v234_v17  ;;  %869 = vmatpush1.msra.mxu1 %v236_v18 }
  0x7c   : > { %707 = vmatprep.mubr.f32.mxu0 %v1458_v0  ;;  %784 = vmatprep.mubr.f32.mxu1 %v1458_v0 }
  0x7e   : > { %1225 = vmatmul.mubr.msk.f32.gmra.mrb[10].mxu0 %vm322_vm0, %v221_v10  ;;  %1227 = vmatmul.mubr.msk.f32.gmra.mrb[10].mxu1 %vm322_vm0, %v221_v10 }
  0x7f   : > { %855 = vmatprep.mubr.f32.mxu0 %v1458_v0  ;;  %932 = vmatprep.mubr.f32.mxu1 %v1458_v0 }
  0x82   : > { %1228 = vmatmul.mubr.msk.f32.vlgmr.msra.gmra.mrb[12].mxu0 %vm322_vm0, %v220_v5  ;;  %1230 = vmatmul.mubr.msk.f32.vlgmr.msra.gmra.mrb[12].mxu1 %vm322_vm0, %v220_v5 }
  0x83   : > { %861 = vmatprep.mubr.f32.mxu0 %v1458_v0  ;;  %938 = vmatprep.mubr.f32.mxu1 %v1458_v0  ;;  %v1710_v0 = vld [vmem:[#allocation6 + $0x8] sm:$0xff] }
  0x84   : > { %v277_v11 = vrot.slane %v1710_v0, %v244_v21  ;;  %v285_v12 = vrot.slane %v1710_v0, %v252_v22 }
  0x86   : > { %1229 = vmatmul.mubr.msk.f32.gmra.mrb[14].mxu0 %vm322_vm0, %v221_v10  ;;  %1231 = vmatmul.mubr.msk.f32.gmra.mrb[14].mxu1 %vm322_vm0, %v221_v10 }
 0x13d   : > { %v395_v30 = vpop.f32.mrb[0].mxu0  ;;  %v472_v31 = vpop.f32.mrb[0].mxu1 }
 0x13e   : > { %v396_v34 = vadd.f32 %v395_v30, %v245_v26  ;;  %v473_v35 = vadd.f32 %v472_v31, %v253_v27  ;;  %v397_v36 = vpop.f32.mrb[1].mxu0  ;;  %v474_v37 = vpop.f32.mrb[1].mxu1  ;;  %v281_v30 = vrot.slane %v1710_v0, %v248_v24  ;;  %v289_v31 = vrot.slane %v1710_v0, %v256_v25 }
 0x13f   : > { %v398_v40 = vadd.f32 %v397_v36, %v249_v28  ;;  %v475_v41 = vadd.f32 %v474_v37, %v257_v29 }
 0x140   : > { %v945_v42 = vmax.f32 %v396_v34, 0.0  ;;  %v947_v43 = vmax.f32 %v473_v35, 0.0 }
 0x141   : > { %v946_v44 = vmax.f32 %v398_v40, 0.0  ;;  %v948_v45 = vmax.f32 %v475_v41, 0.0  ;;  %v401_v46 = vpop.f32.mrb[2].mxu0  ;;  %v478_v47 = vpop.f32.mrb[2].mxu1 }
 0x142   : > { %v402_v50 = vadd.f32 %v401_v46, %v245_v26  ;;  %v479_v51 = vadd.f32 %v478_v47, %v253_v27  ;;  %v403_v52 = vpop.f32.mrb[3].mxu0  ;;  %v480_v53 = vpop.f32.mrb[3].mxu1 }
 0x143   : > { %v985_v56 = vcombine.low %v945_v42, %v946_v44  ;;  %v997_v57 = vcombine.high %v945_v42, %v946_v44  ;;  %v986_v58 = vcombine.low %v947_v43, %v948_v45  ;;  %v998_v59 = vcombine.high %v947_v43, %v948_v45 }
 0x144   : > { %v961_v60 = vmax.f32 %v402_v50, 0.0  ;;  %v963_v61 = vmax.f32 %v479_v51, 0.0  ;;  %v404_v62 = vadd.f32 %v403_v52, %v249_v28  ;;  %v481_v63 = vadd.f32 %v480_v53, %v257_v29 }
 0x145   : > { %993 = vst [vmem:[%s1704_s24] sm:$0xff] %v985_v56  ;;  %994 = vst [vmem:[%s1704_s24 + $0x8] sm:$0xff] %v986_v58  ;;  %v549_v1 = vpop.f32.mrb[4].mxu0  ;;  %v626_v2 = vpop.f32.mrb[4].mxu1  ;;  %v293_v52 = vrot.slane %v1710_v0, %v260_v32  ;;  %v301_v53 = vrot.slane %v1710_v0, %v268_v33 }
 0x146   : > { %1232 = vst [vmem:[%s1704_s24 + $0x40] sm:$0xff] %v997_v57  ;;  %1233 = vst [vmem:[%s1704_s24 + $0x48] sm:$0xff] %v998_v59  ;;  %v962_v3 = vmax.f32 %v404_v62, 0.0  ;;  %v964_v4 = vmax.f32 %v481_v63, 0.0  ;;  %v550_v5 = vadd.f32 %v549_v1, %v261_v48  ;;  %v627_v6 = vadd.f32 %v626_v2, %v269_v49  ;;  %v551_v7 = vpop.f32.mrb[5].mxu0  ;;  %v628_v8 = vpop.f32.mrb[5].mxu1 }
 0x147   : > { %v552_v9 = vadd.f32 %v551_v7, %v265_v54  ;;  %v629_v10 = vadd.f32 %v628_v8, %v273_v55 }
 0x148   : > { %v1018_v13 = vcombine.low %v961_v60, %v962_v3  ;;  %v1031_v14 = vcombine.high %v961_v60, %v962_v3  ;;  %v1019_v15 = vcombine.low %v963_v61, %v964_v4  ;;  %v1032_v16 = vcombine.high %v963_v61, %v964_v4 }
 0x149   : > { %v949_v17 = vmax.f32 %v550_v5, 0.0  ;;  %v951_v18 = vmax.f32 %v627_v6, 0.0  ;;  %v950_v19 = vmax.f32 %v552_v9, 0.0  ;;  %v952_v23 = vmax.f32 %v629_v10, 0.0  ;;  %v555_v26 = vpop.f32.mrb[6].mxu0  ;;  %v632_v27 = vpop.f32.mrb[6].mxu1 }
 0x14a   : > { %1236 = vst [vmem:[%s1704_s24 + $0x80] sm:$0xff] %v1018_v13  ;;  %1237 = vst [vmem:[%s1704_s24 + $0x88] sm:$0xff] %v1019_v15  ;;  %v556_v28 = vadd.f32 %v555_v26, %v261_v48  ;;  %v633_v29 = vadd.f32 %v632_v27, %v269_v49  ;;  %v557_v21 = vpop.f32.mrb[7].mxu0  ;;  %v634_v22 = vpop.f32.mrb[7].mxu1  ;;  %v297_v3 = vrot.slane %v1710_v0, %v264_v38 }
 0x14b   : > { %1240 = vst [vmem:[%s1704_s24 + $0xc0] sm:$0xff] %v1031_v14  ;;  %1241 = vst [vmem:[%s1704_s24 + $0xc8] sm:$0xff] %v1032_v16  ;;  %v987_v34 = vcombine.low %v949_v17, %v950_v19  ;;  %v999_v35 = vcombine.high %v949_v17, %v950_v19  ;;  %v988_v36 = vcombine.low %v951_v18, %v952_v23 }
 0x14c   : > { %v1000_v37 = vcombine.high %v951_v18, %v952_v23  ;;  %v965_v40 = vmax.f32 %v556_v28, 0.0  ;;  %v967_v41 = vmax.f32 %v633_v29, 0.0  ;;  %v558_v42 = vadd.f32 %v557_v21, %v265_v54 }
 0x14d   : > { %v635_v43 = vadd.f32 %v634_v22, %v273_v55  ;;  %995 = vst [vmem:[%s1704_s24 + $0x10] sm:$0xff] %v987_v34  ;;  %996 = vst [vmem:[%s1704_s24 + $0x18] sm:$0xff] %v988_v36  ;;  %v703_v44 = vpop.f32.mrb[8].mxu0  ;;  %v780_v24 = vpop.f32.mrb[8].mxu1  ;;  %v305_v4 = vrot.slane %v1710_v0, %v272_v39 }
 0x14e   : > { %1234 = vst [vmem:[%s1704_s24 + $0x50] sm:$0xff] %v999_v35  ;;  %1235 = vst [vmem:[%s1704_s24 + $0x58] sm:$0xff] %v1000_v37  ;;  %v966_v45 = vmax.f32 %v558_v42, 0.0  ;;  %v704_v25 = vadd.f32 %v703_v44, %v277_v11  ;;  %v781_v47 = vadd.f32 %v780_v24, %v285_v12  ;;  %v705_v48 = vpop.f32.mrb[9].mxu0  ;;  %v782_v49 = vpop.f32.mrb[9].mxu1 }
 0x14f   : > { %v968_v46 = vmax.f32 %v635_v43, 0.0  ;;  %v706_v50 = vadd.f32 %v705_v48, %v281_v30  ;;  %v783_v51 = vadd.f32 %v782_v49, %v289_v31 }
 0x150   : > { %v1020_v54 = vcombine.low %v965_v40, %v966_v45  ;;  %v1033_v55 = vcombine.high %v965_v40, %v966_v45  ;;  %v953_v58 = vmax.f32 %v704_v25, 0.0  ;;  %v955_v59 = vmax.f32 %v781_v47, 0.0 }
 0x151   : > { %v1021_v56 = vcombine.low %v967_v41, %v968_v46  ;;  %v1034_v57 = vcombine.high %v967_v41, %v968_v46  ;;  %v954_v60 = vmax.f32 %v706_v50, 0.0  ;;  %v956_v61 = vmax.f32 %v783_v51, 0.0  ;;  %v709_v62 = vpop.f32.mrb[10].mxu0  ;;  %v786_v63 = vpop.f32.mrb[10].mxu1 }
 0x152   : > { %1238 = vst [vmem:[%s1704_s24 + $0x90] sm:$0xff] %v1020_v54  ;;  %v710_v1 = vadd.f32 %v709_v62, %v277_v11  ;;  %v787_v32 = vadd.f32 %v786_v63, %v285_v12  ;;  %v711_v2 = vpop.f32.mrb[11].mxu0  ;;  %v788_v33 = vpop.f32.mrb[11].mxu1  ;;  %1242 = vst [vmem:[%s1704_s24 + $0xd0] sm:$0xff] %v1033_v55 }
 0x153   : > { %1239 = vst [vmem:[%s1704_s24 + $0x98] sm:$0xff] %v1021_v56  ;;  %1243 = vst [vmem:[%s1704_s24 + $0xd8] sm:$0xff] %v1034_v57  ;;  %v1052_v5 = vcombine.low %v953_v58, %v954_v60  ;;  %v1065_v6 = vcombine.high %v953_v58, %v954_v60  ;;  %v1053_v7 = vcombine.low %v955_v59, %v956_v61 }
 0x154   : > { %v1066_v8 = vcombine.high %v955_v59, %v956_v61  ;;  %v969_v9 = vmax.f32 %v710_v1, 0.0  ;;  %v971_v10 = vmax.f32 %v787_v32, 0.0  ;;  %v712_v11 = vadd.f32 %v711_v2, %v281_v30 }
 0x155   : > { %v789_v12 = vadd.f32 %v788_v33, %v289_v31  ;;  %1244 = vst [vmem:[%s1704_s24 + $0x20] sm:$0xff] %v1052_v5  ;;  %1245 = vst [vmem:[%s1704_s24 + $0x28] sm:$0xff] %v1053_v7  ;;  %v857_v13 = vpop.f32.mrb[12].mxu0  ;;  %v934_v38 = vpop.f32.mrb[12].mxu1 }
 0x156   : > { %1248 = vst [vmem:[%s1704_s24 + $0x60] sm:$0xff] %v1065_v6  ;;  %1249 = vst [vmem:[%s1704_s24 + $0x68] sm:$0xff] %v1066_v8  ;;  %v970_v20 = vmax.f32 %v712_v11, 0.0  ;;  %v858_v39 = vadd.f32 %v857_v13, %v293_v52  ;;  %v935_v0 = vadd.f32 %v934_v38, %v301_v53  ;;  %v859_v15 = vpop.f32.mrb[13].mxu0  ;;  %v936_v16 = vpop.f32.mrb[13].mxu1 }
 0x157   : > { %v972_v14 = vmax.f32 %v789_v12, 0.0  ;;  %v860_v17 = vadd.f32 %v859_v15, %v297_v3  ;;  %v937_v18 = vadd.f32 %v936_v16, %v305_v4 }
 0x158   : > { %v1086_v19 = vcombine.low %v969_v9, %v970_v20  ;;  %v1099_v23 = vcombine.high %v969_v9, %v970_v20  ;;  %v957_v28 = vmax.f32 %v858_v39, 0.0  ;;  %v959_v29 = vmax.f32 %v935_v0, 0.0 }
 0x159   : > { %v1087_v26 = vcombine.low %v971_v10, %v972_v14  ;;  %v1100_v27 = vcombine.high %v971_v10, %v972_v14  ;;  %v958_v21 = vmax.f32 %v860_v17, 0.0  ;;  %v960_v22 = vmax.f32 %v937_v18, 0.0  ;;  %v863_v30 = vpop.f32.mrb[14].mxu0  ;;  %v940_v31 = vpop.f32.mrb[14].mxu1 }
 0x15a   : > { %1252 = vst [vmem:[%s1704_s24 + $0xa0] sm:$0xff] %v1086_v19  ;;  %v864_v34 = vadd.f32 %v863_v30, %v293_v52  ;;  %v941_v35 = vadd.f32 %v940_v31, %v301_v53  ;;  %v865_v36 = vpop.f32.mrb[15].mxu0  ;;  %v942_v37 = vpop.f32.mrb[15].mxu1  ;;  %1256 = vst [vmem:[%s1704_s24 + $0xe0] sm:$0xff] %v1099_v23 }
 0x15b   : > { %1253 = vst [vmem:[%s1704_s24 + $0xa8] sm:$0xff] %v1087_v26  ;;  %1257 = vst [vmem:[%s1704_s24 + $0xe8] sm:$0xff] %v1100_v27  ;;  %v1054_v40 = vcombine.low %v957_v28, %v958_v21  ;;  %v1067_v41 = vcombine.high %v957_v28, %v958_v21  ;;  %v1055_v42 = vcombine.low %v959_v29, %v960_v22 }
 0x15c   : > { %v1068_v43 = vcombine.high %v959_v29, %v960_v22  ;;  %v973_v44 = vmax.f32 %v864_v34, 0.0  ;;  %v975_v24 = vmax.f32 %v941_v35, 0.0  ;;  %v866_v45 = vadd.f32 %v865_v36, %v297_v3 }
 0x15d   : > { %v943_v46 = vadd.f32 %v942_v37, %v305_v4  ;;  %1246 = vst [vmem:[%s1704_s24 + $0x30] sm:$0xff] %v1054_v40  ;;  %1247 = vst [vmem:[%s1704_s24 + $0x38] sm:$0xff] %v1055_v42 }
 0x15e   : > { %1250 = vst [vmem:[%s1704_s24 + $0x70] sm:$0xff] %v1067_v41  ;;  %1251 = vst [vmem:[%s1704_s24 + $0x78] sm:$0xff] %v1068_v43  ;;  %v974_v25 = vmax.f32 %v866_v45, 0.0 }
 0x15f   : > { %v976_v47 = vmax.f32 %v943_v46, 0.0 }
 0x160   : > { %v1088_v48 = vcombine.low %v973_v44, %v974_v25  ;;  %v1101_v49 = vcombine.high %v973_v44, %v974_v25 }
 0x161   : > { %v1089_v50 = vcombine.low %v975_v24, %v976_v47  ;;  %v1102_v51 = vcombine.high %v975_v24, %v976_v47 }
 0x162   : > { %1254 = vst [vmem:[%s1704_s24 + $0xb0] sm:$0xff] %v1088_v48  ;;  %1258 = vst [vmem:[%s1704_s24 + $0xf0] sm:$0xff] %v1101_v49 }
 0x163   : > { %1255 = vst [vmem:[%s1704_s24 + $0xb8] sm:$0xff] %v1089_v50  ;;  %1259 = vst [vmem:[%s1704_s24 + $0xf8] sm:$0xff] %v1102_v51 }
 0x164 PF: > { %p14_p3 = scmp.ge.s32.totalorder %s1499_s17, 4   ;;  %s1796_s12 = smov %s1443_s13 }
 0x165   : > { %s1797_s13 = smov %s1447_s14  ;;  %s1798_s14 = smov %s1509_s20 }
 0x166   : > { %s1799_s15 = smov %s1499_s17  ;;  %16 = sbr.rel (!%p14_p3) target bundleno = 4 (0x4), region = 87 }
 0x16d   :  { %1136 = vsyncpa [#allocation3], 1 }
 0x16e   :  { %1138 = vsyncpa [#allocation3 + $0x1], 1 }
 0x16f   :  { %1139 = vsyncpa [#allocation5], 1 }

// kernel: decoder_forward.7
= control target key start
LH: loop header
LB: loop body
LE: loop exit
PB: predicated region body
PF: predicated region fallthrough
CT: control target
= control target key end

     0   :  { %s1465_s12 = smov 0   ;;  %s2209_s0 = inlined_call_operand.vmem [shape: f32[512,256], index: 0, kind: input, shape index: {}]   ;;  %s2210_s1 = inlined_call_operand.vmem [shape: f32[256,512], index: 1, kind: input, shape index: {}]   ;;  %s2211_s2 = inlined_call_operand.vmem [shape: f32[1,512], index: 2, kind: input, shape index: {}]   ;;  %s2212_s3 = inlined_call_operand.vmem [shape: f32[32,2,16,256], index: 3, kind: output, shape index: {}]  }
   0x1 LB: > { %s1222_s13 = sadd.s32 4294967295, %s1443_s12   ;;  %p1226_p0 = scmp.ge.s32.totalorder %s1443_s12, 1  ;;  %s1443_s12 = sphi %s1465_s12, %s13_s12  }
   0x2   : > { %p139_p1 = scmp.lt.s32.totalorder %s1443_s12, 3 }
   0x4   : > { %p140_p2 = pnand %p1226_p0, %p139_p1 }
   0x5   : > { %v244_v0 = vld [vmem:[%s2210_s1 + $0x8] sm:$0xff] (!%p140_p2)  ;;  %v246_v2 = vld [vmem:[%s2210_s1 + $0x18] sm:$0xff] (!%p140_p2)  ;;  %v243_v5 = vld [vmem:[%s2210_s1] sm:$0xff] (!%p140_p2)  ;;  %s1227_s15 = sshll.u32 (!%p140_p2), %s1222_s13, 5  ;;  %s1230_s29 = sshll.u32 (!%p140_p2), %s1222_s13, 4 }
   0x6   : > { %143 = sbr.rel (%p140_p2) target bundleno = 416 (0x1a0), region = 32  ;;  %v248_v1 = vld [vmem:[%s2210_s1 + $0x28] sm:$0xff] (!%p140_p2)  ;;  %v250_v4 = vld [vmem:[%s2210_s1 + $0x38] sm:$0xff] (!%p140_p2)  ;;  %v247_v6 = vld [vmem:[%s2210_s1 + $0x20] sm:$0xff] (!%p140_p2)  ;;  %p166_p3 = scmp.lt.s32.totalorder (!%p140_p2), %s1227_s15, 63 }
   0x7   : > { %v1301_v3 = vpack.c.bf16 (!%p140_p2), %v248_v1, %v244_v0  ;;  %v1365_v7 = vpack.c.bf16 (!%p140_p2), %v250_v4, %v246_v2  ;;  %v1303_v8 = vpack.c.bf16 (!%p140_p2), %v247_v6, %v243_v5  ;;  %v245_v9 = vld [vmem:[%s2210_s1 + $0x10] sm:$0xff] (!%p140_p2)  ;;  %v252_v11 = vld [vmem:[%s2210_s1 + $0x48] sm:$0xff] (!%p140_p2)  ;;  %v254_v14 = vld [vmem:[%s2210_s1 + $0x58] sm:$0xff] (!%p140_p2)  ;;  %p173_p4 = scmp.lt.s32.totalorder (!%p140_p2), %s1230_s29, 31 }
   0x8   : > { %v249_v10 = vld [vmem:[%s2210_s1 + $0x30] sm:$0xff] (!%p140_p2)  ;;  %v256_v13 = vld [vmem:[%s2210_s1 + $0x68] sm:$0xff] (!%p140_p2)  ;;  %v258_v15 = vld [vmem:[%s2210_s1 + $0x78] sm:$0xff] (!%p140_p2) }
   0x9   : > { %1302 = vmatprep.subr.bf16.mxu0 (!%p140_p2), %v1301_v3  ;;  %v1367_v12 = vpack.c.bf16 (!%p140_p2), %v249_v10, %v245_v9  ;;  %1366 = vmatprep.subr.bf16.mxu1 (!%p140_p2), %v1365_v7  ;;  %v1305_v16 = vpack.c.bf16 (!%p140_p2), %v256_v13, %v252_v11  ;;  %v1369_v17 = vpack.c.bf16 (!%p140_p2), %v258_v15, %v254_v14  ;;  %v251_v18 = vld [vmem:[%s2210_s1 + $0x40] sm:$0xff] (!%p140_p2)  ;;  %v253_v20 = vld [vmem:[%s2210_s1 + $0x50] sm:$0xff] (!%p140_p2)  ;;  %v260_v23 = vld [vmem:[%s2210_s1 + $0x88] sm:$0xff] (!%p140_p2) }
   0xa   : > { %1304 = vmatpush1.bf16.msra.mxu0 (!%p140_p2), %v1303_v8  ;;  %v255_v19 = vld [vmem:[%s2210_s1 + $0x60] sm:$0xff] (!%p140_p2)  ;;  %v257_v22 = vld [vmem:[%s2210_s1 + $0x70] sm:$0xff] (!%p140_p2)  ;;  %v264_v24 = vld [vmem:[%s2210_s1 + $0xa8] sm:$0xff] (!%p140_p2) }
   0xb   : > { %1368 = vmatpush1.bf16.msra.mxu1 (!%p140_p2), %v1367_v12  ;;  %v1307_v21 = vpack.c.bf16 (!%p140_p2), %v255_v19, %v251_v18  ;;  %1306 = vmatprep.subr.bf16.mxu0 (!%p140_p2), %v1305_v16  ;;  %v1371_v25 = vpack.c.bf16 (!%p140_p2), %v257_v22, %v253_v20  ;;  %v1309_v26 = vpack.c.bf16 (!%p140_p2), %v264_v24, %v260_v23  ;;  %v262_v27 = vld [vmem:[%s2210_s1 + $0x98] sm:$0xff] (!%p140_p2)  ;;  %v259_v29 = vld [vmem:[%s2210_s1 + $0x80] sm:$0xff] (!%p140_p2)  ;;  %v261_v32 = vld [vmem:[%s2210_s1 + $0x90] sm:$0xff] (!%p140_p2) }
   0xc   : > { %1370 = vmatprep.subr.bf16.mxu1 (!%p140_p2), %v1369_v17  ;;  %v266_v28 = vld [vmem:[%s2210_s1 + $0xb8] sm:$0xff] (!%p140_p2)  ;;  %v263_v31 = vld [vmem:[%s2210_s1 + $0xa0] sm:$0xff] (!%p140_p2)  ;;  %v265_v33 = vld [vmem:[%s2210_s1 + $0xb0] sm:$0xff] (!%p140_p2) }
   0xd   : > { %v1373_v30 = vpack.c.bf16 %v266_v28, %v262_v27  ;;  %v1311_v34 = vpack.c.bf16 %v263_v31, %v259_v29  ;;  %v268_v35 = vld [vmem:[%s2210_s1 + $0xc8] sm:$0xff]  ;;  %v270_v37 = vld [vmem:[%s2210_s1 + $0xd8] sm:$0xff]  ;;  %v1375_v38 = vpack.c.bf16 %v265_v33, %v261_v32  ;;  %v267_v41 = vld [vmem:[%s2210_s1 + $0xc0] sm:$0xff]  ;;  %s2214_s15 = smov (!%p166_p3, %s1227_s15), 63  ;;  %s2216_s29 = smov (!%p173_p4, %s1230_s29), 31 }
   0xe   : > { %1308 = vmatpush1.bf16.msra.mxu0 %v1307_v21  ;;  %v272_v36 = vld [vmem:[%s2210_s1 + $0xe8] sm:$0xff]  ;;  %v274_v40 = vld [vmem:[%s2210_s1 + $0xf8] sm:$0xff]  ;;  %v271_v42 = vld [vmem:[%s2210_s1 + $0xe0] sm:$0xff]  ;;  %s1299_s7 = sshll.u32 %s2214_s15, 4 }
   0xf   : > { %1372 = vmatpush1.bf16.msra.mxu1 %v1371_v25  ;;  %1310 = vmatprep.subr.bf16.mxu0 %v1309_v26  ;;  %v1313_v39 = vpack.c.bf16 %v272_v36, %v268_v35  ;;  %v1377_v43 = vpack.c.bf16 %v274_v40, %v270_v37  ;;  %v269_v44 = vld [vmem:[%s2210_s1 + $0xd0] sm:$0xff]  ;;  %v276_v46 = vld [vmem:[%s2210_s1 + $0x108] sm:$0xff]  ;;  %v278_v48 = vld [vmem:[%s2210_s1 + $0x118] sm:$0xff]  ;;  %v1315_v50 = vpack.c.bf16 %v271_v42, %v267_v41  ;;  %s1758_s28 = scalar_lea.vmem %s2209_s0, %s1299_s7 }
  0x10   : > { %1374 = vmatprep.subr.bf16.mxu1 %v1373_v30  ;;  %v273_v45 = vld [vmem:[%s2210_s1 + $0xf0] sm:$0xff]  ;;  %v280_v47 = vld [vmem:[%s2210_s1 + $0x128] sm:$0xff]  ;;  %v282_v49 = vld [vmem:[%s2210_s1 + $0x138] sm:$0xff] }
  0x11   : > { %v1379_v51 = vpack.c.bf16 %v273_v45, %v269_v44  ;;  %v1317_v52 = vpack.c.bf16 %v280_v47, %v276_v46  ;;  %v275_v53 = vld [vmem:[%s2210_s1 + $0x100] sm:$0xff]  ;;  %v277_v55 = vld [vmem:[%s2210_s1 + $0x110] sm:$0xff]  ;;  %v1381_v56 = vpack.c.bf16 %v282_v49, %v278_v48  ;;  %v284_v58 = vld [vmem:[%s2210_s1 + $0x148] sm:$0xff] }
  0x12   : > { %1312 = vmatpush1.bf16.msra.mxu0 %v1311_v34  ;;  %v279_v54 = vld [vmem:[%s2210_s1 + $0x120] sm:$0xff]  ;;  %v281_v57 = vld [vmem:[%s2210_s1 + $0x130] sm:$0xff]  ;;  %v288_v59 = vld [vmem:[%s2210_s1 + $0x168] sm:$0xff] }
  0x13   : > { %1376 = vmatpush1.bf16.msra.mxu1 %v1375_v38  ;;  %1314 = vmatprep.subr.bf16.mxu0 %v1313_v39  ;;  %v286_v60 = vld [vmem:[%s2210_s1 + $0x158] sm:$0xff]  ;;  %v1319_v62 = vpack.c.bf16 %v279_v54, %v275_v53  ;;  %v1383_v63 = vpack.c.bf16 %v281_v57, %v277_v55  ;;  %v1321_v0 = vpack.c.bf16 %v288_v59, %v284_v58  ;;  %v283_v1 = vld [vmem:[%s2210_s1 + $0x140] sm:$0xff]  ;;  %v285_v3 = vld [vmem:[%s2210_s1 + $0x150] sm:$0xff] }
  0x14   : > { %1378 = vmatprep.subr.bf16.mxu1 %v1377_v43  ;;  %v290_v61 = vld [vmem:[%s2210_s1 + $0x178] sm:$0xff]  ;;  %v287_v2 = vld [vmem:[%s2210_s1 + $0x160] sm:$0xff]  ;;  %v289_v5 = vld [vmem:[%s2210_s1 + $0x170] sm:$0xff] }
  0x15   : > { %v1385_v4 = vpack.c.bf16 %v290_v61, %v286_v60  ;;  %v292_v6 = vld [vmem:[%s2210_s1 + $0x188] sm:$0xff]  ;;  %v294_v8 = vld [vmem:[%s2210_s1 + $0x198] sm:$0xff]  ;;  %v1323_v10 = vpack.c.bf16 %v287_v2, %v283_v1  ;;  %v1387_v11 = vpack.c.bf16 %v289_v5, %v285_v3  ;;  %v291_v13 = vld [vmem:[%s2210_s1 + $0x180] sm:$0xff] }
  0x16   : > { %1316 = vmatpush1.bf16.msra.mxu0 %v1315_v50  ;;  %v296_v7 = vld [vmem:[%s2210_s1 + $0x1a8] sm:$0xff]  ;;  %v298_v9 = vld [vmem:[%s2210_s1 + $0x1b8] sm:$0xff]  ;;  %v295_v14 = vld [vmem:[%s2210_s1 + $0x1a0] sm:$0xff] }
  0x17   : > { %1380 = vmatpush1.bf16.msra.mxu1 %v1379_v51  ;;  %1318 = vmatprep.subr.bf16.mxu0 %v1317_v52  ;;  %v1325_v12 = vpack.c.bf16 %v296_v7, %v292_v6  ;;  %v293_v15 = vld [vmem:[%s2210_s1 + $0x190] sm:$0xff]  ;;  %v1389_v16 = vpack.c.bf16 %v298_v9, %v294_v8  ;;  %v300_v18 = vld [vmem:[%s2210_s1 + $0x1c8] sm:$0xff]  ;;  %v302_v20 = vld [vmem:[%s2210_s1 + $0x1d8] sm:$0xff]  ;;  %v1327_v22 = vpack.c.bf16 %v295_v14, %v291_v13 }
  0x18   : > { %1382 = vmatprep.subr.bf16.mxu1 %v1381_v56  ;;  %v297_v17 = vld [vmem:[%s2210_s1 + $0x1b0] sm:$0xff]  ;;  %v304_v19 = vld [vmem:[%s2210_s1 + $0x1e8] sm:$0xff]  ;;  %v306_v21 = vld [vmem:[%s2210_s1 + $0x1f8] sm:$0xff] }
  0x19   : > { %v1391_v23 = vpack.c.bf16 %v297_v17, %v293_v15  ;;  %v1329_v24 = vpack.c.bf16 %v304_v19, %v300_v18  ;;  %v299_v25 = vld [vmem:[%s2210_s1 + $0x1c0] sm:$0xff]  ;;  %v301_v27 = vld [vmem:[%s2210_s1 + $0x1d0] sm:$0xff]  ;;  %v1393_v28 = vpack.c.bf16 %v306_v21, %v302_v20  ;;  %v308_v30 = vld [vmem:[%s2210_s1 + $0x208] sm:$0xff] }
  0x1a   : > { %1320 = vmatpush1.bf16.msra.mxu0 %v1319_v62  ;;  %v303_v26 = vld [vmem:[%s2210_s1 + $0x1e0] sm:$0xff]  ;;  %v305_v29 = vld [vmem:[%s2210_s1 + $0x1f0] sm:$0xff]  ;;  %v312_v31 = vld [vmem:[%s2210_s1 + $0x228] sm:$0xff] }
  0x1b   : > { %1384 = vmatpush1.bf16.msra.mxu1 %v1383_v63  ;;  %1322 = vmatprep.subr.bf16.mxu0 %v1321_v0  ;;  %v310_v32 = vld [vmem:[%s2210_s1 + $0x218] sm:$0xff]  ;;  %v1331_v34 = vpack.c.bf16 %v303_v26, %v299_v25  ;;  %v1395_v35 = vpack.c.bf16 %v305_v29, %v301_v27  ;;  %v1333_v36 = vpack.c.bf16 %v312_v31, %v308_v30  ;;  %v307_v37 = vld [vmem:[%s2210_s1 + $0x200] sm:$0xff]  ;;  %v309_v39 = vld [vmem:[%s2210_s1 + $0x210] sm:$0xff] }
  0x1c   : > { %1386 = vmatprep.subr.bf16.mxu1 %v1385_v4  ;;  %v314_v33 = vld [vmem:[%s2210_s1 + $0x238] sm:$0xff]  ;;  %v311_v38 = vld [vmem:[%s2210_s1 + $0x220] sm:$0xff]  ;;  %v313_v41 = vld [vmem:[%s2210_s1 + $0x230] sm:$0xff] }
  0x1d   : > { %v1397_v40 = vpack.c.bf16 %v314_v33, %v310_v32  ;;  %v316_v42 = vld [vmem:[%s2210_s1 + $0x248] sm:$0xff]  ;;  %v318_v44 = vld [vmem:[%s2210_s1 + $0x258] sm:$0xff]  ;;  %v1335_v46 = vpack.c.bf16 %v311_v38, %v307_v37  ;;  %v1399_v47 = vpack.c.bf16 %v313_v41, %v309_v39  ;;  %v315_v49 = vld [vmem:[%s2210_s1 + $0x240] sm:$0xff] }
  0x1e   : > { %1324 = vmatpush1.bf16.msra.mxu0 %v1323_v10  ;;  %v320_v43 = vld [vmem:[%s2210_s1 + $0x268] sm:$0xff]  ;;  %v322_v45 = vld [vmem:[%s2210_s1 + $0x278] sm:$0xff]  ;;  %v319_v50 = vld [vmem:[%s2210_s1 + $0x260] sm:$0xff] }
  0x1f   : > { %1388 = vmatpush1.bf16.msra.mxu1 %v1387_v11  ;;  %1326 = vmatprep.subr.bf16.mxu0 %v1325_v12  ;;  %v1337_v48 = vpack.c.bf16 %v320_v43, %v316_v42  ;;  %v317_v51 = vld [vmem:[%s2210_s1 + $0x250] sm:$0xff]  ;;  %v1401_v52 = vpack.c.bf16 %v322_v45, %v318_v44  ;;  %v324_v54 = vld [vmem:[%s2210_s1 + $0x288] sm:$0xff]  ;;  %v326_v56 = vld [vmem:[%s2210_s1 + $0x298] sm:$0xff]  ;;  %v1339_v58 = vpack.c.bf16 %v319_v50, %v315_v49 }
  0x20   : > { %1390 = vmatprep.subr.bf16.mxu1 %v1389_v16  ;;  %v321_v53 = vld [vmem:[%s2210_s1 + $0x270] sm:$0xff]  ;;  %v328_v55 = vld [vmem:[%s2210_s1 + $0x2a8] sm:$0xff]  ;;  %v330_v57 = vld [vmem:[%s2210_s1 + $0x2b8] sm:$0xff] }
  0x21   : > { %v1403_v59 = vpack.c.bf16 %v321_v53, %v317_v51  ;;  %v1341_v60 = vpack.c.bf16 %v328_v55, %v324_v54  ;;  %v323_v61 = vld [vmem:[%s2210_s1 + $0x280] sm:$0xff]  ;;  %v325_v63 = vld [vmem:[%s2210_s1 + $0x290] sm:$0xff]  ;;  %v1405_v0 = vpack.c.bf16 %v330_v57, %v326_v56  ;;  %v332_v2 = vld [vmem:[%s2210_s1 + $0x2c8] sm:$0xff] }
  0x22   : > { %1328 = vmatpush1.bf16.msra.mxu0 %v1327_v22  ;;  %v327_v62 = vld [vmem:[%s2210_s1 + $0x2a0] sm:$0xff]  ;;  %v329_v1 = vld [vmem:[%s2210_s1 + $0x2b0] sm:$0xff]  ;;  %v336_v3 = vld [vmem:[%s2210_s1 + $0x2e8] sm:$0xff] }
  0x23   : > { %1392 = vmatpush1.bf16.msra.mxu1 %v1391_v23  ;;  %1330 = vmatprep.subr.bf16.mxu0 %v1329_v24  ;;  %v334_v4 = vld [vmem:[%s2210_s1 + $0x2d8] sm:$0xff]  ;;  %v1343_v6 = vpack.c.bf16 %v327_v62, %v323_v61  ;;  %v331_v7 = vld [vmem:[%s2210_s1 + $0x2c0] sm:$0xff]  ;;  %v1407_v8 = vpack.c.bf16 %v329_v1, %v325_v63  ;;  %v1345_v9 = vpack.c.bf16 %v336_v3, %v332_v2  ;;  %v333_v11 = vld [vmem:[%s2210_s1 + $0x2d0] sm:$0xff] }
  0x24   : > { %1394 = vmatprep.subr.bf16.mxu1 %v1393_v28  ;;  %v338_v5 = vld [vmem:[%s2210_s1 + $0x2f8] sm:$0xff]  ;;  %v335_v10 = vld [vmem:[%s2210_s1 + $0x2e0] sm:$0xff]  ;;  %v337_v12 = vld [vmem:[%s2210_s1 + $0x2f0] sm:$0xff] }
  0x25   : > { %v1409_v13 = vpack.c.bf16 %v338_v5, %v334_v4  ;;  %v340_v14 = vld [vmem:[%s2210_s1 + $0x308] sm:$0xff]  ;;  %v342_v17 = vld [vmem:[%s2210_s1 + $0x318] sm:$0xff]  ;;  %v1347_v19 = vpack.c.bf16 %v335_v10, %v331_v7  ;;  %v1411_v20 = vpack.c.bf16 %v337_v12, %v333_v11  ;;  %v339_v22 = vld [vmem:[%s2210_s1 + $0x300] sm:$0xff] }
  0x26   : > { %1332 = vmatpush1.bf16.msra.mxu0 %v1331_v34  ;;  %v344_v15 = vld [vmem:[%s2210_s1 + $0x328] sm:$0xff]  ;;  %v346_v18 = vld [vmem:[%s2210_s1 + $0x338] sm:$0xff]  ;;  %v343_v23 = vld [vmem:[%s2210_s1 + $0x320] sm:$0xff] }
  0x27   : > { %1396 = vmatpush1.bf16.msra.mxu1 %v1395_v35  ;;  %1334 = vmatprep.subr.bf16.mxu0 %v1333_v36  ;;  %v180_v16 = vld [vmem:[%s1758_s28 + $0x8] sm:$0xff]  ;;  %v1349_v21 = vpack.c.bf16 %v344_v15, %v340_v14  ;;  %v341_v24 = vld [vmem:[%s2210_s1 + $0x310] sm:$0xff]  ;;  %v1413_v25 = vpack.c.bf16 %v346_v18, %v342_v17  ;;  %v350_v29 = vld [vmem:[%s2210_s1 + $0x358] sm:$0xff]  ;;  %v1351_v31 = vpack.c.bf16 %v343_v23, %v339_v22 }
  0x28   : > { %1398 = vmatprep.subr.bf16.mxu1 %v1397_v40  ;;  %457 = vmatprep.mubr.f32.mxu0 %v180_v16  ;;  %v345_v26 = vld [vmem:[%s2210_s1 + $0x330] sm:$0xff]  ;;  %v348_v27 = vld [vmem:[%s2210_s1 + $0x348] sm:$0xff]  ;;  %v354_v30 = vld [vmem:[%s2210_s1 + $0x378] sm:$0xff] }
  0x29   : > { %714 = vmatprep.mubr.f32.mxu1 %v180_v16  ;;  %v352_v28 = vld [vmem:[%s2210_s1 + $0x368] sm:$0xff]  ;;  %v1415_v32 = vpack.c.bf16 %v345_v26, %v341_v24  ;;  %v347_v34 = vld [vmem:[%s2210_s1 + $0x340] sm:$0xff]  ;;  %v349_v36 = vld [vmem:[%s2210_s1 + $0x350] sm:$0xff]  ;;  %v1417_v37 = vpack.c.bf16 %v354_v30, %v350_v29 }
  0x2a   : > { %1336 = vmatpush1.bf16.msra.mxu0 %v1335_v46  ;;  %v1353_v33 = vpack.c.bf16 %v352_v28, %v348_v27  ;;  %v351_v35 = vld [vmem:[%s2210_s1 + $0x360] sm:$0xff]  ;;  %v353_v38 = vld [vmem:[%s2210_s1 + $0x370] sm:$0xff]  ;;  %v356_v39 = vld [vmem:[%s2210_s1 + $0x388] sm:$0xff] }
  0x2b   : > { %1400 = vmatpush1.bf16.msra.mxu1 %v1399_v47  ;;  %1338 = vmatprep.subr.bf16.mxu0 %v1337_v48  ;;  %v360_v40 = vld [vmem:[%s2210_s1 + $0x3a8] sm:$0xff]  ;;  %v358_v41 = vld [vmem:[%s2210_s1 + $0x398] sm:$0xff]  ;;  %v1355_v43 = vpack.c.bf16 %v351_v35, %v347_v34  ;;  %v1419_v44 = vpack.c.bf16 %v353_v38, %v349_v36  ;;  %v355_v46 = vld [vmem:[%s2210_s1 + $0x380] sm:$0xff] }
  0x2c   : > { %1402 = vmatprep.subr.bf16.mxu1 %v1401_v52  ;;  %v362_v42 = vld [vmem:[%s2210_s1 + $0x3b8] sm:$0xff]  ;;  %v1357_v45 = vpack.c.bf16 %v360_v40, %v356_v39  ;;  %v359_v47 = vld [vmem:[%s2210_s1 + $0x3a0] sm:$0xff]  ;;  %v357_v48 = vld [vmem:[%s2210_s1 + $0x390] sm:$0xff] }
  0x2d   : > { %v1421_v49 = vpack.c.bf16 %v362_v42, %v358_v41  ;;  %v361_v50 = vld [vmem:[%s2210_s1 + $0x3b0] sm:$0xff]  ;;  %v364_v51 = vld [vmem:[%s2210_s1 + $0x3c8] sm:$0xff]  ;;  %v366_v53 = vld [vmem:[%s2210_s1 + $0x3d8] sm:$0xff]  ;;  %v1359_v55 = vpack.c.bf16 %v359_v47, %v355_v46 }
  0x2e   : > { %1340 = vmatpush1.bf16.msra.mxu0 %v1339_v58  ;;  %v368_v52 = vld [vmem:[%s2210_s1 + $0x3e8] sm:$0xff]  ;;  %v370_v54 = vld [vmem:[%s2210_s1 + $0x3f8] sm:$0xff]  ;;  %v1423_v56 = vpack.c.bf16 %v361_v50, %v357_v48  ;;  %v363_v58 = vld [vmem:[%s2210_s1 + $0x3c0] sm:$0xff] }
  0x2f   : > { %1404 = vmatpush1.bf16.msra.mxu1 %v1403_v59  ;;  %1342 = vmatprep.subr.bf16.mxu0 %v1341_v60  ;;  %v1361_v57 = vpack.c.bf16 %v368_v52, %v364_v51  ;;  %v367_v59 = vld [vmem:[%s2210_s1 + $0x3e0] sm:$0xff]  ;;  %v1425_v60 = vpack.c.bf16 %v370_v54, %v366_v53  ;;  %v365_v61 = vld [vmem:[%s2210_s1 + $0x3d0] sm:$0xff]  ;;  %v182_v2 = vld [vmem:[%s1758_s28 + $0x18] sm:$0xff] }
  0x30   : > { %1406 = vmatprep.subr.bf16.mxu1 %v1405_v0  ;;  %v369_v62 = vld [vmem:[%s2210_s1 + $0x3f0] sm:$0xff]  ;;  %v1363_v63 = vpack.c.bf16 %v367_v59, %v363_v58  ;;  %v179_v1 = vld [vmem:[%s1758_s28] sm:$0xff]  ;;  %v184_v4 = vld [vmem:[%s1758_s28 + $0x28] sm:$0xff] }
  0x31   : > { %v1427_v0 = vpack.c.bf16 %v369_v62, %v365_v61  ;;  %v181_v3 = vld [vmem:[%s1758_s28 + $0x10] sm:$0xff]  ;;  %v183_v5 = vld [vmem:[%s1758_s28 + $0x20] sm:$0xff]  ;;  %v190_v10 = vld [vmem:[%s1758_s28 + $0x58] sm:$0xff] }
  0x32   : > { %1344 = vmatpush1.bf16.msra.mxu0 %v1343_v6  ;;  %v186_v6 = vld [vmem:[%s1758_s28 + $0x38] sm:$0xff]  ;;  %v185_v7 = vld [vmem:[%s1758_s28 + $0x30] sm:$0xff]  ;;  %v192_v12 = vld [vmem:[%s1758_s28 + $0x68] sm:$0xff] }
  0x33   : > { %1408 = vmatpush1.bf16.msra.mxu1 %v1407_v8  ;;  %1346 = vmatprep.subr.bf16.mxu0 %v1345_v9  ;;  %v188_v8 = vld [vmem:[%s1758_s28 + $0x48] sm:$0xff]  ;;  %v187_v9 = vld [vmem:[%s1758_s28 + $0x40] sm:$0xff]  ;;  %v189_v11 = vld [vmem:[%s1758_s28 + $0x50] sm:$0xff] }
  0x34   : > { %1410 = vmatprep.subr.bf16.mxu1 %v1409_v13  ;;  %v191_v13 = vld [vmem:[%s1758_s28 + $0x60] sm:$0xff]  ;;  %v194_v14 = vld [vmem:[%s1758_s28 + $0x78] sm:$0xff]  ;;  %v193_v15 = vld [vmem:[%s1758_s28 + $0x70] sm:$0xff] }
  0x35   : > { %v196_v16 = vld [vmem:[%s1758_s28 + $0x88] sm:$0xff]  ;;  %v195_v17 = vld [vmem:[%s1758_s28 + $0x80] sm:$0xff]  ;;  %v198_v18 = vld [vmem:[%s1758_s28 + $0x98] sm:$0xff] }
  0x36   : > { %1348 = vmatpush1.bf16.msra.mxu0 %v1347_v19  ;;  %v197_v19 = vld [vmem:[%s1758_s28 + $0x90] sm:$0xff]  ;;  %v202_v22 = vld [vmem:[%s1758_s28 + $0xb8] sm:$0xff]  ;;  %v204_v24 = vld [vmem:[%s1758_s28 + $0xc8] sm:$0xff] }
  0x37   : > { %1412 = vmatpush1.bf16.msra.mxu1 %v1411_v20  ;;  %1350 = vmatprep.subr.bf16.mxu0 %v1349_v21  ;;  %v200_v20 = vld [vmem:[%s1758_s28 + $0xa8] sm:$0xff]  ;;  %v199_v21 = vld [vmem:[%s1758_s28 + $0xa0] sm:$0xff]  ;;  %v201_v23 = vld [vmem:[%s1758_s28 + $0xb0] sm:$0xff] }
  0x38   : > { %1414 = vmatprep.subr.bf16.mxu1 %v1413_v25  ;;  %v203_v25 = vld [vmem:[%s1758_s28 + $0xc0] sm:$0xff]  ;;  %v206_v26 = vld [vmem:[%s1758_s28 + $0xd8] sm:$0xff]  ;;  %v205_v27 = vld [vmem:[%s1758_s28 + $0xd0] sm:$0xff] }
  0x39   : > { %v208_v28 = vld [vmem:[%s1758_s28 + $0xe8] sm:$0xff]  ;;  %v207_v29 = vld [vmem:[%s1758_s28 + $0xe0] sm:$0xff]  ;;  %v210_v30 = vld [vmem:[%s1758_s28 + $0xf8] sm:$0xff] }
  0x3a   : > { %1352 = vmatpush1.bf16.msra.mxu0 %v1351_v31  ;;  %v209_v31 = vld [vmem:[%s1758_s28 + $0xf0] sm:$0xff]  ;;  %v214_v34 = vld [vmem:[%s1758_s28 + $0x118] sm:$0xff]  ;;  %v216_v36 = vld [vmem:[%s1758_s28 + $0x128] sm:$0xff] }
  0x3b   : > { %1416 = vmatpush1.bf16.msra.mxu1 %v1415_v32  ;;  %1354 = vmatprep.subr.bf16.mxu0 %v1353_v33  ;;  %v212_v32 = vld [vmem:[%s1758_s28 + $0x108] sm:$0xff]  ;;  %v211_v33 = vld [vmem:[%s1758_s28 + $0x100] sm:$0xff]  ;;  %v213_v35 = vld [vmem:[%s1758_s28 + $0x110] sm:$0xff] }
  0x3c   : > { %1418 = vmatprep.subr.bf16.mxu1 %v1417_v37  ;;  %v215_v37 = vld [vmem:[%s1758_s28 + $0x120] sm:$0xff]  ;;  %v218_v38 = vld [vmem:[%s1758_s28 + $0x138] sm:$0xff]  ;;  %v217_v39 = vld [vmem:[%s1758_s28 + $0x130] sm:$0xff] }
  0x3d   : > { %v220_v40 = vld [vmem:[%s1758_s28 + $0x148] sm:$0xff]  ;;  %v219_v41 = vld [vmem:[%s1758_s28 + $0x140] sm:$0xff]  ;;  %v222_v42 = vld [vmem:[%s1758_s28 + $0x158] sm:$0xff] }
  0x3e   : > { %1356 = vmatpush1.bf16.msra.mxu0 %v1355_v43  ;;  %v221_v43 = vld [vmem:[%s1758_s28 + $0x150] sm:$0xff]  ;;  %v226_v46 = vld [vmem:[%s1758_s28 + $0x178] sm:$0xff]  ;;  %v228_v48 = vld [vmem:[%s1758_s28 + $0x188] sm:$0xff] }
  0x3f   : > { %1420 = vmatpush1.bf16.msra.mxu1 %v1419_v44  ;;  %1358 = vmatprep.subr.bf16.mxu0 %v1357_v45  ;;  %v224_v44 = vld [vmem:[%s1758_s28 + $0x168] sm:$0xff]  ;;  %v223_v45 = vld [vmem:[%s1758_s28 + $0x160] sm:$0xff]  ;;  %v225_v47 = vld [vmem:[%s1758_s28 + $0x170] sm:$0xff] }
  0x40   : > { %1422 = vmatprep.subr.bf16.mxu1 %v1421_v49  ;;  %v227_v49 = vld [vmem:[%s1758_s28 + $0x180] sm:$0xff]  ;;  %v230_v50 = vld [vmem:[%s1758_s28 + $0x198] sm:$0xff]  ;;  %v229_v51 = vld [vmem:[%s1758_s28 + $0x190] sm:$0xff] }
  0x41   : > { %v232_v52 = vld [vmem:[%s1758_s28 + $0x1a8] sm:$0xff]  ;;  %v231_v53 = vld [vmem:[%s1758_s28 + $0x1a0] sm:$0xff]  ;;  %v234_v54 = vld [vmem:[%s1758_s28 + $0x1b8] sm:$0xff] }
  0x42   : > { %1360 = vmatpush1.bf16.msra.mxu0 %v1359_v55  ;;  %v233_v55 = vld [vmem:[%s1758_s28 + $0x1b0] sm:$0xff]  ;;  %v238_v58 = vld [vmem:[%s1758_s28 + $0x1d8] sm:$0xff]  ;;  %v239_v61 = vld [vmem:[%s1758_s28 + $0x1e0] sm:$0xff] }
  0x43   : > { %1424 = vmatpush1.bf16.msra.mxu1 %v1423_v56  ;;  %1362 = vmatprep.subr.bf16.mxu0 %v1361_v57  ;;  %v236_v56 = vld [vmem:[%s1758_s28 + $0x1c8] sm:$0xff]  ;;  %v235_v57 = vld [vmem:[%s1758_s28 + $0x1c0] sm:$0xff]  ;;  %v237_v59 = vld [vmem:[%s1758_s28 + $0x1d0] sm:$0xff] }
  0x44   : > { %1426 = vmatprep.subr.bf16.mxu1 %v1425_v60  ;;  %v240_v60 = vld [vmem:[%s1758_s28 + $0x1e8] sm:$0xff]  ;;  %v242_v62 = vld [vmem:[%s1758_s28 + $0x1f8] sm:$0xff] }
  0x46   : > { %1364 = vmatpush1.bf16.msra.mxu0 %v1363_v63  ;;  %v241_v63 = vld [vmem:[%s1758_s28 + $0x1f0] sm:$0xff]  ;;  %s1300_s28 = sshll.u32 %s2216_s29, 6 }
  0x47   : > { %1428 = vmatpush1.bf16.msra.mxu1 %v1427_v0  ;;  %v373_v0 = vlaneseq  ;;  %s1949_s6 = scalar_lea.vmem %s2212_s3, %s1300_s28 }
  0x49   : > { %458 = vmatmul.mubr.f32.vlgmr.msra.gmra.mrb[0].mxu0 %v179_v1 }
  0x4a   : > { %715 = vmatmul.mubr.f32.vlgmr.msra.gmra.mrb[0].mxu1 %v179_v1  ;;  %463 = vmatprep.mubr.f32.mxu0 %v182_v2  ;;  %v374_v1 = vshrl.u32 %v373_v0, 7 }
  0x4b   : > { %720 = vmatprep.mubr.f32.mxu1 %v182_v2 }
  0x4c   : > { %v375_v2 = vsub.s32 0, %v374_v1 }
  0x4d   : > { %464 = vmatmul.mubr.f32.gmra.mrb[2].mxu0 %v181_v3 }
  0x4e   : > { %721 = vmatmul.mubr.f32.gmra.mrb[2].mxu1 %v181_v3  ;;  %469 = vmatprep.mubr.f32.mxu0 %v184_v4  ;;  %v371_v3 = vld [vmem:[%s2211_s2] sm:$0xf] }
  0x4f   : > { %726 = vmatprep.mubr.f32.mxu1 %v184_v4  ;;  %v383_v4 = vsub.s32 2, %v374_v1 }
  0x51   : > { %470 = vmatmul.mubr.f32.gmra.mrb[4].mxu0 %v183_v5 }
  0x52   : > { %727 = vmatmul.mubr.f32.gmra.mrb[4].mxu1 %v183_v5  ;;  %475 = vmatprep.mubr.f32.mxu0 %v186_v6  ;;  %v379_v5 = vsub.s32 1, %v374_v1 }
  0x53   : > { %732 = vmatprep.mubr.f32.mxu1 %v186_v6  ;;  %v387_v6 = vsub.s32 3, %v374_v1 }
  0x55   : > { %476 = vmatmul.mubr.f32.gmra.mrb[6].mxu0 %v185_v7 }
  0x56   : > { %733 = vmatmul.mubr.f32.gmra.mrb[6].mxu1 %v185_v7  ;;  %481 = vmatprep.mubr.f32.mxu0 %v188_v8  ;;  %v1937_v7 = vrot.slane %v371_v3, %v375_v2 }
  0x57   : > { %738 = vmatprep.mubr.f32.mxu1 %v188_v8  ;;  %v1939_v8 = vrot.slane %v371_v3, %v383_v4 }
  0x59   : > { %482 = vmatmul.mubr.f32.gmra.mrb[8].mxu0 %v187_v9 }
  0x5a   : > { %739 = vmatmul.mubr.f32.gmra.mrb[8].mxu1 %v187_v9  ;;  %487 = vmatprep.mubr.f32.mxu0 %v190_v10  ;;  %v1941_v9 = vrot.slane %v371_v3, %v379_v5 }
  0x5b   : > { %744 = vmatprep.mubr.f32.mxu1 %v190_v10  ;;  %v1943_v10 = vrot.slane %v371_v3, %v387_v6 }
  0x5d   : > { %488 = vmatmul.mubr.f32.gmra.mrb[10].mxu0 %v189_v11 }
  0x5e   : > { %745 = vmatmul.mubr.f32.gmra.mrb[10].mxu1 %v189_v11  ;;  %493 = vmatprep.mubr.f32.mxu0 %v192_v12 }
  0x5f   : > { %750 = vmatprep.mubr.f32.mxu1 %v192_v12 }
  0x61   : > { %494 = vmatmul.mubr.f32.gmra.mrb[12].mxu0 %v191_v13 }
  0x62   : > { %751 = vmatmul.mubr.f32.gmra.mrb[12].mxu1 %v191_v13  ;;  %499 = vmatprep.mubr.f32.mxu0 %v194_v14 }
  0x63   : > { %756 = vmatprep.mubr.f32.mxu1 %v194_v14 }
  0x65   : > { %500 = vmatmul.mubr.f32.gmra.mrb[14].mxu0 %v193_v15 }
  0x66   : > { %757 = vmatmul.mubr.f32.gmra.mrb[14].mxu1 %v193_v15  ;;  %505 = vmatprep.mubr.f32.mxu0 %v196_v16 }
  0x67   : > { %762 = vmatprep.mubr.f32.mxu1 %v196_v16 }
  0x69   : > { %506 = vmatmul.mubr.f32.gmra.mrb[16].mxu0 %v195_v17 }
  0x6a   : > { %763 = vmatmul.mubr.f32.gmra.mrb[16].mxu1 %v195_v17  ;;  %511 = vmatprep.mubr.f32.mxu0 %v198_v18 }
  0x6b   : > { %768 = vmatprep.mubr.f32.mxu1 %v198_v18 }
  0x6d   : > { %512 = vmatmul.mubr.f32.gmra.mrb[18].mxu0 %v197_v19 }
  0x6e   : > { %769 = vmatmul.mubr.f32.gmra.mrb[18].mxu1 %v197_v19  ;;  %517 = vmatprep.mubr.f32.mxu0 %v200_v20 }
  0x6f   : > { %774 = vmatprep.mubr.f32.mxu1 %v200_v20 }
  0x71   : > { %518 = vmatmul.mubr.f32.gmra.mrb[20].mxu0 %v199_v21 }
  0x72   : > { %775 = vmatmul.mubr.f32.gmra.mrb[20].mxu1 %v199_v21  ;;  %523 = vmatprep.mubr.f32.mxu0 %v202_v22 }
  0x73   : > { %780 = vmatprep.mubr.f32.mxu1 %v202_v22 }
  0x75   : > { %524 = vmatmul.mubr.f32.gmra.mrb[22].mxu0 %v201_v23 }
  0x76   : > { %781 = vmatmul.mubr.f32.gmra.mrb[22].mxu1 %v201_v23  ;;  %529 = vmatprep.mubr.f32.mxu0 %v204_v24 }
  0x77   : > { %786 = vmatprep.mubr.f32.mxu1 %v204_v24 }
  0x79   : > { %530 = vmatmul.mubr.f32.gmra.mrb[24].mxu0 %v203_v25 }
  0x7a   : > { %787 = vmatmul.mubr.f32.gmra.mrb[24].mxu1 %v203_v25  ;;  %535 = vmatprep.mubr.f32.mxu0 %v206_v26 }
  0x7b   : > { %792 = vmatprep.mubr.f32.mxu1 %v206_v26 }
  0x7d   : > { %536 = vmatmul.mubr.f32.gmra.mrb[26].mxu0 %v205_v27 }
  0x7e   : > { %793 = vmatmul.mubr.f32.gmra.mrb[26].mxu1 %v205_v27  ;;  %541 = vmatprep.mubr.f32.mxu0 %v208_v28 }
  0x7f   : > { %798 = vmatprep.mubr.f32.mxu1 %v208_v28 }
  0x81   : > { %542 = vmatmul.mubr.f32.gmra.mrb[28].mxu0 %v207_v29 }
  0x82   : > { %799 = vmatmul.mubr.f32.gmra.mrb[28].mxu1 %v207_v29  ;;  %547 = vmatprep.mubr.f32.mxu0 %v210_v30 }
  0x83   : > { %804 = vmatprep.mubr.f32.mxu1 %v210_v30 }
  0x85   : > { %548 = vmatmul.mubr.f32.gmra.mrb[30].mxu0 %v209_v31 }
  0x86   : > { %805 = vmatmul.mubr.f32.gmra.mrb[30].mxu1 %v209_v31  ;;  %553 = vmatprep.mubr.f32.mxu0 %v212_v32 }
  0x87   : > { %810 = vmatprep.mubr.f32.mxu1 %v212_v32 }
  0x89   : > { %554 = vmatmul.mubr.f32.gmra.mrb[32].mxu0 %v211_v33 }
  0x8a   : > { %811 = vmatmul.mubr.f32.gmra.mrb[32].mxu1 %v211_v33  ;;  %559 = vmatprep.mubr.f32.mxu0 %v214_v34 }
  0x8b   : > { %816 = vmatprep.mubr.f32.mxu1 %v214_v34 }
  0x8d   : > { %560 = vmatmul.mubr.f32.gmra.mrb[34].mxu0 %v213_v35 }
  0x8e   : > { %817 = vmatmul.mubr.f32.gmra.mrb[34].mxu1 %v213_v35  ;;  %565 = vmatprep.mubr.f32.mxu0 %v216_v36 }
  0x8f   : > { %822 = vmatprep.mubr.f32.mxu1 %v216_v36 }
  0x91   : > { %566 = vmatmul.mubr.f32.gmra.mrb[36].mxu0 %v215_v37 }
  0x92   : > { %823 = vmatmul.mubr.f32.gmra.mrb[36].mxu1 %v215_v37  ;;  %571 = vmatprep.mubr.f32.mxu0 %v218_v38 }
  0x93   : > { %828 = vmatprep.mubr.f32.mxu1 %v218_v38 }
  0x95   : > { %572 = vmatmul.mubr.f32.gmra.mrb[38].mxu0 %v217_v39 }
  0x96   : > { %829 = vmatmul.mubr.f32.gmra.mrb[38].mxu1 %v217_v39  ;;  %577 = vmatprep.mubr.f32.mxu0 %v220_v40 }
  0x97   : > { %834 = vmatprep.mubr.f32.mxu1 %v220_v40 }
  0x99   : > { %578 = vmatmul.mubr.f32.gmra.mrb[40].mxu0 %v219_v41 }
  0x9a   : > { %835 = vmatmul.mubr.f32.gmra.mrb[40].mxu1 %v219_v41  ;;  %583 = vmatprep.mubr.f32.mxu0 %v222_v42 }
  0x9b   : > { %840 = vmatprep.mubr.f32.mxu1 %v222_v42 }
  0x9d   : > { %584 = vmatmul.mubr.f32.gmra.mrb[42].mxu0 %v221_v43 }
  0x9e   : > { %841 = vmatmul.mubr.f32.gmra.mrb[42].mxu1 %v221_v43  ;;  %589 = vmatprep.mubr.f32.mxu0 %v224_v44 }
  0x9f   : > { %846 = vmatprep.mubr.f32.mxu1 %v224_v44 }
  0xa1   : > { %590 = vmatmul.mubr.f32.gmra.mrb[44].mxu0 %v223_v45 }
  0xa2   : > { %847 = vmatmul.mubr.f32.gmra.mrb[44].mxu1 %v223_v45  ;;  %595 = vmatprep.mubr.f32.mxu0 %v226_v46 }
  0xa3   : > { %852 = vmatprep.mubr.f32.mxu1 %v226_v46 }
  0xa5   : > { %596 = vmatmul.mubr.f32.gmra.mrb[46].mxu0 %v225_v47 }
  0xa6   : > { %853 = vmatmul.mubr.f32.gmra.mrb[46].mxu1 %v225_v47  ;;  %601 = vmatprep.mubr.f32.mxu0 %v228_v48 }
  0xa7   : > { %858 = vmatprep.mubr.f32.mxu1 %v228_v48 }
  0xa9   : > { %602 = vmatmul.mubr.f32.gmra.mrb[48].mxu0 %v227_v49 }
  0xaa   : > { %859 = vmatmul.mubr.f32.gmra.mrb[48].mxu1 %v227_v49  ;;  %607 = vmatprep.mubr.f32.mxu0 %v230_v50 }
  0xab   : > { %864 = vmatprep.mubr.f32.mxu1 %v230_v50 }
  0xad   : > { %608 = vmatmul.mubr.f32.gmra.mrb[50].mxu0 %v229_v51 }
  0xae   : > { %865 = vmatmul.mubr.f32.gmra.mrb[50].mxu1 %v229_v51  ;;  %613 = vmatprep.mubr.f32.mxu0 %v232_v52 }
  0xaf   : > { %870 = vmatprep.mubr.f32.mxu1 %v232_v52 }
  0xb1   : > { %614 = vmatmul.mubr.f32.gmra.mrb[52].mxu0 %v231_v53 }
  0xb2   : > { %871 = vmatmul.mubr.f32.gmra.mrb[52].mxu1 %v231_v53  ;;  %619 = vmatprep.mubr.f32.mxu0 %v234_v54 }
  0xb3   : > { %876 = vmatprep.mubr.f32.mxu1 %v234_v54 }
  0xb5   : > { %620 = vmatmul.mubr.f32.gmra.mrb[54].mxu0 %v233_v55 }
  0xb6   : > { %877 = vmatmul.mubr.f32.gmra.mrb[54].mxu1 %v233_v55  ;;  %625 = vmatprep.mubr.f32.mxu0 %v236_v56 }
  0xb7   : > { %882 = vmatprep.mubr.f32.mxu1 %v236_v56 }
  0xb9   : > { %626 = vmatmul.mubr.f32.gmra.mrb[56].mxu0 %v235_v57 }
  0xba   : > { %883 = vmatmul.mubr.f32.gmra.mrb[56].mxu1 %v235_v57  ;;  %631 = vmatprep.mubr.f32.mxu0 %v238_v58 }
  0xbb   : > { %888 = vmatprep.mubr.f32.mxu1 %v238_v58 }
  0xbd   : > { %632 = vmatmul.mubr.f32.gmra.mrb[58].mxu0 %v237_v59 }
  0xbe   : > { %889 = vmatmul.mubr.f32.gmra.mrb[58].mxu1 %v237_v59  ;;  %637 = vmatprep.mubr.f32.mxu0 %v240_v60 }
  0xbf   : > { %894 = vmatprep.mubr.f32.mxu1 %v240_v60 }
  0xc1   : > { %638 = vmatmul.mubr.f32.gmra.mrb[60].mxu0 %v239_v61 }
  0xc2   : > { %895 = vmatmul.mubr.f32.gmra.mrb[60].mxu1 %v239_v61  ;;  %643 = vmatprep.mubr.f32.mxu0 %v242_v62 }
  0xc3   : > { %900 = vmatprep.mubr.f32.mxu1 %v242_v62 }
  0xc5   : > { %644 = vmatmul.mubr.f32.gmra.mrb[62].mxu0 %v241_v63 }
  0xc6   : > { %901 = vmatmul.mubr.f32.gmra.mrb[62].mxu1 %v241_v63 }
 0x11c   : > { %v459_v11 = vpop.f32.mrb[0].mxu0 }
 0x11d   : > { %v460_v12 = vadd.f32 %v459_v11, %v1937_v7  ;;  %v716_v13 = vpop.f32.mrb[0].mxu1  ;;  %v461_v14 = vpop.f32.mrb[1].mxu0 }
 0x11e   : > { %v717_v15 = vadd.f32 %v716_v13, %v1939_v8  ;;  %v462_v16 = vadd.f32 %v461_v14, %v1941_v9  ;;  %v718_v17 = vpop.f32.mrb[1].mxu1 }
 0x11f   : > { %v907_v18 = vmax.f32 %v460_v12, 0.0  ;;  %v719_v19 = vadd.f32 %v718_v17, %v1943_v10 }
 0x120   : > { %v909_v20 = vmax.f32 %v717_v15, 0.0  ;;  %v908_v21 = vmax.f32 %v462_v16, 0.0  ;;  %v465_v22 = vpop.f32.mrb[2].mxu0 }
 0x121   : > { %1035 = vst [vmem:[%s1949_s6] sm:$0xff] %v907_v18  ;;  %v910_v23 = vmax.f32 %v719_v19, 0.0  ;;  %v466_v24 = vadd.f32 %v465_v22, %v1937_v7  ;;  %v722_v25 = vpop.f32.mrb[2].mxu1  ;;  %v467_v26 = vpop.f32.mrb[3].mxu0 }
 0x122   : > { %1233 = vst [vmem:[%s1949_s6 + $0x20] sm:$0xff] %v909_v20  ;;  %1036 = vst [vmem:[%s1949_s6 + $0x8] sm:$0xff] %v908_v21  ;;  %v723_v27 = vadd.f32 %v722_v25, %v1939_v8  ;;  %v468_v28 = vadd.f32 %v467_v26, %v1941_v9  ;;  %v724_v29 = vpop.f32.mrb[3].mxu1 }
 0x123   : > { %1234 = vst [vmem:[%s1949_s6 + $0x28] sm:$0xff] %v910_v23  ;;  %v911_v30 = vmax.f32 %v466_v24, 0.0  ;;  %v725_v31 = vadd.f32 %v724_v29, %v1943_v10 }
 0x124   : > { %v913_v32 = vmax.f32 %v723_v27, 0.0  ;;  %v912_v33 = vmax.f32 %v468_v28, 0.0  ;;  %v471_v34 = vpop.f32.mrb[4].mxu0 }
 0x125   : > { %1037 = vst [vmem:[%s1949_s6 + $0x10] sm:$0xff] %v911_v30  ;;  %v914_v35 = vmax.f32 %v725_v31, 0.0  ;;  %v472_v36 = vadd.f32 %v471_v34, %v1937_v7  ;;  %v728_v37 = vpop.f32.mrb[4].mxu1  ;;  %v473_v38 = vpop.f32.mrb[5].mxu0 }
 0x126   : > { %1235 = vst [vmem:[%s1949_s6 + $0x30] sm:$0xff] %v913_v32  ;;  %1038 = vst [vmem:[%s1949_s6 + $0x18] sm:$0xff] %v912_v33  ;;  %v729_v39 = vadd.f32 %v728_v37, %v1939_v8  ;;  %v474_v40 = vadd.f32 %v473_v38, %v1941_v9  ;;  %v730_v41 = vpop.f32.mrb[5].mxu1 }
 0x127   : > { %1236 = vst [vmem:[%s1949_s6 + $0x38] sm:$0xff] %v914_v35  ;;  %v915_v42 = vmax.f32 %v472_v36, 0.0  ;;  %v731_v43 = vadd.f32 %v730_v41, %v1943_v10 }
 0x128   : > { %v917_v44 = vmax.f32 %v729_v39, 0.0  ;;  %v916_v45 = vmax.f32 %v474_v40, 0.0  ;;  %v477_v46 = vpop.f32.mrb[6].mxu0 }
 0x129   : > { %1039 = vst [vmem:[%s1949_s6 + $0x40] sm:$0xff] %v915_v42  ;;  %v918_v47 = vmax.f32 %v731_v43, 0.0  ;;  %v478_v48 = vadd.f32 %v477_v46, %v1937_v7  ;;  %v734_v49 = vpop.f32.mrb[6].mxu1  ;;  %v479_v50 = vpop.f32.mrb[7].mxu0 }
 0x12a   : > { %1237 = vst [vmem:[%s1949_s6 + $0x60] sm:$0xff] %v917_v44  ;;  %1040 = vst [vmem:[%s1949_s6 + $0x48] sm:$0xff] %v916_v45  ;;  %v735_v51 = vadd.f32 %v734_v49, %v1939_v8  ;;  %v480_v52 = vadd.f32 %v479_v50, %v1941_v9  ;;  %v736_v53 = vpop.f32.mrb[7].mxu1 }
 0x12b   : > { %1238 = vst [vmem:[%s1949_s6 + $0x68] sm:$0xff] %v918_v47  ;;  %v919_v54 = vmax.f32 %v478_v48, 0.0  ;;  %v737_v55 = vadd.f32 %v736_v53, %v1943_v10 }
 0x12c   : > { %v921_v56 = vmax.f32 %v735_v51, 0.0  ;;  %v920_v57 = vmax.f32 %v480_v52, 0.0  ;;  %v483_v58 = vpop.f32.mrb[8].mxu0 }
 0x12d   : > { %1041 = vst [vmem:[%s1949_s6 + $0x50] sm:$0xff] %v919_v54  ;;  %v922_v59 = vmax.f32 %v737_v55, 0.0  ;;  %v484_v60 = vadd.f32 %v483_v58, %v1937_v7  ;;  %v740_v61 = vpop.f32.mrb[8].mxu1  ;;  %v485_v62 = vpop.f32.mrb[9].mxu0 }
 0x12e   : > { %1239 = vst [vmem:[%s1949_s6 + $0x70] sm:$0xff] %v921_v56  ;;  %1042 = vst [vmem:[%s1949_s6 + $0x58] sm:$0xff] %v920_v57  ;;  %v741_v63 = vadd.f32 %v740_v61, %v1939_v8  ;;  %v486_v0 = vadd.f32 %v485_v62, %v1941_v9  ;;  %v742_v1 = vpop.f32.mrb[9].mxu1 }
 0x12f   : > { %1240 = vst [vmem:[%s1949_s6 + $0x78] sm:$0xff] %v922_v59  ;;  %v923_v2 = vmax.f32 %v484_v60, 0.0  ;;  %v743_v3 = vadd.f32 %v742_v1, %v1943_v10 }
 0x130   : > { %v925_v4 = vmax.f32 %v741_v63, 0.0  ;;  %v924_v5 = vmax.f32 %v486_v0, 0.0  ;;  %v489_v6 = vpop.f32.mrb[10].mxu0 }
 0x131   : > { %1043 = vst [vmem:[%s1949_s6 + $0x80] sm:$0xff] %v923_v2  ;;  %v926_v11 = vmax.f32 %v743_v3, 0.0  ;;  %v490_v12 = vadd.f32 %v489_v6, %v1937_v7  ;;  %v746_v13 = vpop.f32.mrb[10].mxu1  ;;  %v491_v14 = vpop.f32.mrb[11].mxu0 }
 0x132   : > { %1241 = vst [vmem:[%s1949_s6 + $0xa0] sm:$0xff] %v925_v4  ;;  %1044 = vst [vmem:[%s1949_s6 + $0x88] sm:$0xff] %v924_v5  ;;  %v747_v15 = vadd.f32 %v746_v13, %v1939_v8  ;;  %v492_v16 = vadd.f32 %v491_v14, %v1941_v9  ;;  %v748_v17 = vpop.f32.mrb[11].mxu1 }
 0x133   : > { %1242 = vst [vmem:[%s1949_s6 + $0xa8] sm:$0xff] %v926_v11  ;;  %v927_v18 = vmax.f32 %v490_v12, 0.0  ;;  %v749_v19 = vadd.f32 %v748_v17, %v1943_v10 }
 0x134   : > { %v929_v20 = vmax.f32 %v747_v15, 0.0  ;;  %v928_v21 = vmax.f32 %v492_v16, 0.0  ;;  %v495_v22 = vpop.f32.mrb[12].mxu0 }
 0x135   : > { %1045 = vst [vmem:[%s1949_s6 + $0x90] sm:$0xff] %v927_v18  ;;  %v930_v23 = vmax.f32 %v749_v19, 0.0  ;;  %v496_v24 = vadd.f32 %v495_v22, %v1937_v7  ;;  %v752_v25 = vpop.f32.mrb[12].mxu1  ;;  %v497_v26 = vpop.f32.mrb[13].mxu0 }
 0x136   : > { %1243 = vst [vmem:[%s1949_s6 + $0xb0] sm:$0xff] %v929_v20  ;;  %1046 = vst [vmem:[%s1949_s6 + $0x98] sm:$0xff] %v928_v21  ;;  %v753_v27 = vadd.f32 %v752_v25, %v1939_v8  ;;  %v498_v28 = vadd.f32 %v497_v26, %v1941_v9  ;;  %v754_v29 = vpop.f32.mrb[13].mxu1 }
 0x137   : > { %1244 = vst [vmem:[%s1949_s6 + $0xb8] sm:$0xff] %v930_v23  ;;  %v931_v30 = vmax.f32 %v496_v24, 0.0  ;;  %v755_v31 = vadd.f32 %v754_v29, %v1943_v10 }
 0x138   : > { %v933_v32 = vmax.f32 %v753_v27, 0.0  ;;  %v932_v33 = vmax.f32 %v498_v28, 0.0  ;;  %v501_v34 = vpop.f32.mrb[14].mxu0 }
 0x139   : > { %1047 = vst [vmem:[%s1949_s6 + $0xc0] sm:$0xff] %v931_v30  ;;  %v934_v35 = vmax.f32 %v755_v31, 0.0  ;;  %v502_v36 = vadd.f32 %v501_v34, %v1937_v7  ;;  %v758_v37 = vpop.f32.mrb[14].mxu1  ;;  %v503_v38 = vpop.f32.mrb[15].mxu0 }
 0x13a   : > { %1245 = vst [vmem:[%s1949_s6 + $0xe0] sm:$0xff] %v933_v32  ;;  %1048 = vst [vmem:[%s1949_s6 + $0xc8] sm:$0xff] %v932_v33  ;;  %v759_v39 = vadd.f32 %v758_v37, %v1939_v8  ;;  %v504_v40 = vadd.f32 %v503_v38, %v1941_v9  ;;  %v760_v41 = vpop.f32.mrb[15].mxu1 }
 0x13b   : > { %1246 = vst [vmem:[%s1949_s6 + $0xe8] sm:$0xff] %v934_v35  ;;  %v935_v42 = vmax.f32 %v502_v36, 0.0  ;;  %v761_v43 = vadd.f32 %v760_v41, %v1943_v10 }
 0x13c   : > { %v937_v44 = vmax.f32 %v759_v39, 0.0  ;;  %v936_v45 = vmax.f32 %v504_v40, 0.0  ;;  %v507_v46 = vpop.f32.mrb[16].mxu0 }
 0x13d   : > { %1049 = vst [vmem:[%s1949_s6 + $0xd0] sm:$0xff] %v935_v42  ;;  %v938_v47 = vmax.f32 %v761_v43, 0.0  ;;  %v508_v48 = vadd.f32 %v507_v46, %v1937_v7  ;;  %v764_v49 = vpop.f32.mrb[16].mxu1  ;;  %v509_v50 = vpop.f32.mrb[17].mxu0 }
 0x13e   : > { %1247 = vst [vmem:[%s1949_s6 + $0xf0] sm:$0xff] %v937_v44  ;;  %1050 = vst [vmem:[%s1949_s6 + $0xd8] sm:$0xff] %v936_v45  ;;  %v765_v51 = vadd.f32 %v764_v49, %v1939_v8  ;;  %v510_v52 = vadd.f32 %v509_v50, %v1941_v9  ;;  %v766_v53 = vpop.f32.mrb[17].mxu1 }
 0x13f   : > { %1248 = vst [vmem:[%s1949_s6 + $0xf8] sm:$0xff] %v938_v47  ;;  %v939_v54 = vmax.f32 %v508_v48, 0.0  ;;  %v767_v55 = vadd.f32 %v766_v53, %v1943_v10 }
 0x140   : > { %v941_v56 = vmax.f32 %v765_v51, 0.0  ;;  %v940_v57 = vmax.f32 %v510_v52, 0.0  ;;  %v513_v58 = vpop.f32.mrb[18].mxu0 }
 0x141   : > { %1051 = vst [vmem:[%s1949_s6 + $0x100] sm:$0xff] %v939_v54  ;;  %v942_v59 = vmax.f32 %v767_v55, 0.0  ;;  %v514_v60 = vadd.f32 %v513_v58, %v1937_v7  ;;  %v770_v61 = vpop.f32.mrb[18].mxu1  ;;  %v515_v62 = vpop.f32.mrb[19].mxu0 }
 0x142   : > { %1249 = vst [vmem:[%s1949_s6 + $0x120] sm:$0xff] %v941_v56  ;;  %1052 = vst [vmem:[%s1949_s6 + $0x108] sm:$0xff] %v940_v57  ;;  %v771_v63 = vadd.f32 %v770_v61, %v1939_v8  ;;  %v516_v0 = vadd.f32 %v515_v62, %v1941_v9  ;;  %v772_v1 = vpop.f32.mrb[19].mxu1 }
 0x143   : > { %1250 = vst [vmem:[%s1949_s6 + $0x128] sm:$0xff] %v942_v59  ;;  %v943_v2 = vmax.f32 %v514_v60, 0.0  ;;  %v773_v3 = vadd.f32 %v772_v1, %v1943_v10 }
 0x144   : > { %v945_v4 = vmax.f32 %v771_v63, 0.0  ;;  %v944_v5 = vmax.f32 %v516_v0, 0.0  ;;  %v519_v6 = vpop.f32.mrb[20].mxu0 }
 0x145   : > { %1053 = vst [vmem:[%s1949_s6 + $0x110] sm:$0xff] %v943_v2  ;;  %v946_v11 = vmax.f32 %v773_v3, 0.0  ;;  %v520_v12 = vadd.f32 %v519_v6, %v1937_v7  ;;  %v776_v13 = vpop.f32.mrb[20].mxu1  ;;  %v521_v14 = vpop.f32.mrb[21].mxu0 }
 0x146   : > { %1251 = vst [vmem:[%s1949_s6 + $0x130] sm:$0xff] %v945_v4  ;;  %1054 = vst [vmem:[%s1949_s6 + $0x118] sm:$0xff] %v944_v5  ;;  %v777_v15 = vadd.f32 %v776_v13, %v1939_v8  ;;  %v522_v16 = vadd.f32 %v521_v14, %v1941_v9  ;;  %v778_v17 = vpop.f32.mrb[21].mxu1 }
 0x147   : > { %1252 = vst [vmem:[%s1949_s6 + $0x138] sm:$0xff] %v946_v11  ;;  %v947_v18 = vmax.f32 %v520_v12, 0.0  ;;  %v779_v19 = vadd.f32 %v778_v17, %v1943_v10 }
 0x148   : > { %v949_v20 = vmax.f32 %v777_v15, 0.0  ;;  %v948_v21 = vmax.f32 %v522_v16, 0.0  ;;  %v525_v22 = vpop.f32.mrb[22].mxu0 }
 0x149   : > { %1055 = vst [vmem:[%s1949_s6 + $0x140] sm:$0xff] %v947_v18  ;;  %v950_v23 = vmax.f32 %v779_v19, 0.0  ;;  %v526_v24 = vadd.f32 %v525_v22, %v1937_v7  ;;  %v782_v25 = vpop.f32.mrb[22].mxu1  ;;  %v527_v26 = vpop.f32.mrb[23].mxu0 }
 0x14a   : > { %1253 = vst [vmem:[%s1949_s6 + $0x160] sm:$0xff] %v949_v20  ;;  %1056 = vst [vmem:[%s1949_s6 + $0x148] sm:$0xff] %v948_v21  ;;  %v783_v27 = vadd.f32 %v782_v25, %v1939_v8  ;;  %v528_v28 = vadd.f32 %v527_v26, %v1941_v9  ;;  %v784_v29 = vpop.f32.mrb[23].mxu1 }
 0x14b   : > { %1254 = vst [vmem:[%s1949_s6 + $0x168] sm:$0xff] %v950_v23  ;;  %v951_v30 = vmax.f32 %v526_v24, 0.0  ;;  %v785_v31 = vadd.f32 %v784_v29, %v1943_v10 }
 0x14c   : > { %v953_v32 = vmax.f32 %v783_v27, 0.0  ;;  %v952_v33 = vmax.f32 %v528_v28, 0.0  ;;  %v531_v34 = vpop.f32.mrb[24].mxu0 }
 0x14d   : > { %1057 = vst [vmem:[%s1949_s6 + $0x150] sm:$0xff] %v951_v30  ;;  %v954_v35 = vmax.f32 %v785_v31, 0.0  ;;  %v532_v36 = vadd.f32 %v531_v34, %v1937_v7  ;;  %v788_v37 = vpop.f32.mrb[24].mxu1  ;;  %v533_v38 = vpop.f32.mrb[25].mxu0 }
 0x14e   : > { %1255 = vst [vmem:[%s1949_s6 + $0x170] sm:$0xff] %v953_v32  ;;  %1058 = vst [vmem:[%s1949_s6 + $0x158] sm:$0xff] %v952_v33  ;;  %v789_v39 = vadd.f32 %v788_v37, %v1939_v8  ;;  %v534_v40 = vadd.f32 %v533_v38, %v1941_v9  ;;  %v790_v41 = vpop.f32.mrb[25].mxu1 }
 0x14f   : > { %1256 = vst [vmem:[%s1949_s6 + $0x178] sm:$0xff] %v954_v35  ;;  %v955_v42 = vmax.f32 %v532_v36, 0.0  ;;  %v791_v43 = vadd.f32 %v790_v41, %v1943_v10 }
 0x150   : > { %v957_v44 = vmax.f32 %v789_v39, 0.0  ;;  %v956_v45 = vmax.f32 %v534_v40, 0.0  ;;  %v537_v46 = vpop.f32.mrb[26].mxu0 }
 0x151   : > { %1059 = vst [vmem:[%s1949_s6 + $0x180] sm:$0xff] %v955_v42  ;;  %v958_v47 = vmax.f32 %v791_v43, 0.0  ;;  %v538_v48 = vadd.f32 %v537_v46, %v1937_v7  ;;  %v794_v49 = vpop.f32.mrb[26].mxu1  ;;  %v539_v50 = vpop.f32.mrb[27].mxu0 }
 0x152   : > { %1257 = vst [vmem:[%s1949_s6 + $0x1a0] sm:$0xff] %v957_v44  ;;  %1060 = vst [vmem:[%s1949_s6 + $0x188] sm:$0xff] %v956_v45  ;;  %v795_v51 = vadd.f32 %v794_v49, %v1939_v8  ;;  %v540_v52 = vadd.f32 %v539_v50, %v1941_v9  ;;  %v796_v53 = vpop.f32.mrb[27].mxu1 }
 0x153   : > { %1258 = vst [vmem:[%s1949_s6 + $0x1a8] sm:$0xff] %v958_v47  ;;  %v959_v54 = vmax.f32 %v538_v48, 0.0  ;;  %v797_v55 = vadd.f32 %v796_v53, %v1943_v10 }
 0x154   : > { %v961_v56 = vmax.f32 %v795_v51, 0.0  ;;  %v960_v57 = vmax.f32 %v540_v52, 0.0  ;;  %v543_v58 = vpop.f32.mrb[28].mxu0 }
 0x155   : > { %1061 = vst [vmem:[%s1949_s6 + $0x190] sm:$0xff] %v959_v54  ;;  %v962_v59 = vmax.f32 %v797_v55, 0.0  ;;  %v544_v60 = vadd.f32 %v543_v58, %v1937_v7  ;;  %v800_v61 = vpop.f32.mrb[28].mxu1  ;;  %v545_v62 = vpop.f32.mrb[29].mxu0 }
 0x156   : > { %1259 = vst [vmem:[%s1949_s6 + $0x1b0] sm:$0xff] %v961_v56  ;;  %1062 = vst [vmem:[%s1949_s6 + $0x198] sm:$0xff] %v960_v57  ;;  %v801_v63 = vadd.f32 %v800_v61, %v1939_v8  ;;  %v546_v0 = vadd.f32 %v545_v62, %v1941_v9  ;;  %v802_v1 = vpop.f32.mrb[29].mxu1 }
 0x157   : > { %1260 = vst [vmem:[%s1949_s6 + $0x1b8] sm:$0xff] %v962_v59  ;;  %v963_v2 = vmax.f32 %v544_v60, 0.0  ;;  %v803_v3 = vadd.f32 %v802_v1, %v1943_v10 }
 0x158   : > { %v965_v4 = vmax.f32 %v801_v63, 0.0  ;;  %v964_v5 = vmax.f32 %v546_v0, 0.0  ;;  %v549_v6 = vpop.f32.mrb[30].mxu0 }
 0x159   : > { %1063 = vst [vmem:[%s1949_s6 + $0x1c0] sm:$0xff] %v963_v2  ;;  %v966_v11 = vmax.f32 %v803_v3, 0.0  ;;  %v550_v12 = vadd.f32 %v549_v6, %v1937_v7  ;;  %v806_v13 = vpop.f32.mrb[30].mxu1  ;;  %v551_v14 = vpop.f32.mrb[31].mxu0 }
 0x15a   : > { %1261 = vst [vmem:[%s1949_s6 + $0x1e0] sm:$0xff] %v965_v4  ;;  %1064 = vst [vmem:[%s1949_s6 + $0x1c8] sm:$0xff] %v964_v5  ;;  %v807_v15 = vadd.f32 %v806_v13, %v1939_v8  ;;  %v552_v16 = vadd.f32 %v551_v14, %v1941_v9  ;;  %v808_v17 = vpop.f32.mrb[31].mxu1 }
 0x15b   : > { %1262 = vst [vmem:[%s1949_s6 + $0x1e8] sm:$0xff] %v966_v11  ;;  %v967_v18 = vmax.f32 %v550_v12, 0.0  ;;  %v809_v19 = vadd.f32 %v808_v17, %v1943_v10 }
 0x15c   : > { %v969_v20 = vmax.f32 %v807_v15, 0.0  ;;  %v968_v21 = vmax.f32 %v552_v16, 0.0  ;;  %v555_v22 = vpop.f32.mrb[32].mxu0 }
 0x15d   : > { %1065 = vst [vmem:[%s1949_s6 + $0x1d0] sm:$0xff] %v967_v18  ;;  %v970_v23 = vmax.f32 %v809_v19, 0.0  ;;  %v556_v24 = vadd.f32 %v555_v22, %v1937_v7  ;;  %v812_v25 = vpop.f32.mrb[32].mxu1  ;;  %v557_v26 = vpop.f32.mrb[33].mxu0 }
 0x15e   : > { %1263 = vst [vmem:[%s1949_s6 + $0x1f0] sm:$0xff] %v969_v20  ;;  %1066 = vst [vmem:[%s1949_s6 + $0x1d8] sm:$0xff] %v968_v21  ;;  %v813_v27 = vadd.f32 %v812_v25, %v1939_v8  ;;  %v558_v28 = vadd.f32 %v557_v26, %v1941_v9  ;;  %v814_v29 = vpop.f32.mrb[33].mxu1 }
 0x15f   : > { %1264 = vst [vmem:[%s1949_s6 + $0x1f8] sm:$0xff] %v970_v23  ;;  %v971_v30 = vmax.f32 %v556_v24, 0.0  ;;  %v815_v31 = vadd.f32 %v814_v29, %v1943_v10 }
 0x160   : > { %v973_v32 = vmax.f32 %v813_v27, 0.0  ;;  %v972_v33 = vmax.f32 %v558_v28, 0.0  ;;  %v561_v34 = vpop.f32.mrb[34].mxu0 }
 0x161   : > { %1067 = vst [vmem:[%s1949_s6 + $0x200] sm:$0xff] %v971_v30  ;;  %v974_v35 = vmax.f32 %v815_v31, 0.0  ;;  %v562_v36 = vadd.f32 %v561_v34, %v1937_v7  ;;  %v818_v37 = vpop.f32.mrb[34].mxu1  ;;  %v563_v38 = vpop.f32.mrb[35].mxu0 }
 0x162   : > { %1265 = vst [vmem:[%s1949_s6 + $0x220] sm:$0xff] %v973_v32  ;;  %1068 = vst [vmem:[%s1949_s6 + $0x208] sm:$0xff] %v972_v33  ;;  %v819_v39 = vadd.f32 %v818_v37, %v1939_v8  ;;  %v564_v40 = vadd.f32 %v563_v38, %v1941_v9  ;;  %v820_v41 = vpop.f32.mrb[35].mxu1 }
 0x163   : > { %1266 = vst [vmem:[%s1949_s6 + $0x228] sm:$0xff] %v974_v35  ;;  %v975_v42 = vmax.f32 %v562_v36, 0.0  ;;  %v821_v43 = vadd.f32 %v820_v41, %v1943_v10 }
 0x164   : > { %v977_v44 = vmax.f32 %v819_v39, 0.0  ;;  %v976_v45 = vmax.f32 %v564_v40, 0.0  ;;  %v567_v46 = vpop.f32.mrb[36].mxu0 }
 0x165   : > { %1069 = vst [vmem:[%s1949_s6 + $0x210] sm:$0xff] %v975_v42  ;;  %v978_v47 = vmax.f32 %v821_v43, 0.0  ;;  %v568_v48 = vadd.f32 %v567_v46, %v1937_v7  ;;  %v824_v49 = vpop.f32.mrb[36].mxu1  ;;  %v569_v50 = vpop.f32.mrb[37].mxu0 }
 0x166   : > { %1267 = vst [vmem:[%s1949_s6 + $0x230] sm:$0xff] %v977_v44  ;;  %1070 = vst [vmem:[%s1949_s6 + $0x218] sm:$0xff] %v976_v45  ;;  %v825_v51 = vadd.f32 %v824_v49, %v1939_v8  ;;  %v570_v52 = vadd.f32 %v569_v50, %v1941_v9  ;;  %v826_v53 = vpop.f32.mrb[37].mxu1 }
 0x167   : > { %1268 = vst [vmem:[%s1949_s6 + $0x238] sm:$0xff] %v978_v47  ;;  %v979_v54 = vmax.f32 %v568_v48, 0.0  ;;  %v827_v55 = vadd.f32 %v826_v53, %v1943_v10 }
 0x168   : > { %v981_v56 = vmax.f32 %v825_v51, 0.0  ;;  %v980_v57 = vmax.f32 %v570_v52, 0.0  ;;  %v573_v58 = vpop.f32.mrb[38].mxu0 }
 0x169   : > { %1071 = vst [vmem:[%s1949_s6 + $0x240] sm:$0xff] %v979_v54  ;;  %v982_v59 = vmax.f32 %v827_v55, 0.0  ;;  %v574_v60 = vadd.f32 %v573_v58, %v1937_v7  ;;  %v830_v61 = vpop.f32.mrb[38].mxu1  ;;  %v575_v62 = vpop.f32.mrb[39].mxu0 }
 0x16a   : > { %1269 = vst [vmem:[%s1949_s6 + $0x260] sm:$0xff] %v981_v56  ;;  %1072 = vst [vmem:[%s1949_s6 + $0x248] sm:$0xff] %v980_v57  ;;  %v831_v63 = vadd.f32 %v830_v61, %v1939_v8  ;;  %v576_v0 = vadd.f32 %v575_v62, %v1941_v9  ;;  %v832_v1 = vpop.f32.mrb[39].mxu1 }
 0x16b   : > { %1270 = vst [vmem:[%s1949_s6 + $0x268] sm:$0xff] %v982_v59  ;;  %v983_v2 = vmax.f32 %v574_v60, 0.0  ;;  %v833_v3 = vadd.f32 %v832_v1, %v1943_v10 }
 0x16c   : > { %v985_v4 = vmax.f32 %v831_v63, 0.0  ;;  %v984_v5 = vmax.f32 %v576_v0, 0.0  ;;  %v579_v6 = vpop.f32.mrb[40].mxu0 }
 0x16d   : > { %1073 = vst [vmem:[%s1949_s6 + $0x250] sm:$0xff] %v983_v2  ;;  %v986_v11 = vmax.f32 %v833_v3, 0.0  ;;  %v580_v12 = vadd.f32 %v579_v6, %v1937_v7  ;;  %v836_v13 = vpop.f32.mrb[40].mxu1  ;;  %v581_v14 = vpop.f32.mrb[41].mxu0 }
 0x16e   : > { %1271 = vst [vmem:[%s1949_s6 + $0x270] sm:$0xff] %v985_v4  ;;  %1074 = vst [vmem:[%s1949_s6 + $0x258] sm:$0xff] %v984_v5  ;;  %v837_v15 = vadd.f32 %v836_v13, %v1939_v8  ;;  %v582_v16 = vadd.f32 %v581_v14, %v1941_v9  ;;  %v838_v17 = vpop.f32.mrb[41].mxu1 }
 0x16f   : > { %1272 = vst [vmem:[%s1949_s6 + $0x278] sm:$0xff] %v986_v11  ;;  %v987_v18 = vmax.f32 %v580_v12, 0.0  ;;  %v839_v19 = vadd.f32 %v838_v17, %v1943_v10 }
 0x170   : > { %v989_v20 = vmax.f32 %v837_v15, 0.0  ;;  %v988_v21 = vmax.f32 %v582_v16, 0.0  ;;  %v585_v22 = vpop.f32.mrb[42].mxu0 }
 0x171   : > { %1075 = vst [vmem:[%s1949_s6 + $0x280] sm:$0xff] %v987_v18  ;;  %v990_v23 = vmax.f32 %v839_v19, 0.0  ;;  %v586_v24 = vadd.f32 %v585_v22, %v1937_v7  ;;  %v842_v25 = vpop.f32.mrb[42].mxu1  ;;  %v587_v26 = vpop.f32.mrb[43].mxu0 }
 0x172   : > { %1273 = vst [vmem:[%s1949_s6 + $0x2a0] sm:$0xff] %v989_v20  ;;  %1076 = vst [vmem:[%s1949_s6 + $0x288] sm:$0xff] %v988_v21  ;;  %v843_v27 = vadd.f32 %v842_v25, %v1939_v8  ;;  %v588_v28 = vadd.f32 %v587_v26, %v1941_v9  ;;  %v844_v29 = vpop.f32.mrb[43].mxu1 }
 0x173   : > { %1274 = vst [vmem:[%s1949_s6 + $0x2a8] sm:$0xff] %v990_v23  ;;  %v991_v30 = vmax.f32 %v586_v24, 0.0  ;;  %v845_v31 = vadd.f32 %v844_v29, %v1943_v10 }
 0x174   : > { %v993_v32 = vmax.f32 %v843_v27, 0.0  ;;  %v992_v33 = vmax.f32 %v588_v28, 0.0  ;;  %v591_v34 = vpop.f32.mrb[44].mxu0 }
 0x175   : > { %1077 = vst [vmem:[%s1949_s6 + $0x290] sm:$0xff] %v991_v30  ;;  %v994_v35 = vmax.f32 %v845_v31, 0.0  ;;  %v592_v36 = vadd.f32 %v591_v34, %v1937_v7  ;;  %v848_v37 = vpop.f32.mrb[44].mxu1  ;;  %v593_v38 = vpop.f32.mrb[45].mxu0 }
 0x176   : > { %1275 = vst [vmem:[%s1949_s6 + $0x2b0] sm:$0xff] %v993_v32  ;;  %1078 = vst [vmem:[%s1949_s6 + $0x298] sm:$0xff] %v992_v33  ;;  %v849_v39 = vadd.f32 %v848_v37, %v1939_v8  ;;  %v594_v40 = vadd.f32 %v593_v38, %v1941_v9  ;;  %v850_v41 = vpop.f32.mrb[45].mxu1 }
 0x177   : > { %1276 = vst [vmem:[%s1949_s6 + $0x2b8] sm:$0xff] %v994_v35  ;;  %v995_v42 = vmax.f32 %v592_v36, 0.0  ;;  %v851_v43 = vadd.f32 %v850_v41, %v1943_v10 }
 0x178   : > { %v997_v44 = vmax.f32 %v849_v39, 0.0  ;;  %v996_v45 = vmax.f32 %v594_v40, 0.0  ;;  %v597_v46 = vpop.f32.mrb[46].mxu0 }
 0x179   : > { %1079 = vst [vmem:[%s1949_s6 + $0x2c0] sm:$0xff] %v995_v42  ;;  %v998_v47 = vmax.f32 %v851_v43, 0.0  ;;  %v598_v48 = vadd.f32 %v597_v46, %v1937_v7  ;;  %v854_v49 = vpop.f32.mrb[46].mxu1  ;;  %v599_v50 = vpop.f32.mrb[47].mxu0 }
 0x17a   : > { %1277 = vst [vmem:[%s1949_s6 + $0x2e0] sm:$0xff] %v997_v44  ;;  %1080 = vst [vmem:[%s1949_s6 + $0x2c8] sm:$0xff] %v996_v45  ;;  %v855_v51 = vadd.f32 %v854_v49, %v1939_v8  ;;  %v600_v52 = vadd.f32 %v599_v50, %v1941_v9  ;;  %v856_v53 = vpop.f32.mrb[47].mxu1 }
 0x17b   : > { %1278 = vst [vmem:[%s1949_s6 + $0x2e8] sm:$0xff] %v998_v47  ;;  %v999_v54 = vmax.f32 %v598_v48, 0.0  ;;  %v857_v55 = vadd.f32 %v856_v53, %v1943_v10 }
 0x17c   : > { %v1001_v56 = vmax.f32 %v855_v51, 0.0  ;;  %v1000_v57 = vmax.f32 %v600_v52, 0.0  ;;  %v603_v58 = vpop.f32.mrb[48].mxu0 }
 0x17d   : > { %1081 = vst [vmem:[%s1949_s6 + $0x2d0] sm:$0xff] %v999_v54  ;;  %v1002_v59 = vmax.f32 %v857_v55, 0.0  ;;  %v604_v60 = vadd.f32 %v603_v58, %v1937_v7  ;;  %v860_v61 = vpop.f32.mrb[48].mxu1  ;;  %v605_v62 = vpop.f32.mrb[49].mxu0 }
 0x17e   : > { %1279 = vst [vmem:[%s1949_s6 + $0x2f0] sm:$0xff] %v1001_v56  ;;  %1082 = vst [vmem:[%s1949_s6 + $0x2d8] sm:$0xff] %v1000_v57  ;;  %v861_v63 = vadd.f32 %v860_v61, %v1939_v8  ;;  %v606_v0 = vadd.f32 %v605_v62, %v1941_v9  ;;  %v862_v1 = vpop.f32.mrb[49].mxu1 }
 0x17f   : > { %1280 = vst [vmem:[%s1949_s6 + $0x2f8] sm:$0xff] %v1002_v59  ;;  %v1003_v2 = vmax.f32 %v604_v60, 0.0  ;;  %v863_v3 = vadd.f32 %v862_v1, %v1943_v10 }
 0x180   : > { %v1005_v4 = vmax.f32 %v861_v63, 0.0  ;;  %v1004_v5 = vmax.f32 %v606_v0, 0.0  ;;  %v609_v6 = vpop.f32.mrb[50].mxu0 }
 0x181   : > { %1083 = vst [vmem:[%s1949_s6 + $0x300] sm:$0xff] %v1003_v2  ;;  %v1006_v11 = vmax.f32 %v863_v3, 0.0  ;;  %v610_v12 = vadd.f32 %v609_v6, %v1937_v7  ;;  %v866_v13 = vpop.f32.mrb[50].mxu1  ;;  %v611_v14 = vpop.f32.mrb[51].mxu0 }
 0x182   : > { %1281 = vst [vmem:[%s1949_s6 + $0x320] sm:$0xff] %v1005_v4  ;;  %1084 = vst [vmem:[%s1949_s6 + $0x308] sm:$0xff] %v1004_v5  ;;  %v867_v15 = vadd.f32 %v866_v13, %v1939_v8  ;;  %v612_v16 = vadd.f32 %v611_v14, %v1941_v9  ;;  %v868_v17 = vpop.f32.mrb[51].mxu1 }
 0x183   : > { %1282 = vst [vmem:[%s1949_s6 + $0x328] sm:$0xff] %v1006_v11  ;;  %v1007_v18 = vmax.f32 %v610_v12, 0.0  ;;  %v869_v19 = vadd.f32 %v868_v17, %v1943_v10 }
 0x184   : > { %v1009_v20 = vmax.f32 %v867_v15, 0.0  ;;  %v1008_v21 = vmax.f32 %v612_v16, 0.0  ;;  %v615_v22 = vpop.f32.mrb[52].mxu0 }
 0x185   : > { %1085 = vst [vmem:[%s1949_s6 + $0x310] sm:$0xff] %v1007_v18  ;;  %v1010_v23 = vmax.f32 %v869_v19, 0.0  ;;  %v616_v24 = vadd.f32 %v615_v22, %v1937_v7  ;;  %v872_v25 = vpop.f32.mrb[52].mxu1  ;;  %v617_v26 = vpop.f32.mrb[53].mxu0 }
 0x186   : > { %1283 = vst [vmem:[%s1949_s6 + $0x330] sm:$0xff] %v1009_v20  ;;  %1086 = vst [vmem:[%s1949_s6 + $0x318] sm:$0xff] %v1008_v21  ;;  %v873_v27 = vadd.f32 %v872_v25, %v1939_v8  ;;  %v618_v28 = vadd.f32 %v617_v26, %v1941_v9  ;;  %v874_v29 = vpop.f32.mrb[53].mxu1 }
 0x187   : > { %1284 = vst [vmem:[%s1949_s6 + $0x338] sm:$0xff] %v1010_v23  ;;  %v1011_v30 = vmax.f32 %v616_v24, 0.0  ;;  %v875_v31 = vadd.f32 %v874_v29, %v1943_v10 }
 0x188   : > { %v1013_v32 = vmax.f32 %v873_v27, 0.0  ;;  %v1012_v33 = vmax.f32 %v618_v28, 0.0  ;;  %v621_v34 = vpop.f32.mrb[54].mxu0 }
 0x189   : > { %1087 = vst [vmem:[%s1949_s6 + $0x340] sm:$0xff] %v1011_v30  ;;  %v1014_v35 = vmax.f32 %v875_v31, 0.0  ;;  %v622_v36 = vadd.f32 %v621_v34, %v1937_v7  ;;  %v878_v37 = vpop.f32.mrb[54].mxu1  ;;  %v623_v38 = vpop.f32.mrb[55].mxu0 }
 0x18a   : > { %1285 = vst [vmem:[%s1949_s6 + $0x360] sm:$0xff] %v1013_v32  ;;  %1088 = vst [vmem:[%s1949_s6 + $0x348] sm:$0xff] %v1012_v33  ;;  %v879_v39 = vadd.f32 %v878_v37, %v1939_v8  ;;  %v624_v40 = vadd.f32 %v623_v38, %v1941_v9  ;;  %v880_v41 = vpop.f32.mrb[55].mxu1 }
 0x18b   : > { %1286 = vst [vmem:[%s1949_s6 + $0x368] sm:$0xff] %v1014_v35  ;;  %v1015_v42 = vmax.f32 %v622_v36, 0.0  ;;  %v881_v43 = vadd.f32 %v880_v41, %v1943_v10 }
 0x18c   : > { %v1017_v44 = vmax.f32 %v879_v39, 0.0  ;;  %v1016_v45 = vmax.f32 %v624_v40, 0.0  ;;  %v627_v46 = vpop.f32.mrb[56].mxu0 }
 0x18d   : > { %1089 = vst [vmem:[%s1949_s6 + $0x350] sm:$0xff] %v1015_v42  ;;  %v1018_v47 = vmax.f32 %v881_v43, 0.0  ;;  %v628_v48 = vadd.f32 %v627_v46, %v1937_v7  ;;  %v884_v49 = vpop.f32.mrb[56].mxu1  ;;  %v629_v50 = vpop.f32.mrb[57].mxu0 }
 0x18e   : > { %1287 = vst [vmem:[%s1949_s6 + $0x370] sm:$0xff] %v1017_v44  ;;  %1090 = vst [vmem:[%s1949_s6 + $0x358] sm:$0xff] %v1016_v45  ;;  %v885_v51 = vadd.f32 %v884_v49, %v1939_v8  ;;  %v630_v52 = vadd.f32 %v629_v50, %v1941_v9  ;;  %v886_v53 = vpop.f32.mrb[57].mxu1 }
 0x18f   : > { %1288 = vst [vmem:[%s1949_s6 + $0x378] sm:$0xff] %v1018_v47  ;;  %v1019_v54 = vmax.f32 %v628_v48, 0.0  ;;  %v887_v55 = vadd.f32 %v886_v53, %v1943_v10 }
 0x190   : > { %v1021_v56 = vmax.f32 %v885_v51, 0.0  ;;  %v1020_v57 = vmax.f32 %v630_v52, 0.0  ;;  %v633_v58 = vpop.f32.mrb[58].mxu0 }
 0x191   : > { %1091 = vst [vmem:[%s1949_s6 + $0x380] sm:$0xff] %v1019_v54  ;;  %v1022_v59 = vmax.f32 %v887_v55, 0.0  ;;  %v634_v60 = vadd.f32 %v633_v58, %v1937_v7  ;;  %v890_v61 = vpop.f32.mrb[58].mxu1  ;;  %v635_v62 = vpop.f32.mrb[59].mxu0 }
 0x192   : > { %1289 = vst [vmem:[%s1949_s6 + $0x3a0] sm:$0xff] %v1021_v56  ;;  %1092 = vst [vmem:[%s1949_s6 + $0x388] sm:$0xff] %v1020_v57  ;;  %v891_v63 = vadd.f32 %v890_v61, %v1939_v8  ;;  %v636_v0 = vadd.f32 %v635_v62, %v1941_v9  ;;  %v892_v1 = vpop.f32.mrb[59].mxu1 }
 0x193   : > { %1290 = vst [vmem:[%s1949_s6 + $0x3a8] sm:$0xff] %v1022_v59  ;;  %v1023_v2 = vmax.f32 %v634_v60, 0.0  ;;  %v893_v3 = vadd.f32 %v892_v1, %v1943_v10 }
 0x194   : > { %v1025_v4 = vmax.f32 %v891_v63, 0.0  ;;  %v1024_v5 = vmax.f32 %v636_v0, 0.0  ;;  %v639_v6 = vpop.f32.mrb[60].mxu0 }
 0x195   : > { %1093 = vst [vmem:[%s1949_s6 + $0x390] sm:$0xff] %v1023_v2  ;;  %v1026_v11 = vmax.f32 %v893_v3, 0.0  ;;  %v640_v12 = vadd.f32 %v639_v6, %v1937_v7  ;;  %v896_v13 = vpop.f32.mrb[60].mxu1  ;;  %v641_v14 = vpop.f32.mrb[61].mxu0 }
 0x196   : > { %1291 = vst [vmem:[%s1949_s6 + $0x3b0] sm:$0xff] %v1025_v4  ;;  %1094 = vst [vmem:[%s1949_s6 + $0x398] sm:$0xff] %v1024_v5  ;;  %v897_v15 = vadd.f32 %v896_v13, %v1939_v8  ;;  %v642_v16 = vadd.f32 %v641_v14, %v1941_v9  ;;  %v898_v17 = vpop.f32.mrb[61].mxu1 }
 0x197   : > { %1292 = vst [vmem:[%s1949_s6 + $0x3b8] sm:$0xff] %v1026_v11  ;;  %v1027_v18 = vmax.f32 %v640_v12, 0.0  ;;  %v899_v19 = vadd.f32 %v898_v17, %v1943_v10 }
 0x198   : > { %v1029_v20 = vmax.f32 %v897_v15, 0.0  ;;  %v1028_v21 = vmax.f32 %v642_v16, 0.0  ;;  %v645_v22 = vpop.f32.mrb[62].mxu0 }
 0x199   : > { %1095 = vst [vmem:[%s1949_s6 + $0x3c0] sm:$0xff] %v1027_v18  ;;  %v1030_v23 = vmax.f32 %v899_v19, 0.0  ;;  %v646_v24 = vadd.f32 %v645_v22, %v1937_v7  ;;  %v902_v25 = vpop.f32.mrb[62].mxu1  ;;  %v647_v26 = vpop.f32.mrb[63].mxu0 }
 0x19a   : > { %1293 = vst [vmem:[%s1949_s6 + $0x3e0] sm:$0xff] %v1029_v20  ;;  %1096 = vst [vmem:[%s1949_s6 + $0x3c8] sm:$0xff] %v1028_v21  ;;  %v903_v27 = vadd.f32 %v902_v25, %v1939_v8  ;;  %v648_v28 = vadd.f32 %v647_v26, %v1941_v9  ;;  %v904_v29 = vpop.f32.mrb[63].mxu1 }
 0x19b   : > { %1294 = vst [vmem:[%s1949_s6 + $0x3e8] sm:$0xff] %v1030_v23  ;;  %v1031_v30 = vmax.f32 %v646_v24, 0.0  ;;  %v905_v31 = vadd.f32 %v904_v29, %v1943_v10 }
 0x19c   : > { %v1033_v32 = vmax.f32 %v903_v27, 0.0  ;;  %v1032_v33 = vmax.f32 %v648_v28, 0.0 }
 0x19d   : > { %1097 = vst [vmem:[%s1949_s6 + $0x3d0] sm:$0xff] %v1031_v30  ;;  %v1034_v34 = vmax.f32 %v905_v31, 0.0 }
 0x19e   : > { %1295 = vst [vmem:[%s1949_s6 + $0x3f0] sm:$0xff] %v1033_v32  ;;  %1098 = vst [vmem:[%s1949_s6 + $0x3d8] sm:$0xff] %v1032_v33 }
 0x19f   : > { %1296 = vst [vmem:[%s1949_s6 + $0x3f8] sm:$0xff] %v1034_v34 }
 0x1a0 PF: > { %s13_s12 = sadd.s32 1, %s1443_s12  }
 0x1a1   : > { %p10_p5 = scmp.ge.s32.totalorder %s13_s12, 4  }
 0x1a3   :  { %12 = sbr.rel (!%p10_p5) target bundleno = 1 (0x1), region = 63 }

// kernel: decoder_forward.6
= control target key start
LH: loop header
LB: loop body
LE: loop exit
PB: predicated region body
PF: predicated region fallthrough
CT: control target
= control target key end

     0   :  { %8 = vsyncpa [#allocation3], 0  ;;  %s3117_s0 = inlined_call_operand.vmem [shape: f32[128,512], index: 0, kind: input, shape index: {}]   ;;  %s3118_s1 = inlined_call_operand.hbm [shape: f32[512,1024], index: 1, kind: input, shape index: {}]   ;;  %s3119_s2 = inlined_call_operand.hbm [shape: f32[1,1024], index: 2, kind: input, shape index: {}]   ;;  %s3120_s3 = inlined_call_operand.vmem [shape: f32[16,2,8,512], index: 3, kind: output, shape index: {}]  }
   0x1   :  { %9 = vsyncpa [#allocation5], 0  ;;  %s2749_s12 = smov 0  }
   0x2 LB: > { %s1906_s13 = sadd.s32 4294967295, %s2723_s12   ;;  %p1908_p0 = scmp.ge.s32.totalorder %s2723_s12, 1  ;;  %s2723_s12 = sphi %s2749_s12, %s15_s12  }
   0x3   : > { %p114_p1 = scmp.lt.s32.totalorder %s2723_s12, 3  ;;  %s2725_s14 = smov [#allocation2]  }
   0x4   : > { %s126_s15 = sshll.u32 %s2725_s14, 4  ;;  %p2763_p3 = scmp.eq.s32.totalorder %s1906_s13, 0  ;;  %s127_s15 = int_to_ptr.vmem [resolvable:$true] %s126_s15 }
   0x5   : > { %p2757_p2 = pnand %p1908_p0, %p114_p1  ;;  %s2726_s18 = smov [#allocation4]  }
   0x6   : > { %s3125_s17 = scalar_select %p2763_p3, 1, 0 }
   0x7   : > { %s3124_s16 = scalar_select %p2757_p2, 1, 0 }
   0x8   : > { %p2605_p4 = pneg %p2757_p2  ;;  %s140_s19 = sshll.u32 %s2726_s18, 4  ;;  %s2775_s19 = int_to_ptr.vmem [resolvable:$true] %s140_s19 }
   0x9   : > { %s2653_s23 = scalar_lea.hbm %s3118_s1, 65536 }
   0xa   : > { %p2771_p5 = pnand %p2763_p3, %p2605_p4  ;;  %p2654_p6 = scmp.ne.s32.totalorder %s3118_s1, %s2653_s23 }
   0xb   : > { %p2660_p10 = scmp.lt.u32.totalorder %s2653_s23, %s3118_s1 }
   0xc   : > { %p2655_p7 = pneg %p2771_p5 }
   0xe   : > { %p2656_p8 = pnand %p2655_p7, %p2654_p6 }
  0x10   : > { %p2657_p9 = pneg %p2656_p8 }
  0x12   : > { %p2662_p11 = pnand %p2660_p10, %p2657_p9 }
  0x14   : > { %2665 = shalt.err (!%p2662_p11)
}
  0x15   : > { %s2666_s28 = scalar_lea.vmem %s127_s15, 65536  ;;  %p2674_p1 = scmp.lt.s32.totalorder %s127_s15, %s127_s15 }
  0x16   : > { %p2667_p12 = scmp.ne.s32.totalorder %s127_s15, %s2666_s28  ;;  %p2675_p4 = scmp.lt.s32.totalorder %s2666_s28, %s2666_s28 }
  0x18   : > { %p2669_p13 = pnand %p2667_p12, %p2655_p7  ;;  %p2676_p3 = por %p2675_p4, %p2674_p1 }
  0x1a   : > { %p2670_p0 = pneg %p2669_p13 }
  0x1c   : > { %p2677_p2 = pnand %p2676_p3, %p2670_p0 }
  0x1e   : > { %2680 = shalt.err (!%p2677_p2)
}
  0x1f   : > { %s2727_s29 = smov 1024   ;;  %s2728_s30 = smov 64  }
  0x20   : > { %2608 = dma.hbm_to_vmem [thread:$0]  (!%p2771_p5), %s3118_s1, 65536, %s127_s15, [#allocation3], %s2727_s29, %s2727_s29, %s2728_s30  }
  0x21   : > { %s2681_s8 = scalar_lea.hbm %s3119_s2, 128 }
  0x22   : > { %p2682_p6 = scmp.ne.s32.totalorder %s3119_s2, %s2681_s8  ;;  %p2688_p8 = scmp.lt.u32.totalorder %s2681_s8, %s3119_s2 }
  0x24   : > { %p2684_p2 = pnand %p2682_p6, %p2655_p7 }
  0x26   : > { %p2685_p3 = pneg %p2684_p2 }
  0x28   : > { %p2690_p9 = pnand %p2688_p8, %p2685_p3 }
  0x2a   : > { %2693 = shalt.err (!%p2690_p9)
}
  0x2b   : > { %s2694_s15 = scalar_lea.vmem %s2775_s19, 128  ;;  %p2702_p13 = scmp.lt.s32.totalorder %s2775_s19, %s2775_s19 }
  0x2c   : > { %p2695_p10 = scmp.ne.s32.totalorder %s2775_s19, %s2694_s15  ;;  %p2703_p0 = scmp.lt.s32.totalorder %s2694_s15, %s2694_s15 }
  0x2e   : > { %p2697_p11 = pnand %p2695_p10, %p2655_p7  ;;  %p2704_p1 = por %p2703_p0, %p2702_p13 }
  0x30   : > { %p2698_p12 = pneg %p2697_p11 }
  0x32   : > { %p2705_p4 = pnand %p2704_p1, %p2698_p12 }
  0x34   : > { %2708 = shalt.err (!%p2705_p4)
}
  0x35   : > { %2611 = dma.hbm_to_vmem [thread:$0]  (!%p2771_p5), %s3119_s2, 128, %s2775_s19, [#allocation5]  }
  0x36   : > { %p3127_p6 = scmp.ne.s32.totalorder %s3124_s16, 0 }
  0x37   : > { %p3128_p2 = scmp.ne.s32.totalorder (!%p3127_p6), %s3125_s17, 0 }
  0x38   : > { %163 = sbr.rel (%p3127_p6) target bundleno = 573 (0x23d), region = 32 }
  0x3f   : > { %2714 = dma.done.wait (%p3128_p2), [#allocation3], 65536  }
  0x40   : > { %2716 = vsyncadd (%p3128_p2), [#allocation3], 4294901760 }
  0x41   : > { %2718 = dma.done.wait (%p3128_p2), [#allocation5], 128  }
  0x42   : > { %2720 = vsyncadd (%p3128_p2), [#allocation5], 4294967168  ;;  %v240_v0 = vld [vmem:[#allocation2 + $0x8] sm:$0xff]  ;;  %v242_v2 = vld [vmem:[#allocation2 + $0x18] sm:$0xff]  ;;  %s1915_s16 = sshll.u32 %s1906_s13, 3 }
  0x43   : > { %v248_v1 = vld [vmem:[#allocation2 + $0x48] sm:$0xff]  ;;  %v250_v4 = vld [vmem:[#allocation2 + $0x58] sm:$0xff]  ;;  %v239_v5 = vld [vmem:[#allocation2] sm:$0xff]  ;;  %p194_p5 = scmp.lt.s32.totalorder %s1915_s16, 15 }
  0x44   : > { %v1957_v3 = vpack.c.bf16 %v248_v1, %v240_v0  ;;  %v247_v6 = vld [vmem:[#allocation2 + $0x40] sm:$0xff]  ;;  %v2085_v7 = vpack.c.bf16 %v250_v4, %v242_v2  ;;  %v241_v9 = vld [vmem:[#allocation2 + $0x10] sm:$0xff]  ;;  %v256_v11 = vld [vmem:[#allocation2 + $0x88] sm:$0xff] }
  0x45   : > { %v1959_v8 = vpack.c.bf16 %v247_v6, %v239_v5  ;;  %v249_v10 = vld [vmem:[#allocation2 + $0x50] sm:$0xff]  ;;  %v264_v13 = vld [vmem:[#allocation2 + $0xc8] sm:$0xff]  ;;  %v258_v14 = vld [vmem:[#allocation2 + $0x98] sm:$0xff]  ;;  %s3130_s16 = smov (!%p194_p5, %s1915_s16), 15 }
  0x46   : > { %1958 = vmatprep.subr.bf16.mxu0 %v1957_v3  ;;  %v2087_v12 = vpack.c.bf16 %v249_v10, %v241_v9  ;;  %v266_v15 = vld [vmem:[#allocation2 + $0xd8] sm:$0xff]  ;;  %2086 = vmatprep.subr.bf16.mxu1 %v2085_v7  ;;  %v1961_v16 = vpack.c.bf16 %v264_v13, %v256_v11  ;;  %v255_v18 = vld [vmem:[#allocation2 + $0x80] sm:$0xff]  ;;  %v257_v20 = vld [vmem:[#allocation2 + $0x90] sm:$0xff]  ;;  %s1955_s13 = sshll.u32 %s3130_s16, 5  ;;  %s1956_s22 = sshll.u32 %s3130_s16, 6 }
  0x47   : > { %1960 = vmatpush1.bf16.msra.mxu0 %v1959_v8  ;;  %v2089_v17 = vpack.c.bf16 %v266_v15, %v258_v14  ;;  %v263_v19 = vld [vmem:[#allocation2 + $0xc0] sm:$0xff]  ;;  %v265_v22 = vld [vmem:[#allocation2 + $0xd0] sm:$0xff]  ;;  %v272_v23 = vld [vmem:[#allocation2 + $0x108] sm:$0xff]  ;;  %s2843_s20 = scalar_lea.vmem %s3117_s0, %s1955_s13  ;;  %s2969_s25 = scalar_lea.vmem %s3120_s3, %s1956_s22 }
  0x48   : > { %2088 = vmatpush1.bf16.msra.mxu1 %v2087_v12  ;;  %v1963_v21 = vpack.c.bf16 %v263_v19, %v255_v18  ;;  %v280_v24 = vld [vmem:[#allocation2 + $0x148] sm:$0xff]  ;;  %1962 = vmatprep.subr.bf16.mxu0 %v1961_v16  ;;  %v2091_v25 = vpack.c.bf16 %v265_v22, %v257_v20  ;;  %v274_v27 = vld [vmem:[#allocation2 + $0x118] sm:$0xff]  ;;  %v271_v29 = vld [vmem:[#allocation2 + $0x100] sm:$0xff] }
  0x49   : > { %2090 = vmatprep.subr.bf16.mxu1 %v2089_v17  ;;  %v1965_v26 = vpack.c.bf16 %v280_v24, %v272_v23  ;;  %v282_v28 = vld [vmem:[#allocation2 + $0x158] sm:$0xff]  ;;  %v279_v31 = vld [vmem:[#allocation2 + $0x140] sm:$0xff]  ;;  %v273_v32 = vld [vmem:[#allocation2 + $0x110] sm:$0xff] }
  0x4a   : > { %v2093_v30 = vpack.c.bf16 %v282_v28, %v274_v27  ;;  %v281_v33 = vld [vmem:[#allocation2 + $0x150] sm:$0xff]  ;;  %v1967_v34 = vpack.c.bf16 %v279_v31, %v271_v29  ;;  %v288_v35 = vld [vmem:[#allocation2 + $0x188] sm:$0xff]  ;;  %v290_v37 = vld [vmem:[#allocation2 + $0x198] sm:$0xff] }
  0x4b   : > { %1964 = vmatpush1.bf16.msra.mxu0 %v1963_v21  ;;  %v296_v36 = vld [vmem:[#allocation2 + $0x1c8] sm:$0xff]  ;;  %v2095_v38 = vpack.c.bf16 %v281_v33, %v273_v32  ;;  %v298_v40 = vld [vmem:[#allocation2 + $0x1d8] sm:$0xff]  ;;  %v287_v41 = vld [vmem:[#allocation2 + $0x180] sm:$0xff] }
  0x4c   : > { %2092 = vmatpush1.bf16.msra.mxu1 %v2091_v25  ;;  %1966 = vmatprep.subr.bf16.mxu0 %v1965_v26  ;;  %v1969_v39 = vpack.c.bf16 %v296_v36, %v288_v35  ;;  %v295_v42 = vld [vmem:[#allocation2 + $0x1c0] sm:$0xff]  ;;  %v2097_v43 = vpack.c.bf16 %v298_v40, %v290_v37  ;;  %v289_v44 = vld [vmem:[#allocation2 + $0x190] sm:$0xff]  ;;  %v304_v46 = vld [vmem:[#allocation2 + $0x208] sm:$0xff] }
  0x4d   : > { %2094 = vmatprep.subr.bf16.mxu1 %v2093_v30  ;;  %v297_v45 = vld [vmem:[#allocation2 + $0x1d0] sm:$0xff]  ;;  %v312_v47 = vld [vmem:[#allocation2 + $0x248] sm:$0xff]  ;;  %v306_v48 = vld [vmem:[#allocation2 + $0x218] sm:$0xff]  ;;  %v1971_v50 = vpack.c.bf16 %v295_v42, %v287_v41 }
  0x4e   : > { %v314_v49 = vld [vmem:[#allocation2 + $0x258] sm:$0xff]  ;;  %v2099_v51 = vpack.c.bf16 %v297_v45, %v289_v44  ;;  %v1973_v52 = vpack.c.bf16 %v312_v47, %v304_v46  ;;  %v303_v53 = vld [vmem:[#allocation2 + $0x200] sm:$0xff]  ;;  %v305_v55 = vld [vmem:[#allocation2 + $0x210] sm:$0xff] }
  0x4f   : > { %1968 = vmatpush1.bf16.msra.mxu0 %v1967_v34  ;;  %v311_v54 = vld [vmem:[#allocation2 + $0x240] sm:$0xff]  ;;  %v2101_v56 = vpack.c.bf16 %v314_v49, %v306_v48  ;;  %v313_v57 = vld [vmem:[#allocation2 + $0x250] sm:$0xff]  ;;  %v320_v58 = vld [vmem:[#allocation2 + $0x288] sm:$0xff] }
  0x50   : > { %2096 = vmatpush1.bf16.msra.mxu1 %v2095_v38  ;;  %1970 = vmatprep.subr.bf16.mxu0 %v1969_v39  ;;  %v328_v59 = vld [vmem:[#allocation2 + $0x2c8] sm:$0xff]  ;;  %v322_v60 = vld [vmem:[#allocation2 + $0x298] sm:$0xff]  ;;  %v1975_v62 = vpack.c.bf16 %v311_v54, %v303_v53  ;;  %v2103_v63 = vpack.c.bf16 %v313_v57, %v305_v55  ;;  %v319_v1 = vld [vmem:[#allocation2 + $0x280] sm:$0xff] }
  0x51   : > { %2098 = vmatprep.subr.bf16.mxu1 %v2097_v43  ;;  %v330_v61 = vld [vmem:[#allocation2 + $0x2d8] sm:$0xff]  ;;  %v1977_v0 = vpack.c.bf16 %v328_v59, %v320_v58  ;;  %v327_v2 = vld [vmem:[#allocation2 + $0x2c0] sm:$0xff]  ;;  %v321_v3 = vld [vmem:[#allocation2 + $0x290] sm:$0xff] }
  0x52   : > { %v2105_v4 = vpack.c.bf16 %v330_v61, %v322_v60  ;;  %v329_v5 = vld [vmem:[#allocation2 + $0x2d0] sm:$0xff]  ;;  %v336_v6 = vld [vmem:[#allocation2 + $0x308] sm:$0xff]  ;;  %v338_v8 = vld [vmem:[#allocation2 + $0x318] sm:$0xff]  ;;  %v1979_v10 = vpack.c.bf16 %v327_v2, %v319_v1 }
  0x53   : > { %1972 = vmatpush1.bf16.msra.mxu0 %v1971_v50  ;;  %v344_v7 = vld [vmem:[#allocation2 + $0x348] sm:$0xff]  ;;  %v346_v9 = vld [vmem:[#allocation2 + $0x358] sm:$0xff]  ;;  %v2107_v11 = vpack.c.bf16 %v329_v5, %v321_v3  ;;  %v335_v13 = vld [vmem:[#allocation2 + $0x300] sm:$0xff] }
  0x54   : > { %2100 = vmatpush1.bf16.msra.mxu1 %v2099_v51  ;;  %1974 = vmatprep.subr.bf16.mxu0 %v1973_v52  ;;  %v1981_v12 = vpack.c.bf16 %v344_v7, %v336_v6  ;;  %v343_v14 = vld [vmem:[#allocation2 + $0x340] sm:$0xff]  ;;  %v337_v15 = vld [vmem:[#allocation2 + $0x310] sm:$0xff]  ;;  %v2109_v16 = vpack.c.bf16 %v346_v9, %v338_v8  ;;  %v352_v18 = vld [vmem:[#allocation2 + $0x388] sm:$0xff] }
  0x55   : > { %2102 = vmatprep.subr.bf16.mxu1 %v2101_v56  ;;  %v345_v17 = vld [vmem:[#allocation2 + $0x350] sm:$0xff]  ;;  %v360_v19 = vld [vmem:[#allocation2 + $0x3c8] sm:$0xff]  ;;  %v354_v20 = vld [vmem:[#allocation2 + $0x398] sm:$0xff]  ;;  %v1983_v22 = vpack.c.bf16 %v343_v14, %v335_v13 }
  0x56   : > { %v362_v21 = vld [vmem:[#allocation2 + $0x3d8] sm:$0xff]  ;;  %v2111_v23 = vpack.c.bf16 %v345_v17, %v337_v15  ;;  %v1985_v24 = vpack.c.bf16 %v360_v19, %v352_v18  ;;  %v351_v25 = vld [vmem:[#allocation2 + $0x380] sm:$0xff]  ;;  %v353_v27 = vld [vmem:[#allocation2 + $0x390] sm:$0xff] }
  0x57   : > { %1976 = vmatpush1.bf16.msra.mxu0 %v1975_v62  ;;  %v359_v26 = vld [vmem:[#allocation2 + $0x3c0] sm:$0xff]  ;;  %v2113_v28 = vpack.c.bf16 %v362_v21, %v354_v20  ;;  %v361_v29 = vld [vmem:[#allocation2 + $0x3d0] sm:$0xff]  ;;  %v368_v30 = vld [vmem:[#allocation2 + $0x408] sm:$0xff] }
  0x58   : > { %2104 = vmatpush1.bf16.msra.mxu1 %v2103_v63  ;;  %1978 = vmatprep.subr.bf16.mxu0 %v1977_v0  ;;  %v376_v31 = vld [vmem:[#allocation2 + $0x448] sm:$0xff]  ;;  %v370_v32 = vld [vmem:[#allocation2 + $0x418] sm:$0xff]  ;;  %v1987_v34 = vpack.c.bf16 %v359_v26, %v351_v25  ;;  %v2115_v35 = vpack.c.bf16 %v361_v29, %v353_v27  ;;  %v367_v37 = vld [vmem:[#allocation2 + $0x400] sm:$0xff] }
  0x59   : > { %2106 = vmatprep.subr.bf16.mxu1 %v2105_v4  ;;  %v378_v33 = vld [vmem:[#allocation2 + $0x458] sm:$0xff]  ;;  %v1989_v36 = vpack.c.bf16 %v376_v31, %v368_v30  ;;  %v375_v38 = vld [vmem:[#allocation2 + $0x440] sm:$0xff]  ;;  %v369_v39 = vld [vmem:[#allocation2 + $0x410] sm:$0xff] }
  0x5a   : > { %v2117_v40 = vpack.c.bf16 %v378_v33, %v370_v32  ;;  %v377_v41 = vld [vmem:[#allocation2 + $0x450] sm:$0xff]  ;;  %v384_v42 = vld [vmem:[#allocation2 + $0x488] sm:$0xff]  ;;  %v386_v44 = vld [vmem:[#allocation2 + $0x498] sm:$0xff]  ;;  %v1991_v46 = vpack.c.bf16 %v375_v38, %v367_v37 }
  0x5b   : > { %1980 = vmatpush1.bf16.msra.mxu0 %v1979_v10  ;;  %v392_v43 = vld [vmem:[#allocation2 + $0x4c8] sm:$0xff]  ;;  %v394_v45 = vld [vmem:[#allocation2 + $0x4d8] sm:$0xff]  ;;  %v2119_v47 = vpack.c.bf16 %v377_v41, %v369_v39  ;;  %v383_v49 = vld [vmem:[#allocation2 + $0x480] sm:$0xff] }
  0x5c   : > { %2108 = vmatpush1.bf16.msra.mxu1 %v2107_v11  ;;  %1982 = vmatprep.subr.bf16.mxu0 %v1981_v12  ;;  %v1993_v48 = vpack.c.bf16 %v392_v43, %v384_v42  ;;  %v391_v50 = vld [vmem:[#allocation2 + $0x4c0] sm:$0xff]  ;;  %v385_v51 = vld [vmem:[#allocation2 + $0x490] sm:$0xff]  ;;  %v2121_v52 = vpack.c.bf16 %v394_v45, %v386_v44  ;;  %v400_v54 = vld [vmem:[#allocation2 + $0x508] sm:$0xff] }
  0x5d   : > { %2110 = vmatprep.subr.bf16.mxu1 %v2109_v16  ;;  %v393_v53 = vld [vmem:[#allocation2 + $0x4d0] sm:$0xff]  ;;  %v408_v55 = vld [vmem:[#allocation2 + $0x548] sm:$0xff]  ;;  %v402_v56 = vld [vmem:[#allocation2 + $0x518] sm:$0xff]  ;;  %v1995_v58 = vpack.c.bf16 %v391_v50, %v383_v49 }
  0x5e   : > { %v410_v57 = vld [vmem:[#allocation2 + $0x558] sm:$0xff]  ;;  %v2123_v59 = vpack.c.bf16 %v393_v53, %v385_v51  ;;  %v1997_v60 = vpack.c.bf16 %v408_v55, %v400_v54  ;;  %v399_v61 = vld [vmem:[#allocation2 + $0x500] sm:$0xff]  ;;  %v401_v63 = vld [vmem:[#allocation2 + $0x510] sm:$0xff] }
  0x5f   : > { %1984 = vmatpush1.bf16.msra.mxu0 %v1983_v22  ;;  %v407_v62 = vld [vmem:[#allocation2 + $0x540] sm:$0xff]  ;;  %v2125_v0 = vpack.c.bf16 %v410_v57, %v402_v56  ;;  %v409_v1 = vld [vmem:[#allocation2 + $0x550] sm:$0xff]  ;;  %v416_v2 = vld [vmem:[#allocation2 + $0x588] sm:$0xff] }
  0x60   : > { %2112 = vmatpush1.bf16.msra.mxu1 %v2111_v23  ;;  %1986 = vmatprep.subr.bf16.mxu0 %v1985_v24  ;;  %v424_v3 = vld [vmem:[#allocation2 + $0x5c8] sm:$0xff]  ;;  %v418_v4 = vld [vmem:[#allocation2 + $0x598] sm:$0xff]  ;;  %v1999_v6 = vpack.c.bf16 %v407_v62, %v399_v61  ;;  %v415_v7 = vld [vmem:[#allocation2 + $0x580] sm:$0xff]  ;;  %v2127_v8 = vpack.c.bf16 %v409_v1, %v401_v63 }
  0x61   : > { %2114 = vmatprep.subr.bf16.mxu1 %v2113_v28  ;;  %v426_v5 = vld [vmem:[#allocation2 + $0x5d8] sm:$0xff]  ;;  %v2001_v9 = vpack.c.bf16 %v424_v3, %v416_v2  ;;  %v423_v10 = vld [vmem:[#allocation2 + $0x5c0] sm:$0xff]  ;;  %v417_v11 = vld [vmem:[#allocation2 + $0x590] sm:$0xff] }
  0x62   : > { %v425_v12 = vld [vmem:[#allocation2 + $0x5d0] sm:$0xff]  ;;  %v2129_v13 = vpack.c.bf16 %v426_v5, %v418_v4  ;;  %v432_v14 = vld [vmem:[#allocation2 + $0x608] sm:$0xff]  ;;  %v434_v17 = vld [vmem:[#allocation2 + $0x618] sm:$0xff]  ;;  %v2003_v19 = vpack.c.bf16 %v423_v10, %v415_v7 }
  0x63   : > { %1988 = vmatpush1.bf16.msra.mxu0 %v1987_v34  ;;  %v440_v15 = vld [vmem:[#allocation2 + $0x648] sm:$0xff]  ;;  %v442_v18 = vld [vmem:[#allocation2 + $0x658] sm:$0xff]  ;;  %v2131_v20 = vpack.c.bf16 %v425_v12, %v417_v11  ;;  %v431_v22 = vld [vmem:[#allocation2 + $0x600] sm:$0xff] }
  0x64   : > { %2116 = vmatpush1.bf16.msra.mxu1 %v2115_v35  ;;  %1990 = vmatprep.subr.bf16.mxu0 %v1989_v36  ;;  %v208_v16 = vld [vmem:[%s2843_s20 + $0x8] sm:$0xff]  ;;  %v2005_v21 = vpack.c.bf16 %v440_v15, %v432_v14  ;;  %v439_v23 = vld [vmem:[#allocation2 + $0x640] sm:$0xff]  ;;  %v433_v24 = vld [vmem:[#allocation2 + $0x610] sm:$0xff]  ;;  %v2133_v25 = vpack.c.bf16 %v442_v18, %v434_v17 }
  0x65   : > { %2118 = vmatprep.subr.bf16.mxu1 %v2117_v40  ;;  %857 = vmatprep.mubr.f32.mxu0 %v208_v16  ;;  %v441_v26 = vld [vmem:[#allocation2 + $0x650] sm:$0xff]  ;;  %v448_v27 = vld [vmem:[#allocation2 + $0x688] sm:$0xff]  ;;  %v450_v29 = vld [vmem:[#allocation2 + $0x698] sm:$0xff]  ;;  %v2007_v31 = vpack.c.bf16 %v439_v23, %v431_v22 }
  0x66   : > { %1083 = vmatprep.mubr.f32.mxu1 %v208_v16  ;;  %v456_v28 = vld [vmem:[#allocation2 + $0x6c8] sm:$0xff]  ;;  %v458_v30 = vld [vmem:[#allocation2 + $0x6d8] sm:$0xff]  ;;  %v2135_v32 = vpack.c.bf16 %v441_v26, %v433_v24  ;;  %v447_v34 = vld [vmem:[#allocation2 + $0x680] sm:$0xff] }
  0x67   : > { %1992 = vmatpush1.bf16.msra.mxu0 %v1991_v46  ;;  %v2009_v33 = vpack.c.bf16 %v456_v28, %v448_v27  ;;  %v455_v35 = vld [vmem:[#allocation2 + $0x6c0] sm:$0xff]  ;;  %v449_v36 = vld [vmem:[#allocation2 + $0x690] sm:$0xff]  ;;  %v2137_v37 = vpack.c.bf16 %v458_v30, %v450_v29  ;;  %v464_v39 = vld [vmem:[#allocation2 + $0x708] sm:$0xff] }
  0x68   : > { %2120 = vmatpush1.bf16.msra.mxu1 %v2119_v47  ;;  %1994 = vmatprep.subr.bf16.mxu0 %v1993_v48  ;;  %v457_v38 = vld [vmem:[#allocation2 + $0x6d0] sm:$0xff]  ;;  %v472_v40 = vld [vmem:[#allocation2 + $0x748] sm:$0xff]  ;;  %v466_v41 = vld [vmem:[#allocation2 + $0x718] sm:$0xff]  ;;  %v2011_v43 = vpack.c.bf16 %v455_v35, %v447_v34 }
  0x69   : > { %2122 = vmatprep.subr.bf16.mxu1 %v2121_v52  ;;  %v474_v42 = vld [vmem:[#allocation2 + $0x758] sm:$0xff]  ;;  %v2139_v44 = vpack.c.bf16 %v457_v38, %v449_v36  ;;  %v2013_v45 = vpack.c.bf16 %v472_v40, %v464_v39  ;;  %v463_v46 = vld [vmem:[#allocation2 + $0x700] sm:$0xff]  ;;  %v465_v48 = vld [vmem:[#allocation2 + $0x710] sm:$0xff] }
  0x6a   : > { %v471_v47 = vld [vmem:[#allocation2 + $0x740] sm:$0xff]  ;;  %v2141_v49 = vpack.c.bf16 %v474_v42, %v466_v41  ;;  %v473_v50 = vld [vmem:[#allocation2 + $0x750] sm:$0xff]  ;;  %v480_v51 = vld [vmem:[#allocation2 + $0x788] sm:$0xff] }
  0x6b   : > { %1996 = vmatpush1.bf16.msra.mxu0 %v1995_v58  ;;  %v488_v52 = vld [vmem:[#allocation2 + $0x7c8] sm:$0xff]  ;;  %v482_v53 = vld [vmem:[#allocation2 + $0x798] sm:$0xff]  ;;  %v2015_v55 = vpack.c.bf16 %v471_v47, %v463_v46  ;;  %v2143_v56 = vpack.c.bf16 %v473_v50, %v465_v48  ;;  %v479_v58 = vld [vmem:[#allocation2 + $0x780] sm:$0xff] }
  0x6c   : > { %2124 = vmatpush1.bf16.msra.mxu1 %v2123_v59  ;;  %1998 = vmatprep.subr.bf16.mxu0 %v1997_v60  ;;  %v490_v54 = vld [vmem:[#allocation2 + $0x7d8] sm:$0xff]  ;;  %v2017_v57 = vpack.c.bf16 %v488_v52, %v480_v51  ;;  %v487_v59 = vld [vmem:[#allocation2 + $0x7c0] sm:$0xff]  ;;  %v481_v60 = vld [vmem:[#allocation2 + $0x790] sm:$0xff] }
  0x6d   : > { %2126 = vmatprep.subr.bf16.mxu1 %v2125_v0  ;;  %v2145_v61 = vpack.c.bf16 %v490_v54, %v482_v53  ;;  %v489_v62 = vld [vmem:[#allocation2 + $0x7d0] sm:$0xff]  ;;  %v496_v63 = vld [vmem:[#allocation2 + $0x808] sm:$0xff]  ;;  %v498_v1 = vld [vmem:[#allocation2 + $0x818] sm:$0xff]  ;;  %v2019_v3 = vpack.c.bf16 %v487_v59, %v479_v58 }
  0x6e   : > { %v504_v0 = vld [vmem:[#allocation2 + $0x848] sm:$0xff]  ;;  %v506_v2 = vld [vmem:[#allocation2 + $0x858] sm:$0xff]  ;;  %v2147_v4 = vpack.c.bf16 %v489_v62, %v481_v60  ;;  %v503_v7 = vld [vmem:[#allocation2 + $0x840] sm:$0xff] }
  0x6f   : > { %2000 = vmatpush1.bf16.msra.mxu0 %v1999_v6  ;;  %v2021_v5 = vpack.c.bf16 %v504_v0, %v496_v63  ;;  %v495_v6 = vld [vmem:[#allocation2 + $0x800] sm:$0xff]  ;;  %v505_v10 = vld [vmem:[#allocation2 + $0x850] sm:$0xff]  ;;  %v512_v11 = vld [vmem:[#allocation2 + $0x888] sm:$0xff] }
  0x70   : > { %2128 = vmatpush1.bf16.msra.mxu1 %v2127_v8  ;;  %2002 = vmatprep.subr.bf16.mxu0 %v2001_v9  ;;  %v497_v8 = vld [vmem:[#allocation2 + $0x810] sm:$0xff]  ;;  %v2149_v9 = vpack.c.bf16 %v506_v2, %v498_v1  ;;  %v520_v12 = vld [vmem:[#allocation2 + $0x8c8] sm:$0xff]  ;;  %v522_v14 = vld [vmem:[#allocation2 + $0x8d8] sm:$0xff]  ;;  %v2023_v16 = vpack.c.bf16 %v503_v7, %v495_v6 }
  0x71   : > { %2130 = vmatprep.subr.bf16.mxu1 %v2129_v13  ;;  %v514_v13 = vld [vmem:[#allocation2 + $0x898] sm:$0xff]  ;;  %v207_v15 = vld [vmem:[%s2843_s20] sm:$0xff]  ;;  %v2151_v17 = vpack.c.bf16 %v505_v10, %v497_v8  ;;  %v2025_v18 = vpack.c.bf16 %v520_v12, %v512_v11  ;;  %v521_v23 = vld [vmem:[#allocation2 + $0x8d0] sm:$0xff] }
  0x72   : > { %v2153_v22 = vpack.c.bf16 %v522_v14, %v514_v13  ;;  %v528_v24 = vld [vmem:[#allocation2 + $0x908] sm:$0xff]  ;;  %v530_v26 = vld [vmem:[#allocation2 + $0x918] sm:$0xff]  ;;  %v211_v30 = vld [vmem:[%s2843_s20 + $0x20] sm:$0xff] }
  0x73   : > { %2004 = vmatpush1.bf16.msra.mxu0 %v2003_v19  ;;  %v511_v19 = vld [vmem:[#allocation2 + $0x880] sm:$0xff]  ;;  %v538_v27 = vld [vmem:[#allocation2 + $0x958] sm:$0xff]  ;;  %v212_v28 = vld [vmem:[%s2843_s20 + $0x28] sm:$0xff] }
  0x74   : > { %2132 = vmatpush1.bf16.msra.mxu1 %v2131_v20  ;;  %2006 = vmatprep.subr.bf16.mxu0 %v2005_v21  ;;  %v519_v20 = vld [vmem:[#allocation2 + $0x8c0] sm:$0xff]  ;;  %v513_v21 = vld [vmem:[#allocation2 + $0x890] sm:$0xff]  ;;  %v2157_v36 = vpack.c.bf16 %v538_v27, %v530_v26  ;;  %v544_v38 = vld [vmem:[#allocation2 + $0x988] sm:$0xff] }
  0x75   : > { %2134 = vmatprep.subr.bf16.mxu1 %v2133_v25  ;;  %v536_v25 = vld [vmem:[#allocation2 + $0x948] sm:$0xff]  ;;  %v2027_v29 = vpack.c.bf16 %v519_v20, %v511_v19  ;;  %v535_v34 = vld [vmem:[#allocation2 + $0x940] sm:$0xff]  ;;  %v529_v35 = vld [vmem:[#allocation2 + $0x910] sm:$0xff] }
  0x76   : > { %v552_v39 = vld [vmem:[#allocation2 + $0x9c8] sm:$0xff]  ;;  %v546_v40 = vld [vmem:[#allocation2 + $0x998] sm:$0xff]  ;;  %v543_v47 = vld [vmem:[#allocation2 + $0x980] sm:$0xff] }
  0x77   : > { %2008 = vmatpush1.bf16.msra.mxu0 %v2007_v31  ;;  %v2155_v31 = vpack.c.bf16 %v521_v23, %v513_v21  ;;  %v554_v41 = vld [vmem:[#allocation2 + $0x9d8] sm:$0xff]  ;;  %v216_v42 = vld [vmem:[%s2843_s20 + $0x48] sm:$0xff]  ;;  %v2033_v46 = vpack.c.bf16 %v552_v39, %v544_v38  ;;  %v551_v48 = vld [vmem:[#allocation2 + $0x9c0] sm:$0xff] }
  0x78   : > { %2136 = vmatpush1.bf16.msra.mxu1 %v2135_v32  ;;  %2010 = vmatprep.subr.bf16.mxu0 %v2009_v33  ;;  %v2029_v32 = vpack.c.bf16 %v536_v25, %v528_v24  ;;  %v527_v33 = vld [vmem:[#allocation2 + $0x900] sm:$0xff]  ;;  %v2161_v50 = vpack.c.bf16 %v554_v41, %v546_v40  ;;  %v553_v51 = vld [vmem:[#allocation2 + $0x9d0] sm:$0xff]  ;;  %v560_v52 = vld [vmem:[#allocation2 + $0xa08] sm:$0xff] }
  0x79   : > { %2138 = vmatprep.subr.bf16.mxu1 %v2137_v37  ;;  %v537_v37 = vld [vmem:[#allocation2 + $0x950] sm:$0xff]  ;;  %v568_v53 = vld [vmem:[#allocation2 + $0xa48] sm:$0xff]  ;;  %v562_v54 = vld [vmem:[#allocation2 + $0xa18] sm:$0xff] }
  0x7a   : > { %v219_v58 = vld [vmem:[%s2843_s20 + $0x60] sm:$0xff]  ;;  %v2037_v60 = vpack.c.bf16 %v568_v53, %v560_v52  ;;  %v561_v63 = vld [vmem:[#allocation2 + $0xa10] sm:$0xff]  ;;  %v576_v2 = vld [vmem:[#allocation2 + $0xa88] sm:$0xff] }
  0x7b   : > { %2012 = vmatpush1.bf16.msra.mxu0 %v2011_v43  ;;  %v2031_v43 = vpack.c.bf16 %v535_v34, %v527_v33  ;;  %v567_v62 = vld [vmem:[#allocation2 + $0xa40] sm:$0xff]  ;;  %v569_v1 = vld [vmem:[#allocation2 + $0xa50] sm:$0xff]  ;;  %v224_v6 = vld [vmem:[%s2843_s20 + $0x88] sm:$0xff] }
  0x7c   : > { %2140 = vmatpush1.bf16.msra.mxu1 %v2139_v44  ;;  %2014 = vmatprep.subr.bf16.mxu0 %v2013_v45  ;;  %v215_v44 = vld [vmem:[%s2843_s20 + $0x40] sm:$0xff]  ;;  %v2159_v45 = vpack.c.bf16 %v537_v37, %v529_v35  ;;  %v577_v13 = vld [vmem:[#allocation2 + $0xa90] sm:$0xff]  ;;  %v602_v19 = vld [vmem:[#allocation2 + $0xb58] sm:$0xff] }
  0x7d   : > { %2142 = vmatprep.subr.bf16.mxu1 %v2141_v49  ;;  %v545_v49 = vld [vmem:[#allocation2 + $0x990] sm:$0xff]  ;;  %v223_v8 = vld [vmem:[%s2843_s20 + $0x80] sm:$0xff]  ;;  %v228_v20 = vld [vmem:[%s2843_s20 + $0xa8] sm:$0xff] }
  0x7e   : > { %v2163_v59 = vpack.c.bf16 %v553_v51, %v545_v49  ;;  %v575_v11 = vld [vmem:[#allocation2 + $0xa80] sm:$0xff]  ;;  %v593_v27 = vld [vmem:[#allocation2 + $0xb10] sm:$0xff]  ;;  %v618_v33 = vld [vmem:[#allocation2 + $0xbd8] sm:$0xff] }
  0x7f   : > { %2016 = vmatpush1.bf16.msra.mxu0 %v2015_v55  ;;  %v570_v55 = vld [vmem:[#allocation2 + $0xa58] sm:$0xff]  ;;  %v583_v12 = vld [vmem:[#allocation2 + $0xac0] sm:$0xff]  ;;  %v232_v34 = vld [vmem:[%s2843_s20 + $0xc8] sm:$0xff] }
  0x80   : > { %2144 = vmatpush1.bf16.msra.mxu1 %v2143_v56  ;;  %2018 = vmatprep.subr.bf16.mxu0 %v2017_v57  ;;  %v220_v56 = vld [vmem:[%s2843_s20 + $0x68] sm:$0xff]  ;;  %v2035_v57 = vpack.c.bf16 %v551_v48, %v543_v47  ;;  %v2165_v0 = vpack.c.bf16 %v570_v55, %v562_v54  ;;  %v2043_v21 = vpack.c.bf16 %v583_v12, %v575_v11  ;;  %v591_v25 = vld [vmem:[#allocation2 + $0xb00] sm:$0xff]  ;;  %v609_v41 = vld [vmem:[#allocation2 + $0xb90] sm:$0xff] }
  0x81   : > { %2146 = vmatprep.subr.bf16.mxu1 %v2145_v61  ;;  %v559_v61 = vld [vmem:[#allocation2 + $0xa00] sm:$0xff]  ;;  %v634_v47 = vld [vmem:[#allocation2 + $0xc58] sm:$0xff]  ;;  %v236_v48 = vld [vmem:[%s2843_s20 + $0xe8] sm:$0xff] }
  0x82   : > { %v2039_v7 = vpack.c.bf16 %v567_v62, %v559_v61  ;;  %v599_v26 = vld [vmem:[#allocation2 + $0xb40] sm:$0xff]  ;;  %v625_v55 = vld [vmem:[#allocation2 + $0xc10] sm:$0xff]  ;;  %v650_v61 = vld [vmem:[#allocation2 + $0xcd8] sm:$0xff] }
  0x83   : > { %2020 = vmatpush1.bf16.msra.mxu0 %v2019_v3  ;;  %v584_v3 = vld [vmem:[#allocation2 + $0xac8] sm:$0xff]  ;;  %v2047_v35 = vpack.c.bf16 %v599_v26, %v591_v25  ;;  %v607_v39 = vld [vmem:[#allocation2 + $0xb80] sm:$0xff]  ;;  %v210_v62 = vld [vmem:[%s2843_s20 + $0x18] sm:$0xff] }
  0x84   : > { %2148 = vmatpush1.bf16.msra.mxu1 %v2147_v4  ;;  %2022 = vmatprep.subr.bf16.mxu0 %v2021_v5  ;;  %v578_v4 = vld [vmem:[#allocation2 + $0xa98] sm:$0xff]  ;;  %v2041_v10 = vpack.c.bf16 %v584_v3, %v576_v2  ;;  %v615_v40 = vld [vmem:[#allocation2 + $0xbc0] sm:$0xff] }
  0x85   : > { %2150 = vmatprep.subr.bf16.mxu1 %v2149_v9  ;;  %v586_v5 = vld [vmem:[#allocation2 + $0xad8] sm:$0xff]  ;;  %v2167_v9 = vpack.c.bf16 %v569_v1, %v561_v63  ;;  %v2051_v49 = vpack.c.bf16 %v615_v40, %v607_v39  ;;  %v623_v53 = vld [vmem:[#allocation2 + $0xc00] sm:$0xff]  ;;  %v689_v40 = vld [vmem:[#allocation2 + $0xe10] sm:$0xff] }
  0x86   : > { %858 = vmatmul.mubr.f32.vlgmr.msra.gmra.mrb[0].mxu0 %v207_v15  ;;  %v2169_v14 = vpack.c.bf16 %v586_v5, %v578_v4  ;;  %v631_v54 = vld [vmem:[#allocation2 + $0xc40] sm:$0xff]  ;;  %v641_v4 = vld [vmem:[#allocation2 + $0xc90] sm:$0xff] }
  0x87   : > { %2024 = vmatpush1.bf16.msra.mxu0 %v2023_v16  ;;  %1084 = vmatmul.mubr.f32.vlgmr.msra.gmra.mrb[0].mxu1 %v207_v15  ;;  %v585_v15 = vld [vmem:[#allocation2 + $0xad0] sm:$0xff]  ;;  %v592_v16 = vld [vmem:[#allocation2 + $0xb08] sm:$0xff]  ;;  %v2055_v63 = vpack.c.bf16 %v631_v54, %v623_v53  ;;  %v639_v2 = vld [vmem:[#allocation2 + $0xc80] sm:$0xff] }
  0x88   : > { %2152 = vmatpush1.bf16.msra.mxu1 %v2151_v17  ;;  %2026 = vmatprep.subr.bf16.mxu0 %v2025_v18  ;;  %v600_v17 = vld [vmem:[#allocation2 + $0xb48] sm:$0xff]  ;;  %v594_v18 = vld [vmem:[#allocation2 + $0xb18] sm:$0xff]  ;;  %v2171_v23 = vpack.c.bf16 %v585_v15, %v577_v13  ;;  %v647_v3 = vld [vmem:[#allocation2 + $0xcc0] sm:$0xff] }
  0x89   : > { %2154 = vmatprep.subr.bf16.mxu1 %v2153_v22  ;;  %863 = vmatprep.mubr.f32.mxu0 %v212_v28  ;;  %v227_v22 = vld [vmem:[%s2843_s20 + $0xa0] sm:$0xff]  ;;  %v2045_v24 = vpack.c.bf16 %v600_v17, %v592_v16  ;;  %v2059_v11 = vpack.c.bf16 %v647_v3, %v639_v2  ;;  %v657_v16 = vld [vmem:[#allocation2 + $0xd10] sm:$0xff]  ;;  %v736_v3 = vld [vmem:[#allocation2 + $0xf88] sm:$0xff] }
  0x8a   : > { %1089 = vmatprep.mubr.f32.mxu1 %v212_v28  ;;  %864 = vmatmul.mubr.f32.gmra.mrb[2].mxu0 %v211_v30  ;;  %v2173_v28 = vpack.c.bf16 %v602_v19, %v594_v18  ;;  %v663_v15 = vld [vmem:[#allocation2 + $0xd40] sm:$0xff]  ;;  %v665_v18 = vld [vmem:[#allocation2 + $0xd50] sm:$0xff]  ;;  %v672_v19 = vld [vmem:[#allocation2 + $0xd88] sm:$0xff] }
  0x8b   : > { %2028 = vmatpush1.bf16.msra.mxu0 %v2027_v29  ;;  %1090 = vmatmul.mubr.f32.gmra.mrb[2].mxu1 %v211_v30  ;;  %v601_v29 = vld [vmem:[#allocation2 + $0xb50] sm:$0xff]  ;;  %v608_v30 = vld [vmem:[#allocation2 + $0xb88] sm:$0xff]  ;;  %v671_v26 = vld [vmem:[#allocation2 + $0xd80] sm:$0xff] }
  0x8c   : > { %2156 = vmatpush1.bf16.msra.mxu1 %v2155_v31  ;;  %2030 = vmatprep.subr.bf16.mxu0 %v2029_v32  ;;  %v616_v31 = vld [vmem:[#allocation2 + $0xbc8] sm:$0xff]  ;;  %v610_v32 = vld [vmem:[#allocation2 + $0xb98] sm:$0xff]  ;;  %v2175_v37 = vpack.c.bf16 %v601_v29, %v593_v27  ;;  %v679_v27 = vld [vmem:[#allocation2 + $0xdc0] sm:$0xff] }
  0x8d   : > { %2158 = vmatprep.subr.bf16.mxu1 %v2157_v36  ;;  %869 = vmatprep.mubr.f32.mxu0 %v216_v42  ;;  %v231_v36 = vld [vmem:[%s2843_s20 + $0xc0] sm:$0xff]  ;;  %v2049_v38 = vpack.c.bf16 %v616_v31, %v608_v30  ;;  %v681_v30 = vld [vmem:[#allocation2 + $0xdd0] sm:$0xff]  ;;  %v688_v31 = vld [vmem:[#allocation2 + $0xe08] sm:$0xff] }
  0x8e   : > { %1095 = vmatprep.mubr.f32.mxu1 %v216_v42  ;;  %870 = vmatmul.mubr.f32.gmra.mrb[4].mxu0 %v215_v44  ;;  %v2177_v42 = vpack.c.bf16 %v618_v33, %v610_v32  ;;  %v696_v32 = vld [vmem:[#allocation2 + $0xe48] sm:$0xff]  ;;  %v690_v33 = vld [vmem:[#allocation2 + $0xe18] sm:$0xff]  ;;  %v695_v39 = vld [vmem:[#allocation2 + $0xe40] sm:$0xff] }
  0x8f   : > { %2032 = vmatpush1.bf16.msra.mxu0 %v2031_v43  ;;  %1096 = vmatmul.mubr.f32.gmra.mrb[4].mxu1 %v215_v44  ;;  %v617_v43 = vld [vmem:[#allocation2 + $0xbd0] sm:$0xff]  ;;  %v624_v44 = vld [vmem:[#allocation2 + $0xc08] sm:$0xff] }
  0x90   : > { %2160 = vmatpush1.bf16.msra.mxu1 %v2159_v45  ;;  %2034 = vmatprep.subr.bf16.mxu0 %v2033_v46  ;;  %v632_v45 = vld [vmem:[#allocation2 + $0xc48] sm:$0xff]  ;;  %v626_v46 = vld [vmem:[#allocation2 + $0xc18] sm:$0xff]  ;;  %v2179_v51 = vpack.c.bf16 %v617_v43, %v609_v41  ;;  %v713_v54 = vld [vmem:[#allocation2 + $0xed0] sm:$0xff] }
  0x91   : > { %2162 = vmatprep.subr.bf16.mxu1 %v2161_v50  ;;  %875 = vmatprep.mubr.f32.mxu0 %v220_v56  ;;  %v235_v50 = vld [vmem:[%s2843_s20 + $0xe0] sm:$0xff]  ;;  %v2053_v52 = vpack.c.bf16 %v632_v45, %v624_v44  ;;  %v704_v43 = vld [vmem:[#allocation2 + $0xe88] sm:$0xff]  ;;  %v706_v45 = vld [vmem:[#allocation2 + $0xe98] sm:$0xff] }
  0x92   : > { %1101 = vmatprep.mubr.f32.mxu1 %v220_v56  ;;  %876 = vmatmul.mubr.f32.gmra.mrb[6].mxu0 %v219_v58  ;;  %v2181_v56 = vpack.c.bf16 %v634_v47, %v626_v46  ;;  %v712_v44 = vld [vmem:[#allocation2 + $0xec8] sm:$0xff]  ;;  %v714_v46 = vld [vmem:[#allocation2 + $0xed8] sm:$0xff]  ;;  %v729_v2 = vld [vmem:[#allocation2 + $0xf50] sm:$0xff] }
  0x93   : > { %2036 = vmatpush1.bf16.msra.mxu0 %v2035_v57  ;;  %1102 = vmatmul.mubr.f32.gmra.mrb[6].mxu1 %v219_v58  ;;  %v633_v57 = vld [vmem:[#allocation2 + $0xc50] sm:$0xff]  ;;  %v640_v58 = vld [vmem:[#allocation2 + $0xc88] sm:$0xff]  ;;  %v2201_v53 = vpack.c.bf16 %v714_v46, %v706_v45  ;;  %v278_v45 = vld [vmem:[#allocation2 + $0x138] sm:$0xff] }
  0x94   : > { %2164 = vmatpush1.bf16.msra.mxu1 %v2163_v59  ;;  %2038 = vmatprep.subr.bf16.mxu0 %v2037_v60  ;;  %v648_v59 = vld [vmem:[#allocation2 + $0xcc8] sm:$0xff]  ;;  %v642_v60 = vld [vmem:[#allocation2 + $0xc98] sm:$0xff] }
  0x95   : > { %2166 = vmatprep.subr.bf16.mxu1 %v2165_v0  ;;  %881 = vmatprep.mubr.f32.mxu0 %v224_v6  ;;  %v2183_v0 = vpack.c.bf16 %v633_v57, %v625_v55  ;;  %v2057_v1 = vpack.c.bf16 %v648_v59, %v640_v58  ;;  %v2185_v5 = vpack.c.bf16 %v650_v61, %v642_v60  ;;  %v720_v55 = vld [vmem:[#allocation2 + $0xf08] sm:$0xff]  ;;  %v722_v57 = vld [vmem:[#allocation2 + $0xf18] sm:$0xff] }
  0x96   : > { %1107 = vmatprep.mubr.f32.mxu1 %v224_v6  ;;  %882 = vmatmul.mubr.f32.gmra.mrb[8].mxu0 %v223_v8  ;;  %v649_v6 = vld [vmem:[#allocation2 + $0xcd0] sm:$0xff]  ;;  %v730_v58 = vld [vmem:[#allocation2 + $0xf58] sm:$0xff] }
  0x97   : > { %2040 = vmatpush1.bf16.msra.mxu0 %v2039_v7  ;;  %1108 = vmatmul.mubr.f32.gmra.mrb[8].mxu1 %v223_v8  ;;  %v656_v7 = vld [vmem:[#allocation2 + $0xd08] sm:$0xff]  ;;  %v2187_v12 = vpack.c.bf16 %v649_v6, %v641_v4  ;;  %v746_v6 = vld [vmem:[#allocation2 + $0xfd8] sm:$0xff] }
  0x98   : > { %2168 = vmatpush1.bf16.msra.mxu1 %v2167_v9  ;;  %2042 = vmatprep.subr.bf16.mxu0 %v2041_v10  ;;  %v664_v8 = vld [vmem:[#allocation2 + $0xd48] sm:$0xff]  ;;  %v658_v9 = vld [vmem:[#allocation2 + $0xd18] sm:$0xff] }
  0x99   : > { %2170 = vmatprep.subr.bf16.mxu1 %v2169_v14  ;;  %887 = vmatprep.mubr.f32.mxu0 %v228_v20  ;;  %v666_v10 = vld [vmem:[#allocation2 + $0xd58] sm:$0xff]  ;;  %v2061_v13 = vpack.c.bf16 %v664_v8, %v656_v7  ;;  %v655_v14 = vld [vmem:[#allocation2 + $0xd00] sm:$0xff]  ;;  %v744_v4 = vld [vmem:[#allocation2 + $0xfc8] sm:$0xff] }
  0x9a   : > { %1113 = vmatprep.mubr.f32.mxu1 %v228_v20  ;;  %888 = vmatmul.mubr.f32.gmra.mrb[10].mxu0 %v227_v22  ;;  %v2189_v17 = vpack.c.bf16 %v666_v10, %v658_v9  ;;  %v680_v20 = vld [vmem:[#allocation2 + $0xdc8] sm:$0xff]  ;;  %v2081_v9 = vpack.c.bf16 %v744_v4, %v736_v3  ;;  %v735_v10 = vld [vmem:[#allocation2 + $0xf80] sm:$0xff]  ;;  %v286_v46 = vld [vmem:[#allocation2 + $0x178] sm:$0xff] }
  0x9b   : > { %2044 = vmatpush1.bf16.msra.mxu0 %v2043_v21  ;;  %1114 = vmatmul.mubr.f32.gmra.mrb[10].mxu1 %v227_v22  ;;  %v674_v21 = vld [vmem:[#allocation2 + $0xd98] sm:$0xff]  ;;  %v2065_v25 = vpack.c.bf16 %v680_v20, %v672_v19  ;;  %v301_v3 = vld [vmem:[#allocation2 + $0x1f0] sm:$0xff] }
  0x9c   : > { %2172 = vmatpush1.bf16.msra.mxu1 %v2171_v23  ;;  %2046 = vmatprep.subr.bf16.mxu0 %v2045_v24  ;;  %v682_v22 = vld [vmem:[#allocation2 + $0xdd8] sm:$0xff]  ;;  %v2063_v23 = vpack.c.bf16 %v663_v15, %v655_v14  ;;  %v2191_v24 = vpack.c.bf16 %v665_v18, %v657_v16  ;;  %v745_v14 = vld [vmem:[#allocation2 + $0xfd0] sm:$0xff]  ;;  %v244_v15 = vld [vmem:[#allocation2 + $0x28] sm:$0xff] }
  0x9d   : > { %2174 = vmatprep.subr.bf16.mxu1 %v2173_v28  ;;  %893 = vmatprep.mubr.f32.mxu0 %v232_v34  ;;  %v673_v28 = vld [vmem:[#allocation2 + $0xd90] sm:$0xff]  ;;  %v2193_v29 = vpack.c.bf16 %v682_v22, %v674_v21  ;;  %v252_v16 = vld [vmem:[#allocation2 + $0x68] sm:$0xff]  ;;  %v254_v18 = vld [vmem:[#allocation2 + $0x78] sm:$0xff] }
  0x9e   : > { %1119 = vmatprep.mubr.f32.mxu1 %v232_v34  ;;  %894 = vmatmul.mubr.f32.gmra.mrb[12].mxu0 %v231_v36  ;;  %v698_v34 = vld [vmem:[#allocation2 + $0xe58] sm:$0xff]  ;;  %v2213_v21 = vpack.c.bf16 %v252_v16, %v244_v15  ;;  %v243_v22 = vld [vmem:[#allocation2 + $0x20] sm:$0xff]  ;;  %v309_v16 = vld [vmem:[#allocation2 + $0x230] sm:$0xff] }
  0x9f   : > { %2048 = vmatpush1.bf16.msra.mxu0 %v2047_v35  ;;  %1120 = vmatmul.mubr.f32.gmra.mrb[12].mxu1 %v231_v36  ;;  %v2067_v35 = vpack.c.bf16 %v679_v27, %v671_v26  ;;  %v2195_v36 = vpack.c.bf16 %v681_v30, %v673_v28  ;;  %v2197_v41 = vpack.c.bf16 %v698_v34, %v690_v33  ;;  %v253_v26 = vld [vmem:[#allocation2 + $0x70] sm:$0xff]  ;;  %v260_v27 = vld [vmem:[#allocation2 + $0xa8] sm:$0xff]  ;;  %v259_v34 = vld [vmem:[#allocation2 + $0xa0] sm:$0xff] }
  0xa0   : > { %2176 = vmatpush1.bf16.msra.mxu1 %v2175_v37  ;;  %2050 = vmatprep.subr.bf16.mxu0 %v2049_v38  ;;  %v2069_v37 = vpack.c.bf16 %v696_v32, %v688_v31  ;;  %v687_v38 = vld [vmem:[#allocation2 + $0xe00] sm:$0xff]  ;;  %v268_v28 = vld [vmem:[#allocation2 + $0xe8] sm:$0xff]  ;;  %v262_v31 = vld [vmem:[#allocation2 + $0xb8] sm:$0xff] }
  0xa1   : > { %2178 = vmatprep.subr.bf16.mxu1 %v2177_v42  ;;  %899 = vmatprep.mubr.f32.mxu0 %v236_v48  ;;  %v697_v42 = vld [vmem:[#allocation2 + $0xe50] sm:$0xff]  ;;  %v2071_v47 = vpack.c.bf16 %v695_v39, %v687_v38  ;;  %v270_v32 = vld [vmem:[#allocation2 + $0xf8] sm:$0xff] }
  0xa2   : > { %1125 = vmatprep.mubr.f32.mxu1 %v236_v48  ;;  %900 = vmatmul.mubr.f32.gmra.mrb[14].mxu0 %v235_v50  ;;  %v2199_v48 = vpack.c.bf16 %v697_v42, %v689_v40  ;;  %v261_v38 = vld [vmem:[#allocation2 + $0xb0] sm:$0xff]  ;;  %v2345_v40 = vpack.c.bf16 %v270_v32, %v262_v31  ;;  %v284_v42 = vld [vmem:[#allocation2 + $0x168] sm:$0xff] }
  0xa3   : > { %2052 = vmatpush1.bf16.msra.mxu0 %v2051_v49  ;;  %1126 = vmatmul.mubr.f32.gmra.mrb[14].mxu1 %v235_v50  ;;  %v2073_v49 = vpack.c.bf16 %v712_v44, %v704_v43  ;;  %v703_v50 = vld [vmem:[#allocation2 + $0xe80] sm:$0xff]  ;;  %v269_v39 = vld [vmem:[#allocation2 + $0xf0] sm:$0xff] }
  0xa4   : > { %2180 = vmatpush1.bf16.msra.mxu1 %v2179_v51  ;;  %2054 = vmatprep.subr.bf16.mxu0 %v2053_v52  ;;  %v711_v51 = vld [vmem:[#allocation2 + $0xec0] sm:$0xff]  ;;  %v705_v52 = vld [vmem:[#allocation2 + $0xe90] sm:$0xff] }
  0xa5   : > { %2182 = vmatprep.subr.bf16.mxu1 %v2181_v56  ;;  %970 = vmatprep.mubr.f32.mxu0 %v210_v62  ;;  %v728_v56 = vld [vmem:[#allocation2 + $0xf48] sm:$0xff]  ;;  %v2075_v59 = vpack.c.bf16 %v711_v51, %v703_v50  ;;  %v2203_v60 = vpack.c.bf16 %v713_v54, %v705_v52  ;;  %v213_v43 = vld [vmem:[%s2843_s20 + $0x30] sm:$0xff]  ;;  %v218_v50 = vld [vmem:[%s2843_s20 + $0x58] sm:$0xff]  ;;  %v2349_v54 = vpack.c.bf16 %v286_v46, %v278_v45 }
  0xa6   : > { %1196 = vmatprep.mubr.f32.mxu1 %v210_v62  ;;  %v2077_v61 = vpack.c.bf16 %v728_v56, %v720_v55  ;;  %v719_v62 = vld [vmem:[#allocation2 + $0xf00] sm:$0xff]  ;;  %v277_v52 = vld [vmem:[#allocation2 + $0x130] sm:$0xff]  ;;  %v292_v55 = vld [vmem:[#allocation2 + $0x1a8] sm:$0xff] }
  0xa7   : > { %2056 = vmatpush1.bf16.msra.mxu0 %v2055_v63  ;;  %v727_v63 = vld [vmem:[#allocation2 + $0xf40] sm:$0xff]  ;;  %v300_v56 = vld [vmem:[#allocation2 + $0x1e8] sm:$0xff]  ;;  %v333_v31 = vld [vmem:[#allocation2 + $0x2f0] sm:$0xff] }
  0xa8   : > { %2184 = vmatpush1.bf16.msra.mxu1 %v2183_v0  ;;  %2058 = vmatprep.subr.bf16.mxu0 %v2057_v1  ;;  %v721_v0 = vld [vmem:[#allocation2 + $0xf10] sm:$0xff]  ;;  %v2205_v1 = vpack.c.bf16 %v730_v58, %v722_v57  ;;  %v2079_v7 = vpack.c.bf16 %v727_v63, %v719_v62  ;;  %v291_v62 = vld [vmem:[#allocation2 + $0x1a0] sm:$0xff] }
  0xa9   : > { %2186 = vmatprep.subr.bf16.mxu1 %v2185_v5  ;;  %v738_v5 = vld [vmem:[#allocation2 + $0xf98] sm:$0xff]  ;;  %v2207_v8 = vpack.c.bf16 %v729_v2, %v721_v0  ;;  %v217_v57 = vld [vmem:[%s2843_s20 + $0x50] sm:$0xff]  ;;  %v299_v63 = vld [vmem:[#allocation2 + $0x1e0] sm:$0xff] }
  0xaa   : > { %v222_v0 = vld [vmem:[%s2843_s20 + $0x78] sm:$0xff]  ;;  %v293_v2 = vld [vmem:[#allocation2 + $0x1b0] sm:$0xff] }
  0xab   : > { %2060 = vmatpush1.bf16.msra.mxu0 %v2059_v11  ;;  %v743_v11 = vld [vmem:[#allocation2 + $0xfc0] sm:$0xff]  ;;  %v349_v45 = vld [vmem:[#allocation2 + $0x370] sm:$0xff] }
  0xac   : > { %2188 = vmatpush1.bf16.msra.mxu1 %v2187_v12  ;;  %2062 = vmatprep.subr.bf16.mxu0 %v2061_v13  ;;  %v737_v12 = vld [vmem:[#allocation2 + $0xf90] sm:$0xff]  ;;  %v2209_v13 = vpack.c.bf16 %v746_v6, %v738_v5  ;;  %v2083_v19 = vpack.c.bf16 %v743_v11, %v735_v10  ;;  %v308_v5 = vld [vmem:[#allocation2 + $0x228] sm:$0xff]  ;;  %v318_v10 = vld [vmem:[#allocation2 + $0x278] sm:$0xff]  ;;  %v2355_v11 = vpack.c.bf16 %v301_v3, %v293_v2 }
  0xad   : > { %2190 = vmatprep.subr.bf16.mxu1 %v2189_v17  ;;  %v246_v17 = vld [vmem:[#allocation2 + $0x38] sm:$0xff]  ;;  %v2211_v20 = vpack.c.bf16 %v745_v14, %v737_v12  ;;  %v316_v6 = vld [vmem:[#allocation2 + $0x268] sm:$0xff]  ;;  %v307_v12 = vld [vmem:[#allocation2 + $0x220] sm:$0xff] }
  0xae   : > { %v226_v14 = vld [vmem:[%s2843_s20 + $0x98] sm:$0xff]  ;;  %v2229_v15 = vpack.c.bf16 %v316_v6, %v308_v5  ;;  %v2888_v46 = vld [vmem:[%s2843_s20 + $0xd0] sm:$0xff]  ;;  %v371_v5 = vld [vmem:[#allocation2 + $0x420] sm:$0xff] }
  0xaf   : > { %2064 = vmatpush1.bf16.msra.mxu0 %v2063_v23  ;;  %v251_v23 = vld [vmem:[#allocation2 + $0x60] sm:$0xff] }
  0xb0   : > { %2192 = vmatpush1.bf16.msra.mxu1 %v2191_v24  ;;  %2066 = vmatprep.subr.bf16.mxu0 %v2065_v25  ;;  %v2341_v24 = vpack.c.bf16 %v254_v18, %v246_v17  ;;  %v245_v25 = vld [vmem:[#allocation2 + $0x30] sm:$0xff]  ;;  %v2215_v30 = vpack.c.bf16 %v251_v23, %v243_v22  ;;  %v326_v23 = vld [vmem:[#allocation2 + $0x2b8] sm:$0xff]  ;;  %v379_v6 = vld [vmem:[#allocation2 + $0x460] sm:$0xff] }
  0xb1   : > { %2194 = vmatprep.subr.bf16.mxu1 %v2193_v29  ;;  %v209_v29 = vld [vmem:[%s2843_s20 + $0x10] sm:$0xff]  ;;  %v2343_v33 = vpack.c.bf16 %v253_v26, %v245_v25  ;;  %v323_v26 = vld [vmem:[#allocation2 + $0x2a0] sm:$0xff] }
  0xb2   : > { %v317_v17 = vld [vmem:[#allocation2 + $0x270] sm:$0xff] }
  0xb3   : > { %2068 = vmatpush1.bf16.msra.mxu0 %v2067_v35  ;;  %v267_v35 = vld [vmem:[#allocation2 + $0xe0] sm:$0xff]  ;;  %v2359_v25 = vpack.c.bf16 %v317_v17, %v309_v16 }
  0xb4   : > { %2196 = vmatpush1.bf16.msra.mxu1 %v2195_v36  ;;  %2070 = vmatprep.subr.bf16.mxu0 %v2069_v37  ;;  %v214_v36 = vld [vmem:[%s2843_s20 + $0x38] sm:$0xff]  ;;  %v2217_v37 = vpack.c.bf16 %v268_v28, %v260_v27  ;;  %v2219_v44 = vpack.c.bf16 %v267_v35, %v259_v34  ;;  %v331_v27 = vld [vmem:[#allocation2 + $0x2e0] sm:$0xff]  ;;  %v348_v34 = vld [vmem:[#allocation2 + $0x368] sm:$0xff] }
  0xb5   : > { %2198 = vmatprep.subr.bf16.mxu1 %v2197_v41  ;;  %v276_v41 = vld [vmem:[#allocation2 + $0x128] sm:$0xff]  ;;  %v2874_v28 = vld [vmem:[%s2843_s20 + $0xb8] sm:$0xff]  ;;  %v2879_v35 = vld [vmem:[%s2843_s20 + $0xb0] sm:$0xff] }
  0xb6   : > { %v2221_v51 = vpack.c.bf16 %v284_v42, %v276_v41  ;;  %v347_v41 = vld [vmem:[#allocation2 + $0x360] sm:$0xff]  ;;  %v2884_v42 = vld [vmem:[%s2843_s20 + $0xd8] sm:$0xff] }
  0xb7   : > { %2072 = vmatpush1.bf16.msra.mxu0 %v2071_v47  ;;  %v2347_v47 = vpack.c.bf16 %v269_v39, %v261_v38  ;;  %v350_v38 = vld [vmem:[#allocation2 + $0x378] sm:$0xff]  ;;  %v387_v17 = vld [vmem:[#allocation2 + $0x4a0] sm:$0xff] }
  0xb8   : > { %2200 = vmatpush1.bf16.msra.mxu1 %v2199_v48  ;;  %2074 = vmatprep.subr.bf16.mxu0 %v2073_v49  ;;  %v275_v48 = vld [vmem:[#allocation2 + $0x120] sm:$0xff] }
  0xb9   : > { %2202 = vmatprep.subr.bf16.mxu1 %v2201_v53  ;;  %v283_v49 = vld [vmem:[#allocation2 + $0x160] sm:$0xff]  ;;  %v285_v53 = vld [vmem:[#allocation2 + $0x170] sm:$0xff] }
  0xba   : > { %v2223_v58 = vpack.c.bf16 %v283_v49, %v275_v48  ;;  %v356_v48 = vld [vmem:[#allocation2 + $0x3a8] sm:$0xff] }
  0xbb   : > { %2076 = vmatpush1.bf16.msra.mxu0 %v2075_v59  ;;  %v294_v59 = vld [vmem:[#allocation2 + $0x1b8] sm:$0xff]  ;;  %v364_v49 = vld [vmem:[#allocation2 + $0x3e8] sm:$0xff] }
  0xbc   : > { %2204 = vmatpush1.bf16.msra.mxu1 %v2203_v60  ;;  %2078 = vmatprep.subr.bf16.mxu0 %v2077_v61  ;;  %v302_v60 = vld [vmem:[#allocation2 + $0x1f8] sm:$0xff]  ;;  %v2351_v61 = vpack.c.bf16 %v285_v53, %v277_v52 }
  0xbd   : > { %2206 = vmatprep.subr.bf16.mxu1 %v2205_v1  ;;  %v2225_v1 = vpack.c.bf16 %v300_v56, %v292_v55  ;;  %v2353_v4 = vpack.c.bf16 %v302_v60, %v294_v59  ;;  %v358_v52 = vld [vmem:[#allocation2 + $0x3b8] sm:$0xff]  ;;  %v355_v55 = vld [vmem:[#allocation2 + $0x3a0] sm:$0xff]  ;;  %v365_v59 = vld [vmem:[#allocation2 + $0x3f0] sm:$0xff] }
  0xbe   : > { %v366_v53 = vld [vmem:[#allocation2 + $0x3f8] sm:$0xff]  ;;  %v363_v56 = vld [vmem:[#allocation2 + $0x3e0] sm:$0xff]  ;;  %v372_v60 = vld [vmem:[#allocation2 + $0x428] sm:$0xff] }
  0xbf   : > { %2080 = vmatpush1.bf16.msra.mxu0 %v2079_v7  ;;  %v221_v7 = vld [vmem:[%s2843_s20 + $0x70] sm:$0xff]  ;;  %v2243_v2 = vpack.c.bf16 %v363_v56, %v355_v55  ;;  %v438_v55 = vld [vmem:[#allocation2 + $0x638] sm:$0xff] }
  0xc0   : > { %2208 = vmatpush1.bf16.msra.mxu1 %v2207_v8  ;;  %2082 = vmatprep.subr.bf16.mxu0 %v2081_v9  ;;  %v2227_v8 = vpack.c.bf16 %v299_v63, %v291_v62  ;;  %v310_v9 = vld [vmem:[#allocation2 + $0x238] sm:$0xff]  ;;  %v2369_v62 = vpack.c.bf16 %v366_v53, %v358_v52  ;;  %v429_v52 = vld [vmem:[#allocation2 + $0x5f0] sm:$0xff]  ;;  %v436_v53 = vld [vmem:[#allocation2 + $0x628] sm:$0xff] }
  0xc1   : > { %2210 = vmatprep.subr.bf16.mxu1 %v2209_v13  ;;  %v315_v13 = vld [vmem:[#allocation2 + $0x260] sm:$0xff]  ;;  %v2357_v18 = vpack.c.bf16 %v318_v10, %v310_v9  ;;  %v374_v63 = vld [vmem:[#allocation2 + $0x438] sm:$0xff]  ;;  %v381_v9 = vld [vmem:[#allocation2 + $0x470] sm:$0xff] }
  0xc2   : > { %v2231_v22 = vpack.c.bf16 %v315_v13, %v307_v12  ;;  %v388_v10 = vld [vmem:[#allocation2 + $0x4a8] sm:$0xff]  ;;  %v390_v12 = vld [vmem:[#allocation2 + $0x4b8] sm:$0xff] }
  0xc3   : > { %2084 = vmatpush1.bf16.msra.mxu0 %v2083_v19  ;;  %v324_v19 = vld [vmem:[#allocation2 + $0x2a8] sm:$0xff]  ;;  %v398_v13 = vld [vmem:[#allocation2 + $0x4f8] sm:$0xff] }
  0xc4   : > { %2212 = vmatpush1.bf16.msra.mxu1 %v2211_v20  ;;  %2214 = vmatprep.subr.bf16.mxu0 %v2213_v21  ;;  %v332_v20 = vld [vmem:[#allocation2 + $0x2e8] sm:$0xff]  ;;  %v2871_v21 = vld [vmem:[%s2843_s20 + $0x90] sm:$0xff]  ;;  %v446_v56 = vld [vmem:[#allocation2 + $0x678] sm:$0xff] }
  0xc5   : > { %2342 = vmatprep.subr.bf16.mxu1 %v2341_v24  ;;  %v334_v24 = vld [vmem:[#allocation2 + $0x2f8] sm:$0xff] }
  0xc6   : > { %971 = vmatmul.mubr.f32.vlgmr.msra.gmra.mrb[0].mxu0 %v209_v29  ;;  %v2361_v32 = vpack.c.bf16 %v334_v24, %v326_v23  ;;  %v404_v23 = vld [vmem:[#allocation2 + $0x528] sm:$0xff] }
  0xc7   : > { %1197 = vmatmul.mubr.f32.vlgmr.msra.gmra.mrb[0].mxu1 %v209_v29  ;;  %2216 = vmatpush1.bf16.msra.mxu0 %v2215_v30  ;;  %v2233_v29 = vpack.c.bf16 %v332_v20, %v324_v19  ;;  %v325_v30 = vld [vmem:[#allocation2 + $0x2b0] sm:$0xff]  ;;  %v2377_v20 = vpack.c.bf16 %v398_v13, %v390_v12  ;;  %v412_v24 = vld [vmem:[#allocation2 + $0x568] sm:$0xff] }
  0xc8   : > { %2344 = vmatpush1.bf16.msra.mxu1 %v2343_v33  ;;  %976 = vmatprep.mubr.f32.mxu0 %v214_v36  ;;  %v340_v33 = vld [vmem:[#allocation2 + $0x328] sm:$0xff]  ;;  %v2363_v39 = vpack.c.bf16 %v333_v31, %v325_v30  ;;  %v389_v19 = vld [vmem:[#allocation2 + $0x4b0] sm:$0xff]  ;;  %v2253_v31 = vpack.c.bf16 %v412_v24, %v404_v23  ;;  %v475_v23 = vld [vmem:[#allocation2 + $0x760] sm:$0xff] }
  0xc9   : > { %1202 = vmatprep.mubr.f32.mxu1 %v214_v36  ;;  %2218 = vmatprep.subr.bf16.mxu0 %v2217_v37  ;;  %v2235_v36 = vpack.c.bf16 %v331_v27, %v323_v26  ;;  %v342_v37 = vld [vmem:[#allocation2 + $0x338] sm:$0xff]  ;;  %v461_v13 = vld [vmem:[#allocation2 + $0x6f0] sm:$0xff] }
  0xca   : > { %977 = vmatmul.mubr.f32.gmra.mrb[2].mxu0 %v213_v43  ;;  %2346 = vmatprep.subr.bf16.mxu1 %v2345_v40  ;;  %v339_v40 = vld [vmem:[#allocation2 + $0x320] sm:$0xff]  ;;  %v406_v26 = vld [vmem:[#allocation2 + $0x538] sm:$0xff]  ;;  %v469_v24 = vld [vmem:[#allocation2 + $0x730] sm:$0xff] }
  0xcb   : > { %1203 = vmatmul.mubr.f32.gmra.mrb[2].mxu1 %v213_v43  ;;  %2220 = vmatpush1.bf16.msra.mxu0 %v2219_v44  ;;  %v2237_v43 = vpack.c.bf16 %v348_v34, %v340_v33  ;;  %v341_v44 = vld [vmem:[#allocation2 + $0x330] sm:$0xff]  ;;  %v414_v27 = vld [vmem:[#allocation2 + $0x578] sm:$0xff]  ;;  %v411_v33 = vld [vmem:[#allocation2 + $0x560] sm:$0xff] }
  0xcc   : > { %2348 = vmatpush1.bf16.msra.mxu1 %v2347_v47  ;;  %982 = vmatprep.mubr.f32.mxu0 %v218_v50  ;;  %v2365_v47 = vpack.c.bf16 %v350_v38, %v342_v37  ;;  %v405_v34 = vld [vmem:[#allocation2 + $0x530] sm:$0xff]  ;;  %v420_v38 = vld [vmem:[#allocation2 + $0x5a8] sm:$0xff] }
  0xcd   : > { %1208 = vmatprep.mubr.f32.mxu1 %v218_v50  ;;  %2222 = vmatprep.subr.bf16.mxu0 %v2221_v51  ;;  %v2239_v50 = vpack.c.bf16 %v347_v41, %v339_v40  ;;  %v2892_v51 = vld [vmem:[%s2843_s20 + $0xf8] sm:$0xff]  ;;  %v413_v37 = vld [vmem:[#allocation2 + $0x570] sm:$0xff] }
  0xce   : > { %983 = vmatmul.mubr.f32.gmra.mrb[4].mxu0 %v217_v57  ;;  %2350 = vmatprep.subr.bf16.mxu1 %v2349_v54  ;;  %v2367_v54 = vpack.c.bf16 %v349_v45, %v341_v44  ;;  %v422_v40 = vld [vmem:[#allocation2 + $0x5b8] sm:$0xff]  ;;  %v2383_v44 = vpack.c.bf16 %v413_v37, %v405_v34  ;;  %v491_v37 = vld [vmem:[#allocation2 + $0x7e0] sm:$0xff] }
  0xcf   : > { %1209 = vmatmul.mubr.f32.gmra.mrb[4].mxu1 %v217_v57  ;;  %2224 = vmatpush1.bf16.msra.mxu0 %v2223_v58  ;;  %v357_v57 = vld [vmem:[#allocation2 + $0x3b0] sm:$0xff]  ;;  %v2241_v58 = vpack.c.bf16 %v364_v49, %v356_v48  ;;  %v430_v41 = vld [vmem:[#allocation2 + $0x5f8] sm:$0xff]  ;;  %v427_v48 = vld [vmem:[#allocation2 + $0x5e0] sm:$0xff] }
  0xd0   : > { %2352 = vmatpush1.bf16.msra.mxu1 %v2351_v61  ;;  %988 = vmatprep.mubr.f32.mxu0 %v222_v0  ;;  %v380_v61 = vld [vmem:[#allocation2 + $0x468] sm:$0xff]  ;;  %v2371_v3 = vpack.c.bf16 %v365_v59, %v357_v57  ;;  %v421_v49 = vld [vmem:[#allocation2 + $0x5b0] sm:$0xff] }
  0xd1   : > { %1214 = vmatprep.mubr.f32.mxu1 %v222_v0  ;;  %2226 = vmatprep.subr.bf16.mxu0 %v2225_v1  ;;  %v382_v0 = vld [vmem:[#allocation2 + $0x478] sm:$0xff]  ;;  %v2899_v1 = vld [vmem:[%s2843_s20 + $0xf0] sm:$0xff] }
  0xd2   : > { %989 = vmatmul.mubr.f32.gmra.mrb[6].mxu0 %v221_v7  ;;  %2354 = vmatprep.subr.bf16.mxu1 %v2353_v4  ;;  %v2245_v4 = vpack.c.bf16 %v380_v61, %v372_v60  ;;  %v435_v60 = vld [vmem:[#allocation2 + $0x620] sm:$0xff] }
  0xd3   : > { %1215 = vmatmul.mubr.f32.gmra.mrb[6].mxu1 %v221_v7  ;;  %2228 = vmatpush1.bf16.msra.mxu0 %v2227_v8  ;;  %v373_v7 = vld [vmem:[#allocation2 + $0x430] sm:$0xff]  ;;  %v2373_v8 = vpack.c.bf16 %v382_v0, %v374_v63  ;;  %v443_v61 = vld [vmem:[#allocation2 + $0x660] sm:$0xff]  ;;  %v2389_v63 = vpack.c.bf16 %v446_v56, %v438_v55  ;;  %v516_v56 = vld [vmem:[#allocation2 + $0x8a8] sm:$0xff] }
  0xd4   : > { %2356 = vmatpush1.bf16.msra.mxu1 %v2355_v11  ;;  %994 = vmatprep.mubr.f32.mxu0 %v226_v14  ;;  %v396_v11 = vld [vmem:[#allocation2 + $0x4e8] sm:$0xff]  ;;  %v445_v0 = vld [vmem:[#allocation2 + $0x670] sm:$0xff] }
  0xd5   : > { %1220 = vmatprep.mubr.f32.mxu1 %v226_v14  ;;  %2230 = vmatprep.subr.bf16.mxu0 %v2229_v15  ;;  %v2247_v14 = vpack.c.bf16 %v379_v6, %v371_v5  ;;  %v2375_v15 = vpack.c.bf16 %v381_v9, %v373_v7  ;;  %v2249_v16 = vpack.c.bf16 %v396_v11, %v388_v10  ;;  %v462_v5 = vld [vmem:[#allocation2 + $0x6f8] sm:$0xff]  ;;  %v451_v9 = vld [vmem:[#allocation2 + $0x6a0] sm:$0xff]  ;;  %v453_v11 = vld [vmem:[#allocation2 + $0x6b0] sm:$0xff] }
  0xd6   : > { %995 = vmatmul.mubr.f32.gmra.mrb[8].mxu0 %v2871_v21  ;;  %2358 = vmatprep.subr.bf16.mxu1 %v2357_v18  ;;  %v395_v18 = vld [vmem:[#allocation2 + $0x4e0] sm:$0xff]  ;;  %v2263_v6 = vpack.c.bf16 %v443_v61, %v435_v60  ;;  %v509_v55 = vld [vmem:[#allocation2 + $0x870] sm:$0xff] }
  0xd7   : > { %1221 = vmatmul.mubr.f32.gmra.mrb[8].mxu1 %v2871_v21  ;;  %2232 = vmatpush1.bf16.msra.mxu0 %v2231_v22  ;;  %v397_v22 = vld [vmem:[#allocation2 + $0x4f0] sm:$0xff]  ;;  %v459_v10 = vld [vmem:[#allocation2 + $0x6e0] sm:$0xff] }
  0xd8   : > { %2360 = vmatpush1.bf16.msra.mxu1 %v2359_v25  ;;  %1000 = vmatprep.mubr.f32.mxu0 %v2874_v28  ;;  %v2628_v25 = vld [vmem:[%s2843_s20 + $0x8] sm:$0xff]  ;;  %v2379_v30 = vpack.c.bf16 %v397_v22, %v389_v19  ;;  %v2395_v19 = vpack.c.bf16 %v461_v13, %v453_v11  ;;  %v467_v22 = vld [vmem:[#allocation2 + $0x720] sm:$0xff] }
  0xd9   : > { %1226 = vmatprep.mubr.f32.mxu1 %v2874_v28  ;;  %2234 = vmatprep.subr.bf16.mxu0 %v2233_v29  ;;  %v2251_v29 = vpack.c.bf16 %v395_v18, %v387_v17  ;;  %v478_v17 = vld [vmem:[#allocation2 + $0x778] sm:$0xff]  ;;  %v2267_v18 = vpack.c.bf16 %v459_v10, %v451_v9  ;;  %v531_v13 = vld [vmem:[#allocation2 + $0x920] sm:$0xff] }
  0xda   : > { %1001 = vmatmul.mubr.f32.gmra.mrb[10].mxu0 %v2879_v35  ;;  %2362 = vmatprep.subr.bf16.mxu1 %v2361_v32  ;;  %v403_v32 = vld [vmem:[#allocation2 + $0x520] sm:$0xff]  ;;  %v542_v9 = vld [vmem:[#allocation2 + $0x978] sm:$0xff] }
  0xdb   : > { %1227 = vmatmul.mubr.f32.gmra.mrb[10].mxu1 %v2879_v35  ;;  %2236 = vmatpush1.bf16.msra.mxu0 %v2235_v36  ;;  %v2381_v36 = vpack.c.bf16 %v414_v27, %v406_v26  ;;  %v477_v26 = vld [vmem:[#allocation2 + $0x770] sm:$0xff]  ;;  %v484_v27 = vld [vmem:[#allocation2 + $0x7a8] sm:$0xff] }
  0xdc   : > { %2364 = vmatpush1.bf16.msra.mxu1 %v2363_v39  ;;  %1006 = vmatprep.mubr.f32.mxu0 %v2884_v42  ;;  %v428_v39 = vld [vmem:[#allocation2 + $0x5e8] sm:$0xff] }
  0xdd   : > { %1232 = vmatprep.mubr.f32.mxu1 %v2884_v42  ;;  %2238 = vmatprep.subr.bf16.mxu0 %v2237_v43  ;;  %v2255_v43 = vpack.c.bf16 %v411_v33, %v403_v32  ;;  %v2257_v45 = vpack.c.bf16 %v428_v39, %v420_v38  ;;  %v2271_v32 = vpack.c.bf16 %v475_v23, %v467_v22  ;;  %v485_v38 = vld [vmem:[#allocation2 + $0x7b0] sm:$0xff]  ;;  %v550_v22 = vld [vmem:[#allocation2 + $0x9b8] sm:$0xff] }
  0xde   : > { %1007 = vmatmul.mubr.f32.gmra.mrb[12].mxu0 %v2888_v46  ;;  %2366 = vmatprep.subr.bf16.mxu1 %v2365_v47  ;;  %v419_v47 = vld [vmem:[#allocation2 + $0x5a0] sm:$0xff]  ;;  %v2399_v33 = vpack.c.bf16 %v477_v26, %v469_v24  ;;  %v558_v23 = vld [vmem:[#allocation2 + $0x9f8] sm:$0xff] }
  0xdf   : > { %1233 = vmatmul.mubr.f32.gmra.mrb[12].mxu1 %v2888_v46  ;;  %2240 = vmatpush1.bf16.msra.mxu0 %v2239_v50  ;;  %v2385_v50 = vpack.c.bf16 %v430_v41, %v422_v40  ;;  %v2259_v57 = vpack.c.bf16 %v427_v48, %v419_v47  ;;  %v493_v40 = vld [vmem:[#allocation2 + $0x7f0] sm:$0xff]  ;;  %v500_v41 = vld [vmem:[#allocation2 + $0x828] sm:$0xff]  ;;  %v2631_v24 = vld [vmem:[%s2843_s20 + $0x20] sm:$0xff] }
  0xe0   : > { %2368 = vmatpush1.bf16.msra.mxu1 %v2367_v54  ;;  %1012 = vmatprep.mubr.f32.mxu0 %v2892_v51  ;;  %v444_v54 = vld [vmem:[#allocation2 + $0x668] sm:$0xff]  ;;  %v2403_v48 = vpack.c.bf16 %v493_v40, %v485_v38  ;;  %v566_v38 = vld [vmem:[#allocation2 + $0xa38] sm:$0xff]  ;;  %v2633_v40 = vld [vmem:[%s2843_s20 + $0x40] sm:$0xff] }
  0xe1   : > { %1238 = vmatprep.mubr.f32.mxu1 %v2892_v51  ;;  %2242 = vmatprep.subr.bf16.mxu0 %v2241_v58  ;;  %v2387_v58 = vpack.c.bf16 %v429_v52, %v421_v49  ;;  %v2261_v59 = vpack.c.bf16 %v444_v54, %v436_v53  ;;  %v507_v52 = vld [vmem:[#allocation2 + $0x860] sm:$0xff]  ;;  %v501_v53 = vld [vmem:[#allocation2 + $0x830] sm:$0xff] }
  0xe2   : > { %1013 = vmatmul.mubr.f32.gmra.mrb[14].mxu0 %v2899_v1  ;;  %2370 = vmatprep.subr.bf16.mxu1 %v2369_v62  ;;  %v437_v62 = vld [vmem:[#allocation2 + $0x630] sm:$0xff]  ;;  %v2407_v61 = vpack.c.bf16 %v509_v55, %v501_v53  ;;  %v588_v53 = vld [vmem:[#allocation2 + $0xae8] sm:$0xff]  ;;  %v582_v55 = vld [vmem:[#allocation2 + $0xab8] sm:$0xff] }
  0xe3   : > { %1239 = vmatmul.mubr.f32.gmra.mrb[14].mxu1 %v2899_v1  ;;  %2244 = vmatpush1.bf16.msra.mxu0 %v2243_v2  ;;  %v452_v2 = vld [vmem:[#allocation2 + $0x6a8] sm:$0xff]  ;;  %v2391_v7 = vpack.c.bf16 %v445_v0, %v437_v62  ;;  %v523_v0 = vld [vmem:[#allocation2 + $0x8e0] sm:$0xff] }
  0xe4   : > { %2372 = vmatpush1.bf16.msra.mxu1 %v2371_v3  ;;  %2246 = vmatprep.subr.bf16.mxu0 %v2245_v4  ;;  %v460_v3 = vld [vmem:[#allocation2 + $0x6e8] sm:$0xff]  ;;  %v454_v4 = vld [vmem:[#allocation2 + $0x6b8] sm:$0xff] }
  0xe5   : > { %2374 = vmatprep.subr.bf16.mxu1 %v2373_v8  ;;  %1309 = vmatprep.mubr.f32.mxu0 %v2628_v25  ;;  %v2265_v8 = vpack.c.bf16 %v460_v3, %v452_v2  ;;  %v2393_v12 = vpack.c.bf16 %v462_v5, %v454_v4  ;;  %v517_v2 = vld [vmem:[#allocation2 + $0x8b0] sm:$0xff]  ;;  %v532_v5 = vld [vmem:[#allocation2 + $0x928] sm:$0xff] }
  0xe6   : > { %1535 = vmatprep.mubr.f32.mxu1 %v2628_v25  ;;  %v525_v4 = vld [vmem:[#allocation2 + $0x8f0] sm:$0xff] }
  0xe7   : > { %2248 = vmatpush1.bf16.msra.mxu0 %v2247_v14  ;;  %v468_v14 = vld [vmem:[#allocation2 + $0x728] sm:$0xff]  ;;  %v2411_v11 = vpack.c.bf16 %v525_v4, %v517_v2  ;;  %v589_v2 = vld [vmem:[#allocation2 + $0xaf0] sm:$0xff] }
  0xe8   : > { %2376 = vmatpush1.bf16.msra.mxu1 %v2375_v15  ;;  %2250 = vmatprep.subr.bf16.mxu0 %v2249_v16  ;;  %v476_v15 = vld [vmem:[#allocation2 + $0x768] sm:$0xff]  ;;  %v470_v16 = vld [vmem:[#allocation2 + $0x738] sm:$0xff] }
  0xe9   : > { %2378 = vmatprep.subr.bf16.mxu1 %v2377_v20  ;;  %v2269_v20 = vpack.c.bf16 %v476_v15, %v468_v14  ;;  %v2397_v25 = vpack.c.bf16 %v478_v17, %v470_v16  ;;  %v539_v14 = vld [vmem:[#allocation2 + $0x960] sm:$0xff]  ;;  %v533_v15 = vld [vmem:[#allocation2 + $0x930] sm:$0xff]  ;;  %v604_v4 = vld [vmem:[#allocation2 + $0xb68] sm:$0xff] }
  0xea   : > { %v541_v17 = vld [vmem:[#allocation2 + $0x970] sm:$0xff] }
  0xeb   : > { %2252 = vmatpush1.bf16.msra.mxu0 %v2251_v29  ;;  %v492_v29 = vld [vmem:[#allocation2 + $0x7e8] sm:$0xff]  ;;  %v2415_v26 = vpack.c.bf16 %v541_v17, %v533_v15 }
  0xec   : > { %2380 = vmatpush1.bf16.msra.mxu1 %v2379_v30  ;;  %2254 = vmatprep.subr.bf16.mxu0 %v2253_v31  ;;  %v486_v30 = vld [vmem:[#allocation2 + $0x7b8] sm:$0xff]  ;;  %v2273_v34 = vpack.c.bf16 %v492_v29, %v484_v27  ;;  %v547_v29 = vld [vmem:[#allocation2 + $0x9a0] sm:$0xff]  ;;  %v612_v17 = vld [vmem:[#allocation2 + $0xba8] sm:$0xff] }
  0xed   : > { %2382 = vmatprep.subr.bf16.mxu1 %v2381_v36  ;;  %v494_v31 = vld [vmem:[#allocation2 + $0x7f8] sm:$0xff]  ;;  %v483_v36 = vld [vmem:[#allocation2 + $0x7a0] sm:$0xff] }
  0xee   : > { %v2401_v39 = vpack.c.bf16 %v494_v31, %v486_v30  ;;  %v2275_v47 = vpack.c.bf16 %v491_v37, %v483_v36  ;;  %v555_v30 = vld [vmem:[#allocation2 + $0x9e0] sm:$0xff]  ;;  %v549_v31 = vld [vmem:[#allocation2 + $0x9b0] sm:$0xff]  ;;  %v572_v36 = vld [vmem:[#allocation2 + $0xa68] sm:$0xff] }
  0xef   : > { %2256 = vmatpush1.bf16.msra.mxu0 %v2255_v43  ;;  %v508_v43 = vld [vmem:[#allocation2 + $0x868] sm:$0xff] }
  0xf0   : > { %2384 = vmatpush1.bf16.msra.mxu1 %v2383_v44  ;;  %2258 = vmatprep.subr.bf16.mxu0 %v2257_v45  ;;  %v502_v44 = vld [vmem:[#allocation2 + $0x838] sm:$0xff]  ;;  %v2277_v49 = vpack.c.bf16 %v508_v43, %v500_v41  ;;  %v2632_v37 = vld [vmem:[%s2843_s20 + $0x48] sm:$0xff]  ;;  %v2291_v41 = vpack.c.bf16 %v555_v30, %v547_v29  ;;  %v619_v29 = vld [vmem:[#allocation2 + $0xbe0] sm:$0xff] }
  0xf1   : > { %2386 = vmatprep.subr.bf16.mxu1 %v2385_v50  ;;  %v510_v45 = vld [vmem:[#allocation2 + $0x878] sm:$0xff]  ;;  %v499_v50 = vld [vmem:[#allocation2 + $0x820] sm:$0xff]  ;;  %v613_v30 = vld [vmem:[#allocation2 + $0xbb0] sm:$0xff] }
  0xf2   : > { %v2405_v54 = vpack.c.bf16 %v510_v45, %v502_v44  ;;  %v2279_v60 = vpack.c.bf16 %v507_v52, %v499_v50  ;;  %v563_v45 = vld [vmem:[#allocation2 + $0xa20] sm:$0xff]  ;;  %v573_v50 = vld [vmem:[#allocation2 + $0xa70] sm:$0xff]  ;;  %v580_v52 = vld [vmem:[#allocation2 + $0xaa8] sm:$0xff] }
  0xf3   : > { %2260 = vmatpush1.bf16.msra.mxu0 %v2259_v57  ;;  %v524_v57 = vld [vmem:[#allocation2 + $0x8e8] sm:$0xff] }
  0xf4   : > { %2388 = vmatpush1.bf16.msra.mxu1 %v2387_v58  ;;  %2262 = vmatprep.subr.bf16.mxu0 %v2261_v59  ;;  %v518_v58 = vld [vmem:[#allocation2 + $0x8b8] sm:$0xff]  ;;  %v2281_v62 = vpack.c.bf16 %v524_v57, %v516_v56  ;;  %v2635_v57 = vld [vmem:[%s2843_s20 + $0x60] sm:$0xff] }
  0xf5   : > { %2390 = vmatprep.subr.bf16.mxu1 %v2389_v63  ;;  %v526_v59 = vld [vmem:[#allocation2 + $0x8f8] sm:$0xff]  ;;  %v515_v63 = vld [vmem:[#allocation2 + $0x8a0] sm:$0xff] }
  0xf6   : > { %v2409_v3 = vpack.c.bf16 %v526_v59, %v518_v58  ;;  %v2283_v10 = vpack.c.bf16 %v523_v0, %v515_v63  ;;  %v590_v56 = vld [vmem:[#allocation2 + $0xaf8] sm:$0xff]  ;;  %v581_v63 = vld [vmem:[#allocation2 + $0xab0] sm:$0xff] }
  0xf7   : > { %2264 = vmatpush1.bf16.msra.mxu0 %v2263_v6  ;;  %v540_v6 = vld [vmem:[#allocation2 + $0x968] sm:$0xff]  ;;  %v2425_v0 = vpack.c.bf16 %v590_v56, %v582_v55  ;;  %v654_v55 = vld [vmem:[#allocation2 + $0xcf8] sm:$0xff]  ;;  %v2643_v56 = vld [vmem:[%s2843_s20 + $0xe0] sm:$0xff] }
  0xf8   : > { %2392 = vmatpush1.bf16.msra.mxu1 %v2391_v7  ;;  %2266 = vmatprep.subr.bf16.mxu0 %v2265_v8  ;;  %v2629_v7 = vld [vmem:[%s2843_s20] sm:$0xff]  ;;  %v534_v8 = vld [vmem:[#allocation2 + $0x938] sm:$0xff] }
  0xf9   : > { %2394 = vmatprep.subr.bf16.mxu1 %v2393_v12  ;;  %v2285_v12 = vpack.c.bf16 %v540_v6, %v532_v5  ;;  %v2413_v16 = vpack.c.bf16 %v542_v9, %v534_v8  ;;  %v2636_v5 = vld [vmem:[%s2843_s20 + $0x88] sm:$0xff]  ;;  %v598_v6 = vld [vmem:[#allocation2 + $0xb38] sm:$0xff]  ;;  %v2637_v8 = vld [vmem:[%s2843_s20 + $0x80] sm:$0xff] }
  0xfb   : > { %2268 = vmatpush1.bf16.msra.mxu0 %v2267_v18  ;;  %v548_v18 = vld [vmem:[#allocation2 + $0x9a8] sm:$0xff] }
  0xfc   : > { %2396 = vmatpush1.bf16.msra.mxu1 %v2395_v19  ;;  %2270 = vmatprep.subr.bf16.mxu0 %v2269_v20  ;;  %v556_v19 = vld [vmem:[#allocation2 + $0x9e8] sm:$0xff] }
  0xfd   : > { %2398 = vmatprep.subr.bf16.mxu1 %v2397_v25  ;;  %v2630_v20 = vld [vmem:[%s2843_s20 + $0x28] sm:$0xff]  ;;  %v2287_v25 = vpack.c.bf16 %v539_v14, %v531_v13  ;;  %v2289_v27 = vpack.c.bf16 %v556_v19, %v548_v18  ;;  %v603_v13 = vld [vmem:[#allocation2 + $0xb60] sm:$0xff]  ;;  %v597_v14 = vld [vmem:[#allocation2 + $0xb30] sm:$0xff] }
  0xfe   : > { %v620_v18 = vld [vmem:[#allocation2 + $0xbe8] sm:$0xff] }
  0xff   : > { %2272 = vmatpush1.bf16.msra.mxu0 %v2271_v32  ;;  %v2417_v32 = vpack.c.bf16 %v558_v23, %v550_v22  ;;  %v2638_v19 = vld [vmem:[%s2843_s20 + $0xa8] sm:$0xff]  ;;  %v622_v22 = vld [vmem:[#allocation2 + $0xbf8] sm:$0xff]  ;;  %v2639_v23 = vld [vmem:[%s2843_s20 + $0xa0] sm:$0xff] }
 0x100   : > { %2400 = vmatpush1.bf16.msra.mxu1 %v2399_v33  ;;  %2274 = vmatprep.subr.bf16.mxu0 %v2273_v34  ;;  %v557_v33 = vld [vmem:[#allocation2 + $0x9f0] sm:$0xff]  ;;  %v564_v34 = vld [vmem:[#allocation2 + $0xa28] sm:$0xff] }
 0x101   : > { %2402 = vmatprep.subr.bf16.mxu1 %v2401_v39  ;;  %v574_v39 = vld [vmem:[#allocation2 + $0xa78] sm:$0xff]  ;;  %v2419_v43 = vpack.c.bf16 %v557_v33, %v549_v31  ;;  %v2293_v44 = vpack.c.bf16 %v572_v36, %v564_v34  ;;  %v628_v33 = vld [vmem:[#allocation2 + $0xc28] sm:$0xff] }
 0x102   : > { %v636_v34 = vld [vmem:[#allocation2 + $0xc68] sm:$0xff] }
 0x103   : > { %2276 = vmatpush1.bf16.msra.mxu0 %v2275_v47  ;;  %v571_v47 = vld [vmem:[#allocation2 + $0xa60] sm:$0xff]  ;;  %v2640_v36 = vld [vmem:[%s2843_s20 + $0xc8] sm:$0xff] }
 0x104   : > { %2404 = vmatpush1.bf16.msra.mxu1 %v2403_v48  ;;  %2278 = vmatprep.subr.bf16.mxu0 %v2277_v49  ;;  %v565_v48 = vld [vmem:[#allocation2 + $0xa30] sm:$0xff]  ;;  %v2421_v49 = vpack.c.bf16 %v574_v39, %v566_v38  ;;  %v2295_v58 = vpack.c.bf16 %v571_v47, %v563_v45  ;;  %v638_v38 = vld [vmem:[#allocation2 + $0xc78] sm:$0xff]  ;;  %v2641_v39 = vld [vmem:[%s2843_s20 + $0xc0] sm:$0xff] }
 0x105   : > { %2406 = vmatprep.subr.bf16.mxu1 %v2405_v54  ;;  %v2634_v54 = vld [vmem:[%s2843_s20 + $0x68] sm:$0xff]  ;;  %v2423_v59 = vpack.c.bf16 %v573_v50, %v565_v48  ;;  %v635_v45 = vld [vmem:[#allocation2 + $0xc60] sm:$0xff]  ;;  %v629_v47 = vld [vmem:[#allocation2 + $0xc30] sm:$0xff] }
 0x106   : > { %1310 = vmatmul.mubr.f32.vlgmr.msra.gmra.mrb[16].mxu0 %v2629_v7  ;;  %v644_v50 = vld [vmem:[#allocation2 + $0xca8] sm:$0xff] }
 0x107   : > { %2280 = vmatpush1.bf16.msra.mxu0 %v2279_v60  ;;  %1536 = vmatmul.mubr.f32.vlgmr.msra.gmra.mrb[16].mxu1 %v2629_v7  ;;  %v2297_v60 = vpack.c.bf16 %v588_v53, %v580_v52  ;;  %v606_v7 = vld [vmem:[#allocation2 + $0xb78] sm:$0xff]  ;;  %v652_v52 = vld [vmem:[#allocation2 + $0xce8] sm:$0xff] }
 0x108   : > { %2408 = vmatpush1.bf16.msra.mxu1 %v2407_v61  ;;  %2282 = vmatprep.subr.bf16.mxu0 %v2281_v62  ;;  %v579_v61 = vld [vmem:[#allocation2 + $0xaa0] sm:$0xff]  ;;  %v2429_v15 = vpack.c.bf16 %v606_v7, %v598_v6  ;;  %v2642_v53 = vld [vmem:[%s2843_s20 + $0xe8] sm:$0xff]  ;;  %v670_v6 = vld [vmem:[#allocation2 + $0xd78] sm:$0xff] }
 0x109   : > { %2410 = vmatprep.subr.bf16.mxu1 %v2409_v3  ;;  %1315 = vmatprep.mubr.f32.mxu0 %v2630_v20  ;;  %v587_v62 = vld [vmem:[#allocation2 + $0xae0] sm:$0xff]  ;;  %v596_v3 = vld [vmem:[#allocation2 + $0xb28] sm:$0xff] }
 0x10a   : > { %1541 = vmatprep.mubr.f32.mxu1 %v2630_v20  ;;  %1316 = vmatmul.mubr.f32.gmra.mrb[18].mxu0 %v2631_v24  ;;  %v2299_v9 = vpack.c.bf16 %v587_v62, %v579_v61  ;;  %v614_v20 = vld [vmem:[#allocation2 + $0xbb8] sm:$0xff]  ;;  %v651_v61 = vld [vmem:[#allocation2 + $0xce0] sm:$0xff]  ;;  %v645_v62 = vld [vmem:[#allocation2 + $0xcb0] sm:$0xff] }
 0x10b   : > { %2284 = vmatpush1.bf16.msra.mxu0 %v2283_v10  ;;  %1542 = vmatmul.mubr.f32.gmra.mrb[18].mxu1 %v2631_v24  ;;  %v2427_v10 = vpack.c.bf16 %v589_v2, %v581_v63  ;;  %v2433_v31 = vpack.c.bf16 %v622_v22, %v614_v20  ;;  %v660_v2 = vld [vmem:[#allocation2 + $0xd28] sm:$0xff] }
 0x10c   : > { %2412 = vmatpush1.bf16.msra.mxu1 %v2411_v11  ;;  %2286 = vmatprep.subr.bf16.mxu0 %v2285_v12  ;;  %v2301_v11 = vpack.c.bf16 %v604_v4, %v596_v3  ;;  %v595_v12 = vld [vmem:[#allocation2 + $0xb20] sm:$0xff]  ;;  %v668_v3 = vld [vmem:[#allocation2 + $0xd68] sm:$0xff]  ;;  %v2644_v4 = vld [vmem:[%s2843_s20 + $0x18] sm:$0xff] }
 0x10d   : > { %2414 = vmatprep.subr.bf16.mxu1 %v2413_v16  ;;  %1321 = vmatprep.mubr.f32.mxu0 %v2632_v37  ;;  %v605_v16 = vld [vmem:[#allocation2 + $0xb70] sm:$0xff]  ;;  %v2303_v24 = vpack.c.bf16 %v603_v13, %v595_v12 }
 0x10e   : > { %1547 = vmatprep.mubr.f32.mxu1 %v2632_v37  ;;  %1322 = vmatmul.mubr.f32.gmra.mrb[20].mxu0 %v2633_v40  ;;  %v630_v37 = vld [vmem:[#allocation2 + $0xc38] sm:$0xff]  ;;  %v661_v12 = vld [vmem:[#allocation2 + $0xd30] sm:$0xff] }
 0x10f   : > { %2288 = vmatpush1.bf16.msra.mxu0 %v2287_v25  ;;  %1548 = vmatmul.mubr.f32.gmra.mrb[20].mxu1 %v2633_v40  ;;  %v2431_v25 = vpack.c.bf16 %v605_v16, %v597_v14  ;;  %v2437_v48 = vpack.c.bf16 %v638_v38, %v630_v37  ;;  %v669_v14 = vld [vmem:[#allocation2 + $0xd70] sm:$0xff]  ;;  %v684_v16 = vld [vmem:[#allocation2 + $0xde8] sm:$0xff]  ;;  %v691_v37 = vld [vmem:[#allocation2 + $0xe20] sm:$0xff] }
 0x110   : > { %2416 = vmatpush1.bf16.msra.mxu1 %v2415_v26  ;;  %2290 = vmatprep.subr.bf16.mxu0 %v2289_v27  ;;  %v2305_v26 = vpack.c.bf16 %v620_v18, %v612_v17  ;;  %v611_v27 = vld [vmem:[#allocation2 + $0xba0] sm:$0xff]  ;;  %v678_v17 = vld [vmem:[#allocation2 + $0xdb8] sm:$0xff]  ;;  %v2447_v20 = vpack.c.bf16 %v669_v14, %v661_v12 }
 0x111   : > { %2418 = vmatprep.subr.bf16.mxu1 %v2417_v32  ;;  %1327 = vmatprep.mubr.f32.mxu0 %v2634_v54  ;;  %v621_v32 = vld [vmem:[#allocation2 + $0xbf0] sm:$0xff]  ;;  %v2307_v40 = vpack.c.bf16 %v619_v29, %v611_v27  ;;  %v686_v18 = vld [vmem:[#allocation2 + $0xdf8] sm:$0xff]  ;;  %v692_v29 = vld [vmem:[#allocation2 + $0xe28] sm:$0xff] }
 0x112   : > { %1553 = vmatprep.mubr.f32.mxu1 %v2634_v54  ;;  %1328 = vmatmul.mubr.f32.gmra.mrb[22].mxu0 %v2635_v57  ;;  %v646_v54 = vld [vmem:[#allocation2 + $0xcb8] sm:$0xff]  ;;  %v685_v27 = vld [vmem:[#allocation2 + $0xdf0] sm:$0xff]  ;;  %v699_v38 = vld [vmem:[#allocation2 + $0xe60] sm:$0xff] }
 0x113   : > { %2292 = vmatpush1.bf16.msra.mxu0 %v2291_v41  ;;  %1554 = vmatmul.mubr.f32.gmra.mrb[22].mxu1 %v2635_v57  ;;  %v2435_v41 = vpack.c.bf16 %v621_v32, %v613_v30  ;;  %v2441_v63 = vpack.c.bf16 %v654_v55, %v646_v54  ;;  %v700_v30 = vld [vmem:[#allocation2 + $0xe68] sm:$0xff]  ;;  %v702_v32 = vld [vmem:[#allocation2 + $0xe78] sm:$0xff]  ;;  %v709_v54 = vld [vmem:[#allocation2 + $0xeb0] sm:$0xff] }
 0x114   : > { %2420 = vmatpush1.bf16.msra.mxu1 %v2419_v43  ;;  %2294 = vmatprep.subr.bf16.mxu0 %v2293_v44  ;;  %v2309_v43 = vpack.c.bf16 %v636_v34, %v628_v33  ;;  %v627_v44 = vld [vmem:[#allocation2 + $0xc20] sm:$0xff] }
 0x115   : > { %2422 = vmatprep.subr.bf16.mxu1 %v2421_v49  ;;  %1333 = vmatprep.mubr.f32.mxu0 %v2636_v5  ;;  %v637_v49 = vld [vmem:[#allocation2 + $0xc70] sm:$0xff]  ;;  %v2311_v57 = vpack.c.bf16 %v635_v45, %v627_v44  ;;  %v716_v44 = vld [vmem:[#allocation2 + $0xee8] sm:$0xff]  ;;  %v710_v45 = vld [vmem:[#allocation2 + $0xeb8] sm:$0xff] }
 0x116   : > { %1559 = vmatprep.mubr.f32.mxu1 %v2636_v5  ;;  %1334 = vmatmul.mubr.f32.gmra.mrb[24].mxu0 %v2637_v8  ;;  %v662_v5 = vld [vmem:[#allocation2 + $0xd38] sm:$0xff]  ;;  %v747_v14 = vld [vmem:[#allocation2 + $0xfe0] sm:$0xff] }
 0x117   : > { %2296 = vmatpush1.bf16.msra.mxu0 %v2295_v58  ;;  %1560 = vmatmul.mubr.f32.gmra.mrb[24].mxu1 %v2637_v8  ;;  %v2439_v58 = vpack.c.bf16 %v637_v49, %v629_v47  ;;  %v2445_v13 = vpack.c.bf16 %v670_v6, %v662_v5  ;;  %v718_v47 = vld [vmem:[#allocation2 + $0xef8] sm:$0xff]  ;;  %v733_v5 = vld [vmem:[#allocation2 + $0xf70] sm:$0xff]  ;;  %v740_v6 = vld [vmem:[#allocation2 + $0xfa8] sm:$0xff] }
 0x118   : > { %2424 = vmatpush1.bf16.msra.mxu1 %v2423_v59  ;;  %2298 = vmatprep.subr.bf16.mxu0 %v2297_v60  ;;  %v2313_v59 = vpack.c.bf16 %v652_v52, %v644_v50  ;;  %v643_v60 = vld [vmem:[#allocation2 + $0xca0] sm:$0xff]  ;;  %v2457_v55 = vpack.c.bf16 %v718_v47, %v710_v45 }
 0x119   : > { %2426 = vmatprep.subr.bf16.mxu1 %v2425_v0  ;;  %1339 = vmatprep.mubr.f32.mxu0 %v2638_v19  ;;  %v653_v0 = vld [vmem:[#allocation2 + $0xcf0] sm:$0xff]  ;;  %v2315_v7 = vpack.c.bf16 %v651_v61, %v643_v60  ;;  %v707_v52 = vld [vmem:[#allocation2 + $0xea0] sm:$0xff]  ;;  %v734_v60 = vld [vmem:[#allocation2 + $0xf78] sm:$0xff] }
 0x11a   : > { %1565 = vmatprep.mubr.f32.mxu1 %v2638_v19  ;;  %1340 = vmatmul.mubr.f32.gmra.mrb[26].mxu0 %v2639_v23  ;;  %v2443_v8 = vpack.c.bf16 %v653_v0, %v645_v62  ;;  %v723_v0 = vld [vmem:[#allocation2 + $0xf20] sm:$0xff] }
 0x11b   : > { %2300 = vmatpush1.bf16.msra.mxu0 %v2299_v9  ;;  %1566 = vmatmul.mubr.f32.gmra.mrb[26].mxu1 %v2639_v23  ;;  %v2317_v9 = vpack.c.bf16 %v668_v3, %v660_v2  ;;  %v675_v23 = vld [vmem:[#allocation2 + $0xda0] sm:$0xff]  ;;  %v725_v3 = vld [vmem:[#allocation2 + $0xf30] sm:$0xff] }
 0x11c   : > { %2428 = vmatpush1.bf16.msra.mxu1 %v2427_v10  ;;  %2302 = vmatprep.subr.bf16.mxu0 %v2301_v11  ;;  %v659_v10 = vld [vmem:[#allocation2 + $0xd20] sm:$0xff] }
 0x11d   : > { %2430 = vmatprep.subr.bf16.mxu1 %v2429_v15  ;;  %1345 = vmatprep.mubr.f32.mxu0 %v2640_v36  ;;  %v667_v11 = vld [vmem:[#allocation2 + $0xd60] sm:$0xff]  ;;  %v676_v15 = vld [vmem:[#allocation2 + $0xda8] sm:$0xff] }
 0x11e   : > { %1571 = vmatprep.mubr.f32.mxu1 %v2640_v36  ;;  %1346 = vmatmul.mubr.f32.gmra.mrb[28].mxu0 %v2641_v39  ;;  %v2319_v19 = vpack.c.bf16 %v667_v11, %v659_v10  ;;  %v2321_v22 = vpack.c.bf16 %v684_v16, %v676_v15  ;;  %v2325_v36 = vpack.c.bf16 %v700_v30, %v692_v29  ;;  %v731_v2 = vld [vmem:[#allocation2 + $0xf60] sm:$0xff]  ;;  %v741_v16 = vld [vmem:[#allocation2 + $0xfb0] sm:$0xff]  ;;  %v2652_v29 = vld [vmem:[%s2843_s20 + $0x98] sm:$0xff] }
 0x11f   : > { %2304 = vmatpush1.bf16.msra.mxu0 %v2303_v24  ;;  %1572 = vmatmul.mubr.f32.gmra.mrb[28].mxu1 %v2641_v39  ;;  %v683_v24 = vld [vmem:[#allocation2 + $0xde0] sm:$0xff]  ;;  %v693_v39 = vld [vmem:[#allocation2 + $0xe30] sm:$0xff]  ;;  %v2335_v10 = vpack.c.bf16 %v731_v2, %v723_v0  ;;  %v2463_v11 = vpack.c.bf16 %v733_v5, %v725_v3 }
 0x120   : > { %2432 = vmatpush1.bf16.msra.mxu1 %v2431_v25  ;;  %2306 = vmatprep.subr.bf16.mxu0 %v2305_v26  ;;  %v677_v25 = vld [vmem:[#allocation2 + $0xdb0] sm:$0xff]  ;;  %v2449_v26 = vpack.c.bf16 %v686_v18, %v678_v17  ;;  %v2323_v33 = vpack.c.bf16 %v683_v24, %v675_v23  ;;  %v2648_v24 = vld [vmem:[%s2843_s20 + $0x58] sm:$0xff]  ;;  %v2947_v30 = vld [vmem:[#allocation4] sm:$0xff] }
 0x121   : > { %2434 = vmatprep.subr.bf16.mxu1 %v2433_v31  ;;  %1351 = vmatprep.mubr.f32.mxu0 %v2642_v53  ;;  %v694_v31 = vld [vmem:[#allocation2 + $0xe38] sm:$0xff]  ;;  %v2451_v34 = vpack.c.bf16 %v685_v27, %v677_v25  ;;  %v749_v17 = vld [vmem:[#allocation2 + $0xff0] sm:$0xff] }
 0x122   : > { %1577 = vmatprep.mubr.f32.mxu1 %v2642_v53  ;;  %1352 = vmatmul.mubr.f32.gmra.mrb[30].mxu0 %v2643_v56  ;;  %v715_v53 = vld [vmem:[#allocation2 + $0xee0] sm:$0xff]  ;;  %v2647_v23 = vld [vmem:[%s2843_s20 + $0x30] sm:$0xff] }
 0x123   : > { %2308 = vmatpush1.bf16.msra.mxu0 %v2307_v40  ;;  %1578 = vmatmul.mubr.f32.gmra.mrb[30].mxu1 %v2643_v56  ;;  %v2453_v40 = vpack.c.bf16 %v702_v32, %v694_v31  ;;  %v717_v56 = vld [vmem:[#allocation2 + $0xef0] sm:$0xff]  ;;  %v2331_v61 = vpack.c.bf16 %v715_v53, %v707_v52 }
 0x124   : > { %2436 = vmatpush1.bf16.msra.mxu1 %v2435_v41  ;;  %2310 = vmatprep.subr.bf16.mxu0 %v2309_v43  ;;  %v701_v41 = vld [vmem:[#allocation2 + $0xe70] sm:$0xff]  ;;  %v708_v43 = vld [vmem:[#allocation2 + $0xea8] sm:$0xff]  ;;  %v2459_v62 = vpack.c.bf16 %v717_v56, %v709_v54 }
 0x125   : > { %2438 = vmatprep.subr.bf16.mxu1 %v2437_v48  ;;  %1422 = vmatprep.mubr.f32.mxu0 %v2644_v4  ;;  %v2327_v48 = vpack.c.bf16 %v699_v38, %v691_v37  ;;  %v2455_v49 = vpack.c.bf16 %v701_v41, %v693_v39  ;;  %v2329_v50 = vpack.c.bf16 %v716_v44, %v708_v43  ;;  %v2649_v25 = vld [vmem:[%s2843_s20 + $0x50] sm:$0xff] }
 0x126   : > { %1648 = vmatprep.mubr.f32.mxu1 %v2644_v4  ;;  %v2651_v27 = vld [vmem:[%s2843_s20 + $0x70] sm:$0xff] }
 0x127   : > { %2312 = vmatpush1.bf16.msra.mxu0 %v2311_v57  ;;  %v724_v57 = vld [vmem:[#allocation2 + $0xf28] sm:$0xff] }
 0x128   : > { %2440 = vmatpush1.bf16.msra.mxu1 %v2439_v58  ;;  %2314 = vmatprep.subr.bf16.mxu0 %v2313_v59  ;;  %v732_v58 = vld [vmem:[#allocation2 + $0xf68] sm:$0xff]  ;;  %v726_v59 = vld [vmem:[#allocation2 + $0xf38] sm:$0xff] }
 0x129   : > { %2442 = vmatprep.subr.bf16.mxu1 %v2441_v63  ;;  %v2333_v63 = vpack.c.bf16 %v732_v58, %v724_v57  ;;  %v2461_v4 = vpack.c.bf16 %v734_v60, %v726_v59 }
 0x12b   : > { %2316 = vmatpush1.bf16.msra.mxu0 %v2315_v7  ;;  %v748_v7 = vld [vmem:[#allocation2 + $0xfe8] sm:$0xff] }
 0x12c   : > { %2444 = vmatpush1.bf16.msra.mxu1 %v2443_v8  ;;  %2318 = vmatprep.subr.bf16.mxu0 %v2317_v9  ;;  %v742_v8 = vld [vmem:[#allocation2 + $0xfb8] sm:$0xff]  ;;  %v2337_v12 = vpack.c.bf16 %v748_v7, %v740_v6 }
 0x12d   : > { %2446 = vmatprep.subr.bf16.mxu1 %v2445_v13  ;;  %v750_v9 = vld [vmem:[#allocation2 + $0xff8] sm:$0xff]  ;;  %v739_v13 = vld [vmem:[#allocation2 + $0xfa0] sm:$0xff] }
 0x12e   : > { %v2465_v15 = vpack.c.bf16 %v750_v9, %v742_v8  ;;  %v2339_v18 = vpack.c.bf16 %v747_v14, %v739_v13 }
 0x12f   : > { %2320 = vmatpush1.bf16.msra.mxu0 %v2319_v19  ;;  %v2467_v19 = vpack.c.bf16 %v749_v17, %v741_v16 }
 0x130   : > { %2448 = vmatpush1.bf16.msra.mxu1 %v2447_v20  ;;  %2322 = vmatprep.subr.bf16.mxu0 %v2321_v22  ;;  %v2645_v20 = vld [vmem:[%s2843_s20 + $0x10] sm:$0xff]  ;;  %v2646_v22 = vld [vmem:[%s2843_s20 + $0x38] sm:$0xff] }
 0x131   : > { %2450 = vmatprep.subr.bf16.mxu1 %v2449_v26  ;;  %v2650_v26 = vld [vmem:[%s2843_s20 + $0x78] sm:$0xff] }
 0x133   : > { %2324 = vmatpush1.bf16.msra.mxu0 %v2323_v33 }
 0x134   : > { %2452 = vmatpush1.bf16.msra.mxu1 %v2451_v34  ;;  %2326 = vmatprep.subr.bf16.mxu0 %v2325_v36 }
 0x135   : > { %2454 = vmatprep.subr.bf16.mxu1 %v2453_v40 }
 0x137   : > { %2328 = vmatpush1.bf16.msra.mxu0 %v2327_v48 }
 0x138   : > { %2456 = vmatpush1.bf16.msra.mxu1 %v2455_v49  ;;  %2330 = vmatprep.subr.bf16.mxu0 %v2329_v50 }
 0x139   : > { %2458 = vmatprep.subr.bf16.mxu1 %v2457_v55 }
 0x13b   : > { %2332 = vmatpush1.bf16.msra.mxu0 %v2331_v61 }
 0x13c   : > { %2460 = vmatpush1.bf16.msra.mxu1 %v2459_v62  ;;  %2334 = vmatprep.subr.bf16.mxu0 %v2333_v63 }
 0x13d   : > { %2462 = vmatprep.subr.bf16.mxu1 %v2461_v4 }
 0x13f   : > { %2336 = vmatpush1.bf16.msra.mxu0 %v2335_v10 }
 0x140   : > { %2464 = vmatpush1.bf16.msra.mxu1 %v2463_v11  ;;  %2338 = vmatprep.subr.bf16.mxu0 %v2337_v12 }
 0x141   : > { %2466 = vmatprep.subr.bf16.mxu1 %v2465_v15 }
 0x143   : > { %2340 = vmatpush1.bf16.msra.mxu0 %v2339_v18 }
 0x144   : > { %2468 = vmatpush1.bf16.msra.mxu1 %v2467_v19 }
 0x146   : > { %1423 = vmatmul.mubr.f32.vlgmr.msra.gmra.mrb[16].mxu0 %v2645_v20 }
 0x147   : > { %1649 = vmatmul.mubr.f32.vlgmr.msra.gmra.mrb[16].mxu1 %v2645_v20  ;;  %1428 = vmatprep.mubr.f32.mxu0 %v2646_v22 }
 0x148   : > { %1654 = vmatprep.mubr.f32.mxu1 %v2646_v22 }
 0x14a   : > { %1429 = vmatmul.mubr.f32.gmra.mrb[18].mxu0 %v2647_v23 }
 0x14b   : > { %1655 = vmatmul.mubr.f32.gmra.mrb[18].mxu1 %v2647_v23  ;;  %1434 = vmatprep.mubr.f32.mxu0 %v2648_v24 }
 0x14c   : > { %1660 = vmatprep.mubr.f32.mxu1 %v2648_v24 }
 0x14e   : > { %1435 = vmatmul.mubr.f32.gmra.mrb[20].mxu0 %v2649_v25 }
 0x14f   : > { %1661 = vmatmul.mubr.f32.gmra.mrb[20].mxu1 %v2649_v25  ;;  %1440 = vmatprep.mubr.f32.mxu0 %v2650_v26 }
 0x150   : > { %1666 = vmatprep.mubr.f32.mxu1 %v2650_v26 }
 0x152   : > { %1441 = vmatmul.mubr.f32.gmra.mrb[22].mxu0 %v2651_v27 }
 0x153   : > { %1667 = vmatmul.mubr.f32.gmra.mrb[22].mxu1 %v2651_v27  ;;  %1446 = vmatprep.mubr.f32.mxu0 %v2652_v29 }
 0x154   : > { %1672 = vmatprep.mubr.f32.mxu1 %v2652_v29 }
 0x156   : > { %1447 = vmatmul.mubr.f32.gmra.mrb[24].mxu0 %v2871_v21 }
 0x157   : > { %1673 = vmatmul.mubr.f32.gmra.mrb[24].mxu1 %v2871_v21  ;;  %1452 = vmatprep.mubr.f32.mxu0 %v2874_v28  ;;  %v753_v21 = vlaneseq }
 0x158   : > { %1678 = vmatprep.mubr.f32.mxu1 %v2874_v28 }
 0x159   : > { %v2944_v28 = vshrl.u32 %v753_v21, 7 }
 0x15a   : > { %1453 = vmatmul.mubr.f32.gmra.mrb[26].mxu0 %v2879_v35 }
 0x15b   : > { %1679 = vmatmul.mubr.f32.gmra.mrb[26].mxu1 %v2879_v35  ;;  %1458 = vmatprep.mubr.f32.mxu0 %v2884_v42  ;;  %v755_v35 = vsub.s32 0, %v2944_v28  ;;  %v759_v31 = vsub.s32 1, %v2944_v28 }
 0x15c   : > { %1684 = vmatprep.mubr.f32.mxu1 %v2884_v42  ;;  %v763_v42 = vsub.s32 2, %v2944_v28 }
 0x15d   : > { %v2953_v32 = vrot.slane %v2947_v30, %v755_v35 }
 0x15e   : > { %1459 = vmatmul.mubr.f32.gmra.mrb[28].mxu0 %v2888_v46 }
 0x15f   : > { %1685 = vmatmul.mubr.f32.gmra.mrb[28].mxu1 %v2888_v46  ;;  %1464 = vmatprep.mubr.f32.mxu0 %v2892_v51  ;;  %v767_v46 = vsub.s32 3, %v2944_v28 }
 0x160   : > { %1690 = vmatprep.mubr.f32.mxu1 %v2892_v51  ;;  %v2956_v51 = vrot.slane %v2947_v30, %v763_v42 }
 0x161   : > { %v2963_v33 = vrot.slane %v2947_v30, %v767_v46 }
 0x162   : > { %1465 = vmatmul.mubr.f32.gmra.mrb[30].mxu0 %v2899_v1 }
 0x163   : > { %1691 = vmatmul.mubr.f32.gmra.mrb[30].mxu1 %v2899_v1  ;;  %v2959_v1 = vrot.slane %v2947_v30, %v759_v31 }
 0x199   : > { %v972_v34 = vpop.f32.mrb[0].mxu0 }
 0x19a   : > { %v2469_v36 = vadd.f32 %v972_v34, %v2953_v32  ;;  %v1198_v37 = vpop.f32.mrb[0].mxu1  ;;  %v974_v38 = vpop.f32.mrb[1].mxu0 }
 0x19b   : > { %v2485_v39 = vadd.f32 %v1198_v37, %v2956_v51  ;;  %v2470_v40 = vadd.f32 %v974_v38, %v2959_v1  ;;  %v1200_v41 = vpop.f32.mrb[1].mxu1 }
 0x19c   : > { %v1697_v43 = vmax.f32 %v2469_v36, 0.0  ;;  %v2486_v44 = vadd.f32 %v1200_v41, %v2963_v33 }
 0x19d   : > { %v1699_v45 = vmax.f32 %v2485_v39, 0.0  ;;  %v1698_v47 = vmax.f32 %v2470_v40, 0.0  ;;  %v978_v48 = vpop.f32.mrb[2].mxu0 }
 0x19e   : > { %1761 = vst [vmem:[%s2969_s25] sm:$0xff] %v1697_v43  ;;  %v1700_v49 = vmax.f32 %v2486_v44, 0.0  ;;  %v2471_v50 = vadd.f32 %v978_v48, %v2953_v32  ;;  %v1204_v52 = vpop.f32.mrb[2].mxu1  ;;  %v980_v53 = vpop.f32.mrb[3].mxu0 }
 0x19f   : > { %1763 = vst [vmem:[%s2969_s25 + $0x10] sm:$0xff] %v1699_v45  ;;  %1762 = vst [vmem:[%s2969_s25 + $0x8] sm:$0xff] %v1698_v47  ;;  %v2487_v54 = vadd.f32 %v1204_v52, %v2956_v51  ;;  %v2472_v55 = vadd.f32 %v980_v53, %v2959_v1  ;;  %v1206_v56 = vpop.f32.mrb[3].mxu1 }
 0x1a0   : > { %1764 = vst [vmem:[%s2969_s25 + $0x18] sm:$0xff] %v1700_v49  ;;  %v1705_v57 = vmax.f32 %v2471_v50, 0.0  ;;  %v2488_v58 = vadd.f32 %v1206_v56, %v2963_v33 }
 0x1a1   : > { %v1707_v59 = vmax.f32 %v2487_v54, 0.0  ;;  %v1706_v60 = vmax.f32 %v2472_v55, 0.0  ;;  %v984_v61 = vpop.f32.mrb[4].mxu0 }
 0x1a2   : > { %1765 = vst [vmem:[%s2969_s25 + $0x40] sm:$0xff] %v1705_v57  ;;  %v1708_v62 = vmax.f32 %v2488_v58, 0.0  ;;  %v2473_v63 = vadd.f32 %v984_v61, %v2953_v32  ;;  %v1210_v0 = vpop.f32.mrb[4].mxu1  ;;  %v986_v2 = vpop.f32.mrb[5].mxu0 }
 0x1a3   : > { %1767 = vst [vmem:[%s2969_s25 + $0x50] sm:$0xff] %v1707_v59  ;;  %1766 = vst [vmem:[%s2969_s25 + $0x48] sm:$0xff] %v1706_v60  ;;  %v2489_v3 = vadd.f32 %v1210_v0, %v2956_v51  ;;  %v2474_v4 = vadd.f32 %v986_v2, %v2959_v1  ;;  %v1212_v5 = vpop.f32.mrb[5].mxu1 }
 0x1a4   : > { %1768 = vst [vmem:[%s2969_s25 + $0x58] sm:$0xff] %v1708_v62  ;;  %v1713_v6 = vmax.f32 %v2473_v63, 0.0  ;;  %v2490_v7 = vadd.f32 %v1212_v5, %v2963_v33 }
 0x1a5   : > { %v1715_v8 = vmax.f32 %v2489_v3, 0.0  ;;  %v1714_v9 = vmax.f32 %v2474_v4, 0.0  ;;  %v990_v10 = vpop.f32.mrb[6].mxu0 }
 0x1a6   : > { %1769 = vst [vmem:[%s2969_s25 + $0x80] sm:$0xff] %v1713_v6  ;;  %v1716_v11 = vmax.f32 %v2490_v7, 0.0  ;;  %v2475_v12 = vadd.f32 %v990_v10, %v2953_v32  ;;  %v1216_v13 = vpop.f32.mrb[6].mxu1  ;;  %v992_v14 = vpop.f32.mrb[7].mxu0 }
 0x1a7   : > { %1771 = vst [vmem:[%s2969_s25 + $0x90] sm:$0xff] %v1715_v8  ;;  %1770 = vst [vmem:[%s2969_s25 + $0x88] sm:$0xff] %v1714_v9  ;;  %v2491_v15 = vadd.f32 %v1216_v13, %v2956_v51  ;;  %v2476_v16 = vadd.f32 %v992_v14, %v2959_v1  ;;  %v1218_v17 = vpop.f32.mrb[7].mxu1  ;;  %v779_v13 = vsub.s32 6, %v2944_v28 }
 0x1a8   : > { %1772 = vst [vmem:[%s2969_s25 + $0x98] sm:$0xff] %v1716_v11  ;;  %v1721_v18 = vmax.f32 %v2475_v12, 0.0  ;;  %v2492_v19 = vadd.f32 %v1218_v17, %v2963_v33 }
 0x1a9   : > { %v1723_v20 = vmax.f32 %v2491_v15, 0.0  ;;  %v1722_v22 = vmax.f32 %v2476_v16, 0.0  ;;  %v996_v23 = vpop.f32.mrb[8].mxu0 }
 0x1aa   : > { %1773 = vst [vmem:[%s2969_s25 + $0xc0] sm:$0xff] %v1721_v18  ;;  %v1724_v24 = vmax.f32 %v2492_v19, 0.0  ;;  %v2477_v25 = vadd.f32 %v996_v23, %v2953_v32  ;;  %v1222_v26 = vpop.f32.mrb[8].mxu1  ;;  %v998_v27 = vpop.f32.mrb[9].mxu0 }
 0x1ab   : > { %1775 = vst [vmem:[%s2969_s25 + $0xd0] sm:$0xff] %v1723_v20  ;;  %1774 = vst [vmem:[%s2969_s25 + $0xc8] sm:$0xff] %v1722_v22  ;;  %v2493_v29 = vadd.f32 %v1222_v26, %v2956_v51  ;;  %v2478_v21 = vadd.f32 %v998_v27, %v2959_v1  ;;  %v1224_v35 = vpop.f32.mrb[9].mxu1 }
 0x1ac   : > { %1776 = vst [vmem:[%s2969_s25 + $0xd8] sm:$0xff] %v1724_v24  ;;  %v1729_v42 = vmax.f32 %v2477_v25, 0.0  ;;  %v2494_v31 = vadd.f32 %v1224_v35, %v2963_v33 }
 0x1ad   : > { %v1731_v46 = vmax.f32 %v2493_v29, 0.0  ;;  %v1730_v34 = vmax.f32 %v2478_v21, 0.0  ;;  %v1002_v36 = vpop.f32.mrb[10].mxu0 }
 0x1ae   : > { %1777 = vst [vmem:[%s2969_s25 + $0x100] sm:$0xff] %v1729_v42  ;;  %v1732_v37 = vmax.f32 %v2494_v31, 0.0  ;;  %v2479_v38 = vadd.f32 %v1002_v36, %v2953_v32  ;;  %v1228_v39 = vpop.f32.mrb[10].mxu1  ;;  %v1004_v40 = vpop.f32.mrb[11].mxu0 }
 0x1af   : > { %1779 = vst [vmem:[%s2969_s25 + $0x110] sm:$0xff] %v1731_v46  ;;  %1778 = vst [vmem:[%s2969_s25 + $0x108] sm:$0xff] %v1730_v34  ;;  %v2495_v41 = vadd.f32 %v1228_v39, %v2956_v51  ;;  %v2480_v43 = vadd.f32 %v1004_v40, %v2959_v1  ;;  %v1230_v44 = vpop.f32.mrb[11].mxu1 }
 0x1b0   : > { %1780 = vst [vmem:[%s2969_s25 + $0x118] sm:$0xff] %v1732_v37  ;;  %v1737_v45 = vmax.f32 %v2479_v38, 0.0  ;;  %v2496_v47 = vadd.f32 %v1230_v44, %v2963_v33 }
 0x1b1   : > { %v1739_v48 = vmax.f32 %v2495_v41, 0.0  ;;  %v1738_v49 = vmax.f32 %v2480_v43, 0.0  ;;  %v1008_v50 = vpop.f32.mrb[12].mxu0 }
 0x1b2   : > { %1781 = vst [vmem:[%s2969_s25 + $0x140] sm:$0xff] %v1737_v45  ;;  %v1740_v52 = vmax.f32 %v2496_v47, 0.0  ;;  %v2481_v53 = vadd.f32 %v1008_v50, %v2953_v32  ;;  %v1234_v54 = vpop.f32.mrb[12].mxu1  ;;  %v1010_v55 = vpop.f32.mrb[13].mxu0 }
 0x1b3   : > { %1783 = vst [vmem:[%s2969_s25 + $0x150] sm:$0xff] %v1739_v48  ;;  %1782 = vst [vmem:[%s2969_s25 + $0x148] sm:$0xff] %v1738_v49  ;;  %v2497_v56 = vadd.f32 %v1234_v54, %v2956_v51  ;;  %v2482_v57 = vadd.f32 %v1010_v55, %v2959_v1  ;;  %v1236_v58 = vpop.f32.mrb[13].mxu1 }
 0x1b4   : > { %1784 = vst [vmem:[%s2969_s25 + $0x158] sm:$0xff] %v1740_v52  ;;  %v1745_v59 = vmax.f32 %v2481_v53, 0.0  ;;  %v2498_v60 = vadd.f32 %v1236_v58, %v2963_v33 }
 0x1b5   : > { %v1747_v61 = vmax.f32 %v2497_v56, 0.0  ;;  %v1746_v62 = vmax.f32 %v2482_v57, 0.0  ;;  %v1014_v63 = vpop.f32.mrb[14].mxu0 }
 0x1b6   : > { %1785 = vst [vmem:[%s2969_s25 + $0x180] sm:$0xff] %v1745_v59  ;;  %v1748_v0 = vmax.f32 %v2498_v60, 0.0  ;;  %v2483_v2 = vadd.f32 %v1014_v63, %v2953_v32  ;;  %v1240_v3 = vpop.f32.mrb[14].mxu1  ;;  %v1016_v4 = vpop.f32.mrb[15].mxu0  ;;  %v771_v32 = vsub.s32 4, %v2944_v28 }
 0x1b7   : > { %1787 = vst [vmem:[%s2969_s25 + $0x190] sm:$0xff] %v1747_v61  ;;  %1786 = vst [vmem:[%s2969_s25 + $0x188] sm:$0xff] %v1746_v62  ;;  %v2499_v5 = vadd.f32 %v1240_v3, %v2956_v51  ;;  %v2484_v6 = vadd.f32 %v1016_v4, %v2959_v1  ;;  %v1242_v7 = vpop.f32.mrb[15].mxu1  ;;  %v775_v51 = vsub.s32 5, %v2944_v28  ;;  %v783_v1 = vsub.s32 7, %v2944_v28 }
 0x1b8   : > { %1788 = vst [vmem:[%s2969_s25 + $0x198] sm:$0xff] %v1748_v0  ;;  %v1753_v8 = vmax.f32 %v2483_v2, 0.0  ;;  %v2500_v9 = vadd.f32 %v1242_v7, %v2963_v33  ;;  %v3039_v14 = vrot.slane %v2947_v30, %v771_v32  ;;  %v3042_v33 = vrot.slane %v2947_v30, %v779_v13 }
 0x1b9   : > { %v1755_v10 = vmax.f32 %v2499_v5, 0.0  ;;  %v1754_v11 = vmax.f32 %v2484_v6, 0.0  ;;  %v3045_v15 = vrot.slane %v2947_v30, %v775_v51  ;;  %v3048_v16 = vrot.slane %v2947_v30, %v783_v1 }
 0x1ba   : > { %1789 = vst [vmem:[%s2969_s25 + $0x1c0] sm:$0xff] %v1753_v8  ;;  %v1756_v12 = vmax.f32 %v2500_v9, 0.0 }
 0x1bb   : > { %1791 = vst [vmem:[%s2969_s25 + $0x1d0] sm:$0xff] %v1755_v10  ;;  %1790 = vst [vmem:[%s2969_s25 + $0x1c8] sm:$0xff] %v1754_v11 }
 0x1bc   : > { %1792 = vst [vmem:[%s2969_s25 + $0x1d8] sm:$0xff] %v1756_v12 }
 0x219   : > { %v1424_v17 = vpop.f32.mrb[16].mxu0 }
 0x21a   : > { %v2501_v18 = vadd.f32 %v1424_v17, %v3039_v14  ;;  %v1650_v19 = vpop.f32.mrb[16].mxu1  ;;  %v1426_v28 = vpop.f32.mrb[17].mxu0 }
 0x21b   : > { %v2517_v20 = vadd.f32 %v1650_v19, %v3042_v33  ;;  %v2502_v22 = vadd.f32 %v1426_v28, %v3045_v15  ;;  %v1652_v23 = vpop.f32.mrb[17].mxu1 }
 0x21c   : > { %v1701_v24 = vmax.f32 %v2501_v18, 0.0  ;;  %v2518_v25 = vadd.f32 %v1652_v23, %v3048_v16 }
 0x21d   : > { %v1703_v26 = vmax.f32 %v2517_v20, 0.0  ;;  %v1702_v27 = vmax.f32 %v2502_v22, 0.0  ;;  %v1430_v30 = vpop.f32.mrb[18].mxu0 }
 0x21e   : > { %1921 = vst [vmem:[%s2969_s25 + $0x20] sm:$0xff] %v1701_v24  ;;  %v1704_v29 = vmax.f32 %v2518_v25, 0.0  ;;  %v2503_v21 = vadd.f32 %v1430_v30, %v3039_v14  ;;  %v1656_v35 = vpop.f32.mrb[18].mxu1  ;;  %v1432_v42 = vpop.f32.mrb[19].mxu0 }
 0x21f   : > { %1923 = vst [vmem:[%s2969_s25 + $0x30] sm:$0xff] %v1703_v26  ;;  %1922 = vst [vmem:[%s2969_s25 + $0x28] sm:$0xff] %v1702_v27  ;;  %v2519_v31 = vadd.f32 %v1656_v35, %v3042_v33  ;;  %v2504_v46 = vadd.f32 %v1432_v42, %v3045_v15  ;;  %v1658_v34 = vpop.f32.mrb[19].mxu1 }
 0x220   : > { %1924 = vst [vmem:[%s2969_s25 + $0x38] sm:$0xff] %v1704_v29  ;;  %v1709_v36 = vmax.f32 %v2503_v21, 0.0  ;;  %v2520_v37 = vadd.f32 %v1658_v34, %v3048_v16 }
 0x221   : > { %v1711_v38 = vmax.f32 %v2519_v31, 0.0  ;;  %v1710_v39 = vmax.f32 %v2504_v46, 0.0  ;;  %v1436_v40 = vpop.f32.mrb[20].mxu0 }
 0x222   : > { %1925 = vst [vmem:[%s2969_s25 + $0x60] sm:$0xff] %v1709_v36  ;;  %v1712_v41 = vmax.f32 %v2520_v37, 0.0  ;;  %v2505_v43 = vadd.f32 %v1436_v40, %v3039_v14  ;;  %v1662_v44 = vpop.f32.mrb[20].mxu1  ;;  %v1438_v45 = vpop.f32.mrb[21].mxu0 }
 0x223   : > { %1927 = vst [vmem:[%s2969_s25 + $0x70] sm:$0xff] %v1711_v38  ;;  %1926 = vst [vmem:[%s2969_s25 + $0x68] sm:$0xff] %v1710_v39  ;;  %v2521_v47 = vadd.f32 %v1662_v44, %v3042_v33  ;;  %v2506_v48 = vadd.f32 %v1438_v45, %v3045_v15  ;;  %v1664_v49 = vpop.f32.mrb[21].mxu1 }
 0x224   : > { %1928 = vst [vmem:[%s2969_s25 + $0x78] sm:$0xff] %v1712_v41  ;;  %v1717_v50 = vmax.f32 %v2505_v43, 0.0  ;;  %v2522_v52 = vadd.f32 %v1664_v49, %v3048_v16 }
 0x225   : > { %v1719_v53 = vmax.f32 %v2521_v47, 0.0  ;;  %v1718_v54 = vmax.f32 %v2506_v48, 0.0  ;;  %v1442_v55 = vpop.f32.mrb[22].mxu0 }
 0x226   : > { %1929 = vst [vmem:[%s2969_s25 + $0xa0] sm:$0xff] %v1717_v50  ;;  %v1720_v56 = vmax.f32 %v2522_v52, 0.0  ;;  %v2507_v57 = vadd.f32 %v1442_v55, %v3039_v14  ;;  %v1668_v58 = vpop.f32.mrb[22].mxu1  ;;  %v1444_v59 = vpop.f32.mrb[23].mxu0 }
 0x227   : > { %1931 = vst [vmem:[%s2969_s25 + $0xb0] sm:$0xff] %v1719_v53  ;;  %1930 = vst [vmem:[%s2969_s25 + $0xa8] sm:$0xff] %v1718_v54  ;;  %v2523_v60 = vadd.f32 %v1668_v58, %v3042_v33  ;;  %v2508_v61 = vadd.f32 %v1444_v59, %v3045_v15  ;;  %v1670_v62 = vpop.f32.mrb[23].mxu1 }
 0x228   : > { %1932 = vst [vmem:[%s2969_s25 + $0xb8] sm:$0xff] %v1720_v56  ;;  %v1725_v63 = vmax.f32 %v2507_v57, 0.0  ;;  %v2524_v0 = vadd.f32 %v1670_v62, %v3048_v16 }
 0x229   : > { %v1727_v2 = vmax.f32 %v2523_v60, 0.0  ;;  %v1726_v3 = vmax.f32 %v2508_v61, 0.0  ;;  %v1448_v4 = vpop.f32.mrb[24].mxu0 }
 0x22a   : > { %1933 = vst [vmem:[%s2969_s25 + $0xe0] sm:$0xff] %v1725_v63  ;;  %v1728_v5 = vmax.f32 %v2524_v0, 0.0  ;;  %v2509_v6 = vadd.f32 %v1448_v4, %v3039_v14  ;;  %v1674_v7 = vpop.f32.mrb[24].mxu1  ;;  %v1450_v8 = vpop.f32.mrb[25].mxu0 }
 0x22b   : > { %1935 = vst [vmem:[%s2969_s25 + $0xf0] sm:$0xff] %v1727_v2  ;;  %1934 = vst [vmem:[%s2969_s25 + $0xe8] sm:$0xff] %v1726_v3  ;;  %v2525_v9 = vadd.f32 %v1674_v7, %v3042_v33  ;;  %v2510_v10 = vadd.f32 %v1450_v8, %v3045_v15  ;;  %v1676_v11 = vpop.f32.mrb[25].mxu1 }
 0x22c   : > { %1936 = vst [vmem:[%s2969_s25 + $0xf8] sm:$0xff] %v1728_v5  ;;  %v1733_v12 = vmax.f32 %v2509_v6, 0.0  ;;  %v2526_v32 = vadd.f32 %v1676_v11, %v3048_v16 }
 0x22d   : > { %v1735_v13 = vmax.f32 %v2525_v9, 0.0  ;;  %v1734_v51 = vmax.f32 %v2510_v10, 0.0  ;;  %v1454_v1 = vpop.f32.mrb[26].mxu0 }
 0x22e   : > { %1937 = vst [vmem:[%s2969_s25 + $0x120] sm:$0xff] %v1733_v12  ;;  %v1736_v17 = vmax.f32 %v2526_v32, 0.0  ;;  %v2511_v18 = vadd.f32 %v1454_v1, %v3039_v14  ;;  %v1680_v19 = vpop.f32.mrb[26].mxu1  ;;  %v1456_v28 = vpop.f32.mrb[27].mxu0 }
 0x22f   : > { %1939 = vst [vmem:[%s2969_s25 + $0x130] sm:$0xff] %v1735_v13  ;;  %1938 = vst [vmem:[%s2969_s25 + $0x128] sm:$0xff] %v1734_v51  ;;  %v2527_v20 = vadd.f32 %v1680_v19, %v3042_v33  ;;  %v2512_v22 = vadd.f32 %v1456_v28, %v3045_v15  ;;  %v1682_v23 = vpop.f32.mrb[27].mxu1 }
 0x230   : > { %1940 = vst [vmem:[%s2969_s25 + $0x138] sm:$0xff] %v1736_v17  ;;  %v1741_v24 = vmax.f32 %v2511_v18, 0.0  ;;  %v2528_v25 = vadd.f32 %v1682_v23, %v3048_v16 }
 0x231   : > { %v1743_v26 = vmax.f32 %v2527_v20, 0.0  ;;  %v1742_v27 = vmax.f32 %v2512_v22, 0.0  ;;  %v1460_v30 = vpop.f32.mrb[28].mxu0 }
 0x232   : > { %1941 = vst [vmem:[%s2969_s25 + $0x160] sm:$0xff] %v1741_v24  ;;  %v1744_v29 = vmax.f32 %v2528_v25, 0.0  ;;  %v2513_v21 = vadd.f32 %v1460_v30, %v3039_v14  ;;  %v1686_v35 = vpop.f32.mrb[28].mxu1  ;;  %v1462_v42 = vpop.f32.mrb[29].mxu0 }
 0x233   : > { %1943 = vst [vmem:[%s2969_s25 + $0x170] sm:$0xff] %v1743_v26  ;;  %1942 = vst [vmem:[%s2969_s25 + $0x168] sm:$0xff] %v1742_v27  ;;  %v2529_v31 = vadd.f32 %v1686_v35, %v3042_v33  ;;  %v2514_v46 = vadd.f32 %v1462_v42, %v3045_v15  ;;  %v1688_v34 = vpop.f32.mrb[29].mxu1 }
 0x234   : > { %1944 = vst [vmem:[%s2969_s25 + $0x178] sm:$0xff] %v1744_v29  ;;  %v1749_v36 = vmax.f32 %v2513_v21, 0.0  ;;  %v2530_v37 = vadd.f32 %v1688_v34, %v3048_v16 }
 0x235   : > { %v1751_v38 = vmax.f32 %v2529_v31, 0.0  ;;  %v1750_v39 = vmax.f32 %v2514_v46, 0.0  ;;  %v1466_v40 = vpop.f32.mrb[30].mxu0 }
 0x236   : > { %1945 = vst [vmem:[%s2969_s25 + $0x1a0] sm:$0xff] %v1749_v36  ;;  %v1752_v41 = vmax.f32 %v2530_v37, 0.0  ;;  %v2515_v43 = vadd.f32 %v1466_v40, %v3039_v14  ;;  %v1692_v44 = vpop.f32.mrb[30].mxu1  ;;  %v1468_v45 = vpop.f32.mrb[31].mxu0 }
 0x237   : > { %1947 = vst [vmem:[%s2969_s25 + $0x1b0] sm:$0xff] %v1751_v38  ;;  %1946 = vst [vmem:[%s2969_s25 + $0x1a8] sm:$0xff] %v1750_v39  ;;  %v2531_v47 = vadd.f32 %v1692_v44, %v3042_v33  ;;  %v2516_v48 = vadd.f32 %v1468_v45, %v3045_v15  ;;  %v1694_v49 = vpop.f32.mrb[31].mxu1 }
 0x238   : > { %1948 = vst [vmem:[%s2969_s25 + $0x1b8] sm:$0xff] %v1752_v41  ;;  %v1757_v50 = vmax.f32 %v2515_v43, 0.0  ;;  %v2532_v52 = vadd.f32 %v1694_v49, %v3048_v16 }
 0x239   : > { %v1759_v53 = vmax.f32 %v2531_v47, 0.0  ;;  %v1758_v54 = vmax.f32 %v2516_v48, 0.0 }
 0x23a   : > { %1949 = vst [vmem:[%s2969_s25 + $0x1e0] sm:$0xff] %v1757_v50  ;;  %v1760_v55 = vmax.f32 %v2532_v52, 0.0 }
 0x23b   : > { %1951 = vst [vmem:[%s2969_s25 + $0x1f0] sm:$0xff] %v1759_v53  ;;  %1950 = vst [vmem:[%s2969_s25 + $0x1e8] sm:$0xff] %v1758_v54 }
 0x23c   : > { %1952 = vst [vmem:[%s2969_s25 + $0x1f8] sm:$0xff] %v1760_v55 }
 0x23d PF: > { %s15_s12 = sadd.s32 1, %s2723_s12  }
 0x23e   : > { %p12_p7 = scmp.ge.s32.totalorder %s15_s12, 4  }
 0x240   :  { %14 = sbr.rel (!%p12_p7) target bundleno = 2 (0x2), region = 72 }
 0x247   :  { %1850 = vsyncpa [#allocation3], 1 }
 0x248   :  { %1852 = vsyncpa [#allocation3 + $0x1], 1 }
 0x249   :  { %1853 = vsyncpa [#allocation5], 1 }

// kernel: decoder_forward.8
= control target key start
LH: loop header
LB: loop body
LE: loop exit
PB: predicated region body
PF: predicated region fallthrough
CT: control target
= control target key end

     0   :  { %s1979_s12 = smov 0   ;;  %s2875_s0 = inlined_call_operand.vmem [shape: f32[2048,128], index: 0, kind: input, shape index: {}]   ;;  %s2876_s1 = inlined_call_operand.vmem [shape: f32[128,256], index: 1, kind: input, shape index: {}]   ;;  %s2877_s2 = inlined_call_operand.vmem [shape: f32[1,256], index: 2, kind: input, shape index: {}]   ;;  %s2878_s3 = inlined_call_operand.vmem [shape: f32[64,2,32,128], index: 3, kind: output, shape index: {}]  }
   0x1 LB: > { %s1752_s13 = sadd.s32 4294967295, %s1956_s12   ;;  %p1756_p0 = scmp.ge.s32.totalorder %s1956_s12, 1  ;;  %s1956_s12 = sphi %s1979_s12, %s13_s12  }
   0x2   : > { %p138_p1 = scmp.lt.s32.totalorder %s1956_s12, 3 }
   0x4   : > { %p139_p2 = pnand %p1756_p0, %p138_p1 }
   0x5   : > { %v305_v0 = vld [vmem:[%s2876_s1 + $0x8] sm:$0xff] (!%p139_p2)  ;;  %v307_v1 = vld [vmem:[%s2876_s1 + $0x18] sm:$0xff] (!%p139_p2)  ;;  %v304_v2 = vld [vmem:[%s2876_s1] sm:$0xff] (!%p139_p2)  ;;  %v1958_v7 = vmov (!%p139_p2), 0.0   ;;  %s1757_s6 = sshll.u32 (!%p139_p2), %s1752_s13, 7 }
   0x6   : > { %142 = sbr.rel (%p139_p2) target bundleno = 510 (0x1fe), region = 32  ;;  %v1893_v3 = vpack.c.bf16 (!%p139_p2), %v307_v1, %v305_v0  ;;  %v306_v4 = vld [vmem:[%s2876_s1 + $0x10] sm:$0xff] (!%p139_p2)  ;;  %v309_v5 = vld [vmem:[%s2876_s1 + $0x28] sm:$0xff] (!%p139_p2)  ;;  %v311_v6 = vld [vmem:[%s2876_s1 + $0x38] sm:$0xff] (!%p139_p2)  ;;  %412 = vmatprep.mubr.f32.mxu0 (!%p139_p2), %v1958_v7  ;;  %796 = vmatprep.mubr.f32.mxu1 (!%p139_p2), %v1958_v7  ;;  %p164_p3 = scmp.lt.s32.totalorder (!%p139_p2), %s1757_s6, 255 }
   0x7   : > { %v1895_v8 = vpack.c.bf16 (!%p139_p2), %v306_v4, %v304_v2  ;;  %v1897_v9 = vpack.c.bf16 (!%p139_p2), %v311_v6, %v309_v5  ;;  %v308_v10 = vld [vmem:[%s2876_s1 + $0x20] sm:$0xff] (!%p139_p2)  ;;  %v310_v11 = vld [vmem:[%s2876_s1 + $0x30] sm:$0xff] (!%p139_p2)  ;;  %v313_v12 = vld [vmem:[%s2876_s1 + $0x48] sm:$0xff] (!%p139_p2) }
   0x8   : > { %1894 = vmatprep.subr.bf16.mxu0 (!%p139_p2), %v1893_v3  ;;  %1925 = vmatprep.subr.bf16.mxu1 (!%p139_p2), %v1893_v3  ;;  %v315_v13 = vld [vmem:[%s2876_s1 + $0x58] sm:$0xff] (!%p139_p2)  ;;  %v1899_v14 = vpack.c.bf16 (!%p139_p2), %v310_v11, %v308_v10  ;;  %v312_v16 = vld [vmem:[%s2876_s1 + $0x40] sm:$0xff] (!%p139_p2)  ;;  %v314_v17 = vld [vmem:[%s2876_s1 + $0x50] sm:$0xff] (!%p139_p2) }
   0x9   : > { %1896 = vmatpush1.bf16.msra.mxu0 (!%p139_p2), %v1895_v8  ;;  %1933 = vmatpush1.bf16.msra.mxu1 (!%p139_p2), %v1895_v8  ;;  %v1901_v15 = vpack.c.bf16 (!%p139_p2), %v315_v13, %v313_v12  ;;  %v317_v18 = vld [vmem:[%s2876_s1 + $0x68] sm:$0xff] (!%p139_p2)  ;;  %v319_v19 = vld [vmem:[%s2876_s1 + $0x78] sm:$0xff] (!%p139_p2)  ;;  %v1903_v20 = vpack.c.bf16 (!%p139_p2), %v314_v17, %v312_v16  ;;  %v316_v22 = vld [vmem:[%s2876_s1 + $0x60] sm:$0xff] (!%p139_p2) }
   0xa   : > { %1898 = vmatprep.subr.bf16.mxu0 (!%p139_p2), %v1897_v9  ;;  %1926 = vmatprep.subr.bf16.mxu1 (!%p139_p2), %v1897_v9  ;;  %v1905_v21 = vpack.c.bf16 (!%p139_p2), %v319_v19, %v317_v18  ;;  %v318_v23 = vld [vmem:[%s2876_s1 + $0x70] sm:$0xff] (!%p139_p2)  ;;  %v321_v24 = vld [vmem:[%s2876_s1 + $0x88] sm:$0xff] (!%p139_p2)  ;;  %v323_v25 = vld [vmem:[%s2876_s1 + $0x98] sm:$0xff] (!%p139_p2) }
   0xb   : > { %v1907_v26 = vpack.c.bf16 (!%p139_p2), %v318_v23, %v316_v22  ;;  %v1909_v27 = vpack.c.bf16 (!%p139_p2), %v323_v25, %v321_v24  ;;  %v320_v28 = vld [vmem:[%s2876_s1 + $0x80] sm:$0xff] (!%p139_p2)  ;;  %v322_v29 = vld [vmem:[%s2876_s1 + $0x90] sm:$0xff] (!%p139_p2)  ;;  %v325_v30 = vld [vmem:[%s2876_s1 + $0xa8] sm:$0xff] (!%p139_p2) }
   0xc   : > { %v327_v31 = vld [vmem:[%s2876_s1 + $0xb8] sm:$0xff] (!%p139_p2)  ;;  %v1911_v32 = vpack.c.bf16 (!%p139_p2), %v322_v29, %v320_v28  ;;  %v324_v34 = vld [vmem:[%s2876_s1 + $0xa0] sm:$0xff] (!%p139_p2)  ;;  %v326_v35 = vld [vmem:[%s2876_s1 + $0xb0] sm:$0xff] (!%p139_p2) }
   0xd   : > { %1900 = vmatpush1.bf16.msra.mxu0 %v1899_v14  ;;  %1934 = vmatpush1.bf16.msra.mxu1 %v1899_v14  ;;  %v1913_v33 = vpack.c.bf16 %v327_v31, %v325_v30  ;;  %v329_v36 = vld [vmem:[%s2876_s1 + $0xc8] sm:$0xff]  ;;  %v331_v37 = vld [vmem:[%s2876_s1 + $0xd8] sm:$0xff]  ;;  %v1915_v38 = vpack.c.bf16 %v326_v35, %v324_v34  ;;  %v328_v40 = vld [vmem:[%s2876_s1 + $0xc0] sm:$0xff]  ;;  %s2880_s6 = smov (!%p164_p3, %s1757_s6), 255 }
   0xe   : > { %1902 = vmatprep.subr.bf16.mxu0 %v1901_v15  ;;  %1927 = vmatprep.subr.bf16.mxu1 %v1901_v15  ;;  %v1917_v39 = vpack.c.bf16 %v331_v37, %v329_v36  ;;  %v330_v41 = vld [vmem:[%s2876_s1 + $0xd0] sm:$0xff]  ;;  %v333_v42 = vld [vmem:[%s2876_s1 + $0xe8] sm:$0xff]  ;;  %v335_v43 = vld [vmem:[%s2876_s1 + $0xf8] sm:$0xff]  ;;  %s1758_s29 = sshll.u32 %s2880_s6, 3  ;;  %s1759_s6 = sshll.u32 %s1752_s13, 5 }
   0xf   : > { %v1919_v44 = vpack.c.bf16 %v330_v41, %v328_v40  ;;  %v1921_v45 = vpack.c.bf16 %v335_v43, %v333_v42  ;;  %v332_v46 = vld [vmem:[%s2876_s1 + $0xe0] sm:$0xff]  ;;  %v334_v47 = vld [vmem:[%s2876_s1 + $0xf0] sm:$0xff]  ;;  %s2090_s5 = scalar_lea.vmem %s2875_s0, %s1758_s29  ;;  %p170_p4 = scmp.lt.s32.totalorder %s1759_s6, 63 }
  0x10   : > { %v1923_v48 = vpack.c.bf16 %v334_v47, %v332_v46  ;;  %v176_v49 = vld [vmem:[%s2090_s5] sm:$0xff]  ;;  %v177_v51 = vld [vmem:[%s2090_s5 + $0x8] sm:$0xff]  ;;  %v178_v53 = vld [vmem:[%s2090_s5 + $0x10] sm:$0xff] }
  0x11   : > { %1904 = vmatpush1.bf16.msra.mxu0 %v1903_v20  ;;  %1935 = vmatpush1.bf16.msra.mxu1 %v1903_v20  ;;  %v240_v50 = vld [vmem:[%s2090_s5 + $0x200] sm:$0xff]  ;;  %v241_v52 = vld [vmem:[%s2090_s5 + $0x208] sm:$0xff]  ;;  %v242_v54 = vld [vmem:[%s2090_s5 + $0x210] sm:$0xff]  ;;  %s2882_s6 = smov (!%p170_p4, %s1759_s6), 63 }
  0x12   : > { %1906 = vmatprep.subr.bf16.mxu0 %v1905_v21  ;;  %1928 = vmatprep.subr.bf16.mxu1 %v1905_v21  ;;  %v179_v55 = vld [vmem:[%s2090_s5 + $0x18] sm:$0xff]  ;;  %v180_v57 = vld [vmem:[%s2090_s5 + $0x20] sm:$0xff]  ;;  %v181_v59 = vld [vmem:[%s2090_s5 + $0x28] sm:$0xff]  ;;  %s1892_s8 = sshll.u32 %s2882_s6, 6 }
  0x13   : > { %v243_v56 = vld [vmem:[%s2090_s5 + $0x218] sm:$0xff]  ;;  %v244_v58 = vld [vmem:[%s2090_s5 + $0x220] sm:$0xff]  ;;  %v245_v60 = vld [vmem:[%s2090_s5 + $0x228] sm:$0xff]  ;;  %s2320_s11 = scalar_lea.vmem %s2878_s3, %s1892_s8 }
  0x14   : > { %v182_v61 = vld [vmem:[%s2090_s5 + $0x30] sm:$0xff]  ;;  %v183_v63 = vld [vmem:[%s2090_s5 + $0x38] sm:$0xff]  ;;  %v184_v1 = vld [vmem:[%s2090_s5 + $0x40] sm:$0xff] }
  0x15   : > { %1908 = vmatpush1.bf16.msra.mxu0 %v1907_v26  ;;  %1936 = vmatpush1.bf16.msra.mxu1 %v1907_v26  ;;  %v246_v62 = vld [vmem:[%s2090_s5 + $0x230] sm:$0xff]  ;;  %v247_v0 = vld [vmem:[%s2090_s5 + $0x238] sm:$0xff]  ;;  %v248_v2 = vld [vmem:[%s2090_s5 + $0x240] sm:$0xff] }
  0x16   : > { %1910 = vmatprep.subr.bf16.mxu0 %v1909_v27  ;;  %1929 = vmatprep.subr.bf16.mxu1 %v1909_v27  ;;  %v185_v3 = vld [vmem:[%s2090_s5 + $0x48] sm:$0xff]  ;;  %v186_v5 = vld [vmem:[%s2090_s5 + $0x50] sm:$0xff]  ;;  %v187_v8 = vld [vmem:[%s2090_s5 + $0x58] sm:$0xff] }
  0x17   : > { %v249_v4 = vld [vmem:[%s2090_s5 + $0x248] sm:$0xff]  ;;  %v250_v6 = vld [vmem:[%s2090_s5 + $0x250] sm:$0xff]  ;;  %v251_v9 = vld [vmem:[%s2090_s5 + $0x258] sm:$0xff] }
  0x18   : > { %v188_v10 = vld [vmem:[%s2090_s5 + $0x60] sm:$0xff]  ;;  %v189_v12 = vld [vmem:[%s2090_s5 + $0x68] sm:$0xff]  ;;  %v190_v14 = vld [vmem:[%s2090_s5 + $0x70] sm:$0xff] }
  0x19   : > { %1912 = vmatpush1.bf16.msra.mxu0 %v1911_v32  ;;  %1937 = vmatpush1.bf16.msra.mxu1 %v1911_v32  ;;  %v252_v11 = vld [vmem:[%s2090_s5 + $0x260] sm:$0xff]  ;;  %v253_v13 = vld [vmem:[%s2090_s5 + $0x268] sm:$0xff]  ;;  %v254_v15 = vld [vmem:[%s2090_s5 + $0x270] sm:$0xff] }
  0x1a   : > { %1914 = vmatprep.subr.bf16.mxu0 %v1913_v33  ;;  %1930 = vmatprep.subr.bf16.mxu1 %v1913_v33  ;;  %v191_v16 = vld [vmem:[%s2090_s5 + $0x78] sm:$0xff]  ;;  %v192_v18 = vld [vmem:[%s2090_s5 + $0x80] sm:$0xff]  ;;  %v193_v20 = vld [vmem:[%s2090_s5 + $0x88] sm:$0xff] }
  0x1b   : > { %v255_v17 = vld [vmem:[%s2090_s5 + $0x278] sm:$0xff]  ;;  %v256_v19 = vld [vmem:[%s2090_s5 + $0x280] sm:$0xff]  ;;  %v257_v21 = vld [vmem:[%s2090_s5 + $0x288] sm:$0xff] }
  0x1c   : > { %v194_v22 = vld [vmem:[%s2090_s5 + $0x90] sm:$0xff]  ;;  %v195_v24 = vld [vmem:[%s2090_s5 + $0x98] sm:$0xff]  ;;  %v196_v26 = vld [vmem:[%s2090_s5 + $0xa0] sm:$0xff] }
  0x1d   : > { %1916 = vmatpush1.bf16.msra.mxu0 %v1915_v38  ;;  %1938 = vmatpush1.bf16.msra.mxu1 %v1915_v38  ;;  %v258_v23 = vld [vmem:[%s2090_s5 + $0x290] sm:$0xff]  ;;  %v259_v25 = vld [vmem:[%s2090_s5 + $0x298] sm:$0xff]  ;;  %v260_v27 = vld [vmem:[%s2090_s5 + $0x2a0] sm:$0xff] }
  0x1e   : > { %1918 = vmatprep.subr.bf16.mxu0 %v1917_v39  ;;  %1931 = vmatprep.subr.bf16.mxu1 %v1917_v39  ;;  %v197_v28 = vld [vmem:[%s2090_s5 + $0xa8] sm:$0xff]  ;;  %v198_v30 = vld [vmem:[%s2090_s5 + $0xb0] sm:$0xff]  ;;  %v199_v32 = vld [vmem:[%s2090_s5 + $0xb8] sm:$0xff] }
  0x1f   : > { %v261_v29 = vld [vmem:[%s2090_s5 + $0x2a8] sm:$0xff]  ;;  %v262_v31 = vld [vmem:[%s2090_s5 + $0x2b0] sm:$0xff]  ;;  %v263_v33 = vld [vmem:[%s2090_s5 + $0x2b8] sm:$0xff] }
  0x20   : > { %v200_v34 = vld [vmem:[%s2090_s5 + $0xc0] sm:$0xff]  ;;  %v201_v36 = vld [vmem:[%s2090_s5 + $0xc8] sm:$0xff]  ;;  %v202_v38 = vld [vmem:[%s2090_s5 + $0xd0] sm:$0xff] }
  0x21   : > { %1920 = vmatpush1.bf16.msra.mxu0 %v1919_v44  ;;  %1939 = vmatpush1.bf16.msra.mxu1 %v1919_v44  ;;  %v264_v35 = vld [vmem:[%s2090_s5 + $0x2c0] sm:$0xff]  ;;  %v265_v37 = vld [vmem:[%s2090_s5 + $0x2c8] sm:$0xff]  ;;  %v266_v39 = vld [vmem:[%s2090_s5 + $0x2d0] sm:$0xff] }
  0x22   : > { %1922 = vmatprep.subr.bf16.mxu0 %v1921_v45  ;;  %1932 = vmatprep.subr.bf16.mxu1 %v1921_v45  ;;  %v203_v40 = vld [vmem:[%s2090_s5 + $0xd8] sm:$0xff]  ;;  %v204_v42 = vld [vmem:[%s2090_s5 + $0xe0] sm:$0xff]  ;;  %v205_v44 = vld [vmem:[%s2090_s5 + $0xe8] sm:$0xff] }
  0x23   : > { %v267_v41 = vld [vmem:[%s2090_s5 + $0x2d8] sm:$0xff]  ;;  %v268_v43 = vld [vmem:[%s2090_s5 + $0x2e0] sm:$0xff]  ;;  %v269_v45 = vld [vmem:[%s2090_s5 + $0x2e8] sm:$0xff] }
  0x24   : > { %v206_v46 = vld [vmem:[%s2090_s5 + $0xf0] sm:$0xff] }
  0x25   : > { %1924 = vmatpush1.bf16.msra.mxu0 %v1923_v48  ;;  %1940 = vmatpush1.bf16.msra.mxu1 %v1923_v48  ;;  %v270_v47 = vld [vmem:[%s2090_s5 + $0x2f0] sm:$0xff]  ;;  %v207_v48 = vld [vmem:[%s2090_s5 + $0xf8] sm:$0xff] }
  0x28   : > { %413 = vmatmul.mubr.f32.vlgmr.msra.gmra.mrb[0].mxu0 %v176_v49  ;;  %797 = vmatmul.mubr.f32.vlgmr.msra.gmra.mrb[0].mxu1 %v240_v50  ;;  %v271_v49 = vld [vmem:[%s2090_s5 + $0x2f8] sm:$0xff]  ;;  %v208_v50 = vld [vmem:[%s2090_s5 + $0x100] sm:$0xff] }
  0x29   : > { %418 = vmatprep.mubr.f32.mxu0 %v1958_v7  ;;  %802 = vmatprep.mubr.f32.mxu1 %v1958_v7 }
  0x2c   : > { %419 = vmatmul.mubr.f32.gmra.mrb[2].mxu0 %v177_v51  ;;  %803 = vmatmul.mubr.f32.gmra.mrb[2].mxu1 %v241_v52  ;;  %v272_v51 = vld [vmem:[%s2090_s5 + $0x300] sm:$0xff]  ;;  %v209_v52 = vld [vmem:[%s2090_s5 + $0x108] sm:$0xff] }
  0x2d   : > { %424 = vmatprep.mubr.f32.mxu0 %v1958_v7  ;;  %808 = vmatprep.mubr.f32.mxu1 %v1958_v7 }
  0x30   : > { %425 = vmatmul.mubr.f32.gmra.mrb[4].mxu0 %v178_v53  ;;  %809 = vmatmul.mubr.f32.gmra.mrb[4].mxu1 %v242_v54  ;;  %v273_v53 = vld [vmem:[%s2090_s5 + $0x308] sm:$0xff]  ;;  %v210_v54 = vld [vmem:[%s2090_s5 + $0x110] sm:$0xff] }
  0x31   : > { %430 = vmatprep.mubr.f32.mxu0 %v1958_v7  ;;  %814 = vmatprep.mubr.f32.mxu1 %v1958_v7 }
  0x34   : > { %431 = vmatmul.mubr.f32.gmra.mrb[6].mxu0 %v179_v55  ;;  %815 = vmatmul.mubr.f32.gmra.mrb[6].mxu1 %v243_v56  ;;  %v274_v55 = vld [vmem:[%s2090_s5 + $0x310] sm:$0xff]  ;;  %v211_v56 = vld [vmem:[%s2090_s5 + $0x118] sm:$0xff] }
  0x35   : > { %436 = vmatprep.mubr.f32.mxu0 %v1958_v7  ;;  %820 = vmatprep.mubr.f32.mxu1 %v1958_v7 }
  0x38   : > { %437 = vmatmul.mubr.f32.gmra.mrb[8].mxu0 %v180_v57  ;;  %821 = vmatmul.mubr.f32.gmra.mrb[8].mxu1 %v244_v58  ;;  %v275_v57 = vld [vmem:[%s2090_s5 + $0x318] sm:$0xff]  ;;  %v212_v58 = vld [vmem:[%s2090_s5 + $0x120] sm:$0xff] }
  0x39   : > { %442 = vmatprep.mubr.f32.mxu0 %v1958_v7  ;;  %826 = vmatprep.mubr.f32.mxu1 %v1958_v7 }
  0x3c   : > { %443 = vmatmul.mubr.f32.gmra.mrb[10].mxu0 %v181_v59  ;;  %827 = vmatmul.mubr.f32.gmra.mrb[10].mxu1 %v245_v60  ;;  %v276_v59 = vld [vmem:[%s2090_s5 + $0x320] sm:$0xff]  ;;  %v213_v60 = vld [vmem:[%s2090_s5 + $0x128] sm:$0xff] }
  0x3d   : > { %448 = vmatprep.mubr.f32.mxu0 %v1958_v7  ;;  %832 = vmatprep.mubr.f32.mxu1 %v1958_v7 }
  0x40   : > { %449 = vmatmul.mubr.f32.gmra.mrb[12].mxu0 %v182_v61  ;;  %833 = vmatmul.mubr.f32.gmra.mrb[12].mxu1 %v246_v62  ;;  %v277_v61 = vld [vmem:[%s2090_s5 + $0x328] sm:$0xff]  ;;  %v214_v62 = vld [vmem:[%s2090_s5 + $0x130] sm:$0xff] }
  0x41   : > { %454 = vmatprep.mubr.f32.mxu0 %v1958_v7  ;;  %838 = vmatprep.mubr.f32.mxu1 %v1958_v7 }
  0x44   : > { %455 = vmatmul.mubr.f32.gmra.mrb[14].mxu0 %v183_v63  ;;  %839 = vmatmul.mubr.f32.gmra.mrb[14].mxu1 %v247_v0  ;;  %v278_v63 = vld [vmem:[%s2090_s5 + $0x330] sm:$0xff]  ;;  %v215_v0 = vld [vmem:[%s2090_s5 + $0x138] sm:$0xff] }
  0x45   : > { %460 = vmatprep.mubr.f32.mxu0 %v1958_v7  ;;  %844 = vmatprep.mubr.f32.mxu1 %v1958_v7 }
  0x48   : > { %461 = vmatmul.mubr.f32.gmra.mrb[16].mxu0 %v184_v1  ;;  %845 = vmatmul.mubr.f32.gmra.mrb[16].mxu1 %v248_v2  ;;  %v279_v1 = vld [vmem:[%s2090_s5 + $0x338] sm:$0xff]  ;;  %v216_v2 = vld [vmem:[%s2090_s5 + $0x140] sm:$0xff] }
  0x49   : > { %466 = vmatprep.mubr.f32.mxu0 %v1958_v7  ;;  %850 = vmatprep.mubr.f32.mxu1 %v1958_v7 }
  0x4c   : > { %467 = vmatmul.mubr.f32.gmra.mrb[18].mxu0 %v185_v3  ;;  %851 = vmatmul.mubr.f32.gmra.mrb[18].mxu1 %v249_v4  ;;  %v280_v3 = vld [vmem:[%s2090_s5 + $0x340] sm:$0xff]  ;;  %v217_v4 = vld [vmem:[%s2090_s5 + $0x148] sm:$0xff] }
  0x4d   : > { %472 = vmatprep.mubr.f32.mxu0 %v1958_v7  ;;  %856 = vmatprep.mubr.f32.mxu1 %v1958_v7 }
  0x50   : > { %473 = vmatmul.mubr.f32.gmra.mrb[20].mxu0 %v186_v5  ;;  %857 = vmatmul.mubr.f32.gmra.mrb[20].mxu1 %v250_v6  ;;  %v281_v5 = vld [vmem:[%s2090_s5 + $0x348] sm:$0xff]  ;;  %v218_v6 = vld [vmem:[%s2090_s5 + $0x150] sm:$0xff] }
  0x51   : > { %478 = vmatprep.mubr.f32.mxu0 %v1958_v7  ;;  %862 = vmatprep.mubr.f32.mxu1 %v1958_v7 }
  0x54   : > { %479 = vmatmul.mubr.f32.gmra.mrb[22].mxu0 %v187_v8  ;;  %863 = vmatmul.mubr.f32.gmra.mrb[22].mxu1 %v251_v9  ;;  %v282_v8 = vld [vmem:[%s2090_s5 + $0x350] sm:$0xff]  ;;  %v219_v9 = vld [vmem:[%s2090_s5 + $0x158] sm:$0xff] }
  0x55   : > { %484 = vmatprep.mubr.f32.mxu0 %v1958_v7  ;;  %868 = vmatprep.mubr.f32.mxu1 %v1958_v7 }
  0x58   : > { %485 = vmatmul.mubr.f32.gmra.mrb[24].mxu0 %v188_v10  ;;  %869 = vmatmul.mubr.f32.gmra.mrb[24].mxu1 %v252_v11  ;;  %v283_v10 = vld [vmem:[%s2090_s5 + $0x358] sm:$0xff]  ;;  %v220_v11 = vld [vmem:[%s2090_s5 + $0x160] sm:$0xff] }
  0x59   : > { %490 = vmatprep.mubr.f32.mxu0 %v1958_v7  ;;  %874 = vmatprep.mubr.f32.mxu1 %v1958_v7 }
  0x5c   : > { %491 = vmatmul.mubr.f32.gmra.mrb[26].mxu0 %v189_v12  ;;  %875 = vmatmul.mubr.f32.gmra.mrb[26].mxu1 %v253_v13  ;;  %v284_v12 = vld [vmem:[%s2090_s5 + $0x360] sm:$0xff]  ;;  %v221_v13 = vld [vmem:[%s2090_s5 + $0x168] sm:$0xff] }
  0x5d   : > { %496 = vmatprep.mubr.f32.mxu0 %v1958_v7  ;;  %880 = vmatprep.mubr.f32.mxu1 %v1958_v7 }
  0x60   : > { %497 = vmatmul.mubr.f32.gmra.mrb[28].mxu0 %v190_v14  ;;  %881 = vmatmul.mubr.f32.gmra.mrb[28].mxu1 %v254_v15  ;;  %v285_v14 = vld [vmem:[%s2090_s5 + $0x368] sm:$0xff]  ;;  %v222_v15 = vld [vmem:[%s2090_s5 + $0x170] sm:$0xff] }
  0x61   : > { %502 = vmatprep.mubr.f32.mxu0 %v1958_v7  ;;  %886 = vmatprep.mubr.f32.mxu1 %v1958_v7 }
  0x64   : > { %503 = vmatmul.mubr.f32.gmra.mrb[30].mxu0 %v191_v16  ;;  %887 = vmatmul.mubr.f32.gmra.mrb[30].mxu1 %v255_v17  ;;  %v286_v16 = vld [vmem:[%s2090_s5 + $0x370] sm:$0xff]  ;;  %v223_v17 = vld [vmem:[%s2090_s5 + $0x178] sm:$0xff] }
  0x65   : > { %508 = vmatprep.mubr.f32.mxu0 %v1958_v7  ;;  %892 = vmatprep.mubr.f32.mxu1 %v1958_v7 }
  0x68   : > { %509 = vmatmul.mubr.f32.gmra.mrb[32].mxu0 %v192_v18  ;;  %893 = vmatmul.mubr.f32.gmra.mrb[32].mxu1 %v256_v19  ;;  %v287_v18 = vld [vmem:[%s2090_s5 + $0x378] sm:$0xff]  ;;  %v224_v19 = vld [vmem:[%s2090_s5 + $0x180] sm:$0xff] }
  0x69   : > { %514 = vmatprep.mubr.f32.mxu0 %v1958_v7  ;;  %898 = vmatprep.mubr.f32.mxu1 %v1958_v7 }
  0x6c   : > { %515 = vmatmul.mubr.f32.gmra.mrb[34].mxu0 %v193_v20  ;;  %899 = vmatmul.mubr.f32.gmra.mrb[34].mxu1 %v257_v21  ;;  %v288_v20 = vld [vmem:[%s2090_s5 + $0x380] sm:$0xff]  ;;  %v225_v21 = vld [vmem:[%s2090_s5 + $0x188] sm:$0xff] }
  0x6d   : > { %520 = vmatprep.mubr.f32.mxu0 %v1958_v7  ;;  %904 = vmatprep.mubr.f32.mxu1 %v1958_v7 }
  0x70   : > { %521 = vmatmul.mubr.f32.gmra.mrb[36].mxu0 %v194_v22  ;;  %905 = vmatmul.mubr.f32.gmra.mrb[36].mxu1 %v258_v23  ;;  %v289_v22 = vld [vmem:[%s2090_s5 + $0x388] sm:$0xff]  ;;  %v338_v23 = vlaneseq }
  0x71   : > { %526 = vmatprep.mubr.f32.mxu0 %v1958_v7  ;;  %910 = vmatprep.mubr.f32.mxu1 %v1958_v7 }
  0x74   : > { %527 = vmatmul.mubr.f32.gmra.mrb[38].mxu0 %v195_v24  ;;  %911 = vmatmul.mubr.f32.gmra.mrb[38].mxu1 %v259_v25  ;;  %v226_v24 = vld [vmem:[%s2090_s5 + $0x190] sm:$0xff] }
  0x75   : > { %532 = vmatprep.mubr.f32.mxu0 %v1958_v7  ;;  %916 = vmatprep.mubr.f32.mxu1 %v1958_v7  ;;  %v290_v25 = vld [vmem:[%s2090_s5 + $0x390] sm:$0xff] }
  0x78   : > { %533 = vmatmul.mubr.f32.gmra.mrb[40].mxu0 %v196_v26  ;;  %917 = vmatmul.mubr.f32.gmra.mrb[40].mxu1 %v260_v27  ;;  %v339_v26 = vshrl.u32 %v338_v23, 7  ;;  %v227_v27 = vld [vmem:[%s2090_s5 + $0x198] sm:$0xff] }
  0x79   : > { %538 = vmatprep.mubr.f32.mxu0 %v1958_v7  ;;  %922 = vmatprep.mubr.f32.mxu1 %v1958_v7 }
  0x7c   : > { %539 = vmatmul.mubr.f32.gmra.mrb[42].mxu0 %v197_v28  ;;  %923 = vmatmul.mubr.f32.gmra.mrb[42].mxu1 %v261_v29  ;;  %v291_v28 = vld [vmem:[%s2090_s5 + $0x398] sm:$0xff]  ;;  %v340_v29 = vsub.s32 0, %v339_v26 }
  0x7d   : > { %544 = vmatprep.mubr.f32.mxu0 %v1958_v7  ;;  %928 = vmatprep.mubr.f32.mxu1 %v1958_v7 }
  0x80   : > { %545 = vmatmul.mubr.f32.gmra.mrb[44].mxu0 %v198_v30  ;;  %929 = vmatmul.mubr.f32.gmra.mrb[44].mxu1 %v262_v31  ;;  %v228_v30 = vld [vmem:[%s2090_s5 + $0x1a0] sm:$0xff] }
  0x81   : > { %550 = vmatprep.mubr.f32.mxu0 %v1958_v7  ;;  %934 = vmatprep.mubr.f32.mxu1 %v1958_v7  ;;  %v292_v31 = vld [vmem:[%s2090_s5 + $0x3a0] sm:$0xff] }
  0x84   : > { %551 = vmatmul.mubr.f32.gmra.mrb[46].mxu0 %v199_v32  ;;  %935 = vmatmul.mubr.f32.gmra.mrb[46].mxu1 %v263_v33  ;;  %v336_v32 = vld [vmem:[%s2877_s2] sm:$0x3]  ;;  %v344_v33 = vsub.s32 1, %v339_v26  ;;  %v297_v26 = vld [vmem:[%s2090_s5 + $0x3c8] sm:$0xff] }
  0x85   : > { %556 = vmatprep.mubr.f32.mxu0 %v1958_v7  ;;  %940 = vmatprep.mubr.f32.mxu1 %v1958_v7 }
  0x88   : > { %557 = vmatmul.mubr.f32.gmra.mrb[48].mxu0 %v200_v34  ;;  %941 = vmatmul.mubr.f32.gmra.mrb[48].mxu1 %v264_v35  ;;  %v2307_v34 = vrot.slane %v336_v32, %v340_v29  ;;  %v2311_v35 = vrot.slane %v336_v32, %v344_v33 }
  0x89   : > { %562 = vmatprep.mubr.f32.mxu0 %v1958_v7  ;;  %946 = vmatprep.mubr.f32.mxu1 %v1958_v7 }
  0x8c   : > { %563 = vmatmul.mubr.f32.gmra.mrb[50].mxu0 %v201_v36  ;;  %947 = vmatmul.mubr.f32.gmra.mrb[50].mxu1 %v265_v37  ;;  %v229_v36 = vld [vmem:[%s2090_s5 + $0x1a8] sm:$0xff] }
  0x8d   : > { %568 = vmatprep.mubr.f32.mxu0 %v1958_v7  ;;  %952 = vmatprep.mubr.f32.mxu1 %v1958_v7  ;;  %v293_v37 = vld [vmem:[%s2090_s5 + $0x3a8] sm:$0xff] }
  0x90   : > { %569 = vmatmul.mubr.f32.gmra.mrb[52].mxu0 %v202_v38  ;;  %953 = vmatmul.mubr.f32.gmra.mrb[52].mxu1 %v266_v39 }
  0x91   : > { %574 = vmatprep.mubr.f32.mxu0 %v1958_v7  ;;  %958 = vmatprep.mubr.f32.mxu1 %v1958_v7 }
  0x94   : > { %575 = vmatmul.mubr.f32.gmra.mrb[54].mxu0 %v203_v40  ;;  %959 = vmatmul.mubr.f32.gmra.mrb[54].mxu1 %v267_v41 }
  0x95   : > { %580 = vmatprep.mubr.f32.mxu0 %v1958_v7  ;;  %964 = vmatprep.mubr.f32.mxu1 %v1958_v7 }
  0x98   : > { %581 = vmatmul.mubr.f32.gmra.mrb[56].mxu0 %v204_v42  ;;  %965 = vmatmul.mubr.f32.gmra.mrb[56].mxu1 %v268_v43 }
  0x99   : > { %586 = vmatprep.mubr.f32.mxu0 %v1958_v7  ;;  %970 = vmatprep.mubr.f32.mxu1 %v1958_v7 }
  0x9c   : > { %587 = vmatmul.mubr.f32.gmra.mrb[58].mxu0 %v205_v44  ;;  %971 = vmatmul.mubr.f32.gmra.mrb[58].mxu1 %v269_v45 }
  0x9d   : > { %592 = vmatprep.mubr.f32.mxu0 %v1958_v7  ;;  %976 = vmatprep.mubr.f32.mxu1 %v1958_v7 }
  0xa0   : > { %593 = vmatmul.mubr.f32.gmra.mrb[60].mxu0 %v206_v46  ;;  %977 = vmatmul.mubr.f32.gmra.mrb[60].mxu1 %v270_v47  ;;  %v230_v46 = vld [vmem:[%s2090_s5 + $0x1b0] sm:$0xff] }
  0xa1   : > { %598 = vmatprep.mubr.f32.mxu0 %v1958_v7  ;;  %982 = vmatprep.mubr.f32.mxu1 %v1958_v7  ;;  %v294_v47 = vld [vmem:[%s2090_s5 + $0x3b0] sm:$0xff] }
  0xa4   : > { %599 = vmatmul.mubr.f32.gmra.mrb[62].mxu0 %v207_v48  ;;  %983 = vmatmul.mubr.f32.gmra.mrb[62].mxu1 %v271_v49 }
  0xa5   : > { %604 = vmatprep.mubr.f32.mxu0 %v1958_v7  ;;  %988 = vmatprep.mubr.f32.mxu1 %v1958_v7 }
  0xa8   : > { %605 = vmatmul.mubr.f32.gmra.mrb[64].mxu0 %v208_v50  ;;  %989 = vmatmul.mubr.f32.gmra.mrb[64].mxu1 %v272_v51 }
  0xa9   : > { %610 = vmatprep.mubr.f32.mxu0 %v1958_v7  ;;  %994 = vmatprep.mubr.f32.mxu1 %v1958_v7 }
  0xac   : > { %611 = vmatmul.mubr.f32.gmra.mrb[66].mxu0 %v209_v52  ;;  %995 = vmatmul.mubr.f32.gmra.mrb[66].mxu1 %v273_v53 }
  0xad   : > { %616 = vmatprep.mubr.f32.mxu0 %v1958_v7  ;;  %1000 = vmatprep.mubr.f32.mxu1 %v1958_v7 }
  0xb0   : > { %617 = vmatmul.mubr.f32.gmra.mrb[68].mxu0 %v210_v54  ;;  %1001 = vmatmul.mubr.f32.gmra.mrb[68].mxu1 %v274_v55 }
  0xb1   : > { %622 = vmatprep.mubr.f32.mxu0 %v1958_v7  ;;  %1006 = vmatprep.mubr.f32.mxu1 %v1958_v7 }
  0xb4   : > { %623 = vmatmul.mubr.f32.gmra.mrb[70].mxu0 %v211_v56  ;;  %1007 = vmatmul.mubr.f32.gmra.mrb[70].mxu1 %v275_v57 }
  0xb5   : > { %628 = vmatprep.mubr.f32.mxu0 %v1958_v7  ;;  %1012 = vmatprep.mubr.f32.mxu1 %v1958_v7 }
  0xb8   : > { %629 = vmatmul.mubr.f32.gmra.mrb[72].mxu0 %v212_v58  ;;  %1013 = vmatmul.mubr.f32.gmra.mrb[72].mxu1 %v276_v59 }
  0xb9   : > { %634 = vmatprep.mubr.f32.mxu0 %v1958_v7  ;;  %1018 = vmatprep.mubr.f32.mxu1 %v1958_v7 }
  0xbc   : > { %635 = vmatmul.mubr.f32.gmra.mrb[74].mxu0 %v213_v60  ;;  %1019 = vmatmul.mubr.f32.gmra.mrb[74].mxu1 %v277_v61  ;;  %v231_v60 = vld [vmem:[%s2090_s5 + $0x1b8] sm:$0xff] }
  0xbd   : > { %640 = vmatprep.mubr.f32.mxu0 %v1958_v7  ;;  %1024 = vmatprep.mubr.f32.mxu1 %v1958_v7  ;;  %v295_v61 = vld [vmem:[%s2090_s5 + $0x3b8] sm:$0xff] }
  0xc0   : > { %641 = vmatmul.mubr.f32.gmra.mrb[76].mxu0 %v214_v62  ;;  %1025 = vmatmul.mubr.f32.gmra.mrb[76].mxu1 %v278_v63 }
  0xc1   : > { %646 = vmatprep.mubr.f32.mxu0 %v1958_v7  ;;  %1030 = vmatprep.mubr.f32.mxu1 %v1958_v7 }
  0xc4   : > { %647 = vmatmul.mubr.f32.gmra.mrb[78].mxu0 %v215_v0  ;;  %1031 = vmatmul.mubr.f32.gmra.mrb[78].mxu1 %v279_v1 }
  0xc5   : > { %652 = vmatprep.mubr.f32.mxu0 %v1958_v7  ;;  %1036 = vmatprep.mubr.f32.mxu1 %v1958_v7 }
  0xc8   : > { %653 = vmatmul.mubr.f32.gmra.mrb[80].mxu0 %v216_v2  ;;  %1037 = vmatmul.mubr.f32.gmra.mrb[80].mxu1 %v280_v3 }
  0xc9   : > { %658 = vmatprep.mubr.f32.mxu0 %v1958_v7  ;;  %1042 = vmatprep.mubr.f32.mxu1 %v1958_v7 }
  0xcc   : > { %659 = vmatmul.mubr.f32.gmra.mrb[82].mxu0 %v217_v4  ;;  %1043 = vmatmul.mubr.f32.gmra.mrb[82].mxu1 %v281_v5 }
  0xcd   : > { %664 = vmatprep.mubr.f32.mxu0 %v1958_v7  ;;  %1048 = vmatprep.mubr.f32.mxu1 %v1958_v7 }
  0xd0   : > { %665 = vmatmul.mubr.f32.gmra.mrb[84].mxu0 %v218_v6  ;;  %1049 = vmatmul.mubr.f32.gmra.mrb[84].mxu1 %v282_v8 }
  0xd1   : > { %670 = vmatprep.mubr.f32.mxu0 %v1958_v7  ;;  %1054 = vmatprep.mubr.f32.mxu1 %v1958_v7 }
  0xd4   : > { %671 = vmatmul.mubr.f32.gmra.mrb[86].mxu0 %v219_v9  ;;  %1055 = vmatmul.mubr.f32.gmra.mrb[86].mxu1 %v283_v10 }
  0xd5   : > { %676 = vmatprep.mubr.f32.mxu0 %v1958_v7  ;;  %1060 = vmatprep.mubr.f32.mxu1 %v1958_v7 }
  0xd8   : > { %677 = vmatmul.mubr.f32.gmra.mrb[88].mxu0 %v220_v11  ;;  %1061 = vmatmul.mubr.f32.gmra.mrb[88].mxu1 %v284_v12  ;;  %v232_v11 = vld [vmem:[%s2090_s5 + $0x1c0] sm:$0xff] }
  0xd9   : > { %682 = vmatprep.mubr.f32.mxu0 %v1958_v7  ;;  %1066 = vmatprep.mubr.f32.mxu1 %v1958_v7  ;;  %v296_v12 = vld [vmem:[%s2090_s5 + $0x3c0] sm:$0xff] }
  0xdc   : > { %683 = vmatmul.mubr.f32.gmra.mrb[90].mxu0 %v221_v13  ;;  %1067 = vmatmul.mubr.f32.gmra.mrb[90].mxu1 %v285_v14 }
  0xdd   : > { %688 = vmatprep.mubr.f32.mxu0 %v1958_v7  ;;  %1072 = vmatprep.mubr.f32.mxu1 %v1958_v7 }
  0xe0   : > { %689 = vmatmul.mubr.f32.gmra.mrb[92].mxu0 %v222_v15  ;;  %1073 = vmatmul.mubr.f32.gmra.mrb[92].mxu1 %v286_v16 }
  0xe1   : > { %694 = vmatprep.mubr.f32.mxu0 %v1958_v7  ;;  %1078 = vmatprep.mubr.f32.mxu1 %v1958_v7 }
  0xe4   : > { %695 = vmatmul.mubr.f32.gmra.mrb[94].mxu0 %v223_v17  ;;  %1079 = vmatmul.mubr.f32.gmra.mrb[94].mxu1 %v287_v18 }
  0xe5   : > { %700 = vmatprep.mubr.f32.mxu0 %v1958_v7  ;;  %1084 = vmatprep.mubr.f32.mxu1 %v1958_v7 }
  0xe8   : > { %701 = vmatmul.mubr.f32.gmra.mrb[96].mxu0 %v224_v19  ;;  %1085 = vmatmul.mubr.f32.gmra.mrb[96].mxu1 %v288_v20 }
  0xe9   : > { %706 = vmatprep.mubr.f32.mxu0 %v1958_v7  ;;  %1090 = vmatprep.mubr.f32.mxu1 %v1958_v7 }
  0xec   : > { %707 = vmatmul.mubr.f32.gmra.mrb[98].mxu0 %v225_v21  ;;  %1091 = vmatmul.mubr.f32.gmra.mrb[98].mxu1 %v289_v22 }
  0xed   : > { %712 = vmatprep.mubr.f32.mxu0 %v1958_v7  ;;  %1096 = vmatprep.mubr.f32.mxu1 %v1958_v7 }
  0xf0   : > { %713 = vmatmul.mubr.f32.gmra.mrb[100].mxu0 %v226_v24  ;;  %1097 = vmatmul.mubr.f32.gmra.mrb[100].mxu1 %v290_v25  ;;  %v233_v25 = vld [vmem:[%s2090_s5 + $0x1c8] sm:$0xff] }
  0xf1   : > { %718 = vmatprep.mubr.f32.mxu0 %v1958_v7  ;;  %1102 = vmatprep.mubr.f32.mxu1 %v1958_v7 }
  0xf4   : > { %719 = vmatmul.mubr.f32.gmra.mrb[102].mxu0 %v227_v27  ;;  %1103 = vmatmul.mubr.f32.gmra.mrb[102].mxu1 %v291_v28 }
  0xf5   : > { %724 = vmatprep.mubr.f32.mxu0 %v1958_v7  ;;  %1108 = vmatprep.mubr.f32.mxu1 %v1958_v7 }
  0xf8   : > { %725 = vmatmul.mubr.f32.gmra.mrb[104].mxu0 %v228_v30  ;;  %1109 = vmatmul.mubr.f32.gmra.mrb[104].mxu1 %v292_v31 }
  0xf9   : > { %730 = vmatprep.mubr.f32.mxu0 %v1958_v7  ;;  %1114 = vmatprep.mubr.f32.mxu1 %v1958_v7 }
  0xfb   : > { %v414_v38 = vpop.f32.mrb[0].mxu0  ;;  %v798_v39 = vpop.f32.mrb[0].mxu1 }
  0xfc   : > { %v415_v40 = vadd.f32 %v414_v38, %v2307_v34  ;;  %v799_v41 = vadd.f32 %v798_v39, %v2307_v34  ;;  %v416_v42 = vpop.f32.mrb[1].mxu0  ;;  %731 = vmatmul.mubr.f32.gmra.mrb[106].mxu0 %v229_v36  ;;  %v800_v43 = vpop.f32.mrb[1].mxu1  ;;  %1115 = vmatmul.mubr.f32.gmra.mrb[106].mxu1 %v293_v37 }
  0xfd   : > { %v417_v44 = vadd.f32 %v416_v42, %v2311_v35  ;;  %v801_v45 = vadd.f32 %v800_v43, %v2311_v35  ;;  %736 = vmatprep.mubr.f32.mxu0 %v1958_v7  ;;  %1120 = vmatprep.mubr.f32.mxu1 %v1958_v7  ;;  %v298_v42 = vld [vmem:[%s2090_s5 + $0x3d0] sm:$0xff] }
  0xfe   : > { %v1181_v48 = vmax.f32 %v415_v40, 0.0  ;;  %v1309_v49 = vmax.f32 %v799_v41, 0.0  ;;  %v234_v41 = vld [vmem:[%s2090_s5 + $0x1d0] sm:$0xff] }
  0xff   : > { %v1182_v50 = vmax.f32 %v417_v44, 0.0  ;;  %v1310_v51 = vmax.f32 %v801_v45, 0.0  ;;  %v420_v52 = vpop.f32.mrb[2].mxu0  ;;  %v804_v53 = vpop.f32.mrb[2].mxu1 }
 0x100   : > { %1437 = vst [vmem:[%s2320_s11] sm:$0xff] %v1181_v48  ;;  %1501 = vst [vmem:[%s2320_s11 + $0x400] sm:$0xff] %v1309_v49  ;;  %v421_v54 = vadd.f32 %v420_v52, %v2307_v34  ;;  %v805_v55 = vadd.f32 %v804_v53, %v2307_v34  ;;  %v422_v56 = vpop.f32.mrb[3].mxu0  ;;  %737 = vmatmul.mubr.f32.gmra.mrb[108].mxu0 %v230_v46  ;;  %v806_v57 = vpop.f32.mrb[3].mxu1  ;;  %1121 = vmatmul.mubr.f32.gmra.mrb[108].mxu1 %v294_v47 }
 0x101   : > { %1762 = vst [vmem:[%s2320_s11 + $0x20] sm:$0xff] %v1182_v50  ;;  %1826 = vst [vmem:[%s2320_s11 + $0x420] sm:$0xff] %v1310_v51  ;;  %v423_v58 = vadd.f32 %v422_v56, %v2311_v35  ;;  %v807_v59 = vadd.f32 %v806_v57, %v2311_v35  ;;  %742 = vmatprep.mubr.f32.mxu0 %v1958_v7  ;;  %1126 = vmatprep.mubr.f32.mxu1 %v1958_v7  ;;  %v299_v56 = vld [vmem:[%s2090_s5 + $0x3d8] sm:$0xff] }
 0x102   : > { %v1183_v62 = vmax.f32 %v421_v54, 0.0  ;;  %v1311_v63 = vmax.f32 %v805_v55, 0.0  ;;  %v235_v55 = vld [vmem:[%s2090_s5 + $0x1d8] sm:$0xff] }
 0x103   : > { %v1184_v0 = vmax.f32 %v423_v58, 0.0  ;;  %v1312_v1 = vmax.f32 %v807_v59, 0.0  ;;  %v426_v2 = vpop.f32.mrb[4].mxu0  ;;  %v810_v3 = vpop.f32.mrb[4].mxu1 }
 0x104   : > { %1438 = vst [vmem:[%s2320_s11 + $0x8] sm:$0xff] %v1183_v62  ;;  %1502 = vst [vmem:[%s2320_s11 + $0x408] sm:$0xff] %v1311_v63  ;;  %v427_v4 = vadd.f32 %v426_v2, %v2307_v34  ;;  %v811_v5 = vadd.f32 %v810_v3, %v2307_v34  ;;  %v428_v6 = vpop.f32.mrb[5].mxu0  ;;  %743 = vmatmul.mubr.f32.gmra.mrb[110].mxu0 %v231_v60  ;;  %v812_v8 = vpop.f32.mrb[5].mxu1  ;;  %1127 = vmatmul.mubr.f32.gmra.mrb[110].mxu1 %v295_v61 }
 0x105   : > { %1763 = vst [vmem:[%s2320_s11 + $0x28] sm:$0xff] %v1184_v0  ;;  %1827 = vst [vmem:[%s2320_s11 + $0x428] sm:$0xff] %v1312_v1  ;;  %v429_v9 = vadd.f32 %v428_v6, %v2311_v35  ;;  %v813_v10 = vadd.f32 %v812_v8, %v2311_v35  ;;  %748 = vmatprep.mubr.f32.mxu0 %v1958_v7  ;;  %1132 = vmatprep.mubr.f32.mxu1 %v1958_v7  ;;  %v300_v6 = vld [vmem:[%s2090_s5 + $0x3e0] sm:$0xff] }
 0x106   : > { %v1185_v13 = vmax.f32 %v427_v4, 0.0  ;;  %v1313_v14 = vmax.f32 %v811_v5, 0.0  ;;  %v236_v5 = vld [vmem:[%s2090_s5 + $0x1e0] sm:$0xff] }
 0x107   : > { %v1186_v15 = vmax.f32 %v429_v9, 0.0  ;;  %v1314_v16 = vmax.f32 %v813_v10, 0.0  ;;  %v432_v17 = vpop.f32.mrb[6].mxu0  ;;  %v816_v18 = vpop.f32.mrb[6].mxu1 }
 0x108   : > { %1439 = vst [vmem:[%s2320_s11 + $0x10] sm:$0xff] %v1185_v13  ;;  %1503 = vst [vmem:[%s2320_s11 + $0x410] sm:$0xff] %v1313_v14  ;;  %v433_v19 = vadd.f32 %v432_v17, %v2307_v34  ;;  %v817_v20 = vadd.f32 %v816_v18, %v2307_v34  ;;  %v434_v21 = vpop.f32.mrb[7].mxu0  ;;  %749 = vmatmul.mubr.f32.gmra.mrb[112].mxu0 %v232_v11  ;;  %v818_v22 = vpop.f32.mrb[7].mxu1  ;;  %1133 = vmatmul.mubr.f32.gmra.mrb[112].mxu1 %v296_v12 }
 0x109   : > { %1764 = vst [vmem:[%s2320_s11 + $0x30] sm:$0xff] %v1186_v15  ;;  %1828 = vst [vmem:[%s2320_s11 + $0x430] sm:$0xff] %v1314_v16  ;;  %v435_v23 = vadd.f32 %v434_v21, %v2311_v35  ;;  %v819_v24 = vadd.f32 %v818_v22, %v2311_v35  ;;  %754 = vmatprep.mubr.f32.mxu0 %v1958_v7  ;;  %1138 = vmatprep.mubr.f32.mxu1 %v1958_v7  ;;  %v301_v21 = vld [vmem:[%s2090_s5 + $0x3e8] sm:$0xff] }
 0x10a   : > { %v1187_v27 = vmax.f32 %v433_v19, 0.0  ;;  %v1315_v28 = vmax.f32 %v817_v20, 0.0  ;;  %v237_v20 = vld [vmem:[%s2090_s5 + $0x1e8] sm:$0xff] }
 0x10b   : > { %v1188_v29 = vmax.f32 %v435_v23, 0.0  ;;  %v1316_v30 = vmax.f32 %v819_v24, 0.0  ;;  %v438_v31 = vpop.f32.mrb[8].mxu0  ;;  %v822_v32 = vpop.f32.mrb[8].mxu1 }
 0x10c   : > { %1440 = vst [vmem:[%s2320_s11 + $0x18] sm:$0xff] %v1187_v27  ;;  %1504 = vst [vmem:[%s2320_s11 + $0x418] sm:$0xff] %v1315_v28  ;;  %v439_v33 = vadd.f32 %v438_v31, %v2307_v34  ;;  %v823_v36 = vadd.f32 %v822_v32, %v2307_v34  ;;  %v440_v37 = vpop.f32.mrb[9].mxu0  ;;  %755 = vmatmul.mubr.f32.gmra.mrb[114].mxu0 %v233_v25  ;;  %v824_v38 = vpop.f32.mrb[9].mxu1  ;;  %1139 = vmatmul.mubr.f32.gmra.mrb[114].mxu1 %v297_v26 }
 0x10d   : > { %1765 = vst [vmem:[%s2320_s11 + $0x38] sm:$0xff] %v1188_v29  ;;  %1829 = vst [vmem:[%s2320_s11 + $0x438] sm:$0xff] %v1316_v30  ;;  %v441_v39 = vadd.f32 %v440_v37, %v2311_v35  ;;  %v825_v40 = vadd.f32 %v824_v38, %v2311_v35  ;;  %760 = vmatprep.mubr.f32.mxu0 %v1958_v7  ;;  %1144 = vmatprep.mubr.f32.mxu1 %v1958_v7  ;;  %v302_v37 = vld [vmem:[%s2090_s5 + $0x3f0] sm:$0xff] }
 0x10e   : > { %v1189_v43 = vmax.f32 %v439_v33, 0.0  ;;  %v1317_v44 = vmax.f32 %v823_v36, 0.0  ;;  %v238_v36 = vld [vmem:[%s2090_s5 + $0x1f0] sm:$0xff] }
 0x10f   : > { %v1190_v45 = vmax.f32 %v441_v39, 0.0  ;;  %v1318_v46 = vmax.f32 %v825_v40, 0.0  ;;  %v444_v47 = vpop.f32.mrb[10].mxu0  ;;  %v828_v48 = vpop.f32.mrb[10].mxu1 }
 0x110   : > { %1441 = vst [vmem:[%s2320_s11 + $0x40] sm:$0xff] %v1189_v43  ;;  %1505 = vst [vmem:[%s2320_s11 + $0x440] sm:$0xff] %v1317_v44  ;;  %v445_v49 = vadd.f32 %v444_v47, %v2307_v34  ;;  %v829_v50 = vadd.f32 %v828_v48, %v2307_v34  ;;  %v446_v51 = vpop.f32.mrb[11].mxu0  ;;  %761 = vmatmul.mubr.f32.gmra.mrb[116].mxu0 %v234_v41  ;;  %v830_v52 = vpop.f32.mrb[11].mxu1  ;;  %1145 = vmatmul.mubr.f32.gmra.mrb[116].mxu1 %v298_v42 }
 0x111   : > { %1766 = vst [vmem:[%s2320_s11 + $0x60] sm:$0xff] %v1190_v45  ;;  %1830 = vst [vmem:[%s2320_s11 + $0x460] sm:$0xff] %v1318_v46  ;;  %v447_v53 = vadd.f32 %v446_v51, %v2311_v35  ;;  %v831_v54 = vadd.f32 %v830_v52, %v2311_v35  ;;  %766 = vmatprep.mubr.f32.mxu0 %v1958_v7  ;;  %1150 = vmatprep.mubr.f32.mxu1 %v1958_v7  ;;  %v303_v51 = vld [vmem:[%s2090_s5 + $0x3f8] sm:$0xff] }
 0x112   : > { %v1191_v57 = vmax.f32 %v445_v49, 0.0  ;;  %v1319_v58 = vmax.f32 %v829_v50, 0.0  ;;  %v239_v50 = vld [vmem:[%s2090_s5 + $0x1f8] sm:$0xff] }
 0x113   : > { %v1192_v59 = vmax.f32 %v447_v53, 0.0  ;;  %v1320_v60 = vmax.f32 %v831_v54, 0.0  ;;  %v450_v61 = vpop.f32.mrb[12].mxu0  ;;  %v834_v62 = vpop.f32.mrb[12].mxu1 }
 0x114   : > { %1442 = vst [vmem:[%s2320_s11 + $0x48] sm:$0xff] %v1191_v57  ;;  %1506 = vst [vmem:[%s2320_s11 + $0x448] sm:$0xff] %v1319_v58  ;;  %v451_v63 = vadd.f32 %v450_v61, %v2307_v34  ;;  %v835_v0 = vadd.f32 %v834_v62, %v2307_v34  ;;  %v452_v1 = vpop.f32.mrb[13].mxu0  ;;  %767 = vmatmul.mubr.f32.gmra.mrb[118].mxu0 %v235_v55  ;;  %v836_v2 = vpop.f32.mrb[13].mxu1  ;;  %1151 = vmatmul.mubr.f32.gmra.mrb[118].mxu1 %v299_v56 }
 0x115   : > { %1767 = vst [vmem:[%s2320_s11 + $0x68] sm:$0xff] %v1192_v59  ;;  %1831 = vst [vmem:[%s2320_s11 + $0x468] sm:$0xff] %v1320_v60  ;;  %v453_v3 = vadd.f32 %v452_v1, %v2311_v35  ;;  %v837_v4 = vadd.f32 %v836_v2, %v2311_v35  ;;  %772 = vmatprep.mubr.f32.mxu0 %v1958_v7  ;;  %1156 = vmatprep.mubr.f32.mxu1 %v1958_v7 }
 0x116   : > { %v1193_v8 = vmax.f32 %v451_v63, 0.0  ;;  %v1321_v9 = vmax.f32 %v835_v0, 0.0 }
 0x117   : > { %v1194_v10 = vmax.f32 %v453_v3, 0.0  ;;  %v1322_v11 = vmax.f32 %v837_v4, 0.0  ;;  %v456_v12 = vpop.f32.mrb[14].mxu0  ;;  %v840_v13 = vpop.f32.mrb[14].mxu1 }
 0x118   : > { %1443 = vst [vmem:[%s2320_s11 + $0x50] sm:$0xff] %v1193_v8  ;;  %1507 = vst [vmem:[%s2320_s11 + $0x450] sm:$0xff] %v1321_v9  ;;  %v457_v14 = vadd.f32 %v456_v12, %v2307_v34  ;;  %v841_v15 = vadd.f32 %v840_v13, %v2307_v34  ;;  %v458_v16 = vpop.f32.mrb[15].mxu0  ;;  %773 = vmatmul.mubr.f32.gmra.mrb[120].mxu0 %v236_v5  ;;  %v842_v17 = vpop.f32.mrb[15].mxu1  ;;  %1157 = vmatmul.mubr.f32.gmra.mrb[120].mxu1 %v300_v6 }
 0x119   : > { %1768 = vst [vmem:[%s2320_s11 + $0x70] sm:$0xff] %v1194_v10  ;;  %1832 = vst [vmem:[%s2320_s11 + $0x470] sm:$0xff] %v1322_v11  ;;  %v459_v18 = vadd.f32 %v458_v16, %v2311_v35  ;;  %v843_v19 = vadd.f32 %v842_v17, %v2311_v35  ;;  %778 = vmatprep.mubr.f32.mxu0 %v1958_v7  ;;  %1162 = vmatprep.mubr.f32.mxu1 %v1958_v7 }
 0x11a   : > { %v1195_v22 = vmax.f32 %v457_v14, 0.0  ;;  %v1323_v23 = vmax.f32 %v841_v15, 0.0 }
 0x11b   : > { %v1196_v24 = vmax.f32 %v459_v18, 0.0  ;;  %v1324_v25 = vmax.f32 %v843_v19, 0.0  ;;  %v462_v26 = vpop.f32.mrb[16].mxu0  ;;  %v846_v27 = vpop.f32.mrb[16].mxu1 }
 0x11c   : > { %1444 = vst [vmem:[%s2320_s11 + $0x58] sm:$0xff] %v1195_v22  ;;  %1508 = vst [vmem:[%s2320_s11 + $0x458] sm:$0xff] %v1323_v23  ;;  %v463_v28 = vadd.f32 %v462_v26, %v2307_v34  ;;  %v847_v29 = vadd.f32 %v846_v27, %v2307_v34  ;;  %v464_v30 = vpop.f32.mrb[17].mxu0  ;;  %779 = vmatmul.mubr.f32.gmra.mrb[122].mxu0 %v237_v20  ;;  %v848_v31 = vpop.f32.mrb[17].mxu1  ;;  %1163 = vmatmul.mubr.f32.gmra.mrb[122].mxu1 %v301_v21 }
 0x11d   : > { %1769 = vst [vmem:[%s2320_s11 + $0x78] sm:$0xff] %v1196_v24  ;;  %1833 = vst [vmem:[%s2320_s11 + $0x478] sm:$0xff] %v1324_v25  ;;  %v465_v32 = vadd.f32 %v464_v30, %v2311_v35  ;;  %v849_v33 = vadd.f32 %v848_v31, %v2311_v35  ;;  %784 = vmatprep.mubr.f32.mxu0 %v1958_v7  ;;  %1168 = vmatprep.mubr.f32.mxu1 %v1958_v7 }
 0x11e   : > { %v1197_v38 = vmax.f32 %v463_v28, 0.0  ;;  %v1325_v39 = vmax.f32 %v847_v29, 0.0 }
 0x11f   : > { %v1198_v40 = vmax.f32 %v465_v32, 0.0  ;;  %v1326_v41 = vmax.f32 %v849_v33, 0.0  ;;  %v468_v42 = vpop.f32.mrb[18].mxu0  ;;  %v852_v43 = vpop.f32.mrb[18].mxu1 }
 0x120   : > { %1445 = vst [vmem:[%s2320_s11 + $0x80] sm:$0xff] %v1197_v38  ;;  %1509 = vst [vmem:[%s2320_s11 + $0x480] sm:$0xff] %v1325_v39  ;;  %v469_v44 = vadd.f32 %v468_v42, %v2307_v34  ;;  %v853_v45 = vadd.f32 %v852_v43, %v2307_v34  ;;  %v470_v46 = vpop.f32.mrb[19].mxu0  ;;  %785 = vmatmul.mubr.f32.gmra.mrb[124].mxu0 %v238_v36  ;;  %v854_v47 = vpop.f32.mrb[19].mxu1  ;;  %1169 = vmatmul.mubr.f32.gmra.mrb[124].mxu1 %v302_v37 }
 0x121   : > { %1770 = vst [vmem:[%s2320_s11 + $0xa0] sm:$0xff] %v1198_v40  ;;  %1834 = vst [vmem:[%s2320_s11 + $0x4a0] sm:$0xff] %v1326_v41  ;;  %v471_v48 = vadd.f32 %v470_v46, %v2311_v35  ;;  %v855_v49 = vadd.f32 %v854_v47, %v2311_v35  ;;  %790 = vmatprep.mubr.f32.mxu0 %v1958_v7  ;;  %1174 = vmatprep.mubr.f32.mxu1 %v1958_v7 }
 0x122   : > { %v1199_v52 = vmax.f32 %v469_v44, 0.0  ;;  %v1327_v53 = vmax.f32 %v853_v45, 0.0 }
 0x123   : > { %v1200_v54 = vmax.f32 %v471_v48, 0.0  ;;  %v1328_v55 = vmax.f32 %v855_v49, 0.0  ;;  %v474_v56 = vpop.f32.mrb[20].mxu0  ;;  %v858_v57 = vpop.f32.mrb[20].mxu1 }
 0x124   : > { %1446 = vst [vmem:[%s2320_s11 + $0x88] sm:$0xff] %v1199_v52  ;;  %1510 = vst [vmem:[%s2320_s11 + $0x488] sm:$0xff] %v1327_v53  ;;  %v475_v58 = vadd.f32 %v474_v56, %v2307_v34  ;;  %v859_v59 = vadd.f32 %v858_v57, %v2307_v34  ;;  %v476_v60 = vpop.f32.mrb[21].mxu0  ;;  %791 = vmatmul.mubr.f32.gmra.mrb[126].mxu0 %v239_v50  ;;  %v860_v7 = vpop.f32.mrb[21].mxu1  ;;  %1175 = vmatmul.mubr.f32.gmra.mrb[126].mxu1 %v303_v51 }
 0x125   : > { %1771 = vst [vmem:[%s2320_s11 + $0xa8] sm:$0xff] %v1200_v54  ;;  %1835 = vst [vmem:[%s2320_s11 + $0x4a8] sm:$0xff] %v1328_v55  ;;  %v477_v61 = vadd.f32 %v476_v60, %v2311_v35  ;;  %v861_v62 = vadd.f32 %v860_v7, %v2311_v35 }
 0x126   : > { %v1201_v63 = vmax.f32 %v475_v58, 0.0  ;;  %v1329_v0 = vmax.f32 %v859_v59, 0.0 }
 0x127   : > { %v1202_v1 = vmax.f32 %v477_v61, 0.0  ;;  %v1330_v2 = vmax.f32 %v861_v62, 0.0  ;;  %v480_v3 = vpop.f32.mrb[22].mxu0  ;;  %v864_v4 = vpop.f32.mrb[22].mxu1 }
 0x128   : > { %1447 = vst [vmem:[%s2320_s11 + $0x90] sm:$0xff] %v1201_v63  ;;  %1511 = vst [vmem:[%s2320_s11 + $0x490] sm:$0xff] %v1329_v0  ;;  %v481_v5 = vadd.f32 %v480_v3, %v2307_v34  ;;  %v865_v6 = vadd.f32 %v864_v4, %v2307_v34  ;;  %v482_v8 = vpop.f32.mrb[23].mxu0  ;;  %v866_v9 = vpop.f32.mrb[23].mxu1 }
 0x129   : > { %1772 = vst [vmem:[%s2320_s11 + $0xb0] sm:$0xff] %v1202_v1  ;;  %1836 = vst [vmem:[%s2320_s11 + $0x4b0] sm:$0xff] %v1330_v2  ;;  %v483_v10 = vadd.f32 %v482_v8, %v2311_v35  ;;  %v867_v11 = vadd.f32 %v866_v9, %v2311_v35 }
 0x12a   : > { %v1203_v12 = vmax.f32 %v481_v5, 0.0  ;;  %v1331_v13 = vmax.f32 %v865_v6, 0.0 }
 0x12b   : > { %v1204_v14 = vmax.f32 %v483_v10, 0.0  ;;  %v1332_v15 = vmax.f32 %v867_v11, 0.0  ;;  %v486_v16 = vpop.f32.mrb[24].mxu0  ;;  %v870_v17 = vpop.f32.mrb[24].mxu1 }
 0x12c   : > { %1448 = vst [vmem:[%s2320_s11 + $0x98] sm:$0xff] %v1203_v12  ;;  %1512 = vst [vmem:[%s2320_s11 + $0x498] sm:$0xff] %v1331_v13  ;;  %v487_v18 = vadd.f32 %v486_v16, %v2307_v34  ;;  %v871_v19 = vadd.f32 %v870_v17, %v2307_v34  ;;  %v488_v20 = vpop.f32.mrb[25].mxu0  ;;  %v872_v21 = vpop.f32.mrb[25].mxu1 }
 0x12d   : > { %1773 = vst [vmem:[%s2320_s11 + $0xb8] sm:$0xff] %v1204_v14  ;;  %1837 = vst [vmem:[%s2320_s11 + $0x4b8] sm:$0xff] %v1332_v15  ;;  %v489_v22 = vadd.f32 %v488_v20, %v2311_v35  ;;  %v873_v23 = vadd.f32 %v872_v21, %v2311_v35 }
 0x12e   : > { %v1205_v24 = vmax.f32 %v487_v18, 0.0  ;;  %v1333_v25 = vmax.f32 %v871_v19, 0.0 }
 0x12f   : > { %v1206_v26 = vmax.f32 %v489_v22, 0.0  ;;  %v1334_v27 = vmax.f32 %v873_v23, 0.0  ;;  %v492_v28 = vpop.f32.mrb[26].mxu0  ;;  %v876_v29 = vpop.f32.mrb[26].mxu1 }
 0x130   : > { %1449 = vst [vmem:[%s2320_s11 + $0xc0] sm:$0xff] %v1205_v24  ;;  %1513 = vst [vmem:[%s2320_s11 + $0x4c0] sm:$0xff] %v1333_v25  ;;  %v493_v30 = vadd.f32 %v492_v28, %v2307_v34  ;;  %v877_v31 = vadd.f32 %v876_v29, %v2307_v34  ;;  %v494_v32 = vpop.f32.mrb[27].mxu0  ;;  %v878_v33 = vpop.f32.mrb[27].mxu1 }
 0x131   : > { %1774 = vst [vmem:[%s2320_s11 + $0xe0] sm:$0xff] %v1206_v26  ;;  %1838 = vst [vmem:[%s2320_s11 + $0x4e0] sm:$0xff] %v1334_v27  ;;  %v495_v36 = vadd.f32 %v494_v32, %v2311_v35  ;;  %v879_v37 = vadd.f32 %v878_v33, %v2311_v35 }
 0x132   : > { %v1207_v38 = vmax.f32 %v493_v30, 0.0  ;;  %v1335_v39 = vmax.f32 %v877_v31, 0.0 }
 0x133   : > { %v1208_v40 = vmax.f32 %v495_v36, 0.0  ;;  %v1336_v41 = vmax.f32 %v879_v37, 0.0  ;;  %v498_v42 = vpop.f32.mrb[28].mxu0  ;;  %v882_v43 = vpop.f32.mrb[28].mxu1 }
 0x134   : > { %1450 = vst [vmem:[%s2320_s11 + $0xc8] sm:$0xff] %v1207_v38  ;;  %1514 = vst [vmem:[%s2320_s11 + $0x4c8] sm:$0xff] %v1335_v39  ;;  %v499_v44 = vadd.f32 %v498_v42, %v2307_v34  ;;  %v883_v45 = vadd.f32 %v882_v43, %v2307_v34  ;;  %v500_v46 = vpop.f32.mrb[29].mxu0  ;;  %v884_v47 = vpop.f32.mrb[29].mxu1 }
 0x135   : > { %1775 = vst [vmem:[%s2320_s11 + $0xe8] sm:$0xff] %v1208_v40  ;;  %1839 = vst [vmem:[%s2320_s11 + $0x4e8] sm:$0xff] %v1336_v41  ;;  %v501_v48 = vadd.f32 %v500_v46, %v2311_v35  ;;  %v885_v49 = vadd.f32 %v884_v47, %v2311_v35 }
 0x136   : > { %v1209_v50 = vmax.f32 %v499_v44, 0.0  ;;  %v1337_v51 = vmax.f32 %v883_v45, 0.0 }
 0x137   : > { %v1210_v52 = vmax.f32 %v501_v48, 0.0  ;;  %v1338_v53 = vmax.f32 %v885_v49, 0.0  ;;  %v504_v54 = vpop.f32.mrb[30].mxu0  ;;  %v888_v55 = vpop.f32.mrb[30].mxu1 }
 0x138   : > { %1451 = vst [vmem:[%s2320_s11 + $0xd0] sm:$0xff] %v1209_v50  ;;  %1515 = vst [vmem:[%s2320_s11 + $0x4d0] sm:$0xff] %v1337_v51  ;;  %v505_v56 = vadd.f32 %v504_v54, %v2307_v34  ;;  %v889_v57 = vadd.f32 %v888_v55, %v2307_v34  ;;  %v506_v58 = vpop.f32.mrb[31].mxu0  ;;  %v890_v59 = vpop.f32.mrb[31].mxu1 }
 0x139   : > { %1776 = vst [vmem:[%s2320_s11 + $0xf0] sm:$0xff] %v1210_v52  ;;  %1840 = vst [vmem:[%s2320_s11 + $0x4f0] sm:$0xff] %v1338_v53  ;;  %v507_v60 = vadd.f32 %v506_v58, %v2311_v35  ;;  %v891_v7 = vadd.f32 %v890_v59, %v2311_v35 }
 0x13a   : > { %v1211_v61 = vmax.f32 %v505_v56, 0.0  ;;  %v1339_v62 = vmax.f32 %v889_v57, 0.0 }
 0x13b   : > { %v1212_v63 = vmax.f32 %v507_v60, 0.0  ;;  %v1340_v0 = vmax.f32 %v891_v7, 0.0  ;;  %v510_v1 = vpop.f32.mrb[32].mxu0  ;;  %v894_v2 = vpop.f32.mrb[32].mxu1 }
 0x13c   : > { %1452 = vst [vmem:[%s2320_s11 + $0xd8] sm:$0xff] %v1211_v61  ;;  %1516 = vst [vmem:[%s2320_s11 + $0x4d8] sm:$0xff] %v1339_v62  ;;  %v511_v3 = vadd.f32 %v510_v1, %v2307_v34  ;;  %v895_v4 = vadd.f32 %v894_v2, %v2307_v34  ;;  %v512_v5 = vpop.f32.mrb[33].mxu0  ;;  %v896_v6 = vpop.f32.mrb[33].mxu1 }
 0x13d   : > { %1777 = vst [vmem:[%s2320_s11 + $0xf8] sm:$0xff] %v1212_v63  ;;  %1841 = vst [vmem:[%s2320_s11 + $0x4f8] sm:$0xff] %v1340_v0  ;;  %v513_v8 = vadd.f32 %v512_v5, %v2311_v35  ;;  %v897_v9 = vadd.f32 %v896_v6, %v2311_v35 }
 0x13e   : > { %v1213_v10 = vmax.f32 %v511_v3, 0.0  ;;  %v1341_v11 = vmax.f32 %v895_v4, 0.0 }
 0x13f   : > { %v1214_v12 = vmax.f32 %v513_v8, 0.0  ;;  %v1342_v13 = vmax.f32 %v897_v9, 0.0  ;;  %v516_v14 = vpop.f32.mrb[34].mxu0  ;;  %v900_v15 = vpop.f32.mrb[34].mxu1 }
 0x140   : > { %1453 = vst [vmem:[%s2320_s11 + $0x100] sm:$0xff] %v1213_v10  ;;  %1517 = vst [vmem:[%s2320_s11 + $0x500] sm:$0xff] %v1341_v11  ;;  %v517_v16 = vadd.f32 %v516_v14, %v2307_v34  ;;  %v901_v17 = vadd.f32 %v900_v15, %v2307_v34  ;;  %v518_v18 = vpop.f32.mrb[35].mxu0  ;;  %v902_v19 = vpop.f32.mrb[35].mxu1 }
 0x141   : > { %1778 = vst [vmem:[%s2320_s11 + $0x120] sm:$0xff] %v1214_v12  ;;  %1842 = vst [vmem:[%s2320_s11 + $0x520] sm:$0xff] %v1342_v13  ;;  %v519_v20 = vadd.f32 %v518_v18, %v2311_v35  ;;  %v903_v21 = vadd.f32 %v902_v19, %v2311_v35 }
 0x142   : > { %v1215_v22 = vmax.f32 %v517_v16, 0.0  ;;  %v1343_v23 = vmax.f32 %v901_v17, 0.0 }
 0x143   : > { %v1216_v24 = vmax.f32 %v519_v20, 0.0  ;;  %v1344_v25 = vmax.f32 %v903_v21, 0.0  ;;  %v522_v26 = vpop.f32.mrb[36].mxu0  ;;  %v906_v27 = vpop.f32.mrb[36].mxu1 }
 0x144   : > { %1454 = vst [vmem:[%s2320_s11 + $0x108] sm:$0xff] %v1215_v22  ;;  %1518 = vst [vmem:[%s2320_s11 + $0x508] sm:$0xff] %v1343_v23  ;;  %v523_v28 = vadd.f32 %v522_v26, %v2307_v34  ;;  %v907_v29 = vadd.f32 %v906_v27, %v2307_v34  ;;  %v524_v30 = vpop.f32.mrb[37].mxu0  ;;  %v908_v31 = vpop.f32.mrb[37].mxu1 }
 0x145   : > { %1779 = vst [vmem:[%s2320_s11 + $0x128] sm:$0xff] %v1216_v24  ;;  %1843 = vst [vmem:[%s2320_s11 + $0x528] sm:$0xff] %v1344_v25  ;;  %v525_v32 = vadd.f32 %v524_v30, %v2311_v35  ;;  %v909_v33 = vadd.f32 %v908_v31, %v2311_v35 }
 0x146   : > { %v1217_v36 = vmax.f32 %v523_v28, 0.0  ;;  %v1345_v37 = vmax.f32 %v907_v29, 0.0 }
 0x147   : > { %v1218_v38 = vmax.f32 %v525_v32, 0.0  ;;  %v1346_v39 = vmax.f32 %v909_v33, 0.0  ;;  %v528_v40 = vpop.f32.mrb[38].mxu0  ;;  %v912_v41 = vpop.f32.mrb[38].mxu1 }
 0x148   : > { %1455 = vst [vmem:[%s2320_s11 + $0x110] sm:$0xff] %v1217_v36  ;;  %1519 = vst [vmem:[%s2320_s11 + $0x510] sm:$0xff] %v1345_v37  ;;  %v529_v42 = vadd.f32 %v528_v40, %v2307_v34  ;;  %v913_v43 = vadd.f32 %v912_v41, %v2307_v34  ;;  %v530_v44 = vpop.f32.mrb[39].mxu0  ;;  %v914_v45 = vpop.f32.mrb[39].mxu1 }
 0x149   : > { %1780 = vst [vmem:[%s2320_s11 + $0x130] sm:$0xff] %v1218_v38  ;;  %1844 = vst [vmem:[%s2320_s11 + $0x530] sm:$0xff] %v1346_v39  ;;  %v531_v46 = vadd.f32 %v530_v44, %v2311_v35  ;;  %v915_v47 = vadd.f32 %v914_v45, %v2311_v35 }
 0x14a   : > { %v1219_v48 = vmax.f32 %v529_v42, 0.0  ;;  %v1347_v49 = vmax.f32 %v913_v43, 0.0 }
 0x14b   : > { %v1220_v50 = vmax.f32 %v531_v46, 0.0  ;;  %v1348_v51 = vmax.f32 %v915_v47, 0.0  ;;  %v534_v52 = vpop.f32.mrb[40].mxu0  ;;  %v918_v53 = vpop.f32.mrb[40].mxu1 }
 0x14c   : > { %1456 = vst [vmem:[%s2320_s11 + $0x118] sm:$0xff] %v1219_v48  ;;  %1520 = vst [vmem:[%s2320_s11 + $0x518] sm:$0xff] %v1347_v49  ;;  %v535_v54 = vadd.f32 %v534_v52, %v2307_v34  ;;  %v919_v55 = vadd.f32 %v918_v53, %v2307_v34  ;;  %v536_v56 = vpop.f32.mrb[41].mxu0  ;;  %v920_v57 = vpop.f32.mrb[41].mxu1 }
 0x14d   : > { %1781 = vst [vmem:[%s2320_s11 + $0x138] sm:$0xff] %v1220_v50  ;;  %1845 = vst [vmem:[%s2320_s11 + $0x538] sm:$0xff] %v1348_v51  ;;  %v537_v58 = vadd.f32 %v536_v56, %v2311_v35  ;;  %v921_v59 = vadd.f32 %v920_v57, %v2311_v35 }
 0x14e   : > { %v1221_v60 = vmax.f32 %v535_v54, 0.0  ;;  %v1349_v7 = vmax.f32 %v919_v55, 0.0 }
 0x14f   : > { %v1222_v61 = vmax.f32 %v537_v58, 0.0  ;;  %v1350_v62 = vmax.f32 %v921_v59, 0.0  ;;  %v540_v63 = vpop.f32.mrb[42].mxu0  ;;  %v924_v0 = vpop.f32.mrb[42].mxu1 }
 0x150   : > { %1457 = vst [vmem:[%s2320_s11 + $0x140] sm:$0xff] %v1221_v60  ;;  %1521 = vst [vmem:[%s2320_s11 + $0x540] sm:$0xff] %v1349_v7  ;;  %v541_v1 = vadd.f32 %v540_v63, %v2307_v34  ;;  %v925_v2 = vadd.f32 %v924_v0, %v2307_v34  ;;  %v542_v3 = vpop.f32.mrb[43].mxu0  ;;  %v926_v4 = vpop.f32.mrb[43].mxu1 }
 0x151   : > { %1782 = vst [vmem:[%s2320_s11 + $0x160] sm:$0xff] %v1222_v61  ;;  %1846 = vst [vmem:[%s2320_s11 + $0x560] sm:$0xff] %v1350_v62  ;;  %v543_v5 = vadd.f32 %v542_v3, %v2311_v35  ;;  %v927_v6 = vadd.f32 %v926_v4, %v2311_v35 }
 0x152   : > { %v1223_v8 = vmax.f32 %v541_v1, 0.0  ;;  %v1351_v9 = vmax.f32 %v925_v2, 0.0 }
 0x153   : > { %v1224_v10 = vmax.f32 %v543_v5, 0.0  ;;  %v1352_v11 = vmax.f32 %v927_v6, 0.0  ;;  %v546_v12 = vpop.f32.mrb[44].mxu0  ;;  %v930_v13 = vpop.f32.mrb[44].mxu1 }
 0x154   : > { %1458 = vst [vmem:[%s2320_s11 + $0x148] sm:$0xff] %v1223_v8  ;;  %1522 = vst [vmem:[%s2320_s11 + $0x548] sm:$0xff] %v1351_v9  ;;  %v547_v14 = vadd.f32 %v546_v12, %v2307_v34  ;;  %v931_v15 = vadd.f32 %v930_v13, %v2307_v34  ;;  %v548_v16 = vpop.f32.mrb[45].mxu0  ;;  %v932_v17 = vpop.f32.mrb[45].mxu1 }
 0x155   : > { %1783 = vst [vmem:[%s2320_s11 + $0x168] sm:$0xff] %v1224_v10  ;;  %1847 = vst [vmem:[%s2320_s11 + $0x568] sm:$0xff] %v1352_v11  ;;  %v549_v18 = vadd.f32 %v548_v16, %v2311_v35  ;;  %v933_v19 = vadd.f32 %v932_v17, %v2311_v35 }
 0x156   : > { %v1225_v20 = vmax.f32 %v547_v14, 0.0  ;;  %v1353_v21 = vmax.f32 %v931_v15, 0.0 }
 0x157   : > { %v1226_v22 = vmax.f32 %v549_v18, 0.0  ;;  %v1354_v23 = vmax.f32 %v933_v19, 0.0  ;;  %v552_v24 = vpop.f32.mrb[46].mxu0  ;;  %v936_v25 = vpop.f32.mrb[46].mxu1 }
 0x158   : > { %1459 = vst [vmem:[%s2320_s11 + $0x150] sm:$0xff] %v1225_v20  ;;  %1523 = vst [vmem:[%s2320_s11 + $0x550] sm:$0xff] %v1353_v21  ;;  %v553_v26 = vadd.f32 %v552_v24, %v2307_v34  ;;  %v937_v27 = vadd.f32 %v936_v25, %v2307_v34  ;;  %v554_v28 = vpop.f32.mrb[47].mxu0  ;;  %v938_v29 = vpop.f32.mrb[47].mxu1 }
 0x159   : > { %1784 = vst [vmem:[%s2320_s11 + $0x170] sm:$0xff] %v1226_v22  ;;  %1848 = vst [vmem:[%s2320_s11 + $0x570] sm:$0xff] %v1354_v23  ;;  %v555_v30 = vadd.f32 %v554_v28, %v2311_v35  ;;  %v939_v31 = vadd.f32 %v938_v29, %v2311_v35 }
 0x15a   : > { %v1227_v32 = vmax.f32 %v553_v26, 0.0  ;;  %v1355_v33 = vmax.f32 %v937_v27, 0.0 }
 0x15b   : > { %v1228_v36 = vmax.f32 %v555_v30, 0.0  ;;  %v1356_v37 = vmax.f32 %v939_v31, 0.0  ;;  %v558_v38 = vpop.f32.mrb[48].mxu0  ;;  %v942_v39 = vpop.f32.mrb[48].mxu1 }
 0x15c   : > { %1460 = vst [vmem:[%s2320_s11 + $0x158] sm:$0xff] %v1227_v32  ;;  %1524 = vst [vmem:[%s2320_s11 + $0x558] sm:$0xff] %v1355_v33  ;;  %v559_v40 = vadd.f32 %v558_v38, %v2307_v34  ;;  %v943_v41 = vadd.f32 %v942_v39, %v2307_v34  ;;  %v560_v42 = vpop.f32.mrb[49].mxu0  ;;  %v944_v43 = vpop.f32.mrb[49].mxu1 }
 0x15d   : > { %1785 = vst [vmem:[%s2320_s11 + $0x178] sm:$0xff] %v1228_v36  ;;  %1849 = vst [vmem:[%s2320_s11 + $0x578] sm:$0xff] %v1356_v37  ;;  %v561_v44 = vadd.f32 %v560_v42, %v2311_v35  ;;  %v945_v45 = vadd.f32 %v944_v43, %v2311_v35 }
 0x15e   : > { %v1229_v46 = vmax.f32 %v559_v40, 0.0  ;;  %v1357_v47 = vmax.f32 %v943_v41, 0.0 }
 0x15f   : > { %v1230_v48 = vmax.f32 %v561_v44, 0.0  ;;  %v1358_v49 = vmax.f32 %v945_v45, 0.0  ;;  %v564_v50 = vpop.f32.mrb[50].mxu0  ;;  %v948_v51 = vpop.f32.mrb[50].mxu1 }
 0x160   : > { %1461 = vst [vmem:[%s2320_s11 + $0x180] sm:$0xff] %v1229_v46  ;;  %1525 = vst [vmem:[%s2320_s11 + $0x580] sm:$0xff] %v1357_v47  ;;  %v565_v52 = vadd.f32 %v564_v50, %v2307_v34  ;;  %v949_v53 = vadd.f32 %v948_v51, %v2307_v34  ;;  %v566_v54 = vpop.f32.mrb[51].mxu0  ;;  %v950_v55 = vpop.f32.mrb[51].mxu1 }
 0x161   : > { %1786 = vst [vmem:[%s2320_s11 + $0x1a0] sm:$0xff] %v1230_v48  ;;  %1850 = vst [vmem:[%s2320_s11 + $0x5a0] sm:$0xff] %v1358_v49  ;;  %v567_v56 = vadd.f32 %v566_v54, %v2311_v35  ;;  %v951_v57 = vadd.f32 %v950_v55, %v2311_v35 }
 0x162   : > { %v1231_v58 = vmax.f32 %v565_v52, 0.0  ;;  %v1359_v59 = vmax.f32 %v949_v53, 0.0 }
 0x163   : > { %v1232_v60 = vmax.f32 %v567_v56, 0.0  ;;  %v1360_v7 = vmax.f32 %v951_v57, 0.0  ;;  %v570_v61 = vpop.f32.mrb[52].mxu0  ;;  %v954_v62 = vpop.f32.mrb[52].mxu1 }
 0x164   : > { %1462 = vst [vmem:[%s2320_s11 + $0x188] sm:$0xff] %v1231_v58  ;;  %1526 = vst [vmem:[%s2320_s11 + $0x588] sm:$0xff] %v1359_v59  ;;  %v571_v63 = vadd.f32 %v570_v61, %v2307_v34  ;;  %v955_v0 = vadd.f32 %v954_v62, %v2307_v34  ;;  %v572_v1 = vpop.f32.mrb[53].mxu0  ;;  %v956_v2 = vpop.f32.mrb[53].mxu1 }
 0x165   : > { %1787 = vst [vmem:[%s2320_s11 + $0x1a8] sm:$0xff] %v1232_v60  ;;  %1851 = vst [vmem:[%s2320_s11 + $0x5a8] sm:$0xff] %v1360_v7  ;;  %v573_v3 = vadd.f32 %v572_v1, %v2311_v35  ;;  %v957_v4 = vadd.f32 %v956_v2, %v2311_v35 }
 0x166   : > { %v1233_v5 = vmax.f32 %v571_v63, 0.0  ;;  %v1361_v6 = vmax.f32 %v955_v0, 0.0 }
 0x167   : > { %v1234_v8 = vmax.f32 %v573_v3, 0.0  ;;  %v1362_v9 = vmax.f32 %v957_v4, 0.0  ;;  %v576_v10 = vpop.f32.mrb[54].mxu0  ;;  %v960_v11 = vpop.f32.mrb[54].mxu1 }
 0x168   : > { %1463 = vst [vmem:[%s2320_s11 + $0x190] sm:$0xff] %v1233_v5  ;;  %1527 = vst [vmem:[%s2320_s11 + $0x590] sm:$0xff] %v1361_v6  ;;  %v577_v12 = vadd.f32 %v576_v10, %v2307_v34  ;;  %v961_v13 = vadd.f32 %v960_v11, %v2307_v34  ;;  %v578_v14 = vpop.f32.mrb[55].mxu0  ;;  %v962_v15 = vpop.f32.mrb[55].mxu1 }
 0x169   : > { %1788 = vst [vmem:[%s2320_s11 + $0x1b0] sm:$0xff] %v1234_v8  ;;  %1852 = vst [vmem:[%s2320_s11 + $0x5b0] sm:$0xff] %v1362_v9  ;;  %v579_v16 = vadd.f32 %v578_v14, %v2311_v35  ;;  %v963_v17 = vadd.f32 %v962_v15, %v2311_v35 }
 0x16a   : > { %v1235_v18 = vmax.f32 %v577_v12, 0.0  ;;  %v1363_v19 = vmax.f32 %v961_v13, 0.0 }
 0x16b   : > { %v1236_v20 = vmax.f32 %v579_v16, 0.0  ;;  %v1364_v21 = vmax.f32 %v963_v17, 0.0  ;;  %v582_v22 = vpop.f32.mrb[56].mxu0  ;;  %v966_v23 = vpop.f32.mrb[56].mxu1 }
 0x16c   : > { %1464 = vst [vmem:[%s2320_s11 + $0x198] sm:$0xff] %v1235_v18  ;;  %1528 = vst [vmem:[%s2320_s11 + $0x598] sm:$0xff] %v1363_v19  ;;  %v583_v24 = vadd.f32 %v582_v22, %v2307_v34  ;;  %v967_v25 = vadd.f32 %v966_v23, %v2307_v34  ;;  %v584_v26 = vpop.f32.mrb[57].mxu0  ;;  %v968_v27 = vpop.f32.mrb[57].mxu1 }
 0x16d   : > { %1789 = vst [vmem:[%s2320_s11 + $0x1b8] sm:$0xff] %v1236_v20  ;;  %1853 = vst [vmem:[%s2320_s11 + $0x5b8] sm:$0xff] %v1364_v21  ;;  %v585_v28 = vadd.f32 %v584_v26, %v2311_v35  ;;  %v969_v29 = vadd.f32 %v968_v27, %v2311_v35 }
 0x16e   : > { %v1237_v30 = vmax.f32 %v583_v24, 0.0  ;;  %v1365_v31 = vmax.f32 %v967_v25, 0.0 }
 0x16f   : > { %v1238_v32 = vmax.f32 %v585_v28, 0.0  ;;  %v1366_v33 = vmax.f32 %v969_v29, 0.0  ;;  %v588_v36 = vpop.f32.mrb[58].mxu0  ;;  %v972_v37 = vpop.f32.mrb[58].mxu1 }
 0x170   : > { %1465 = vst [vmem:[%s2320_s11 + $0x1c0] sm:$0xff] %v1237_v30  ;;  %1529 = vst [vmem:[%s2320_s11 + $0x5c0] sm:$0xff] %v1365_v31  ;;  %v589_v38 = vadd.f32 %v588_v36, %v2307_v34  ;;  %v973_v39 = vadd.f32 %v972_v37, %v2307_v34  ;;  %v590_v40 = vpop.f32.mrb[59].mxu0  ;;  %v974_v41 = vpop.f32.mrb[59].mxu1 }
 0x171   : > { %1790 = vst [vmem:[%s2320_s11 + $0x1e0] sm:$0xff] %v1238_v32  ;;  %1854 = vst [vmem:[%s2320_s11 + $0x5e0] sm:$0xff] %v1366_v33  ;;  %v591_v42 = vadd.f32 %v590_v40, %v2311_v35  ;;  %v975_v43 = vadd.f32 %v974_v41, %v2311_v35 }
 0x172   : > { %v1239_v44 = vmax.f32 %v589_v38, 0.0  ;;  %v1367_v45 = vmax.f32 %v973_v39, 0.0 }
 0x173   : > { %v1240_v46 = vmax.f32 %v591_v42, 0.0  ;;  %v1368_v47 = vmax.f32 %v975_v43, 0.0  ;;  %v594_v48 = vpop.f32.mrb[60].mxu0  ;;  %v978_v49 = vpop.f32.mrb[60].mxu1 }
 0x174   : > { %1466 = vst [vmem:[%s2320_s11 + $0x1c8] sm:$0xff] %v1239_v44  ;;  %1530 = vst [vmem:[%s2320_s11 + $0x5c8] sm:$0xff] %v1367_v45  ;;  %v595_v50 = vadd.f32 %v594_v48, %v2307_v34  ;;  %v979_v51 = vadd.f32 %v978_v49, %v2307_v34  ;;  %v596_v52 = vpop.f32.mrb[61].mxu0  ;;  %v980_v53 = vpop.f32.mrb[61].mxu1 }
 0x175   : > { %1791 = vst [vmem:[%s2320_s11 + $0x1e8] sm:$0xff] %v1240_v46  ;;  %1855 = vst [vmem:[%s2320_s11 + $0x5e8] sm:$0xff] %v1368_v47  ;;  %v597_v54 = vadd.f32 %v596_v52, %v2311_v35  ;;  %v981_v55 = vadd.f32 %v980_v53, %v2311_v35 }
 0x176   : > { %v1241_v56 = vmax.f32 %v595_v50, 0.0  ;;  %v1369_v57 = vmax.f32 %v979_v51, 0.0 }
 0x177   : > { %v1242_v58 = vmax.f32 %v597_v54, 0.0  ;;  %v1370_v59 = vmax.f32 %v981_v55, 0.0  ;;  %v600_v60 = vpop.f32.mrb[62].mxu0  ;;  %v984_v7 = vpop.f32.mrb[62].mxu1 }
 0x178   : > { %1467 = vst [vmem:[%s2320_s11 + $0x1d0] sm:$0xff] %v1241_v56  ;;  %1531 = vst [vmem:[%s2320_s11 + $0x5d0] sm:$0xff] %v1369_v57  ;;  %v601_v61 = vadd.f32 %v600_v60, %v2307_v34  ;;  %v985_v62 = vadd.f32 %v984_v7, %v2307_v34  ;;  %v602_v63 = vpop.f32.mrb[63].mxu0  ;;  %v986_v0 = vpop.f32.mrb[63].mxu1 }
 0x179   : > { %1792 = vst [vmem:[%s2320_s11 + $0x1f0] sm:$0xff] %v1242_v58  ;;  %1856 = vst [vmem:[%s2320_s11 + $0x5f0] sm:$0xff] %v1370_v59  ;;  %v603_v1 = vadd.f32 %v602_v63, %v2311_v35  ;;  %v987_v2 = vadd.f32 %v986_v0, %v2311_v35 }
 0x17a   : > { %v1243_v3 = vmax.f32 %v601_v61, 0.0  ;;  %v1371_v4 = vmax.f32 %v985_v62, 0.0 }
 0x17b   : > { %v1244_v5 = vmax.f32 %v603_v1, 0.0  ;;  %v1372_v6 = vmax.f32 %v987_v2, 0.0  ;;  %v606_v8 = vpop.f32.mrb[64].mxu0  ;;  %v990_v9 = vpop.f32.mrb[64].mxu1 }
 0x17c   : > { %1468 = vst [vmem:[%s2320_s11 + $0x1d8] sm:$0xff] %v1243_v3  ;;  %1532 = vst [vmem:[%s2320_s11 + $0x5d8] sm:$0xff] %v1371_v4  ;;  %v607_v10 = vadd.f32 %v606_v8, %v2307_v34  ;;  %v991_v11 = vadd.f32 %v990_v9, %v2307_v34  ;;  %v608_v12 = vpop.f32.mrb[65].mxu0  ;;  %v992_v13 = vpop.f32.mrb[65].mxu1 }
 0x17d   : > { %1793 = vst [vmem:[%s2320_s11 + $0x1f8] sm:$0xff] %v1244_v5  ;;  %1857 = vst [vmem:[%s2320_s11 + $0x5f8] sm:$0xff] %v1372_v6  ;;  %v609_v14 = vadd.f32 %v608_v12, %v2311_v35  ;;  %v993_v15 = vadd.f32 %v992_v13, %v2311_v35 }
 0x17e   : > { %v1245_v16 = vmax.f32 %v607_v10, 0.0  ;;  %v1373_v17 = vmax.f32 %v991_v11, 0.0 }
 0x17f   : > { %v1246_v18 = vmax.f32 %v609_v14, 0.0  ;;  %v1374_v19 = vmax.f32 %v993_v15, 0.0  ;;  %v612_v20 = vpop.f32.mrb[66].mxu0  ;;  %v996_v21 = vpop.f32.mrb[66].mxu1 }
 0x180   : > { %1469 = vst [vmem:[%s2320_s11 + $0x200] sm:$0xff] %v1245_v16  ;;  %1533 = vst [vmem:[%s2320_s11 + $0x600] sm:$0xff] %v1373_v17  ;;  %v613_v22 = vadd.f32 %v612_v20, %v2307_v34  ;;  %v997_v23 = vadd.f32 %v996_v21, %v2307_v34  ;;  %v614_v24 = vpop.f32.mrb[67].mxu0  ;;  %v998_v25 = vpop.f32.mrb[67].mxu1 }
 0x181   : > { %1794 = vst [vmem:[%s2320_s11 + $0x220] sm:$0xff] %v1246_v18  ;;  %1858 = vst [vmem:[%s2320_s11 + $0x620] sm:$0xff] %v1374_v19  ;;  %v615_v26 = vadd.f32 %v614_v24, %v2311_v35  ;;  %v999_v27 = vadd.f32 %v998_v25, %v2311_v35 }
 0x182   : > { %v1247_v28 = vmax.f32 %v613_v22, 0.0  ;;  %v1375_v29 = vmax.f32 %v997_v23, 0.0 }
 0x183   : > { %v1248_v30 = vmax.f32 %v615_v26, 0.0  ;;  %v1376_v31 = vmax.f32 %v999_v27, 0.0  ;;  %v618_v32 = vpop.f32.mrb[68].mxu0  ;;  %v1002_v33 = vpop.f32.mrb[68].mxu1 }
 0x184   : > { %1470 = vst [vmem:[%s2320_s11 + $0x208] sm:$0xff] %v1247_v28  ;;  %1534 = vst [vmem:[%s2320_s11 + $0x608] sm:$0xff] %v1375_v29  ;;  %v619_v36 = vadd.f32 %v618_v32, %v2307_v34  ;;  %v1003_v37 = vadd.f32 %v1002_v33, %v2307_v34  ;;  %v620_v38 = vpop.f32.mrb[69].mxu0  ;;  %v1004_v39 = vpop.f32.mrb[69].mxu1 }
 0x185   : > { %1795 = vst [vmem:[%s2320_s11 + $0x228] sm:$0xff] %v1248_v30  ;;  %1859 = vst [vmem:[%s2320_s11 + $0x628] sm:$0xff] %v1376_v31  ;;  %v621_v40 = vadd.f32 %v620_v38, %v2311_v35  ;;  %v1005_v41 = vadd.f32 %v1004_v39, %v2311_v35 }
 0x186   : > { %v1249_v42 = vmax.f32 %v619_v36, 0.0  ;;  %v1377_v43 = vmax.f32 %v1003_v37, 0.0 }
 0x187   : > { %v1250_v44 = vmax.f32 %v621_v40, 0.0  ;;  %v1378_v45 = vmax.f32 %v1005_v41, 0.0  ;;  %v624_v46 = vpop.f32.mrb[70].mxu0  ;;  %v1008_v47 = vpop.f32.mrb[70].mxu1 }
 0x188   : > { %1471 = vst [vmem:[%s2320_s11 + $0x210] sm:$0xff] %v1249_v42  ;;  %1535 = vst [vmem:[%s2320_s11 + $0x610] sm:$0xff] %v1377_v43  ;;  %v625_v48 = vadd.f32 %v624_v46, %v2307_v34  ;;  %v1009_v49 = vadd.f32 %v1008_v47, %v2307_v34  ;;  %v626_v50 = vpop.f32.mrb[71].mxu0  ;;  %v1010_v51 = vpop.f32.mrb[71].mxu1 }
 0x189   : > { %1796 = vst [vmem:[%s2320_s11 + $0x230] sm:$0xff] %v1250_v44  ;;  %1860 = vst [vmem:[%s2320_s11 + $0x630] sm:$0xff] %v1378_v45  ;;  %v627_v52 = vadd.f32 %v626_v50, %v2311_v35  ;;  %v1011_v53 = vadd.f32 %v1010_v51, %v2311_v35 }
 0x18a   : > { %v1251_v54 = vmax.f32 %v625_v48, 0.0  ;;  %v1379_v55 = vmax.f32 %v1009_v49, 0.0 }
 0x18b   : > { %v1252_v56 = vmax.f32 %v627_v52, 0.0  ;;  %v1380_v57 = vmax.f32 %v1011_v53, 0.0  ;;  %v630_v58 = vpop.f32.mrb[72].mxu0  ;;  %v1014_v59 = vpop.f32.mrb[72].mxu1 }
 0x18c   : > { %1472 = vst [vmem:[%s2320_s11 + $0x218] sm:$0xff] %v1251_v54  ;;  %1536 = vst [vmem:[%s2320_s11 + $0x618] sm:$0xff] %v1379_v55  ;;  %v631_v60 = vadd.f32 %v630_v58, %v2307_v34  ;;  %v1015_v7 = vadd.f32 %v1014_v59, %v2307_v34  ;;  %v632_v61 = vpop.f32.mrb[73].mxu0  ;;  %v1016_v62 = vpop.f32.mrb[73].mxu1 }
 0x18d   : > { %1797 = vst [vmem:[%s2320_s11 + $0x238] sm:$0xff] %v1252_v56  ;;  %1861 = vst [vmem:[%s2320_s11 + $0x638] sm:$0xff] %v1380_v57  ;;  %v633_v63 = vadd.f32 %v632_v61, %v2311_v35  ;;  %v1017_v0 = vadd.f32 %v1016_v62, %v2311_v35 }
 0x18e   : > { %v1253_v1 = vmax.f32 %v631_v60, 0.0  ;;  %v1381_v2 = vmax.f32 %v1015_v7, 0.0 }
 0x18f   : > { %v1254_v3 = vmax.f32 %v633_v63, 0.0  ;;  %v1382_v4 = vmax.f32 %v1017_v0, 0.0  ;;  %v636_v5 = vpop.f32.mrb[74].mxu0  ;;  %v1020_v6 = vpop.f32.mrb[74].mxu1 }
 0x190   : > { %1473 = vst [vmem:[%s2320_s11 + $0x240] sm:$0xff] %v1253_v1  ;;  %1537 = vst [vmem:[%s2320_s11 + $0x640] sm:$0xff] %v1381_v2  ;;  %v637_v8 = vadd.f32 %v636_v5, %v2307_v34  ;;  %v1021_v9 = vadd.f32 %v1020_v6, %v2307_v34  ;;  %v638_v10 = vpop.f32.mrb[75].mxu0  ;;  %v1022_v11 = vpop.f32.mrb[75].mxu1 }
 0x191   : > { %1798 = vst [vmem:[%s2320_s11 + $0x260] sm:$0xff] %v1254_v3  ;;  %1862 = vst [vmem:[%s2320_s11 + $0x660] sm:$0xff] %v1382_v4  ;;  %v639_v12 = vadd.f32 %v638_v10, %v2311_v35  ;;  %v1023_v13 = vadd.f32 %v1022_v11, %v2311_v35 }
 0x192   : > { %v1255_v14 = vmax.f32 %v637_v8, 0.0  ;;  %v1383_v15 = vmax.f32 %v1021_v9, 0.0 }
 0x193   : > { %v1256_v16 = vmax.f32 %v639_v12, 0.0  ;;  %v1384_v17 = vmax.f32 %v1023_v13, 0.0  ;;  %v642_v18 = vpop.f32.mrb[76].mxu0  ;;  %v1026_v19 = vpop.f32.mrb[76].mxu1 }
 0x194   : > { %1474 = vst [vmem:[%s2320_s11 + $0x248] sm:$0xff] %v1255_v14  ;;  %1538 = vst [vmem:[%s2320_s11 + $0x648] sm:$0xff] %v1383_v15  ;;  %v643_v20 = vadd.f32 %v642_v18, %v2307_v34  ;;  %v1027_v21 = vadd.f32 %v1026_v19, %v2307_v34  ;;  %v644_v22 = vpop.f32.mrb[77].mxu0  ;;  %v1028_v23 = vpop.f32.mrb[77].mxu1 }
 0x195   : > { %1799 = vst [vmem:[%s2320_s11 + $0x268] sm:$0xff] %v1256_v16  ;;  %1863 = vst [vmem:[%s2320_s11 + $0x668] sm:$0xff] %v1384_v17  ;;  %v645_v24 = vadd.f32 %v644_v22, %v2311_v35  ;;  %v1029_v25 = vadd.f32 %v1028_v23, %v2311_v35 }
 0x196   : > { %v1257_v26 = vmax.f32 %v643_v20, 0.0  ;;  %v1385_v27 = vmax.f32 %v1027_v21, 0.0 }
 0x197   : > { %v1258_v28 = vmax.f32 %v645_v24, 0.0  ;;  %v1386_v29 = vmax.f32 %v1029_v25, 0.0  ;;  %v648_v30 = vpop.f32.mrb[78].mxu0  ;;  %v1032_v31 = vpop.f32.mrb[78].mxu1 }
 0x198   : > { %1475 = vst [vmem:[%s2320_s11 + $0x250] sm:$0xff] %v1257_v26  ;;  %1539 = vst [vmem:[%s2320_s11 + $0x650] sm:$0xff] %v1385_v27  ;;  %v649_v32 = vadd.f32 %v648_v30, %v2307_v34  ;;  %v1033_v33 = vadd.f32 %v1032_v31, %v2307_v34  ;;  %v650_v36 = vpop.f32.mrb[79].mxu0  ;;  %v1034_v37 = vpop.f32.mrb[79].mxu1 }
 0x199   : > { %1800 = vst [vmem:[%s2320_s11 + $0x270] sm:$0xff] %v1258_v28  ;;  %1864 = vst [vmem:[%s2320_s11 + $0x670] sm:$0xff] %v1386_v29  ;;  %v651_v38 = vadd.f32 %v650_v36, %v2311_v35  ;;  %v1035_v39 = vadd.f32 %v1034_v37, %v2311_v35 }
 0x19a   : > { %v1259_v40 = vmax.f32 %v649_v32, 0.0  ;;  %v1387_v41 = vmax.f32 %v1033_v33, 0.0 }
 0x19b   : > { %v1260_v42 = vmax.f32 %v651_v38, 0.0  ;;  %v1388_v43 = vmax.f32 %v1035_v39, 0.0  ;;  %v654_v44 = vpop.f32.mrb[80].mxu0  ;;  %v1038_v45 = vpop.f32.mrb[80].mxu1 }
 0x19c   : > { %1476 = vst [vmem:[%s2320_s11 + $0x258] sm:$0xff] %v1259_v40  ;;  %1540 = vst [vmem:[%s2320_s11 + $0x658] sm:$0xff] %v1387_v41  ;;  %v655_v46 = vadd.f32 %v654_v44, %v2307_v34  ;;  %v1039_v47 = vadd.f32 %v1038_v45, %v2307_v34  ;;  %v656_v48 = vpop.f32.mrb[81].mxu0  ;;  %v1040_v49 = vpop.f32.mrb[81].mxu1 }
 0x19d   : > { %1801 = vst [vmem:[%s2320_s11 + $0x278] sm:$0xff] %v1260_v42  ;;  %1865 = vst [vmem:[%s2320_s11 + $0x678] sm:$0xff] %v1388_v43  ;;  %v657_v50 = vadd.f32 %v656_v48, %v2311_v35  ;;  %v1041_v51 = vadd.f32 %v1040_v49, %v2311_v35 }
 0x19e   : > { %v1261_v52 = vmax.f32 %v655_v46, 0.0  ;;  %v1389_v53 = vmax.f32 %v1039_v47, 0.0 }
 0x19f   : > { %v1262_v54 = vmax.f32 %v657_v50, 0.0  ;;  %v1390_v55 = vmax.f32 %v1041_v51, 0.0  ;;  %v660_v56 = vpop.f32.mrb[82].mxu0  ;;  %v1044_v57 = vpop.f32.mrb[82].mxu1 }
 0x1a0   : > { %1477 = vst [vmem:[%s2320_s11 + $0x280] sm:$0xff] %v1261_v52  ;;  %1541 = vst [vmem:[%s2320_s11 + $0x680] sm:$0xff] %v1389_v53  ;;  %v661_v58 = vadd.f32 %v660_v56, %v2307_v34  ;;  %v1045_v59 = vadd.f32 %v1044_v57, %v2307_v34  ;;  %v662_v60 = vpop.f32.mrb[83].mxu0  ;;  %v1046_v7 = vpop.f32.mrb[83].mxu1 }
 0x1a1   : > { %1802 = vst [vmem:[%s2320_s11 + $0x2a0] sm:$0xff] %v1262_v54  ;;  %1866 = vst [vmem:[%s2320_s11 + $0x6a0] sm:$0xff] %v1390_v55  ;;  %v663_v61 = vadd.f32 %v662_v60, %v2311_v35  ;;  %v1047_v62 = vadd.f32 %v1046_v7, %v2311_v35 }
 0x1a2   : > { %v1263_v63 = vmax.f32 %v661_v58, 0.0  ;;  %v1391_v0 = vmax.f32 %v1045_v59, 0.0 }
 0x1a3   : > { %v1264_v1 = vmax.f32 %v663_v61, 0.0  ;;  %v1392_v2 = vmax.f32 %v1047_v62, 0.0  ;;  %v666_v3 = vpop.f32.mrb[84].mxu0  ;;  %v1050_v4 = vpop.f32.mrb[84].mxu1 }
 0x1a4   : > { %1478 = vst [vmem:[%s2320_s11 + $0x288] sm:$0xff] %v1263_v63  ;;  %1542 = vst [vmem:[%s2320_s11 + $0x688] sm:$0xff] %v1391_v0  ;;  %v667_v5 = vadd.f32 %v666_v3, %v2307_v34  ;;  %v1051_v6 = vadd.f32 %v1050_v4, %v2307_v34  ;;  %v668_v8 = vpop.f32.mrb[85].mxu0  ;;  %v1052_v9 = vpop.f32.mrb[85].mxu1 }
 0x1a5   : > { %1803 = vst [vmem:[%s2320_s11 + $0x2a8] sm:$0xff] %v1264_v1  ;;  %1867 = vst [vmem:[%s2320_s11 + $0x6a8] sm:$0xff] %v1392_v2  ;;  %v669_v10 = vadd.f32 %v668_v8, %v2311_v35  ;;  %v1053_v11 = vadd.f32 %v1052_v9, %v2311_v35 }
 0x1a6   : > { %v1265_v12 = vmax.f32 %v667_v5, 0.0  ;;  %v1393_v13 = vmax.f32 %v1051_v6, 0.0 }
 0x1a7   : > { %v1266_v14 = vmax.f32 %v669_v10, 0.0  ;;  %v1394_v15 = vmax.f32 %v1053_v11, 0.0  ;;  %v672_v16 = vpop.f32.mrb[86].mxu0  ;;  %v1056_v17 = vpop.f32.mrb[86].mxu1 }
 0x1a8   : > { %1479 = vst [vmem:[%s2320_s11 + $0x290] sm:$0xff] %v1265_v12  ;;  %1543 = vst [vmem:[%s2320_s11 + $0x690] sm:$0xff] %v1393_v13  ;;  %v673_v18 = vadd.f32 %v672_v16, %v2307_v34  ;;  %v1057_v19 = vadd.f32 %v1056_v17, %v2307_v34  ;;  %v674_v20 = vpop.f32.mrb[87].mxu0  ;;  %v1058_v21 = vpop.f32.mrb[87].mxu1 }
 0x1a9   : > { %1804 = vst [vmem:[%s2320_s11 + $0x2b0] sm:$0xff] %v1266_v14  ;;  %1868 = vst [vmem:[%s2320_s11 + $0x6b0] sm:$0xff] %v1394_v15  ;;  %v675_v22 = vadd.f32 %v674_v20, %v2311_v35  ;;  %v1059_v23 = vadd.f32 %v1058_v21, %v2311_v35 }
 0x1aa   : > { %v1267_v24 = vmax.f32 %v673_v18, 0.0  ;;  %v1395_v25 = vmax.f32 %v1057_v19, 0.0 }
 0x1ab   : > { %v1268_v26 = vmax.f32 %v675_v22, 0.0  ;;  %v1396_v27 = vmax.f32 %v1059_v23, 0.0  ;;  %v678_v28 = vpop.f32.mrb[88].mxu0  ;;  %v1062_v29 = vpop.f32.mrb[88].mxu1 }
 0x1ac   : > { %1480 = vst [vmem:[%s2320_s11 + $0x298] sm:$0xff] %v1267_v24  ;;  %1544 = vst [vmem:[%s2320_s11 + $0x698] sm:$0xff] %v1395_v25  ;;  %v679_v30 = vadd.f32 %v678_v28, %v2307_v34  ;;  %v1063_v31 = vadd.f32 %v1062_v29, %v2307_v34  ;;  %v680_v32 = vpop.f32.mrb[89].mxu0  ;;  %v1064_v33 = vpop.f32.mrb[89].mxu1 }
 0x1ad   : > { %1805 = vst [vmem:[%s2320_s11 + $0x2b8] sm:$0xff] %v1268_v26  ;;  %1869 = vst [vmem:[%s2320_s11 + $0x6b8] sm:$0xff] %v1396_v27  ;;  %v681_v36 = vadd.f32 %v680_v32, %v2311_v35  ;;  %v1065_v37 = vadd.f32 %v1064_v33, %v2311_v35 }
 0x1ae   : > { %v1269_v38 = vmax.f32 %v679_v30, 0.0  ;;  %v1397_v39 = vmax.f32 %v1063_v31, 0.0 }
 0x1af   : > { %v1270_v40 = vmax.f32 %v681_v36, 0.0  ;;  %v1398_v41 = vmax.f32 %v1065_v37, 0.0  ;;  %v684_v42 = vpop.f32.mrb[90].mxu0  ;;  %v1068_v43 = vpop.f32.mrb[90].mxu1 }
 0x1b0   : > { %1481 = vst [vmem:[%s2320_s11 + $0x2c0] sm:$0xff] %v1269_v38  ;;  %1545 = vst [vmem:[%s2320_s11 + $0x6c0] sm:$0xff] %v1397_v39  ;;  %v685_v44 = vadd.f32 %v684_v42, %v2307_v34  ;;  %v1069_v45 = vadd.f32 %v1068_v43, %v2307_v34  ;;  %v686_v46 = vpop.f32.mrb[91].mxu0  ;;  %v1070_v47 = vpop.f32.mrb[91].mxu1 }
 0x1b1   : > { %1806 = vst [vmem:[%s2320_s11 + $0x2e0] sm:$0xff] %v1270_v40  ;;  %1870 = vst [vmem:[%s2320_s11 + $0x6e0] sm:$0xff] %v1398_v41  ;;  %v687_v48 = vadd.f32 %v686_v46, %v2311_v35  ;;  %v1071_v49 = vadd.f32 %v1070_v47, %v2311_v35 }
 0x1b2   : > { %v1271_v50 = vmax.f32 %v685_v44, 0.0  ;;  %v1399_v51 = vmax.f32 %v1069_v45, 0.0 }
 0x1b3   : > { %v1272_v52 = vmax.f32 %v687_v48, 0.0  ;;  %v1400_v53 = vmax.f32 %v1071_v49, 0.0  ;;  %v690_v54 = vpop.f32.mrb[92].mxu0  ;;  %v1074_v55 = vpop.f32.mrb[92].mxu1 }
 0x1b4   : > { %1482 = vst [vmem:[%s2320_s11 + $0x2c8] sm:$0xff] %v1271_v50  ;;  %1546 = vst [vmem:[%s2320_s11 + $0x6c8] sm:$0xff] %v1399_v51  ;;  %v691_v56 = vadd.f32 %v690_v54, %v2307_v34  ;;  %v1075_v57 = vadd.f32 %v1074_v55, %v2307_v34  ;;  %v692_v58 = vpop.f32.mrb[93].mxu0  ;;  %v1076_v59 = vpop.f32.mrb[93].mxu1 }
 0x1b5   : > { %1807 = vst [vmem:[%s2320_s11 + $0x2e8] sm:$0xff] %v1272_v52  ;;  %1871 = vst [vmem:[%s2320_s11 + $0x6e8] sm:$0xff] %v1400_v53  ;;  %v693_v60 = vadd.f32 %v692_v58, %v2311_v35  ;;  %v1077_v7 = vadd.f32 %v1076_v59, %v2311_v35 }
 0x1b6   : > { %v1273_v61 = vmax.f32 %v691_v56, 0.0  ;;  %v1401_v62 = vmax.f32 %v1075_v57, 0.0 }
 0x1b7   : > { %v1274_v63 = vmax.f32 %v693_v60, 0.0  ;;  %v1402_v0 = vmax.f32 %v1077_v7, 0.0  ;;  %v696_v1 = vpop.f32.mrb[94].mxu0  ;;  %v1080_v2 = vpop.f32.mrb[94].mxu1 }
 0x1b8   : > { %1483 = vst [vmem:[%s2320_s11 + $0x2d0] sm:$0xff] %v1273_v61  ;;  %1547 = vst [vmem:[%s2320_s11 + $0x6d0] sm:$0xff] %v1401_v62  ;;  %v697_v3 = vadd.f32 %v696_v1, %v2307_v34  ;;  %v1081_v4 = vadd.f32 %v1080_v2, %v2307_v34  ;;  %v698_v5 = vpop.f32.mrb[95].mxu0  ;;  %v1082_v6 = vpop.f32.mrb[95].mxu1 }
 0x1b9   : > { %1808 = vst [vmem:[%s2320_s11 + $0x2f0] sm:$0xff] %v1274_v63  ;;  %1872 = vst [vmem:[%s2320_s11 + $0x6f0] sm:$0xff] %v1402_v0  ;;  %v699_v8 = vadd.f32 %v698_v5, %v2311_v35  ;;  %v1083_v9 = vadd.f32 %v1082_v6, %v2311_v35 }
 0x1ba   : > { %v1275_v10 = vmax.f32 %v697_v3, 0.0  ;;  %v1403_v11 = vmax.f32 %v1081_v4, 0.0 }
 0x1bb   : > { %v1276_v12 = vmax.f32 %v699_v8, 0.0  ;;  %v1404_v13 = vmax.f32 %v1083_v9, 0.0  ;;  %v702_v14 = vpop.f32.mrb[96].mxu0  ;;  %v1086_v15 = vpop.f32.mrb[96].mxu1 }
 0x1bc   : > { %1484 = vst [vmem:[%s2320_s11 + $0x2d8] sm:$0xff] %v1275_v10  ;;  %1548 = vst [vmem:[%s2320_s11 + $0x6d8] sm:$0xff] %v1403_v11  ;;  %v703_v16 = vadd.f32 %v702_v14, %v2307_v34  ;;  %v1087_v17 = vadd.f32 %v1086_v15, %v2307_v34  ;;  %v704_v18 = vpop.f32.mrb[97].mxu0  ;;  %v1088_v19 = vpop.f32.mrb[97].mxu1 }
 0x1bd   : > { %1809 = vst [vmem:[%s2320_s11 + $0x2f8] sm:$0xff] %v1276_v12  ;;  %1873 = vst [vmem:[%s2320_s11 + $0x6f8] sm:$0xff] %v1404_v13  ;;  %v705_v20 = vadd.f32 %v704_v18, %v2311_v35  ;;  %v1089_v21 = vadd.f32 %v1088_v19, %v2311_v35 }
 0x1be   : > { %v1277_v22 = vmax.f32 %v703_v16, 0.0  ;;  %v1405_v23 = vmax.f32 %v1087_v17, 0.0 }
 0x1bf   : > { %v1278_v24 = vmax.f32 %v705_v20, 0.0  ;;  %v1406_v25 = vmax.f32 %v1089_v21, 0.0  ;;  %v708_v26 = vpop.f32.mrb[98].mxu0  ;;  %v1092_v27 = vpop.f32.mrb[98].mxu1 }
 0x1c0   : > { %1485 = vst [vmem:[%s2320_s11 + $0x300] sm:$0xff] %v1277_v22  ;;  %1549 = vst [vmem:[%s2320_s11 + $0x700] sm:$0xff] %v1405_v23  ;;  %v709_v28 = vadd.f32 %v708_v26, %v2307_v34  ;;  %v1093_v29 = vadd.f32 %v1092_v27, %v2307_v34  ;;  %v710_v30 = vpop.f32.mrb[99].mxu0  ;;  %v1094_v31 = vpop.f32.mrb[99].mxu1 }
 0x1c1   : > { %1810 = vst [vmem:[%s2320_s11 + $0x320] sm:$0xff] %v1278_v24  ;;  %1874 = vst [vmem:[%s2320_s11 + $0x720] sm:$0xff] %v1406_v25  ;;  %v711_v32 = vadd.f32 %v710_v30, %v2311_v35  ;;  %v1095_v33 = vadd.f32 %v1094_v31, %v2311_v35 }
 0x1c2   : > { %v1279_v36 = vmax.f32 %v709_v28, 0.0  ;;  %v1407_v37 = vmax.f32 %v1093_v29, 0.0 }
 0x1c3   : > { %v1280_v38 = vmax.f32 %v711_v32, 0.0  ;;  %v1408_v39 = vmax.f32 %v1095_v33, 0.0  ;;  %v714_v40 = vpop.f32.mrb[100].mxu0  ;;  %v1098_v41 = vpop.f32.mrb[100].mxu1 }
 0x1c4   : > { %1486 = vst [vmem:[%s2320_s11 + $0x308] sm:$0xff] %v1279_v36  ;;  %1550 = vst [vmem:[%s2320_s11 + $0x708] sm:$0xff] %v1407_v37  ;;  %v715_v42 = vadd.f32 %v714_v40, %v2307_v34  ;;  %v1099_v43 = vadd.f32 %v1098_v41, %v2307_v34  ;;  %v716_v44 = vpop.f32.mrb[101].mxu0  ;;  %v1100_v45 = vpop.f32.mrb[101].mxu1 }
 0x1c5   : > { %1811 = vst [vmem:[%s2320_s11 + $0x328] sm:$0xff] %v1280_v38  ;;  %1875 = vst [vmem:[%s2320_s11 + $0x728] sm:$0xff] %v1408_v39  ;;  %v717_v46 = vadd.f32 %v716_v44, %v2311_v35  ;;  %v1101_v47 = vadd.f32 %v1100_v45, %v2311_v35 }
 0x1c6   : > { %v1281_v48 = vmax.f32 %v715_v42, 0.0  ;;  %v1409_v49 = vmax.f32 %v1099_v43, 0.0 }
 0x1c7   : > { %v1282_v50 = vmax.f32 %v717_v46, 0.0  ;;  %v1410_v51 = vmax.f32 %v1101_v47, 0.0  ;;  %v720_v52 = vpop.f32.mrb[102].mxu0  ;;  %v1104_v53 = vpop.f32.mrb[102].mxu1 }
 0x1c8   : > { %1487 = vst [vmem:[%s2320_s11 + $0x310] sm:$0xff] %v1281_v48  ;;  %1551 = vst [vmem:[%s2320_s11 + $0x710] sm:$0xff] %v1409_v49  ;;  %v721_v54 = vadd.f32 %v720_v52, %v2307_v34  ;;  %v1105_v55 = vadd.f32 %v1104_v53, %v2307_v34  ;;  %v722_v56 = vpop.f32.mrb[103].mxu0  ;;  %v1106_v57 = vpop.f32.mrb[103].mxu1 }
 0x1c9   : > { %1812 = vst [vmem:[%s2320_s11 + $0x330] sm:$0xff] %v1282_v50  ;;  %1876 = vst [vmem:[%s2320_s11 + $0x730] sm:$0xff] %v1410_v51  ;;  %v723_v58 = vadd.f32 %v722_v56, %v2311_v35  ;;  %v1107_v59 = vadd.f32 %v1106_v57, %v2311_v35 }
 0x1ca   : > { %v1283_v60 = vmax.f32 %v721_v54, 0.0  ;;  %v1411_v7 = vmax.f32 %v1105_v55, 0.0 }
 0x1cb   : > { %v1284_v61 = vmax.f32 %v723_v58, 0.0  ;;  %v1412_v62 = vmax.f32 %v1107_v59, 0.0  ;;  %v726_v63 = vpop.f32.mrb[104].mxu0  ;;  %v1110_v0 = vpop.f32.mrb[104].mxu1 }
 0x1cc   : > { %1488 = vst [vmem:[%s2320_s11 + $0x318] sm:$0xff] %v1283_v60  ;;  %1552 = vst [vmem:[%s2320_s11 + $0x718] sm:$0xff] %v1411_v7  ;;  %v727_v1 = vadd.f32 %v726_v63, %v2307_v34  ;;  %v1111_v2 = vadd.f32 %v1110_v0, %v2307_v34  ;;  %v728_v3 = vpop.f32.mrb[105].mxu0  ;;  %v1112_v4 = vpop.f32.mrb[105].mxu1 }
 0x1cd   : > { %1813 = vst [vmem:[%s2320_s11 + $0x338] sm:$0xff] %v1284_v61  ;;  %1877 = vst [vmem:[%s2320_s11 + $0x738] sm:$0xff] %v1412_v62  ;;  %v729_v5 = vadd.f32 %v728_v3, %v2311_v35  ;;  %v1113_v6 = vadd.f32 %v1112_v4, %v2311_v35 }
 0x1ce   : > { %v1285_v8 = vmax.f32 %v727_v1, 0.0  ;;  %v1413_v9 = vmax.f32 %v1111_v2, 0.0 }
 0x1cf   : > { %v1286_v10 = vmax.f32 %v729_v5, 0.0  ;;  %v1414_v11 = vmax.f32 %v1113_v6, 0.0  ;;  %v732_v12 = vpop.f32.mrb[106].mxu0  ;;  %v1116_v13 = vpop.f32.mrb[106].mxu1 }
 0x1d0   : > { %1489 = vst [vmem:[%s2320_s11 + $0x340] sm:$0xff] %v1285_v8  ;;  %1553 = vst [vmem:[%s2320_s11 + $0x740] sm:$0xff] %v1413_v9  ;;  %v733_v14 = vadd.f32 %v732_v12, %v2307_v34  ;;  %v1117_v15 = vadd.f32 %v1116_v13, %v2307_v34  ;;  %v734_v16 = vpop.f32.mrb[107].mxu0  ;;  %v1118_v17 = vpop.f32.mrb[107].mxu1 }
 0x1d1   : > { %1814 = vst [vmem:[%s2320_s11 + $0x360] sm:$0xff] %v1286_v10  ;;  %1878 = vst [vmem:[%s2320_s11 + $0x760] sm:$0xff] %v1414_v11  ;;  %v735_v18 = vadd.f32 %v734_v16, %v2311_v35  ;;  %v1119_v19 = vadd.f32 %v1118_v17, %v2311_v35 }
 0x1d2   : > { %v1287_v20 = vmax.f32 %v733_v14, 0.0  ;;  %v1415_v21 = vmax.f32 %v1117_v15, 0.0 }
 0x1d3   : > { %v1288_v22 = vmax.f32 %v735_v18, 0.0  ;;  %v1416_v23 = vmax.f32 %v1119_v19, 0.0  ;;  %v738_v24 = vpop.f32.mrb[108].mxu0  ;;  %v1122_v25 = vpop.f32.mrb[108].mxu1 }
 0x1d4   : > { %1490 = vst [vmem:[%s2320_s11 + $0x348] sm:$0xff] %v1287_v20  ;;  %1554 = vst [vmem:[%s2320_s11 + $0x748] sm:$0xff] %v1415_v21  ;;  %v739_v26 = vadd.f32 %v738_v24, %v2307_v34  ;;  %v1123_v27 = vadd.f32 %v1122_v25, %v2307_v34  ;;  %v740_v28 = vpop.f32.mrb[109].mxu0  ;;  %v1124_v29 = vpop.f32.mrb[109].mxu1 }
 0x1d5   : > { %1815 = vst [vmem:[%s2320_s11 + $0x368] sm:$0xff] %v1288_v22  ;;  %1879 = vst [vmem:[%s2320_s11 + $0x768] sm:$0xff] %v1416_v23  ;;  %v741_v30 = vadd.f32 %v740_v28, %v2311_v35  ;;  %v1125_v31 = vadd.f32 %v1124_v29, %v2311_v35 }
 0x1d6   : > { %v1289_v32 = vmax.f32 %v739_v26, 0.0  ;;  %v1417_v33 = vmax.f32 %v1123_v27, 0.0 }
 0x1d7   : > { %v1290_v36 = vmax.f32 %v741_v30, 0.0  ;;  %v1418_v37 = vmax.f32 %v1125_v31, 0.0  ;;  %v744_v38 = vpop.f32.mrb[110].mxu0  ;;  %v1128_v39 = vpop.f32.mrb[110].mxu1 }
 0x1d8   : > { %1491 = vst [vmem:[%s2320_s11 + $0x350] sm:$0xff] %v1289_v32  ;;  %1555 = vst [vmem:[%s2320_s11 + $0x750] sm:$0xff] %v1417_v33  ;;  %v745_v40 = vadd.f32 %v744_v38, %v2307_v34  ;;  %v1129_v41 = vadd.f32 %v1128_v39, %v2307_v34  ;;  %v746_v42 = vpop.f32.mrb[111].mxu0  ;;  %v1130_v43 = vpop.f32.mrb[111].mxu1 }
 0x1d9   : > { %1816 = vst [vmem:[%s2320_s11 + $0x370] sm:$0xff] %v1290_v36  ;;  %1880 = vst [vmem:[%s2320_s11 + $0x770] sm:$0xff] %v1418_v37  ;;  %v747_v44 = vadd.f32 %v746_v42, %v2311_v35  ;;  %v1131_v45 = vadd.f32 %v1130_v43, %v2311_v35 }
 0x1da   : > { %v1291_v46 = vmax.f32 %v745_v40, 0.0  ;;  %v1419_v47 = vmax.f32 %v1129_v41, 0.0 }
 0x1db   : > { %v1292_v48 = vmax.f32 %v747_v44, 0.0  ;;  %v1420_v49 = vmax.f32 %v1131_v45, 0.0  ;;  %v750_v50 = vpop.f32.mrb[112].mxu0  ;;  %v1134_v51 = vpop.f32.mrb[112].mxu1 }
 0x1dc   : > { %1492 = vst [vmem:[%s2320_s11 + $0x358] sm:$0xff] %v1291_v46  ;;  %1556 = vst [vmem:[%s2320_s11 + $0x758] sm:$0xff] %v1419_v47  ;;  %v751_v52 = vadd.f32 %v750_v50, %v2307_v34  ;;  %v1135_v53 = vadd.f32 %v1134_v51, %v2307_v34  ;;  %v752_v54 = vpop.f32.mrb[113].mxu0  ;;  %v1136_v55 = vpop.f32.mrb[113].mxu1 }
 0x1dd   : > { %1817 = vst [vmem:[%s2320_s11 + $0x378] sm:$0xff] %v1292_v48  ;;  %1881 = vst [vmem:[%s2320_s11 + $0x778] sm:$0xff] %v1420_v49  ;;  %v753_v56 = vadd.f32 %v752_v54, %v2311_v35  ;;  %v1137_v57 = vadd.f32 %v1136_v55, %v2311_v35 }
 0x1de   : > { %v1293_v58 = vmax.f32 %v751_v52, 0.0  ;;  %v1421_v59 = vmax.f32 %v1135_v53, 0.0 }
 0x1df   : > { %v1294_v60 = vmax.f32 %v753_v56, 0.0  ;;  %v1422_v7 = vmax.f32 %v1137_v57, 0.0  ;;  %v756_v61 = vpop.f32.mrb[114].mxu0  ;;  %v1140_v62 = vpop.f32.mrb[114].mxu1 }
 0x1e0   : > { %1493 = vst [vmem:[%s2320_s11 + $0x380] sm:$0xff] %v1293_v58  ;;  %1557 = vst [vmem:[%s2320_s11 + $0x780] sm:$0xff] %v1421_v59  ;;  %v757_v63 = vadd.f32 %v756_v61, %v2307_v34  ;;  %v1141_v0 = vadd.f32 %v1140_v62, %v2307_v34  ;;  %v758_v1 = vpop.f32.mrb[115].mxu0  ;;  %v1142_v2 = vpop.f32.mrb[115].mxu1 }
 0x1e1   : > { %1818 = vst [vmem:[%s2320_s11 + $0x3a0] sm:$0xff] %v1294_v60  ;;  %1882 = vst [vmem:[%s2320_s11 + $0x7a0] sm:$0xff] %v1422_v7  ;;  %v759_v3 = vadd.f32 %v758_v1, %v2311_v35  ;;  %v1143_v4 = vadd.f32 %v1142_v2, %v2311_v35 }
 0x1e2   : > { %v1295_v5 = vmax.f32 %v757_v63, 0.0  ;;  %v1423_v6 = vmax.f32 %v1141_v0, 0.0 }
 0x1e3   : > { %v1296_v8 = vmax.f32 %v759_v3, 0.0  ;;  %v1424_v9 = vmax.f32 %v1143_v4, 0.0  ;;  %v762_v10 = vpop.f32.mrb[116].mxu0  ;;  %v1146_v11 = vpop.f32.mrb[116].mxu1 }
 0x1e4   : > { %1494 = vst [vmem:[%s2320_s11 + $0x388] sm:$0xff] %v1295_v5  ;;  %1558 = vst [vmem:[%s2320_s11 + $0x788] sm:$0xff] %v1423_v6  ;;  %v763_v12 = vadd.f32 %v762_v10, %v2307_v34  ;;  %v1147_v13 = vadd.f32 %v1146_v11, %v2307_v34  ;;  %v764_v14 = vpop.f32.mrb[117].mxu0  ;;  %v1148_v15 = vpop.f32.mrb[117].mxu1 }
 0x1e5   : > { %1819 = vst [vmem:[%s2320_s11 + $0x3a8] sm:$0xff] %v1296_v8  ;;  %1883 = vst [vmem:[%s2320_s11 + $0x7a8] sm:$0xff] %v1424_v9  ;;  %v765_v16 = vadd.f32 %v764_v14, %v2311_v35  ;;  %v1149_v17 = vadd.f32 %v1148_v15, %v2311_v35 }
 0x1e6   : > { %v1297_v18 = vmax.f32 %v763_v12, 0.0  ;;  %v1425_v19 = vmax.f32 %v1147_v13, 0.0 }
 0x1e7   : > { %v1298_v20 = vmax.f32 %v765_v16, 0.0  ;;  %v1426_v21 = vmax.f32 %v1149_v17, 0.0  ;;  %v768_v22 = vpop.f32.mrb[118].mxu0  ;;  %v1152_v23 = vpop.f32.mrb[118].mxu1 }
 0x1e8   : > { %1495 = vst [vmem:[%s2320_s11 + $0x390] sm:$0xff] %v1297_v18  ;;  %1559 = vst [vmem:[%s2320_s11 + $0x790] sm:$0xff] %v1425_v19  ;;  %v769_v24 = vadd.f32 %v768_v22, %v2307_v34  ;;  %v1153_v25 = vadd.f32 %v1152_v23, %v2307_v34  ;;  %v770_v26 = vpop.f32.mrb[119].mxu0  ;;  %v1154_v27 = vpop.f32.mrb[119].mxu1 }
 0x1e9   : > { %1820 = vst [vmem:[%s2320_s11 + $0x3b0] sm:$0xff] %v1298_v20  ;;  %1884 = vst [vmem:[%s2320_s11 + $0x7b0] sm:$0xff] %v1426_v21  ;;  %v771_v28 = vadd.f32 %v770_v26, %v2311_v35  ;;  %v1155_v29 = vadd.f32 %v1154_v27, %v2311_v35 }
 0x1ea   : > { %v1299_v30 = vmax.f32 %v769_v24, 0.0  ;;  %v1427_v31 = vmax.f32 %v1153_v25, 0.0 }
 0x1eb   : > { %v1300_v32 = vmax.f32 %v771_v28, 0.0  ;;  %v1428_v33 = vmax.f32 %v1155_v29, 0.0  ;;  %v774_v36 = vpop.f32.mrb[120].mxu0  ;;  %v1158_v37 = vpop.f32.mrb[120].mxu1 }
 0x1ec   : > { %1496 = vst [vmem:[%s2320_s11 + $0x398] sm:$0xff] %v1299_v30  ;;  %1560 = vst [vmem:[%s2320_s11 + $0x798] sm:$0xff] %v1427_v31  ;;  %v775_v38 = vadd.f32 %v774_v36, %v2307_v34  ;;  %v1159_v39 = vadd.f32 %v1158_v37, %v2307_v34  ;;  %v776_v40 = vpop.f32.mrb[121].mxu0  ;;  %v1160_v41 = vpop.f32.mrb[121].mxu1 }
 0x1ed   : > { %1821 = vst [vmem:[%s2320_s11 + $0x3b8] sm:$0xff] %v1300_v32  ;;  %1885 = vst [vmem:[%s2320_s11 + $0x7b8] sm:$0xff] %v1428_v33  ;;  %v777_v42 = vadd.f32 %v776_v40, %v2311_v35  ;;  %v1161_v43 = vadd.f32 %v1160_v41, %v2311_v35 }
 0x1ee   : > { %v1301_v44 = vmax.f32 %v775_v38, 0.0  ;;  %v1429_v45 = vmax.f32 %v1159_v39, 0.0 }
 0x1ef   : > { %v1302_v46 = vmax.f32 %v777_v42, 0.0  ;;  %v1430_v47 = vmax.f32 %v1161_v43, 0.0  ;;  %v780_v48 = vpop.f32.mrb[122].mxu0  ;;  %v1164_v49 = vpop.f32.mrb[122].mxu1 }
 0x1f0   : > { %1497 = vst [vmem:[%s2320_s11 + $0x3c0] sm:$0xff] %v1301_v44  ;;  %1561 = vst [vmem:[%s2320_s11 + $0x7c0] sm:$0xff] %v1429_v45  ;;  %v781_v50 = vadd.f32 %v780_v48, %v2307_v34  ;;  %v1165_v51 = vadd.f32 %v1164_v49, %v2307_v34  ;;  %v782_v52 = vpop.f32.mrb[123].mxu0  ;;  %v1166_v53 = vpop.f32.mrb[123].mxu1 }
 0x1f1   : > { %1822 = vst [vmem:[%s2320_s11 + $0x3e0] sm:$0xff] %v1302_v46  ;;  %1886 = vst [vmem:[%s2320_s11 + $0x7e0] sm:$0xff] %v1430_v47  ;;  %v783_v54 = vadd.f32 %v782_v52, %v2311_v35  ;;  %v1167_v55 = vadd.f32 %v1166_v53, %v2311_v35 }
 0x1f2   : > { %v1303_v56 = vmax.f32 %v781_v50, 0.0  ;;  %v1431_v57 = vmax.f32 %v1165_v51, 0.0 }
 0x1f3   : > { %v1304_v58 = vmax.f32 %v783_v54, 0.0  ;;  %v1432_v59 = vmax.f32 %v1167_v55, 0.0  ;;  %v786_v60 = vpop.f32.mrb[124].mxu0  ;;  %v1170_v7 = vpop.f32.mrb[124].mxu1 }
 0x1f4   : > { %1498 = vst [vmem:[%s2320_s11 + $0x3c8] sm:$0xff] %v1303_v56  ;;  %1562 = vst [vmem:[%s2320_s11 + $0x7c8] sm:$0xff] %v1431_v57  ;;  %v787_v61 = vadd.f32 %v786_v60, %v2307_v34  ;;  %v1171_v62 = vadd.f32 %v1170_v7, %v2307_v34  ;;  %v788_v63 = vpop.f32.mrb[125].mxu0  ;;  %v1172_v0 = vpop.f32.mrb[125].mxu1 }
 0x1f5   : > { %1823 = vst [vmem:[%s2320_s11 + $0x3e8] sm:$0xff] %v1304_v58  ;;  %1887 = vst [vmem:[%s2320_s11 + $0x7e8] sm:$0xff] %v1432_v59  ;;  %v789_v1 = vadd.f32 %v788_v63, %v2311_v35  ;;  %v1173_v2 = vadd.f32 %v1172_v0, %v2311_v35 }
 0x1f6   : > { %v1305_v3 = vmax.f32 %v787_v61, 0.0  ;;  %v1433_v4 = vmax.f32 %v1171_v62, 0.0 }
 0x1f7   : > { %v1306_v5 = vmax.f32 %v789_v1, 0.0  ;;  %v1434_v6 = vmax.f32 %v1173_v2, 0.0  ;;  %v792_v8 = vpop.f32.mrb[126].mxu0  ;;  %v1176_v9 = vpop.f32.mrb[126].mxu1 }
 0x1f8   : > { %1499 = vst [vmem:[%s2320_s11 + $0x3d0] sm:$0xff] %v1305_v3  ;;  %1563 = vst [vmem:[%s2320_s11 + $0x7d0] sm:$0xff] %v1433_v4  ;;  %v793_v10 = vadd.f32 %v792_v8, %v2307_v34  ;;  %v1177_v11 = vadd.f32 %v1176_v9, %v2307_v34  ;;  %v794_v12 = vpop.f32.mrb[127].mxu0  ;;  %v1178_v13 = vpop.f32.mrb[127].mxu1 }
 0x1f9   : > { %1824 = vst [vmem:[%s2320_s11 + $0x3f0] sm:$0xff] %v1306_v5  ;;  %1888 = vst [vmem:[%s2320_s11 + $0x7f0] sm:$0xff] %v1434_v6  ;;  %v795_v14 = vadd.f32 %v794_v12, %v2311_v35  ;;  %v1179_v15 = vadd.f32 %v1178_v13, %v2311_v35 }
 0x1fa   : > { %v1307_v16 = vmax.f32 %v793_v10, 0.0  ;;  %v1435_v17 = vmax.f32 %v1177_v11, 0.0 }
 0x1fb   : > { %v1308_v18 = vmax.f32 %v795_v14, 0.0  ;;  %v1436_v19 = vmax.f32 %v1179_v15, 0.0 }
 0x1fc   : > { %1500 = vst [vmem:[%s2320_s11 + $0x3d8] sm:$0xff] %v1307_v16  ;;  %1564 = vst [vmem:[%s2320_s11 + $0x7d8] sm:$0xff] %v1435_v17 }
 0x1fd   : > { %1825 = vst [vmem:[%s2320_s11 + $0x3f8] sm:$0xff] %v1308_v18  ;;  %1889 = vst [vmem:[%s2320_s11 + $0x7f8] sm:$0xff] %v1436_v19 }
 0x1fe PF: > { %s13_s12 = sadd.s32 1, %s1956_s12  }
 0x1ff   : > { %p10_p5 = scmp.ge.s32.totalorder %s13_s12, 4  }
 0x201   :  { %12 = sbr.rel (!%p10_p5) target bundleno = 1 (0x1), region = 63 }

// kernel: decoder_forward.9
= control target key start
LH: loop header
LB: loop body
LE: loop exit
PB: predicated region body
PF: predicated region fallthrough
CT: control target
= control target key end

     0   :  { %10 = vsyncpa [#allocation3], 0  ;;  %s8893_s0 = inlined_call_operand.vmem [shape: f32[2,64,4096], index: 0, kind: input, shape index: {}]   ;;  %s8894_s1 = inlined_call_operand.vmem [shape: f32[1024,48], index: 1, kind: input, shape index: {}]   ;;  %s8895_s2 = inlined_call_operand.vmem [shape: f32[1,48], index: 2, kind: input, shape index: {}]   ;;  %s8896_s3 = inlined_call_operand.vmem [shape: f32[72,64], index: 3, kind: input, shape index: {}]   ;;  %s8897_s4 = inlined_call_operand.vmem [shape: f32[4,48,384], index: 4, kind: input, shape index: {}]   ;;  %s8898_s5 = inlined_call_operand.hbm [shape: f32[2,3,72,72], index: 5, kind: output, shape index: {}]  }
   0x1   :  { %12 = vsyncpa [#allocation3 + $0x1], 0  ;;  %s6840_s18 = smov 0   ;;  %s6842_s19 = smov 0  }
   0x2   :  { %s6844_s20 = smov 0   ;;  %s6846_s21 = smov 0  }
   0x3 LB: > { %s6861_s22 = sadd.s32 4294967295, %s6802_s21   ;;  %s4223_s23 = sadd.s32 4294967294, %s6802_s21   ;;  %s6802_s21 = sphi %s6846_s21, %s9159_s21   ;;  %s6798_s20 = sphi %s6844_s20, %s9158_s20   ;;  %s6794_s19 = sphi %s6842_s19, %s9157_s19   ;;  %s6790_s18 = sphi %s6840_s18, %s9156_s18  }
   0x4   : > { %s6865_s24 = sadd.s32 1, %s6802_s21   ;;  %s135_s25 = sadd.s32 1, %s6798_s20 }
   0x5   : > { %s132_s26 = ssub.s32 %s6802_s21, %s6865_s24  ;;  %p145_p0 = scmp.ne.s32.totalorder %s6798_s20, %s6794_s19 }
   0x6   : > { %p133_p1 = scmp.eq.s32.totalorder %s132_s26, 0  ;;  %p146_p2 = scmp.eq.s32.totalorder %s6861_s22, 1 }
   0x7   : > { %p151_p3 = scmp.ne.s32.totalorder %s6794_s19, %s6790_s18  ;;  %p152_p4 = scmp.eq.s32.totalorder %s4223_s23, 1 }
   0x8   : > { %s6876_s27 = scalar_select %p133_p1, %s6798_s20, %s135_s25  }
   0x9   : > { %p6878_p5 = por %p146_p2, %p145_p0  ;;  %p6882_p6 = por %p152_p4, %p151_p3 }
   0xa   : > { %p4226_p7 = scmp.ge.s32.totalorder %s6802_s21, 1  ;;  %p190_p8 = scmp.lt.s32.totalorder %s6802_s21, 3 }
   0xc   : > { %p191_p9 = pnand %p4226_p7, %p190_p8 }
   0xe   : > { %194 = sbr.rel (%p191_p9) target bundleno = 2309 (0x905), region = 40 }
  0x15   : > { %v239_v0 = vld [vmem:[%s8894_s1 + $0x80] sm:$0xff]  ;;  %v240_v1 = vld [vmem:[%s8894_s1 + $0x88] sm:$0xff]  ;;  %v241_v11 = vld [vmem:[%s8894_s1 + $0x90] sm:$0xff]  ;;  %p218_p10 = scmp.lt.s32.totalorder %s6861_s22, 1  ;;  %vm6805_vm0 = vmmov 0   ;;  %vm899_vm1 = vcmask 523264  }
  0x16   : > { %v223_v2 = vld [vmem:[%s8894_s1] sm:$0xff]  ;;  %v6897_v3 = vpack.c.bf16 %v240_v1, %v239_v0  ;;  %v224_v4 = vld [vmem:[%s8894_s1 + $0x8] sm:$0xff]  ;;  %v242_v13 = vld [vmem:[%s8894_s1 + $0x98] sm:$0xff]  ;;  %vm1716_vm2 = vcmask 392192   ;;  %s215_s7 = sand.u32 1, %s6794_s19   ;;  %vm4117_vm3 = vcmask 588800  }
  0x17   : > { %v271_v5 = vld [vmem:[%s8894_s1 + $0x180] sm:$0xff]  ;;  %v272_v6 = vld [vmem:[%s8894_s1 + $0x188] sm:$0xff]  ;;  %v6908_v7 = vpack.c.bf16 %v224_v4, %v223_v2  ;;  %v225_v14 = vld [vmem:[%s8894_s1 + $0x10] sm:$0xff]  ;;  %v6935_v16 = vpack.c.bf16 %v242_v13, %v241_v11  ;;  %s7032_s9 = scalar_select %p218_p10, %s6861_s22, 1 }
  0x18   : > { %v6910_v8 = vpack.c.bf16 %v272_v6, %v271_v5  ;;  %v255_v9 = vld [vmem:[%s8894_s1 + $0x100] sm:$0xff]  ;;  %v256_v10 = vld [vmem:[%s8894_s1 + $0x108] sm:$0xff]  ;;  %5799 = vmatprep.subr.bf16.mxu0 %v6897_v3  ;;  %v226_v15 = vld [vmem:[%s8894_s1 + $0x18] sm:$0xff]  ;;  %s6555_s8 = smul.u32 216, %s215_s7  ;;  %s6807_s25 = smov [#allocation2]  }
  0x19   : > { %v6922_v12 = vpack.c.bf16 %v256_v10, %v255_v9  ;;  %5801 = vmatpush3.bf16.msra.mxu0 %v6908_v7  ;;  %v6937_v17 = vpack.c.bf16 %v226_v15, %v225_v14  ;;  %v273_v18 = vld [vmem:[%s8894_s1 + $0x190] sm:$0xff]  ;;  %v274_v19 = vld [vmem:[%s8894_s1 + $0x198] sm:$0xff]  ;;  %v243_v23 = vld [vmem:[%s8894_s1 + $0xa0] sm:$0xff]  ;;  %s4445_s15 = sshll.u32 %s7032_s9, 11  ;;  %s6556_s11 = smul.u32 3456, %s6861_s22 }
  0x1a   : > { %5831 = vmatprep.subr.bf16.mxu1 %v6910_v8  ;;  %v257_v20 = vld [vmem:[%s8894_s1 + $0x110] sm:$0xff]  ;;  %v6949_v21 = vpack.c.bf16 %v274_v19, %v273_v18  ;;  %v258_v22 = vld [vmem:[%s8894_s1 + $0x118] sm:$0xff]  ;;  %v244_v24 = vld [vmem:[%s8894_s1 + $0xa8] sm:$0xff]  ;;  %5803 = vmatprep.subr.bf16.mxu0 %v6935_v16  ;;  %s7110_s14 = scalar_lea.vmem %s8893_s0, %s4445_s15  ;;  %s8784_s10 = scalar_lea.vmem [#allocation2], %s6555_s8 }
  0x1b   : > { %5833 = vmatpush3.bf16.msra.mxu1 %v6922_v12  ;;  %v6961_v25 = vpack.c.bf16 %v258_v22, %v257_v20  ;;  %v6963_v26 = vpack.c.bf16 %v244_v24, %v243_v23  ;;  %v227_v27 = vld [vmem:[%s8894_s1 + $0x20] sm:$0xff]  ;;  %v228_v28 = vld [vmem:[%s8894_s1 + $0x28] sm:$0xff]  ;;  %v245_v35 = vld [vmem:[%s8894_s1 + $0xb0] sm:$0xff]  ;;  %s4161_s12 = sshll.u32 %s8784_s10, 4  ;;  %s8843_s17 = scalar_lea.hbm %s8898_s5, %s6556_s11  ;;  %s8845_s12 = int_to_ptr.vmem [resolvable:$true] %s4161_s12 }
  0x1c   : > { %v275_v29 = vld [vmem:[%s8894_s1 + $0x1a0] sm:$0xff]  ;;  %5835 = vmatprep.subr.bf16.mxu1 %v6949_v21  ;;  %v276_v30 = vld [vmem:[%s8894_s1 + $0x1a8] sm:$0xff]  ;;  %v6986_v33 = vpack.c.bf16 %v228_v28, %v227_v27  ;;  %v246_v36 = vld [vmem:[%s8894_s1 + $0xb8] sm:$0xff]  ;;  %s8852_s22 = scalar_lea.sflag [#allocation3], %s215_s7  ;;  %s6740_s23 = scalar_lea.vmem %s8845_s12, 3456 }
  0x1d   : > { %v259_v31 = vld [vmem:[%s8894_s1 + $0x120] sm:$0xff]  ;;  %v260_v32 = vld [vmem:[%s8894_s1 + $0x128] sm:$0xff]  ;;  %5805 = vmatpush3.bf16.msra.mxu0 %v6937_v17  ;;  %v6988_v34 = vpack.c.bf16 %v276_v30, %v275_v29  ;;  %v229_v37 = vld [vmem:[%s8894_s1 + $0x30] sm:$0xff]  ;;  %v7003_v39 = vpack.c.bf16 %v246_v36, %v245_v35  ;;  %p6741_p11 = scmp.ne.s32.totalorder %s8845_s12, %s6740_s23  ;;  %s6744_s9 = sshll.u32 %s6807_s25, 4  ;;  %s6745_s9 = int_to_ptr.vmem [resolvable:$false] %s6744_s9 }
  0x1e   : > { %5807 = vmatprep.subr.bf16.mxu0 %v6963_v26  ;;  %v7001_v38 = vpack.c.bf16 %v260_v32, %v259_v31  ;;  %v230_v40 = vld [vmem:[%s8894_s1 + $0x38] sm:$0xff]  ;;  %v277_v41 = vld [vmem:[%s8894_s1 + $0x1b0] sm:$0xff]  ;;  %v247_v46 = vld [vmem:[%s8894_s1 + $0xc0] sm:$0xff]  ;;  %s6746_s26 = scalar_lea.vmem %s6745_s9, 6912  ;;  %p6747_p0 = scmp.lt.s32.totalorder %s8845_s12, %s6745_s9 }
  0x1f   : > { %5837 = vmatpush3.bf16.msra.mxu1 %v6961_v25  ;;  %v278_v42 = vld [vmem:[%s8894_s1 + $0x1b8] sm:$0xff]  ;;  %v261_v44 = vld [vmem:[%s8894_s1 + $0x130] sm:$0xff]  ;;  %v248_v47 = vld [vmem:[%s8894_s1 + $0xc8] sm:$0xff]  ;;  %v7035_v48 = vpack.c.bf16 %v230_v40, %v229_v37  ;;  %p6742_p12 = pnand %p6741_p11, %p6878_p5  ;;  %p6748_p1 = scmp.lt.s32.totalorder %s6746_s26, %s6740_s23 }
  0x20   : > { %5839 = vmatprep.subr.bf16.mxu1 %v6988_v34  ;;  %v7015_v43 = vpack.c.bf16 %v278_v42, %v277_v41  ;;  %v262_v45 = vld [vmem:[%s8894_s1 + $0x138] sm:$0xff]  ;;  %v279_v49 = vld [vmem:[%s8894_s1 + $0x1c0] sm:$0xff]  ;;  %v280_v50 = vld [vmem:[%s8894_s1 + $0x1c8] sm:$0xff]  ;;  %v7047_v52 = vpack.c.bf16 %v248_v47, %v247_v46 }
  0x21   : > { %5809 = vmatpush3.bf16.msra.mxu0 %v6986_v33  ;;  %v7045_v51 = vpack.c.bf16 %v262_v45, %v261_v44  ;;  %v231_v53 = vld [vmem:[%s8894_s1 + $0x40] sm:$0xff]  ;;  %v232_v54 = vld [vmem:[%s8894_s1 + $0x48] sm:$0xff]  ;;  %v7059_v56 = vpack.c.bf16 %v280_v50, %v279_v49  ;;  %v249_v58 = vld [vmem:[%s8894_s1 + $0xd0] sm:$0xff]  ;;  %p6743_p13 = pneg %p6742_p12  ;;  %p6749_p2 = por %p6748_p1, %p6747_p0 }
  0x22   : > { %5811 = vmatprep.subr.bf16.mxu0 %v7003_v39  ;;  %9006 = vst [vmem:[#allocation5_spill] sm:$0xff] %v7047_v52  ;;  %v263_v55 = vld [vmem:[%s8894_s1 + $0x140] sm:$0xff]  ;;  %v264_v57 = vld [vmem:[%s8894_s1 + $0x148] sm:$0xff]  ;;  %v250_v59 = vld [vmem:[%s8894_s1 + $0xd8] sm:$0xff]  ;;  %v7078_v62 = vpack.c.bf16 %v232_v54, %v231_v53 }
  0x23   : > { %5841 = vmatpush3.bf16.msra.mxu1 %v7001_v38  ;;  %9007 = vst [vmem:[#allocation6_spill] sm:$0xff] %v7059_v56  ;;  %v281_v60 = vld [vmem:[%s8894_s1 + $0x1d0] sm:$0xff]  ;;  %v282_v61 = vld [vmem:[%s8894_s1 + $0x1d8] sm:$0xff]  ;;  %v7082_v63 = vpack.c.bf16 %v264_v57, %v263_v55  ;;  %v7084_v0 = vpack.c.bf16 %v250_v59, %v249_v58  ;;  %v251_v9 = vld [vmem:[%s8894_s1 + $0xe0] sm:$0xff]  ;;  %p6750_p3 = pnand %p6749_p2, %p6743_p13 }
  0x24   : > { %5843 = vmatprep.subr.bf16.mxu1 %v7015_v43  ;;  %9008 = vst [vmem:[#allocation7_spill] sm:$0xff] %v7078_v62  ;;  %v233_v1 = vld [vmem:[%s8894_s1 + $0x50] sm:$0xff]  ;;  %v234_v2 = vld [vmem:[%s8894_s1 + $0x58] sm:$0xff]  ;;  %v7096_v5 = vpack.c.bf16 %v282_v61, %v281_v60  ;;  %v252_v10 = vld [vmem:[%s8894_s1 + $0xe8] sm:$0xff] }
  0x25   : > { %5813 = vmatpush3.bf16.msra.mxu0 %v7035_v48  ;;  %9009 = vst [vmem:[#allocation8_spill] sm:$0xff] %v7082_v63  ;;  %9010 = vst [vmem:[#allocation9_spill] sm:$0xff] %v7084_v0  ;;  %v265_v4 = vld [vmem:[%s8894_s1 + $0x150] sm:$0xff]  ;;  %v266_v6 = vld [vmem:[%s8894_s1 + $0x158] sm:$0xff]  ;;  %v7119_v14 = vpack.c.bf16 %v234_v2, %v233_v1  ;;  %v7131_v20 = vpack.c.bf16 %v252_v10, %v251_v9 }
  0x26   : > { %5815 = vmatprep.subr.bf16.mxu0 %v7047_v52  ;;  %9011 = vst [vmem:[#allocation10_spill] sm:$0xff] %v7096_v5  ;;  %v283_v11 = vld [vmem:[%s8894_s1 + $0x1e0] sm:$0xff]  ;;  %v284_v13 = vld [vmem:[%s8894_s1 + $0x1e8] sm:$0xff]  ;;  %v7129_v19 = vpack.c.bf16 %v266_v6, %v265_v4  ;;  %v253_v28 = vld [vmem:[%s8894_s1 + $0xf0] sm:$0xff] }
  0x27   : > { %5845 = vmatpush3.bf16.msra.mxu1 %v7045_v51  ;;  %9012 = vst [vmem:[#allocation11_spill] sm:$0xff] %v7119_v14  ;;  %v235_v15 = vld [vmem:[%s8894_s1 + $0x60] sm:$0xff]  ;;  %v236_v18 = vld [vmem:[%s8894_s1 + $0x68] sm:$0xff]  ;;  %9014 = vst [vmem:[#allocation13_spill] sm:$0xff] %v7131_v20  ;;  %v7141_v27 = vpack.c.bf16 %v284_v13, %v283_v11 }
  0x28   : > { %5847 = vmatprep.subr.bf16.mxu1 %v7059_v56  ;;  %9013 = vst [vmem:[#allocation12_spill] sm:$0xff] %v7129_v19  ;;  %v267_v22 = vld [vmem:[%s8894_s1 + $0x160] sm:$0xff]  ;;  %v268_v23 = vld [vmem:[%s8894_s1 + $0x168] sm:$0xff]  ;;  %v254_v29 = vld [vmem:[%s8894_s1 + $0xf8] sm:$0xff]  ;;  %v7157_v35 = vpack.c.bf16 %v236_v18, %v235_v15 }
  0x29   : > { %5817 = vmatpush3.bf16.msra.mxu0 %v7078_v62  ;;  %v362_v24 = vld [vmem:[%s7110_s14 + $0x8] sm:$0xff]  ;;  %9015 = vst [vmem:[#allocation14_spill] sm:$0xff] %v7141_v27  ;;  %v364_v30 = vld [vmem:[%s7110_s14 + $0x18] sm:$0xff]  ;;  %v285_v31 = vld [vmem:[%s8894_s1 + $0x1f0] sm:$0xff]  ;;  %v7161_v36 = vpack.c.bf16 %v268_v23, %v267_v22  ;;  %v7163_v37 = vpack.c.bf16 %v254_v29, %v253_v28 }
  0x2a   : > { %5819 = vmatprep.subr.bf16.mxu0 %v7084_v0  ;;  %495 = vmatprep.mubr.f32.mxu0 %v362_v24  ;;  %v286_v32 = vld [vmem:[%s8894_s1 + $0x1f8] sm:$0xff]  ;;  %9016 = vst [vmem:[#allocation15_spill] sm:$0xff] %v7157_v35  ;;  %v237_v40 = vld [vmem:[%s8894_s1 + $0x70] sm:$0xff]  ;;  %v303_v46 = vld [vmem:[%s8894_s1 + $0x280] sm:$0xff] }
  0x2b   : > { %5849 = vmatpush3.bf16.msra.mxu1 %v7082_v63  ;;  %600 = vmatprep.mubr.f32.mxu1 %v364_v30  ;;  %9017 = vst [vmem:[#allocation16_spill] sm:$0xff] %v7161_v36  ;;  %9018 = vst [vmem:[#allocation17_spill] sm:$0xff] %v7163_v37  ;;  %v238_v41 = vld [vmem:[%s8894_s1 + $0x78] sm:$0xff]  ;;  %v269_v42 = vld [vmem:[%s8894_s1 + $0x170] sm:$0xff]  ;;  %v7175_v44 = vpack.c.bf16 %v286_v32, %v285_v31 }
  0x2c   : > { %5851 = vmatprep.subr.bf16.mxu1 %v7096_v5  ;;  %v270_v45 = vld [vmem:[%s8894_s1 + $0x178] sm:$0xff]  ;;  %v304_v47 = vld [vmem:[%s8894_s1 + $0x288] sm:$0xff]  ;;  %v335_v49 = vld [vmem:[%s8894_s1 + $0x380] sm:$0xff]  ;;  %v7193_v53 = vpack.c.bf16 %v238_v41, %v237_v40 }
  0x2d   : > { %5821 = vmatpush3.bf16.msra.mxu0 %v7119_v14  ;;  %9019 = vst [vmem:[#allocation18_spill] sm:$0xff] %v7175_v44  ;;  %v336_v50 = vld [vmem:[%s8894_s1 + $0x388] sm:$0xff]  ;;  %v7197_v54 = vpack.c.bf16 %v270_v45, %v269_v42  ;;  %v7199_v55 = vpack.c.bf16 %v304_v47, %v303_v46  ;;  %v287_v57 = vld [vmem:[%s8894_s1 + $0x200] sm:$0xff]  ;;  %v305_v1 = vld [vmem:[%s8894_s1 + $0x290] sm:$0xff] }
  0x2e   : > { %5823 = vmatprep.subr.bf16.mxu0 %v7131_v20  ;;  %9020 = vst [vmem:[#allocation19_spill] sm:$0xff] %v7193_v53  ;;  %v288_v58 = vld [vmem:[%s8894_s1 + $0x208] sm:$0xff]  ;;  %v7208_v59 = vpack.c.bf16 %v336_v50, %v335_v49  ;;  %v319_v60 = vld [vmem:[%s8894_s1 + $0x300] sm:$0xff]  ;;  %v306_v2 = vld [vmem:[%s8894_s1 + $0x298] sm:$0xff] }
  0x2f   : > { %5853 = vmatpush3.bf16.msra.mxu1 %v7129_v19  ;;  %9021 = vst [vmem:[#allocation20_spill] sm:$0xff] %v7197_v54  ;;  %9022 = vst [vmem:[#allocation21_spill] sm:$0xff] %v7199_v55  ;;  %v320_v61 = vld [vmem:[%s8894_s1 + $0x308] sm:$0xff]  ;;  %v361_v4 = vld [vmem:[%s7110_s14] sm:$0xff]  ;;  %v7224_v6 = vpack.c.bf16 %v288_v58, %v287_v57  ;;  %v7245_v23 = vpack.c.bf16 %v306_v2, %v305_v1 }
  0x30   : > { %5855 = vmatprep.subr.bf16.mxu1 %v7141_v27  ;;  %9023 = vst [vmem:[#allocation22_spill] sm:$0xff] %v7208_v59  ;;  %v337_v9 = vld [vmem:[%s8894_s1 + $0x390] sm:$0xff]  ;;  %v338_v10 = vld [vmem:[%s8894_s1 + $0x398] sm:$0xff]  ;;  %v7235_v13 = vpack.c.bf16 %v320_v61, %v319_v60  ;;  %v370_v22 = vld [vmem:[%s7110_s14 + $0x108] sm:$0xff] }
  0x31   : > { %5825 = vmatpush3.bf16.msra.mxu0 %v7157_v35  ;;  %9024 = vst [vmem:[#allocation23_spill] sm:$0xff] %v7224_v6  ;;  %v363_v11 = vld [vmem:[%s7110_s14 + $0x10] sm:$0xff]  ;;  %v290_v18 = vld [vmem:[%s8894_s1 + $0x218] sm:$0xff]  ;;  %9026 = vst [vmem:[#allocation25_spill] sm:$0xff] %v7245_v23  ;;  %v7254_v30 = vpack.c.bf16 %v338_v10, %v337_v9 }
  0x32   : > { %5827 = vmatprep.subr.bf16.mxu0 %v7163_v37  ;;  %9025 = vst [vmem:[#allocation24_spill] sm:$0xff] %v7235_v13  ;;  %v289_v15 = vld [vmem:[%s8894_s1 + $0x210] sm:$0xff]  ;;  %v322_v28 = vld [vmem:[%s8894_s1 + $0x318] sm:$0xff]  ;;  %v307_v31 = vld [vmem:[%s8894_s1 + $0x2a0] sm:$0xff] }
  0x33   : > { %5857 = vmatpush3.bf16.msra.mxu1 %v7161_v36  ;;  %v321_v24 = vld [vmem:[%s8894_s1 + $0x310] sm:$0xff]  ;;  %v372_v29 = vld [vmem:[%s7110_s14 + $0x118] sm:$0xff]  ;;  %9027 = vst [vmem:[#allocation26_spill] sm:$0xff] %v7254_v30  ;;  %v308_v32 = vld [vmem:[%s8894_s1 + $0x2a8] sm:$0xff]  ;;  %v7264_v41 = vpack.c.bf16 %v290_v18, %v289_v15 }
  0x34   : > { %5859 = vmatprep.subr.bf16.mxu1 %v7175_v44  ;;  %v369_v40 = vld [vmem:[%s7110_s14 + $0x100] sm:$0xff]  ;;  %v340_v45 = vld [vmem:[%s8894_s1 + $0x3a8] sm:$0xff]  ;;  %v371_v46 = vld [vmem:[%s7110_s14 + $0x110] sm:$0xff]  ;;  %v7274_v47 = vpack.c.bf16 %v322_v28, %v321_v24  ;;  %v7284_v58 = vpack.c.bf16 %v308_v32, %v307_v31 }
  0x35   : > { %5829 = vmatpush3.bf16.msra.mxu0 %v7193_v53  ;;  %9028 = vst [vmem:[#allocation27_spill] sm:$0xff] %v7264_v41  ;;  %v339_v42 = vld [vmem:[%s8894_s1 + $0x3a0] sm:$0xff]  ;;  %v292_v50 = vld [vmem:[%s8894_s1 + $0x228] sm:$0xff]  ;;  %v380_v1 = vld [vmem:[%s7110_s14 + $0x218] sm:$0xff] }
  0x36   : > { %5863 = vmatprep.subr.bf16.mxu0 %v7199_v55  ;;  %9029 = vst [vmem:[#allocation28_spill] sm:$0xff] %v7274_v47  ;;  %v291_v49 = vld [vmem:[%s8894_s1 + $0x220] sm:$0xff]  ;;  %v378_v57 = vld [vmem:[%s7110_s14 + $0x208] sm:$0xff]  ;;  %9030 = vst [vmem:[#allocation29_spill] sm:$0xff] %v7284_v58  ;;  %v7294_v2 = vpack.c.bf16 %v340_v45, %v339_v42 }
  0x37   : > { %5861 = vmatpush3.bf16.msra.mxu1 %v7197_v54  ;;  %v323_v60 = vld [vmem:[%s8894_s1 + $0x320] sm:$0xff]  ;;  %v324_v61 = vld [vmem:[%s8894_s1 + $0x328] sm:$0xff]  ;;  %v310_v9 = vld [vmem:[%s8894_s1 + $0x2b8] sm:$0xff] }
  0x38   : > { %5895 = vmatprep.subr.bf16.mxu1 %v7208_v59  ;;  %496 = vmatmul.mubr.f32.vlgmr.msra.gmra.mrb[0].mxu0 %v361_v4  ;;  %9031 = vst [vmem:[#allocation30_spill] sm:$0xff] %v7294_v2  ;;  %v309_v4 = vld [vmem:[%s8894_s1 + $0x2b0] sm:$0xff]  ;;  %v377_v10 = vld [vmem:[%s7110_s14 + $0x200] sm:$0xff]  ;;  %v342_v18 = vld [vmem:[%s8894_s1 + $0x3b8] sm:$0xff]  ;;  %v7314_v24 = vpack.c.bf16 %v324_v61, %v323_v60 }
  0x39   : > { %5865 = vmatpush3.bf16.msra.mxu0 %v7224_v6  ;;  %500 = vmatprep.mubr.f32.mxu0 %v370_v22  ;;  %v341_v15 = vld [vmem:[%s8894_s1 + $0x3b0] sm:$0xff]  ;;  %v386_v31 = vld [vmem:[%s7110_s14 + $0x308] sm:$0xff]  ;;  %v7324_v32 = vpack.c.bf16 %v310_v9, %v309_v4  ;;  %v326_v42 = vld [vmem:[%s8894_s1 + $0x338] sm:$0xff] }
  0x3a   : > { %601 = vmatmul.mubr.f32.vlgmr.msra.gmra.mrb[0].mxu1 %v363_v11  ;;  %5867 = vmatprep.subr.bf16.mxu0 %v7245_v23  ;;  %v7304_v11 = vpack.c.bf16 %v292_v50, %v291_v49  ;;  %v379_v22 = vld [vmem:[%s7110_s14 + $0x210] sm:$0xff]  ;;  %9033 = vst [vmem:[#allocation32_spill] sm:$0xff] %v7314_v24  ;;  %v388_v45 = vld [vmem:[%s7110_s14 + $0x318] sm:$0xff]  ;;  %v311_v49 = vld [vmem:[%s8894_s1 + $0x2c0] sm:$0xff] }
  0x3b   : > { %5897 = vmatpush3.bf16.msra.mxu1 %v7235_v13  ;;  %605 = vmatprep.mubr.f32.mxu1 %v372_v29  ;;  %v293_v28 = vld [vmem:[%s8894_s1 + $0x230] sm:$0xff]  ;;  %v294_v29 = vld [vmem:[%s8894_s1 + $0x238] sm:$0xff]  ;;  %9034 = vst [vmem:[#allocation33_spill] sm:$0xff] %v7324_v32  ;;  %v312_v50 = vld [vmem:[%s8894_s1 + $0x2c8] sm:$0xff] }
  0x3c   : > { %501 = vmatmul.mubr.f32.gmra.mrb[2].mxu0 %v369_v40  ;;  %5899 = vmatprep.subr.bf16.mxu1 %v7254_v30  ;;  %9032 = vst [vmem:[#allocation31_spill] sm:$0xff] %v7304_v11  ;;  %v325_v40 = vld [vmem:[%s8894_s1 + $0x330] sm:$0xff]  ;;  %v7344_v60 = vpack.c.bf16 %v294_v29, %v293_v28  ;;  %v343_v61 = vld [vmem:[%s8894_s1 + $0x3c0] sm:$0xff]  ;;  %v328_v29 = vld [vmem:[%s8894_s1 + $0x348] sm:$0xff] }
  0x3d   : > { %5869 = vmatpush3.bf16.msra.mxu0 %v7264_v41  ;;  %505 = vmatprep.mubr.f32.mxu0 %v378_v57  ;;  %v385_v57 = vld [vmem:[%s7110_s14 + $0x300] sm:$0xff]  ;;  %v387_v4 = vld [vmem:[%s7110_s14 + $0x310] sm:$0xff]  ;;  %v7354_v9 = vpack.c.bf16 %v326_v42, %v325_v40 }
  0x3e   : > { %606 = vmatmul.mubr.f32.gmra.mrb[2].mxu1 %v371_v46  ;;  %5871 = vmatprep.subr.bf16.mxu0 %v7284_v58  ;;  %v7334_v46 = vpack.c.bf16 %v342_v18, %v341_v15  ;;  %9036 = vst [vmem:[#allocation35_spill] sm:$0xff] %v7344_v60  ;;  %v296_v15 = vld [vmem:[%s8894_s1 + $0x248] sm:$0xff]  ;;  %v327_v28 = vld [vmem:[%s8894_s1 + $0x340] sm:$0xff]  ;;  %v313_v42 = vld [vmem:[%s8894_s1 + $0x2d0] sm:$0xff] }
  0x3f   : > { %5901 = vmatpush3.bf16.msra.mxu1 %v7274_v47  ;;  %610 = vmatprep.mubr.f32.mxu1 %v380_v1  ;;  %v344_v1 = vld [vmem:[%s8894_s1 + $0x3c8] sm:$0xff]  ;;  %9037 = vst [vmem:[#allocation36_spill] sm:$0xff] %v7354_v9 }
  0x40   : > { %506 = vmatmul.mubr.f32.gmra.mrb[4].mxu0 %v377_v10  ;;  %5903 = vmatprep.subr.bf16.mxu1 %v7294_v2  ;;  %9035 = vst [vmem:[#allocation34_spill] sm:$0xff] %v7334_v46  ;;  %v295_v10 = vld [vmem:[%s8894_s1 + $0x240] sm:$0xff]  ;;  %v394_v18 = vld [vmem:[%s7110_s14 + $0x408] sm:$0xff]  ;;  %v7374_v40 = vpack.c.bf16 %v344_v1, %v343_v61  ;;  %v346_v61 = vld [vmem:[%s8894_s1 + $0x3d8] sm:$0xff] }
  0x41   : > { %5873 = vmatpush3.bf16.msra.mxu0 %v7304_v11  ;;  %510 = vmatprep.mubr.f32.mxu0 %v386_v31  ;;  %v396_v31 = vld [vmem:[%s7110_s14 + $0x418] sm:$0xff]  ;;  %v395_v1 = vld [vmem:[%s7110_s14 + $0x410] sm:$0xff] }
  0x42   : > { %611 = vmatmul.mubr.f32.gmra.mrb[4].mxu1 %v379_v22  ;;  %5875 = vmatprep.subr.bf16.mxu0 %v7324_v32  ;;  %v7364_v22 = vpack.c.bf16 %v312_v50, %v311_v49  ;;  %9039 = vst [vmem:[#allocation38_spill] sm:$0xff] %v7374_v40  ;;  %v393_v49 = vld [vmem:[%s7110_s14 + $0x400] sm:$0xff]  ;;  %v7384_v50 = vpack.c.bf16 %v296_v15, %v295_v10  ;;  %v298_v10 = vld [vmem:[%s8894_s1 + $0x258] sm:$0xff]  ;;  %v402_v15 = vld [vmem:[%s7110_s14 + $0x508] sm:$0xff] }
  0x43   : > { %5905 = vmatpush3.bf16.msra.mxu1 %v7314_v24  ;;  %615 = vmatprep.mubr.f32.mxu1 %v388_v45  ;;  %v314_v45 = vld [vmem:[%s8894_s1 + $0x2d8] sm:$0xff]  ;;  %v7394_v32 = vpack.c.bf16 %v328_v29, %v327_v28 }
  0x44   : > { %9038 = vst [vmem:[#allocation37_spill] sm:$0xff] %v7364_v22  ;;  %511 = vmatmul.mubr.f32.gmra.mrb[6].mxu0 %v385_v57  ;;  %5907 = vmatprep.subr.bf16.mxu1 %v7334_v46  ;;  %9040 = vst [vmem:[#allocation39_spill] sm:$0xff] %v7384_v50  ;;  %v345_v57 = vld [vmem:[%s8894_s1 + $0x3d0] sm:$0xff]  ;;  %v330_v28 = vld [vmem:[%s8894_s1 + $0x358] sm:$0xff] }
  0x45   : > { %5877 = vmatpush3.bf16.msra.mxu0 %v7344_v60  ;;  %515 = vmatprep.mubr.f32.mxu0 %v394_v18  ;;  %9041 = vst [vmem:[#allocation40_spill] sm:$0xff] %v7394_v32  ;;  %v7404_v60 = vpack.c.bf16 %v314_v45, %v313_v42  ;;  %v329_v18 = vld [vmem:[%s8894_s1 + $0x350] sm:$0xff]  ;;  %v404_v29 = vld [vmem:[%s7110_s14 + $0x518] sm:$0xff]  ;;  %v7414_v11 = vpack.c.bf16 %v346_v61, %v345_v57  ;;  %v316_v42 = vld [vmem:[%s8894_s1 + $0x2e8] sm:$0xff] }
  0x46   : > { %616 = vmatmul.mubr.f32.gmra.mrb[6].mxu1 %v387_v4  ;;  %v297_v4 = vld [vmem:[%s8894_s1 + $0x250] sm:$0xff]  ;;  %5879 = vmatprep.subr.bf16.mxu0 %v7364_v22  ;;  %v401_v45 = vld [vmem:[%s7110_s14 + $0x500] sm:$0xff]  ;;  %v348_v57 = vld [vmem:[%s8894_s1 + $0x3e8] sm:$0xff]  ;;  %v7434_v58 = vpack.c.bf16 %v330_v28, %v329_v18 }
  0x47   : > { %5909 = vmatpush3.bf16.msra.mxu1 %v7354_v9  ;;  %620 = vmatprep.mubr.f32.mxu1 %v396_v31  ;;  %9042 = vst [vmem:[#allocation41_spill] sm:$0xff] %v7404_v60  ;;  %9043 = vst [vmem:[#allocation42_spill] sm:$0xff] %v7414_v11  ;;  %v315_v31 = vld [vmem:[%s8894_s1 + $0x2e0] sm:$0xff]  ;;  %v7424_v22 = vpack.c.bf16 %v298_v10, %v297_v4  ;;  %v403_v61 = vld [vmem:[%s7110_s14 + $0x510] sm:$0xff] }
  0x48   : > { %516 = vmatmul.mubr.f32.gmra.mrb[8].mxu0 %v393_v49  ;;  %5911 = vmatprep.subr.bf16.mxu1 %v7374_v40  ;;  %v347_v49 = vld [vmem:[%s8894_s1 + $0x3e0] sm:$0xff]  ;;  %9045 = vst [vmem:[#allocation44_spill] sm:$0xff] %v7434_v58  ;;  %v300_v4 = vld [vmem:[%s8894_s1 + $0x268] sm:$0xff]  ;;  %v412_v28 = vld [vmem:[%s7110_s14 + $0x618] sm:$0xff] }
  0x49   : > { %5881 = vmatpush3.bf16.msra.mxu0 %v7384_v50  ;;  %9044 = vst [vmem:[#allocation43_spill] sm:$0xff] %v7424_v22  ;;  %520 = vmatprep.mubr.f32.mxu0 %v402_v15  ;;  %v410_v10 = vld [vmem:[%s7110_s14 + $0x608] sm:$0xff]  ;;  %v7444_v50 = vpack.c.bf16 %v316_v42, %v315_v31  ;;  %v331_v15 = vld [vmem:[%s8894_s1 + $0x360] sm:$0xff]  ;;  %v7454_v41 = vpack.c.bf16 %v348_v57, %v347_v49  ;;  %v318_v31 = vld [vmem:[%s8894_s1 + $0x2f8] sm:$0xff] }
  0x4a   : > { %621 = vmatmul.mubr.f32.gmra.mrb[8].mxu1 %v395_v1  ;;  %v299_v1 = vld [vmem:[%s8894_s1 + $0x260] sm:$0xff]  ;;  %5883 = vmatprep.subr.bf16.mxu0 %v7404_v60  ;;  %v332_v18 = vld [vmem:[%s8894_s1 + $0x368] sm:$0xff]  ;;  %v350_v49 = vld [vmem:[%s8894_s1 + $0x3f8] sm:$0xff] }
  0x4b   : > { %5913 = vmatpush3.bf16.msra.mxu1 %v7394_v32  ;;  %625 = vmatprep.mubr.f32.mxu1 %v404_v29  ;;  %9046 = vst [vmem:[#allocation45_spill] sm:$0xff] %v7444_v50  ;;  %9047 = vst [vmem:[#allocation46_spill] sm:$0xff] %v7454_v41  ;;  %v317_v29 = vld [vmem:[%s8894_s1 + $0x2f0] sm:$0xff]  ;;  %v409_v42 = vld [vmem:[%s7110_s14 + $0x600] sm:$0xff]  ;;  %v7464_v60 = vpack.c.bf16 %v300_v4, %v299_v1 }
  0x4c   : > { %521 = vmatmul.mubr.f32.gmra.mrb[10].mxu0 %v401_v45  ;;  %5915 = vmatprep.subr.bf16.mxu1 %v7414_v11  ;;  %v349_v45 = vld [vmem:[%s8894_s1 + $0x3f0] sm:$0xff]  ;;  %v302_v4 = vld [vmem:[%s8894_s1 + $0x278] sm:$0xff]  ;;  %v7484_v23 = vpack.c.bf16 %v318_v31, %v317_v29  ;;  %v417_v29 = vld [vmem:[%s7110_s14 + $0x700] sm:$0xff] }
  0x4d   : > { %5885 = vmatpush3.bf16.msra.mxu0 %v7424_v22  ;;  %9048 = vst [vmem:[#allocation47_spill] sm:$0xff] %v7464_v60  ;;  %525 = vmatprep.mubr.f32.mxu0 %v410_v10  ;;  %v411_v57 = vld [vmem:[%s7110_s14 + $0x610] sm:$0xff]  ;;  %v418_v22 = vld [vmem:[%s7110_s14 + $0x708] sm:$0xff] }
  0x4e   : > { %626 = vmatmul.mubr.f32.gmra.mrb[10].mxu1 %v403_v61  ;;  %v7474_v61 = vpack.c.bf16 %v332_v18, %v331_v15  ;;  %v301_v1 = vld [vmem:[%s8894_s1 + $0x270] sm:$0xff]  ;;  %5887 = vmatprep.subr.bf16.mxu0 %v7444_v50  ;;  %9050 = vst [vmem:[#allocation49_spill] sm:$0xff] %v7484_v23  ;;  %v334_v15 = vld [vmem:[%s8894_s1 + $0x378] sm:$0xff] }
  0x4f   : > { %5917 = vmatpush3.bf16.msra.mxu1 %v7434_v58  ;;  %630 = vmatprep.mubr.f32.mxu1 %v412_v28  ;;  %v333_v10 = vld [vmem:[%s8894_s1 + $0x370] sm:$0xff]  ;;  %v420_v18 = vld [vmem:[%s7110_s14 + $0x718] sm:$0xff]  ;;  %v7494_v28 = vpack.c.bf16 %v350_v49, %v349_v45  ;;  %v7498_v31 = vpack.c.bf16 %v302_v4, %v301_v1  ;;  %v366_v45 = vld [vmem:[%s7110_s14 + $0x28] sm:$0xff] }
  0x50   : > { %9049 = vst [vmem:[#allocation48_spill] sm:$0xff] %v7474_v61  ;;  %526 = vmatmul.mubr.f32.gmra.mrb[12].mxu0 %v409_v42  ;;  %5919 = vmatprep.subr.bf16.mxu1 %v7454_v41  ;;  %v419_v50 = vld [vmem:[%s7110_s14 + $0x710] sm:$0xff]  ;;  %v7502_v42 = vpack.c.bf16 %v334_v15, %v333_v10  ;;  %v368_v49 = vld [vmem:[%s7110_s14 + $0x38] sm:$0xff]  ;;  %v374_v1 = vld [vmem:[%s7110_s14 + $0x128] sm:$0xff] }
  0x51   : > { %9051 = vst [vmem:[#allocation50_spill] sm:$0xff] %v7494_v28  ;;  %5889 = vmatpush3.bf16.msra.mxu0 %v7464_v60  ;;  %9052 = vst [vmem:[#allocation51_spill] sm:$0xff] %v7498_v31  ;;  %530 = vmatprep.mubr.f32.mxu0 %v418_v22  ;;  %v367_v22 = vld [vmem:[%s7110_s14 + $0x30] sm:$0xff]  ;;  %v376_v4 = vld [vmem:[%s7110_s14 + $0x138] sm:$0xff] }
  0x52   : > { %631 = vmatmul.mubr.f32.gmra.mrb[12].mxu1 %v411_v57  ;;  %9053 = vst [vmem:[#allocation52_spill] sm:$0xff] %v7502_v42  ;;  %5891 = vmatprep.subr.bf16.mxu0 %v7484_v23  ;;  %v365_v57 = vld [vmem:[%s7110_s14 + $0x20] sm:$0xff]  ;;  %v375_v10 = vld [vmem:[%s7110_s14 + $0x130] sm:$0xff]  ;;  %v382_v15 = vld [vmem:[%s7110_s14 + $0x228] sm:$0xff] }
  0x53   : > { %5921 = vmatpush3.bf16.msra.mxu1 %v7474_v61  ;;  %635 = vmatprep.mubr.f32.mxu1 %v420_v18  ;;  %v384_v18 = vld [vmem:[%s7110_s14 + $0x238] sm:$0xff] }
  0x54   : > { %531 = vmatmul.mubr.f32.gmra.mrb[14].mxu0 %v417_v29  ;;  %5923 = vmatprep.subr.bf16.mxu1 %v7494_v28  ;;  %v381_v29 = vld [vmem:[%s7110_s14 + $0x220] sm:$0xff] }
  0x55   : > { %5893 = vmatpush3.bf16.msra.mxu0 %v7498_v31  ;;  %705 = vmatprep.mubr.f32.mxu0 %v366_v45  ;;  %v383_v45 = vld [vmem:[%s7110_s14 + $0x230] sm:$0xff] }
  0x56   : > { %636 = vmatmul.mubr.f32.gmra.mrb[14].mxu1 %v419_v50  ;;  %v373_v50 = vld [vmem:[%s7110_s14 + $0x120] sm:$0xff] }
  0x57   : > { %5925 = vmatpush3.bf16.msra.mxu1 %v7502_v42  ;;  %810 = vmatprep.mubr.f32.mxu1 %v368_v49  ;;  %v390_v49 = vld [vmem:[%s7110_s14 + $0x328] sm:$0xff] }
  0x58   : > { %5939 = vmatprep.subr.bf16.mxu1 %v6897_v3  ;;  %706 = vmatmul.mubr.f32.vlgmr.msra.gmra.mrb[16].mxu0 %v365_v57  ;;  %v392_v57 = vld [vmem:[%s7110_s14 + $0x338] sm:$0xff] }
  0x59   : > { %710 = vmatprep.mubr.f32.mxu0 %v374_v1  ;;  %v391_v1 = vld [vmem:[%s7110_s14 + $0x330] sm:$0xff] }
  0x5a   : > { %811 = vmatmul.mubr.f32.vlgmr.msra.gmra.mrb[16].mxu1 %v367_v22  ;;  %v389_v22 = vld [vmem:[%s7110_s14 + $0x320] sm:$0xff] }
  0x5b   : > { %815 = vmatprep.mubr.f32.mxu1 %v376_v4  ;;  %5941 = vmatpush3.bf16.msra.mxu1 %v6908_v7  ;;  %v398_v4 = vld [vmem:[%s7110_s14 + $0x428] sm:$0xff] }
  0x5c   : > { %5943 = vmatprep.subr.bf16.mxu1 %v6935_v16  ;;  %711 = vmatmul.mubr.f32.gmra.mrb[18].mxu0 %v373_v50  ;;  %v400_v50 = vld [vmem:[%s7110_s14 + $0x438] sm:$0xff] }
  0x5d   : > { %715 = vmatprep.mubr.f32.mxu0 %v382_v15  ;;  %v399_v15 = vld [vmem:[%s7110_s14 + $0x430] sm:$0xff] }
  0x5e   : > { %816 = vmatmul.mubr.f32.gmra.mrb[18].mxu1 %v375_v10  ;;  %v397_v10 = vld [vmem:[%s7110_s14 + $0x420] sm:$0xff] }
  0x5f   : > { %820 = vmatprep.mubr.f32.mxu1 %v384_v18  ;;  %5945 = vmatpush3.bf16.msra.mxu1 %v6937_v17  ;;  %v406_v18 = vld [vmem:[%s7110_s14 + $0x528] sm:$0xff] }
  0x60   : > { %5947 = vmatprep.subr.bf16.mxu1 %v6963_v26  ;;  %716 = vmatmul.mubr.f32.gmra.mrb[20].mxu0 %v381_v29  ;;  %v408_v29 = vld [vmem:[%s7110_s14 + $0x538] sm:$0xff] }
  0x61   : > { %720 = vmatprep.mubr.f32.mxu0 %v390_v49  ;;  %v407_v49 = vld [vmem:[%s7110_s14 + $0x530] sm:$0xff] }
  0x62   : > { %821 = vmatmul.mubr.f32.gmra.mrb[20].mxu1 %v383_v45  ;;  %v405_v45 = vld [vmem:[%s7110_s14 + $0x520] sm:$0xff] }
  0x63   : > { %825 = vmatprep.mubr.f32.mxu1 %v392_v57  ;;  %5949 = vmatpush3.bf16.msra.mxu1 %v6986_v33  ;;  %v414_v57 = vld [vmem:[%s7110_s14 + $0x628] sm:$0xff] }
  0x64   : > { %5951 = vmatprep.subr.bf16.mxu1 %v7003_v39  ;;  %721 = vmatmul.mubr.f32.gmra.mrb[22].mxu0 %v389_v22  ;;  %v416_v22 = vld [vmem:[%s7110_s14 + $0x638] sm:$0xff] }
  0x65   : > { %725 = vmatprep.mubr.f32.mxu0 %v398_v4  ;;  %v415_v4 = vld [vmem:[%s7110_s14 + $0x630] sm:$0xff] }
  0x66   : > { %826 = vmatmul.mubr.f32.gmra.mrb[22].mxu1 %v391_v1  ;;  %v413_v1 = vld [vmem:[%s7110_s14 + $0x620] sm:$0xff] }
  0x67   : > { %830 = vmatprep.mubr.f32.mxu1 %v400_v50  ;;  %5953 = vmatpush3.bf16.msra.mxu1 %v7035_v48  ;;  %v422_v50 = vld [vmem:[%s7110_s14 + $0x728] sm:$0xff] }
  0x68   : > { %5955 = vmatprep.subr.bf16.mxu1 %v7047_v52  ;;  %726 = vmatmul.mubr.f32.gmra.mrb[24].mxu0 %v397_v10  ;;  %v424_v10 = vld [vmem:[%s7110_s14 + $0x738] sm:$0xff] }
  0x69   : > { %730 = vmatprep.mubr.f32.mxu0 %v406_v18  ;;  %v423_v18 = vld [vmem:[%s7110_s14 + $0x730] sm:$0xff] }
  0x6a   : > { %831 = vmatmul.mubr.f32.gmra.mrb[24].mxu1 %v399_v15  ;;  %v421_v15 = vld [vmem:[%s7110_s14 + $0x720] sm:$0xff] }
  0x6b   : > { %835 = vmatprep.mubr.f32.mxu1 %v408_v29  ;;  %5957 = vmatpush3.bf16.msra.mxu1 %v7078_v62  ;;  %v1056_v29 = vld [vmem:[%s7110_s14 + $0x48] sm:$0xff] }
  0x6c   : > { %5959 = vmatprep.subr.bf16.mxu1 %v7084_v0  ;;  %731 = vmatmul.mubr.f32.gmra.mrb[26].mxu0 %v405_v45  ;;  %v1055_v45 = vld [vmem:[%s7110_s14 + $0x40] sm:$0xff] }
  0x6d   : > { %735 = vmatprep.mubr.f32.mxu0 %v414_v57  ;;  %v1063_v57 = vld [vmem:[%s7110_s14 + $0x140] sm:$0xff] }
  0x6e   : > { %836 = vmatmul.mubr.f32.gmra.mrb[26].mxu1 %v407_v49  ;;  %v1064_v49 = vld [vmem:[%s7110_s14 + $0x148] sm:$0xff] }
  0x6f   : > { %840 = vmatprep.mubr.f32.mxu1 %v416_v22  ;;  %5961 = vmatpush3.bf16.msra.mxu1 %v7119_v14  ;;  %v1072_v22 = vld [vmem:[%s7110_s14 + $0x248] sm:$0xff]  ;;  %v4273_v14 = vld [vmem:[%s8897_s4 + $0xd8] sm:$0xff] }
  0x70   : > { %5963 = vmatprep.subr.bf16.mxu1 %v7131_v20  ;;  %736 = vmatmul.mubr.f32.gmra.mrb[28].mxu0 %v413_v1  ;;  %v1071_v1 = vld [vmem:[%s7110_s14 + $0x240] sm:$0xff] }
  0x71   : > { %740 = vmatprep.mubr.f32.mxu0 %v422_v50  ;;  %v1079_v50 = vld [vmem:[%s7110_s14 + $0x340] sm:$0xff] }
  0x72   : > { %841 = vmatmul.mubr.f32.gmra.mrb[28].mxu1 %v415_v4  ;;  %v1080_v4 = vld [vmem:[%s7110_s14 + $0x348] sm:$0xff] }
  0x73   : > { %845 = vmatprep.mubr.f32.mxu1 %v424_v10  ;;  %5965 = vmatpush3.bf16.msra.mxu1 %v7157_v35  ;;  %v1088_v10 = vld [vmem:[%s7110_s14 + $0x448] sm:$0xff] }
  0x74   : > { %5967 = vmatprep.subr.bf16.mxu1 %v7163_v37  ;;  %741 = vmatmul.mubr.f32.gmra.mrb[30].mxu0 %v421_v15  ;;  %v1087_v15 = vld [vmem:[%s7110_s14 + $0x440] sm:$0xff] }
  0x76   : > { %846 = vmatmul.mubr.f32.gmra.mrb[30].mxu1 %v423_v18  ;;  %v1096_v18 = vld [vmem:[%s7110_s14 + $0x548] sm:$0xff] }
  0x77   : > { %5969 = vmatpush3.bf16.msra.mxu1 %v7193_v53  ;;  %1183 = vmatprep.mubr.f32.mxu1 %v1056_v29  ;;  %v1095_v29 = vld [vmem:[%s7110_s14 + $0x540] sm:$0xff] }
  0x78   : > { %5971 = vmatprep.subr.bf16.mxu1 %v6910_v8 }
  0x7a   : > { %1184 = vmatmul.mubr.f32.vlgmr.msra.gmra.mrb[32].mxu1 %v1055_v45  ;;  %v1104_v45 = vld [vmem:[%s7110_s14 + $0x648] sm:$0xff] }
  0x7b   : > { %5973 = vmatpush3.bf16.msra.mxu1 %v6922_v12  ;;  %1188 = vmatprep.mubr.f32.mxu1 %v1064_v49  ;;  %v1103_v49 = vld [vmem:[%s7110_s14 + $0x640] sm:$0xff] }
  0x7c   : > { %5975 = vmatprep.subr.bf16.mxu1 %v6949_v21 }
  0x7e   : > { %1189 = vmatmul.mubr.f32.gmra.mrb[34].mxu1 %v1063_v57  ;;  %v1112_v57 = vld [vmem:[%s7110_s14 + $0x748] sm:$0xff] }
  0x7f   : > { %5977 = vmatpush3.bf16.msra.mxu1 %v6961_v25  ;;  %1193 = vmatprep.mubr.f32.mxu1 %v1072_v22  ;;  %v1111_v22 = vld [vmem:[%s7110_s14 + $0x740] sm:$0xff] }
  0x80   : > { %5979 = vmatprep.subr.bf16.mxu1 %v6988_v34 }
  0x82   : > { %1194 = vmatmul.mubr.f32.gmra.mrb[36].mxu1 %v1071_v1  ;;  %v8921_v1 = vmov 0.0|0.0  }
  0x83   : > { %5981 = vmatpush3.bf16.msra.mxu1 %v7001_v38  ;;  %1198 = vmatprep.mubr.f32.mxu1 %v1080_v4  ;;  %v1058_v4 = vld [vmem:[%s7110_s14 + $0x58] sm:$0xff] }
  0x84   : > { %5983 = vmatprep.subr.bf16.mxu1 %v7015_v43  ;;  %5926 = vmatprep.subr.bf16.mxu0 %v8921_v1 }
  0x86   : > { %1199 = vmatmul.mubr.f32.gmra.mrb[38].mxu1 %v1079_v50  ;;  %v1057_v50 = vld [vmem:[%s7110_s14 + $0x50] sm:$0xff] }
  0x87   : > { %5985 = vmatpush3.bf16.msra.mxu1 %v7045_v51  ;;  %1203 = vmatprep.mubr.f32.mxu1 %v1088_v10  ;;  %v1066_v10 = vld [vmem:[%s7110_s14 + $0x158] sm:$0xff] }
  0x88   : > { %5987 = vmatprep.subr.bf16.mxu1 %v7059_v56 }
  0x8a   : > { %1204 = vmatmul.mubr.f32.gmra.mrb[40].mxu1 %v1087_v15  ;;  %v1065_v15 = vld [vmem:[%s7110_s14 + $0x150] sm:$0xff] }
  0x8b   : > { %5989 = vmatpush3.bf16.msra.mxu1 %v7082_v63  ;;  %1208 = vmatprep.mubr.f32.mxu1 %v1096_v18  ;;  %v1074_v18 = vld [vmem:[%s7110_s14 + $0x258] sm:$0xff] }
  0x8c   : > { %5991 = vmatprep.subr.bf16.mxu1 %v7096_v5 }
  0x8e   : > { %1209 = vmatmul.mubr.f32.gmra.mrb[42].mxu1 %v1095_v29  ;;  %v1073_v29 = vld [vmem:[%s7110_s14 + $0x250] sm:$0xff] }
  0x8f   : > { %5993 = vmatpush3.bf16.msra.mxu1 %v7129_v19  ;;  %1213 = vmatprep.mubr.f32.mxu1 %v1104_v45  ;;  %v1082_v45 = vld [vmem:[%s7110_s14 + $0x358] sm:$0xff]  ;;  %v4270_v19 = vld [vmem:[%s8897_s4 + $0xc0] sm:$0xff] }
  0x90   : > { %5995 = vmatprep.subr.bf16.mxu1 %v7141_v27 }
  0x92   : > { %1214 = vmatmul.mubr.f32.gmra.mrb[44].mxu1 %v1103_v49  ;;  %v1081_v49 = vld [vmem:[%s7110_s14 + $0x350] sm:$0xff] }
  0x93   : > { %5997 = vmatpush3.bf16.msra.mxu1 %v7161_v36  ;;  %1218 = vmatprep.mubr.f32.mxu1 %v1112_v57  ;;  %v1090_v57 = vld [vmem:[%s7110_s14 + $0x458] sm:$0xff] }
  0x94   : > { %5999 = vmatprep.subr.bf16.mxu1 %v7175_v44 }
  0x96   : > { %1219 = vmatmul.mubr.f32.gmra.mrb[46].mxu1 %v1111_v22  ;;  %v1089_v22 = vld [vmem:[%s7110_s14 + $0x450] sm:$0xff] }
  0x97   : > { %6001 = vmatpush3.bf16.msra.mxu1 %v7197_v54  ;;  %1288 = vmatprep.mubr.f32.mxu1 %v1058_v4  ;;  %v1098_v4 = vld [vmem:[%s7110_s14 + $0x558] sm:$0xff] }
  0x98   : > { %6035 = vmatprep.subr.bf16.mxu1 %v7208_v59 }
  0x9a   : > { %1289 = vmatmul.mubr.f32.vlgmr.msra.gmra.mrb[48].mxu1 %v1057_v50  ;;  %v1097_v50 = vld [vmem:[%s7110_s14 + $0x550] sm:$0xff] }
  0x9b   : > { %6037 = vmatpush3.bf16.msra.mxu1 %v7235_v13  ;;  %1293 = vmatprep.mubr.f32.mxu1 %v1066_v10  ;;  %v1106_v10 = vld [vmem:[%s7110_s14 + $0x658] sm:$0xff] }
  0x9c   : > { %6039 = vmatprep.subr.bf16.mxu1 %v7254_v30  ;;  %v1118_v13 = vld [vmem:[%s7110_s14 + $0x778] sm:$0xff] }
  0x9e   : > { %1294 = vmatmul.mubr.f32.gmra.mrb[50].mxu1 %v1065_v15  ;;  %v1105_v15 = vld [vmem:[%s7110_s14 + $0x650] sm:$0xff] }
  0x9f   : > { %6041 = vmatpush3.bf16.msra.mxu1 %v7274_v47  ;;  %1298 = vmatprep.mubr.f32.mxu1 %v1074_v18  ;;  %v8923_v18 = vmov 0.0  }
  0xa0   : > { %6043 = vmatprep.subr.bf16.mxu1 %v7294_v2  ;;  %5486 = vmatprep.mubr.msk.f32.mxu0 %vm6805_vm0, %v8923_v18 }
  0xa2   : > { %1299 = vmatmul.mubr.f32.gmra.mrb[52].mxu1 %v1073_v29  ;;  %v1114_v29 = vld [vmem:[%s7110_s14 + $0x758] sm:$0xff] }
  0xa3   : > { %6045 = vmatpush3.bf16.msra.mxu1 %v7314_v24  ;;  %1303 = vmatprep.mubr.f32.mxu1 %v1082_v45  ;;  %v1113_v45 = vld [vmem:[%s7110_s14 + $0x750] sm:$0xff] }
  0xa4   : > { %6047 = vmatprep.subr.bf16.mxu1 %v7334_v46 }
  0xa6   : > { %1304 = vmatmul.mubr.f32.gmra.mrb[54].mxu1 %v1081_v49 }
  0xa7   : > { %6049 = vmatpush3.bf16.msra.mxu1 %v7354_v9  ;;  %1308 = vmatprep.mubr.f32.mxu1 %v1090_v57  ;;  %v7626_v57 = vld [vmem:[%s8895_s2] ss:$0 sm:$0xff] }
  0xa8   : > { %6051 = vmatprep.subr.bf16.mxu1 %v7374_v40 }
  0xaa   : > { %1309 = vmatmul.mubr.f32.gmra.mrb[56].mxu1 %v1089_v22 }
  0xab   : > { %1313 = vmatprep.mubr.f32.mxu1 %v1098_v4  ;;  %6053 = vmatpush3.bf16.msra.mxu1 %v7394_v32 }
  0xac   : > { %6055 = vmatprep.subr.bf16.mxu1 %v7414_v11  ;;  %v1061_v11 = vld [vmem:[%s7110_s14 + $0x70] sm:$0xff] }
  0xae   : > { %1314 = vmatmul.mubr.f32.gmra.mrb[58].mxu1 %v1097_v50 }
  0xaf   : > { %6057 = vmatpush3.bf16.msra.mxu1 %v7434_v58  ;;  %1318 = vmatprep.mubr.f32.mxu1 %v1106_v10 }
  0xb0   : > { %6059 = vmatprep.subr.bf16.mxu1 %v7454_v41  ;;  %v1062_v41 = vld [vmem:[%s7110_s14 + $0x78] sm:$0xff] }
  0xb2   : > { %1319 = vmatmul.mubr.f32.gmra.mrb[60].mxu1 %v1105_v15 }
  0xb3   : > { %6061 = vmatpush3.bf16.msra.mxu1 %v7474_v61  ;;  %1323 = vmatprep.mubr.f32.mxu1 %v1114_v29 }
  0xb4   : > { %6063 = vmatprep.subr.bf16.mxu1 %v7494_v28 }
  0xb6   : > { %1324 = vmatmul.mubr.f32.gmra.mrb[62].mxu1 %v1113_v45 }
  0xb7   : > { %6065 = vmatpush3.bf16.msra.mxu1 %v7502_v42  ;;  %1498 = vmatprep.mubr.f32.mxu1 %v1062_v41 }
  0xba   : > { %1499 = vmatmul.mubr.f32.vlgmr.msra.gmra.mrb[64].mxu1 %v1061_v11 }
 0x10b   : > { %v4478_v49 = vpop.f32.mrb[0].mxu0 }
 0x10c   : > { %v4479_v22 = vpop.f32.mrb[1].mxu0 }
 0x10d   : > { %v4534_v4 = vpop.f32.mrb[0].mxu1  ;;  %v4480_v50 = vadd.f32 %v4479_v22, %v4478_v49 }
 0x10e   : > { %v4535_v10 = vpop.f32.mrb[1].mxu1 }
 0x10f   : > { %v4536_v15 = vadd.f32 %v4535_v10, %v4534_v4  ;;  %v498_v29 = vadd.f32 %v4480_v50, %v7626_v57  ;;  %v4481_v1 = vpop.f32.mrb[2].mxu0 }
 0x110   : > { %v4482_v18 = vpop.f32.mrb[3].mxu0 }
 0x111   : > { %v4537_v45 = vpop.f32.mrb[2].mxu1  ;;  %v7629_v28 = vadd.f32 %v4536_v15, %v498_v29  ;;  %v4483_v42 = vadd.f32 %v4482_v18, %v4481_v1  ;;  %v1070_v15 = vld [vmem:[%s7110_s14 + $0x178] sm:$0xff]  ;;  %v1069_v18 = vld [vmem:[%s7110_s14 + $0x170] sm:$0xff] }
 0x112   : > { %v4538_v61 = vpop.f32.mrb[3].mxu1  ;;  %1503 = vmatprep.mubr.f32.mxu1 %v1070_v15 }
 0x113   : > { %v4539_v58 = vadd.f32 %v4538_v61, %v4537_v45  ;;  %v503_v32 = vadd.f32 %v4483_v42, %v7626_v57  ;;  %v4484_v49 = vpop.f32.mrb[4].mxu0  ;;  %1504 = vmatmul.mubr.f32.gmra.mrb[66].mxu1 %v1069_v18 }
 0x114   : > { %v4485_v22 = vpop.f32.mrb[5].mxu0 }
 0x115   : > { %v4540_v4 = vpop.f32.mrb[4].mxu1  ;;  %v7634_v50 = vadd.f32 %v4539_v58, %v503_v32  ;;  %v4486_v10 = vadd.f32 %v4485_v22, %v4484_v49  ;;  %v1078_v58 = vld [vmem:[%s7110_s14 + $0x278] sm:$0xff]  ;;  %v1077_v49 = vld [vmem:[%s7110_s14 + $0x270] sm:$0xff] }
 0x116   : > { %v4541_v40 = vpop.f32.mrb[5].mxu1  ;;  %1508 = vmatprep.mubr.f32.mxu1 %v1078_v58 }
 0x117   : > { %v4542_v1 = vadd.f32 %v4541_v40, %v4540_v4  ;;  %v508_v61 = vadd.f32 %v4486_v10, %v7626_v57  ;;  %v4487_v41 = vpop.f32.mrb[6].mxu0  ;;  %1509 = vmatmul.mubr.f32.gmra.mrb[68].mxu1 %v1077_v49 }
 0x118   : > { %v4488_v29 = vpop.f32.mrb[7].mxu0 }
 0x119   : > { %v4543_v42 = vpop.f32.mrb[6].mxu1  ;;  %v7639_v11 = vadd.f32 %v4542_v1, %v508_v61  ;;  %v4489_v45 = vadd.f32 %v4488_v29, %v4487_v41  ;;  %v1086_v1 = vld [vmem:[%s7110_s14 + $0x378] sm:$0xff]  ;;  %v1085_v41 = vld [vmem:[%s7110_s14 + $0x370] sm:$0xff] }
 0x11a   : > { %v4544_v9 = vpop.f32.mrb[7].mxu1  ;;  %1513 = vmatprep.mubr.f32.mxu1 %v1086_v1 }
 0x11b   : > { %v4545_v32 = vadd.f32 %v4544_v9, %v4543_v42  ;;  %v513_v40 = vadd.f32 %v4489_v45, %v7626_v57  ;;  %v4490_v22 = vpop.f32.mrb[8].mxu0  ;;  %1514 = vmatmul.mubr.f32.gmra.mrb[70].mxu1 %v1085_v41 }
 0x11c   : > { %v4491_v4 = vpop.f32.mrb[9].mxu0 }
 0x11d   : > { %v4546_v10 = vpop.f32.mrb[8].mxu1  ;;  %v7644_v15 = vadd.f32 %v4545_v32, %v513_v40  ;;  %v4492_v18 = vadd.f32 %v4491_v4, %v4490_v22  ;;  %v1094_v32 = vld [vmem:[%s7110_s14 + $0x478] sm:$0xff]  ;;  %v1093_v22 = vld [vmem:[%s7110_s14 + $0x470] sm:$0xff] }
 0x11e   : > { %v4547_v46 = vpop.f32.mrb[9].mxu1  ;;  %1518 = vmatprep.mubr.f32.mxu1 %v1094_v32 }
 0x11f   : > { %v4548_v61 = vadd.f32 %v4547_v46, %v4546_v10  ;;  %v518_v9 = vadd.f32 %v4492_v18, %v7626_v57  ;;  %v4493_v29 = vpop.f32.mrb[10].mxu0  ;;  %1519 = vmatmul.mubr.f32.gmra.mrb[72].mxu1 %v1093_v22 }
 0x120   : > { %v4494_v42 = vpop.f32.mrb[11].mxu0 }
 0x121   : > { %v4549_v45 = vpop.f32.mrb[10].mxu1  ;;  %v7649_v58 = vadd.f32 %v4548_v61, %v518_v9  ;;  %v4495_v49 = vadd.f32 %v4494_v42, %v4493_v29  ;;  %v1102_v61 = vld [vmem:[%s7110_s14 + $0x578] sm:$0xff]  ;;  %v1101_v29 = vld [vmem:[%s7110_s14 + $0x570] sm:$0xff] }
 0x122   : > { %v4550_v24 = vpop.f32.mrb[11].mxu1  ;;  %1523 = vmatprep.mubr.f32.mxu1 %v1102_v61 }
 0x123   : > { %v4551_v40 = vadd.f32 %v4550_v24, %v4549_v45  ;;  %v523_v46 = vadd.f32 %v4495_v49, %v7626_v57  ;;  %v4496_v4 = vpop.f32.mrb[12].mxu0  ;;  %1524 = vmatmul.mubr.f32.gmra.mrb[74].mxu1 %v1101_v29 }
 0x124   : > { %v4497_v10 = vpop.f32.mrb[13].mxu0 }
 0x125   : > { %v4552_v18 = vpop.f32.mrb[12].mxu1  ;;  %v7654_v1 = vadd.f32 %v4551_v40, %v523_v46  ;;  %v4498_v41 = vadd.f32 %v4497_v10, %v4496_v4  ;;  %v1110_v40 = vld [vmem:[%s7110_s14 + $0x678] sm:$0xff]  ;;  %v1109_v4 = vld [vmem:[%s7110_s14 + $0x670] sm:$0xff] }
 0x126   : > { %v4553_v2 = vpop.f32.mrb[13].mxu1  ;;  %1528 = vmatprep.mubr.f32.mxu1 %v1110_v40  ;;  %v9054_v40 = vmov 0.0  }
 0x127   : > { %v4554_v9 = vadd.f32 %v4553_v2, %v4552_v18  ;;  %v528_v24 = vadd.f32 %v4498_v41, %v7626_v57  ;;  %v4499_v42 = vpop.f32.mrb[14].mxu0  ;;  %1529 = vmatmul.mubr.f32.gmra.mrb[76].mxu1 %v1109_v4 }
 0x128   : > { %v4500_v45 = vpop.f32.mrb[15].mxu0  ;;  %1533 = vmatprep.mubr.f32.mxu1 %v1118_v13 }
 0x129   : > { %v4555_v49 = vpop.f32.mrb[14].mxu1  ;;  %v7659_v32 = vadd.f32 %v4554_v9, %v528_v24  ;;  %v4501_v22 = vadd.f32 %v4500_v45, %v4499_v42  ;;  %v1117_v24 = vld [vmem:[%s7110_s14 + $0x770] sm:$0xff] }
 0x12a   : > { %v4556_v47 = vpop.f32.mrb[15].mxu1 }
 0x12b   : > { %v4557_v46 = vadd.f32 %v4556_v47, %v4555_v49  ;;  %v533_v2 = vadd.f32 %v4501_v22, %v7626_v57  ;;  %v4590_v10 = vpop.f32.mrb[16].mxu0  ;;  %1534 = vmatmul.mubr.f32.gmra.mrb[78].mxu1 %v1117_v24 }
 0x12c   : > { %v4591_v18 = vpop.f32.mrb[17].mxu0  ;;  %1808 = vmatprep.mubr.f32.mxu1 %v9054_v40 }
 0x12d   : > { %v4646_v41 = vpop.f32.mrb[16].mxu1  ;;  %v7664_v61 = vadd.f32 %v4557_v46, %v533_v2  ;;  %v4592_v29 = vadd.f32 %v4591_v18, %v4590_v10 }
 0x12e   : > { %v4647_v30 = vpop.f32.mrb[17].mxu1 }
 0x12f   : > { %v4648_v9 = vadd.f32 %v4647_v30, %v4646_v41  ;;  %v708_v42 = vadd.f32 %v4592_v29, %v7629_v28  ;;  %v4593_v45 = vpop.f32.mrb[18].mxu0 }
 0x130   : > { %v4594_v47 = vpop.f32.mrb[19].mxu0 }
 0x131   : > { %v4649_v49 = vpop.f32.mrb[18].mxu1  ;;  %v813_v22 = vadd.f32 %v4648_v9, %v708_v42  ;;  %v4595_v4 = vadd.f32 %v4594_v47, %v4593_v45 }
 0x132   : > { %v4650_v59 = vpop.f32.mrb[19].mxu1 }
 0x133   : > { %v4651_v54 = vadd.f32 %v4650_v59, %v4649_v49  ;;  %v4230_v46 = vmul.f32 -1.442695, %v813_v22  ;;  %v713_v2 = vadd.f32 %v4595_v4, %v7634_v50  ;;  %v4596_v10 = vpop.f32.mrb[20].mxu0 }
 0x134   : > { %v4597_v18 = vpop.f32.mrb[21].mxu0 }
 0x135   : > { %v4652_v30 = vpop.f32.mrb[20].mxu1  ;;  %6601 = vpow2.f32 %v4230_v46  ;;  %v818_v13 = vadd.f32 %v4651_v54, %v713_v2  ;;  %v4598_v41 = vadd.f32 %v4597_v18, %v4596_v10 }
 0x136   : > { %v4653_v28 = vpop.f32.mrb[21].mxu1 }
 0x137   : > { %v4654_v29 = vadd.f32 %v4653_v28, %v4652_v30  ;;  %v4231_v24 = vmul.f32 -1.442695, %v818_v13  ;;  %v718_v53 = vadd.f32 %v4598_v41, %v7639_v11  ;;  %v4599_v44 = vpop.f32.mrb[22].mxu0 }
 0x138   : > { %v4600_v37 = vpop.f32.mrb[23].mxu0 }
 0x139   : > { %v4655_v9 = vpop.f32.mrb[22].mxu1  ;;  %6603 = vpow2.f32 %v4231_v24  ;;  %v823_v42 = vadd.f32 %v4654_v29, %v718_v53  ;;  %v4601_v59 = vadd.f32 %v4600_v37, %v4599_v44 }
 0x13a   : > { %v4656_v45 = vpop.f32.mrb[23].mxu1 }
 0x13b   : > { %v4657_v47 = vadd.f32 %v4656_v45, %v4655_v9  ;;  %v4232_v50 = vmul.f32 -1.442695, %v823_v42  ;;  %v723_v49 = vadd.f32 %v4601_v59, %v7644_v15  ;;  %v4602_v22 = vpop.f32.mrb[24].mxu0 }
 0x13c   : > { %v4603_v4 = vpop.f32.mrb[25].mxu0 }
 0x13d   : > { %v4658_v54 = vpop.f32.mrb[24].mxu1  ;;  %6605 = vpow2.f32 %v4232_v50  ;;  %v828_v46 = vadd.f32 %v4657_v47, %v723_v49  ;;  %v4604_v2 = vadd.f32 %v4603_v4, %v4602_v22 }
 0x13e   : > { %v4659_v10 = vpop.f32.mrb[25].mxu1 }
 0x13f   : > { %v4660_v18 = vadd.f32 %v4659_v10, %v4658_v54  ;;  %v6602_v11 = vpop.eup %6601  ;;  %v4233_v30 = vmul.f32 -1.442695, %v828_v46  ;;  %v728_v13 = vadd.f32 %v4604_v2, %v7649_v58  ;;  %v4605_v41 = vpop.f32.mrb[26].mxu0 }
 0x140   : > { %v875_v53 = vadd.f32 1.0, %v6602_v11  ;;  %v4606_v37 = vpop.f32.mrb[27].mxu0 }
 0x141   : > { %v4661_v44 = vpop.f32.mrb[26].mxu1  ;;  %6607 = vpow2.f32 %v4233_v30  ;;  %v833_v28 = vadd.f32 %v4660_v18, %v728_v13  ;;  %v4607_v29 = vadd.f32 %v4606_v37, %v4605_v41 }
 0x142   : > { %v4662_v15 = vpop.f32.mrb[27].mxu1  ;;  %6609 = vrcp.f32 %v875_v53 }
 0x143   : > { %v4663_v24 = vadd.f32 %v4662_v15, %v4661_v44  ;;  %v6604_v9 = vpop.eup %6603  ;;  %v4234_v42 = vmul.f32 -1.442695, %v833_v28  ;;  %v733_v59 = vadd.f32 %v4607_v29, %v7654_v1  ;;  %v4608_v45 = vpop.f32.mrb[28].mxu0 }
 0x144   : > { %v876_v47 = vadd.f32 1.0, %v6604_v9  ;;  %v4609_v50 = vpop.f32.mrb[29].mxu0 }
 0x145   : > { %v4664_v49 = vpop.f32.mrb[28].mxu1  ;;  %6611 = vpow2.f32 %v4234_v42  ;;  %v838_v58 = vadd.f32 %v4663_v24, %v733_v59  ;;  %v4610_v22 = vadd.f32 %v4609_v50, %v4608_v45 }
 0x146   : > { %v4665_v4 = vpop.f32.mrb[29].mxu1  ;;  %6613 = vrcp.f32 %v876_v47 }
 0x147   : > { %v4666_v54 = vadd.f32 %v4665_v4, %v4664_v49  ;;  %v6606_v46 = vpop.eup %6605  ;;  %v4235_v2 = vmul.f32 -1.442695, %v838_v58  ;;  %v738_v10 = vadd.f32 %v4610_v22, %v7659_v32  ;;  %v4611_v18 = vpop.f32.mrb[30].mxu0  ;;  %v9055_v58 = vmov 0.0|0.0  }
 0x148   : > { %v877_v11 = vadd.f32 1.0, %v6606_v46  ;;  %v4612_v30 = vpop.f32.mrb[31].mxu0 }
 0x149   : > { %v4667_v13 = vpop.f32.mrb[30].mxu1  ;;  %6615 = vpow2.f32 %v4235_v2  ;;  %v843_v1 = vadd.f32 %v4666_v54, %v738_v10  ;;  %v4613_v41 = vadd.f32 %v4612_v30, %v4611_v18 }
 0x14a   : > { %v4668_v53 = vpop.f32.mrb[31].mxu1  ;;  %6617 = vrcp.f32 %v877_v11 }
 0x14b   : > { %v4669_v37 = vadd.f32 %v4668_v53, %v4667_v13  ;;  %v6608_v44 = vpop.eup %6607  ;;  %v4236_v28 = vmul.f32 -1.442695, %v843_v1  ;;  %v743_v29 = vadd.f32 %v4613_v41, %v7664_v61  ;;  %v7683_v53 = vld [vmem:[%s8896_s3] sm:$0xff] }
 0x14c   : > { %v878_v15 = vadd.f32 1.0, %v6608_v44  ;;  %v6610_v9 = vpop.eup %6609  ;;  %v9056_v44 = vld [vmem:[#allocation25_spill] sm:$0xff] }
 0x14d   : > { %6619 = vpow2.f32 %v4236_v28  ;;  %v848_v24 = vadd.f32 %v4669_v37, %v743_v29  ;;  %v7693_v37 = vld [vmem:[%s8896_s3 + $0x8] sm:$0xff]  ;;  %v7704_v28 = vld [vmem:[%s8896_s3 + $0x10] sm:$0xff]  ;;  %v9057_v29 = vld [vmem:[#allocation27_spill] sm:$0xff] }
 0x14e   : > { %6621 = vrcp.f32 %v878_v15  ;;  %v9058_v15 = vld [vmem:[#allocation29_spill] sm:$0xff] }
 0x14f   : > { %v6612_v32 = vpop.eup %6611  ;;  %v4237_v42 = vmul.f32 -1.442695, %v848_v24  ;;  %v7715_v24 = vld [vmem:[%s8896_s3 + $0x18] sm:$0xff] }
 0x150   : > { %v6614_v59 = vpop.eup %6613  ;;  %v879_v45 = vadd.f32 1.0, %v6612_v32  ;;  %v9060_v32 = vld [vmem:[#allocation33_spill] sm:$0xff] }
 0x151   : > { %6623 = vpow2.f32 %v4237_v42  ;;  %v5927_v47 = vpack.c.bf16 %v6614_v59, %v6610_v9  ;;  %v9059_v9 = vld [vmem:[#allocation31_spill] sm:$0xff] }
 0x152   : > { %6625 = vrcp.f32 %v879_v45  ;;  %v7726_v42 = vld [vmem:[%s8896_s3 + $0x20] sm:$0xff]  ;;  %v9062_v45 = vld [vmem:[#allocation37_spill] sm:$0xff] }
 0x153   : > { %v6616_v50 = vpop.eup %6615  ;;  %5928 = vmatpush3.bf16.msra.mxu0 %v5927_v47  ;;  %v9061_v59 = vld [vmem:[#allocation35_spill] sm:$0xff]  ;;  %v7737_v47 = vld [vmem:[%s8896_s3 + $0x28] sm:$0xff] }
 0x154   : > { %v880_v49 = vadd.f32 1.0, %v6616_v50  ;;  %5929 = vmatprep.subr.bf16.mxu0 %v9055_v58  ;;  %v6618_v22 = vpop.eup %6617  ;;  %v9063_v50 = vld [vmem:[#allocation39_spill] sm:$0xff] }
 0x156   : > { %6627 = vrcp.f32 %v880_v49  ;;  %v9064_v49 = vld [vmem:[#allocation41_spill] sm:$0xff] }
 0x157   : > { %v6620_v61 = vpop.eup %6619 }
 0x158   : > { %v6622_v4 = vpop.eup %6621  ;;  %v881_v54 = vadd.f32 1.0, %v6620_v61  ;;  %v9065_v61 = vld [vmem:[#allocation43_spill] sm:$0xff] }
 0x159   : > { %v5930_v46 = vpack.c.bf16 %v6622_v4, %v6618_v22  ;;  %v7748_v22 = vld [vmem:[%s8896_s3 + $0x30] sm:$0xff] }
 0x15a   : > { %6629 = vrcp.f32 %v881_v54  ;;  %v9066_v4 = vld [vmem:[#allocation45_spill] sm:$0xff]  ;;  %v7759_v54 = vld [vmem:[%s8896_s3 + $0x38] sm:$0xff] }
 0x15b   : > { %v6624_v2 = vpop.eup %6623  ;;  %5931 = vmatpush3.bf16.msra.mxu0 %v5930_v46  ;;  %v4719_v46 = vpop.f32.mrb[32].mxu1 }
 0x15c   : > { %v882_v10 = vadd.f32 1.0, %v6624_v2  ;;  %5932 = vmatprep.subr.bf16.mxu0 %v9055_v58  ;;  %v6626_v18 = vpop.eup %6625  ;;  %v4720_v2 = vpop.f32.mrb[33].mxu1 }
 0x15e   : > { %6631 = vrcp.f32 %v882_v10  ;;  %v4721_v10 = vadd.f32 %v4720_v2, %v4719_v46  ;;  %v1068_v46 = vld [vmem:[%s7110_s14 + $0x168] sm:$0xff] }
 0x160   : > { %v6628_v11 = vpop.eup %6627 }
 0x161   : > { %v5933_v30 = vpack.c.bf16 %v6628_v11, %v6626_v18  ;;  %v7770_v18 = vld [vmem:[%s8896_s3 + $0x40] sm:$0xff]  ;;  %v1060_v11 = vld [vmem:[%s7110_s14 + $0x68] sm:$0xff] }
 0x163   : > { %5934 = vmatpush3.bf16.msra.mxu0 %v5933_v30  ;;  %v4722_v30 = vpop.f32.mrb[34].mxu1 }
 0x164   : > { %5935 = vmatprep.subr.bf16.mxu0 %v9055_v58  ;;  %v6630_v13 = vpop.eup %6629 }
 0x168   : > { %v6632_v1 = vpop.eup %6631 }
 0x169   : > { %v5936_v41 = vpack.c.bf16 %v6632_v1, %v6630_v13  ;;  %v4723_v13 = vpop.f32.mrb[35].mxu1 }
 0x16a   : > { %v4724_v1 = vadd.f32 %v4723_v13, %v4722_v30  ;;  %v4725_v2 = vpop.f32.mrb[36].mxu1  ;;  %v1084_v30 = vld [vmem:[%s7110_s14 + $0x368] sm:$0xff] }
 0x16b   : > { %5937 = vmatpush3.bf16.msra.mxu0 %v5936_v41  ;;  %v1059_v41 = vld [vmem:[%s7110_s14 + $0x60] sm:$0xff] }
 0x16c   : > { %6003 = vmatprep.subr.bf16.mxu0 %v7199_v55 }
 0x16e   : > { %5487 = vmatmul.mubr.msk.f32.vlgmr.msra.gmra.mrb[32].mxu0 %vm899_vm1, %v7683_v53 }
 0x16f   : > { %5489 = vmatprep.mubr.msk.f32.mxu0 %vm6805_vm0, %v9054_v40  ;;  %6005 = vmatpush3.bf16.msra.mxu0 %v7224_v6 }
 0x170   : > { %6007 = vmatprep.subr.bf16.mxu0 %v9056_v44 }
 0x172   : > { %5490 = vmatmul.mubr.msk.f32.gmra.mrb[34].mxu0 %vm899_vm1, %v7693_v37 }
 0x173   : > { %5492 = vmatprep.mubr.msk.f32.mxu0 %vm6805_vm0, %v9054_v40  ;;  %6009 = vmatpush3.bf16.msra.mxu0 %v9057_v29 }
 0x174   : > { %6011 = vmatprep.subr.bf16.mxu0 %v9058_v15 }
 0x176   : > { %5493 = vmatmul.mubr.msk.f32.gmra.mrb[36].mxu0 %vm899_vm1, %v7704_v28 }
 0x177   : > { %5495 = vmatprep.mubr.msk.f32.mxu0 %vm6805_vm0, %v9054_v40  ;;  %6013 = vmatpush3.bf16.msra.mxu0 %v9059_v9 }
 0x178   : > { %6015 = vmatprep.subr.bf16.mxu0 %v9060_v32 }
 0x17a   : > { %5496 = vmatmul.mubr.msk.f32.gmra.mrb[38].mxu0 %vm899_vm1, %v7715_v24 }
 0x17b   : > { %5498 = vmatprep.mubr.msk.f32.mxu0 %vm6805_vm0, %v9054_v40  ;;  %6017 = vmatpush3.bf16.msra.mxu0 %v9061_v59 }
 0x17c   : > { %6019 = vmatprep.subr.bf16.mxu0 %v9062_v45 }
 0x17e   : > { %5499 = vmatmul.mubr.msk.f32.gmra.mrb[40].mxu0 %vm899_vm1, %v7726_v42 }
 0x17f   : > { %5501 = vmatprep.mubr.msk.f32.mxu0 %vm6805_vm0, %v9054_v40  ;;  %6021 = vmatpush3.bf16.msra.mxu0 %v9063_v50 }
 0x180   : > { %6023 = vmatprep.subr.bf16.mxu0 %v9064_v49 }
 0x182   : > { %5502 = vmatmul.mubr.msk.f32.gmra.mrb[42].mxu0 %vm899_vm1, %v7737_v47 }
 0x183   : > { %5504 = vmatprep.mubr.msk.f32.mxu0 %vm6805_vm0, %v9054_v40  ;;  %6025 = vmatpush3.bf16.msra.mxu0 %v9065_v61 }
 0x184   : > { %6027 = vmatprep.subr.bf16.mxu0 %v9066_v4  ;;  %v1076_v4 = vld [vmem:[%s7110_s14 + $0x268] sm:$0xff] }
 0x186   : > { %5505 = vmatmul.mubr.msk.f32.gmra.mrb[44].mxu0 %vm899_vm1, %v7748_v22 }
 0x187   : > { %5507 = vmatprep.mubr.msk.f32.mxu0 %vm6805_vm0, %v9054_v40  ;;  %6029 = vmatpush3.bf16.msra.mxu0 %v7464_v60 }
 0x188   : > { %6031 = vmatprep.subr.bf16.mxu0 %v7484_v23  ;;  %v4726_v23 = vpop.f32.mrb[37].mxu1 }
 0x189   : > { %v4727_v60 = vadd.f32 %v4726_v23, %v4725_v2  ;;  %v4728_v61 = vpop.f32.mrb[38].mxu1  ;;  %v1083_v23 = vld [vmem:[%s7110_s14 + $0x360] sm:$0xff] }
 0x18a   : > { %5508 = vmatmul.mubr.msk.f32.gmra.mrb[46].mxu0 %vm899_vm1, %v7759_v54  ;;  %v4729_v49 = vpop.f32.mrb[39].mxu1 }
 0x18b   : > { %5510 = vmatprep.mubr.msk.f32.mxu0 %vm6805_vm0, %v9054_v40  ;;  %6033 = vmatpush3.bf16.msra.mxu0 %v7498_v31  ;;  %v1067_v31 = vld [vmem:[%s7110_s14 + $0x160] sm:$0xff]  ;;  %v4730_v50 = vadd.f32 %v4729_v49, %v4728_v61  ;;  %v4731_v13 = vpop.f32.mrb[40].mxu1  ;;  %v1100_v49 = vld [vmem:[%s7110_s14 + $0x568] sm:$0xff] }
 0x18c   : > { %6066 = vmatprep.subr.bf16.mxu0 %v9055_v58  ;;  %v4732_v45 = vpop.f32.mrb[41].mxu1 }
 0x18d   : > { %v4733_v59 = vadd.f32 %v4732_v45, %v4731_v13  ;;  %v1099_v45 = vld [vmem:[%s7110_s14 + $0x560] sm:$0xff] }
 0x18e   : > { %5511 = vmatmul.mubr.msk.f32.gmra.mrb[48].mxu0 %vm899_vm1, %v7770_v18 }
 0x18f   : > { %1393 = vmatprep.mubr.f32.mxu0 %v1060_v11  ;;  %v1075_v11 = vld [vmem:[%s7110_s14 + $0x260] sm:$0xff] }
 0x192   : > { %1394 = vmatmul.mubr.f32.vlgmr.msra.gmra.mrb[50].mxu0 %v1059_v41  ;;  %v1092_v41 = vld [vmem:[%s7110_s14 + $0x468] sm:$0xff] }
 0x193   : > { %1398 = vmatprep.mubr.f32.mxu0 %v1068_v46  ;;  %v4734_v46 = vpop.f32.mrb[42].mxu1 }
 0x194   : > { %v4735_v2 = vpop.f32.mrb[43].mxu1 }
 0x195   : > { %v4736_v32 = vadd.f32 %v4735_v2, %v4734_v46  ;;  %v4737_v61 = vpop.f32.mrb[44].mxu1  ;;  %v1116_v46 = vld [vmem:[%s7110_s14 + $0x768] sm:$0xff] }
 0x196   : > { %1399 = vmatmul.mubr.f32.gmra.mrb[52].mxu0 %v1067_v31  ;;  %v1091_v31 = vld [vmem:[%s7110_s14 + $0x460] sm:$0xff] }
 0x197   : > { %1403 = vmatprep.mubr.f32.mxu0 %v1076_v4  ;;  %v4738_v4 = vpop.f32.mrb[45].mxu1 }
 0x198   : > { %v4739_v9 = vadd.f32 %v4738_v4, %v4737_v61 }
 0x19a   : > { %1404 = vmatmul.mubr.f32.gmra.mrb[54].mxu0 %v1075_v11  ;;  %v1108_v11 = vld [vmem:[%s7110_s14 + $0x668] sm:$0xff] }
 0x19b   : > { %1408 = vmatprep.mubr.f32.mxu0 %v1084_v30  ;;  %v4740_v30 = vpop.f32.mrb[46].mxu1 }
 0x19c   : > { %v4741_v13 = vpop.f32.mrb[47].mxu1 }
 0x19d   : > { %v4742_v15 = vadd.f32 %v4741_v13, %v4740_v30  ;;  %v4775_v2 = vpop.f32.mrb[48].mxu1 }
 0x19e   : > { %1409 = vmatmul.mubr.f32.gmra.mrb[56].mxu0 %v1083_v23  ;;  %v1107_v23 = vld [vmem:[%s7110_s14 + $0x660] sm:$0xff]  ;;  %v4776_v29 = vpop.f32.mrb[49].mxu1 }
 0x19f   : > { %1413 = vmatprep.mubr.f32.mxu0 %v1092_v41  ;;  %v1186_v41 = vadd.f32 %v4721_v10, %v7626_v57  ;;  %v4777_v44 = vadd.f32 %v4776_v29, %v4775_v2  ;;  %v4778_v4 = vpop.f32.mrb[50].mxu1  ;;  %v1206_v2 = vadd.f32 %v4733_v59, %v7626_v57  ;;  %v1221_v59 = vadd.f32 %v4742_v15, %v7626_v57 }
 0x1a0   : > { %v4779_v6 = vpop.f32.mrb[51].mxu1 }
 0x1a1   : > { %v7794_v61 = vadd.f32 %v4777_v44, %v1186_v41  ;;  %v4781_v30 = vpop.f32.mrb[52].mxu1 }
 0x1a2   : > { %1414 = vmatmul.mubr.f32.gmra.mrb[58].mxu0 %v1091_v31  ;;  %v1115_v31 = vld [vmem:[%s7110_s14 + $0x760] sm:$0xff]  ;;  %v4782_v13 = vpop.f32.mrb[53].mxu1 }
 0x1a3   : > { %1418 = vmatprep.mubr.f32.mxu0 %v1100_v49  ;;  %v1191_v49 = vadd.f32 %v4724_v1, %v7626_v57  ;;  %v4783_v29 = vadd.f32 %v4782_v13, %v4781_v30  ;;  %v4784_v44 = vpop.f32.mrb[54].mxu1 }
 0x1a4   : > { %v4785_v1 = vpop.f32.mrb[55].mxu1 }
 0x1a5   : > { %v4786_v41 = vadd.f32 %v4785_v1, %v4784_v44 }
 0x1a6   : > { %1419 = vmatmul.mubr.f32.gmra.mrb[60].mxu0 %v1099_v45  ;;  %v4780_v45 = vadd.f32 %v4779_v6, %v4778_v4 }
 0x1a7   : > { %1423 = vmatprep.mubr.f32.mxu0 %v1108_v11  ;;  %v1196_v11 = vadd.f32 %v4727_v60, %v7626_v57  ;;  %v1211_v60 = vadd.f32 %v4736_v32, %v7626_v57 }
 0x1a8   : > { %v7799_v10 = vadd.f32 %v4780_v45, %v1191_v49 }
 0x1aa   : > { %1424 = vmatmul.mubr.f32.gmra.mrb[62].mxu0 %v1107_v23  ;;  %v1201_v23 = vadd.f32 %v4730_v50, %v7626_v57  ;;  %v1216_v50 = vadd.f32 %v4739_v9, %v7626_v57 }
 0x1ab   : > { %1428 = vmatprep.mubr.f32.mxu0 %v1116_v46  ;;  %v7802_v46 = vadd.f32 %v4783_v29, %v1196_v11 }
 0x1ac   : > { %v7805_v6 = vadd.f32 %v4786_v41, %v1201_v23 }
 0x1ae   : > { %1429 = vmatmul.mubr.f32.gmra.mrb[64].mxu0 %v1115_v31  ;;  %v4787_v31 = vpop.f32.mrb[56].mxu1 }
 0x1af   : > { %5529 = vmatprep.mubr.msk.f32.mxu0 %vm6805_vm0, %v9054_v40  ;;  %v4788_v4 = vpop.f32.mrb[57].mxu1 }
 0x1b0   : > { %v4789_v55 = vadd.f32 %v4788_v4, %v4787_v31  ;;  %v4790_v45 = vpop.f32.mrb[58].mxu1 }
 0x1b1   : > { %v4791_v30 = vpop.f32.mrb[59].mxu1 }
 0x1b2   : > { %v7808_v49 = vadd.f32 %v4789_v55, %v1206_v2  ;;  %v4792_v13 = vadd.f32 %v4791_v30, %v4790_v45  ;;  %v4793_v29 = vpop.f32.mrb[60].mxu1 }
 0x1b3   : > { %v4794_v44 = vpop.f32.mrb[61].mxu1 }
 0x1b4   : > { %v7811_v11 = vadd.f32 %v4792_v13, %v1211_v60  ;;  %v4795_v1 = vadd.f32 %v4794_v44, %v4793_v29  ;;  %v4796_v41 = vpop.f32.mrb[62].mxu1 }
 0x1b5   : > { %v4797_v31 = vpop.f32.mrb[63].mxu1 }
 0x1b6   : > { %v7814_v23 = vadd.f32 %v4795_v1, %v1216_v50  ;;  %v4798_v4 = vadd.f32 %v4797_v31, %v4796_v41  ;;  %v4887_v55 = vpop.f32.mrb[64].mxu1 }
 0x1b7   : > { %v4888_v2 = vpop.f32.mrb[65].mxu1 }
 0x1b8   : > { %v7816_v32 = vadd.f32 %v4798_v4, %v1221_v59  ;;  %v7818_v36 = vadd.f32 %v4888_v2, %v4887_v55 }
 0x1e6   : > { %v4890_v45 = vpop.f32.mrb[66].mxu1 }
 0x1e7   : > { %v4891_v9 = vpop.f32.mrb[67].mxu1 }
 0x1e8   : > { %v7820_v60 = vadd.f32 %v4891_v9, %v4890_v45 }
 0x1ea   : > { %v4893_v30 = vpop.f32.mrb[68].mxu1 }
 0x1eb   : > { %v4894_v13 = vpop.f32.mrb[69].mxu1 }
 0x1ec   : > { %v7822_v29 = vadd.f32 %v4894_v13, %v4893_v30 }
 0x1ee   : > { %v4896_v57 = vpop.f32.mrb[70].mxu1 }
 0x1ef   : > { %v4897_v15 = vpop.f32.mrb[71].mxu1 }
 0x1f0   : > { %v7824_v50 = vadd.f32 %v4897_v15, %v4896_v57 }
 0x1f2   : > { %v4899_v44 = vpop.f32.mrb[72].mxu1 }
 0x1f3   : > { %v4900_v1 = vpop.f32.mrb[73].mxu1 }
 0x1f4   : > { %v7826_v59 = vadd.f32 %v4900_v1, %v4899_v44  ;;  %v4265_v44 = vld [vmem:[%s8897_s4 + $0x98] sm:$0xff] }
 0x1f6   : > { %v4902_v41 = vpop.f32.mrb[74].mxu1 }
 0x1f7   : > { %v4903_v31 = vpop.f32.mrb[75].mxu1 }
 0x1f8   : > { %v7828_v4 = vadd.f32 %v4903_v31, %v4902_v41  ;;  %v4268_v41 = vld [vmem:[%s8897_s4 + $0xb0] sm:$0xff]  ;;  %v4267_v31 = vld [vmem:[%s8897_s4 + $0xa8] sm:$0xff] }
 0x1fa   : > { %v4905_v55 = vpop.f32.mrb[76].mxu1 }
 0x1fb   : > { %v4906_v2 = vpop.f32.mrb[77].mxu1 }
 0x1fc   : > { %v7830_v45 = vadd.f32 %v4906_v2, %v4905_v55 }
 0x1fe   : > { %v4908_v9 = vpop.f32.mrb[78].mxu1 }
 0x1ff   : > { %v4909_v35 = vpop.f32.mrb[79].mxu1 }
 0x200   : > { %v7832_v30 = vadd.f32 %v4909_v35, %v4908_v9  ;;  %v4264_v35 = vld [vmem:[%s8897_s4 + $0x90] sm:$0xff]  ;;  %v4271_v9 = vld [vmem:[%s8897_s4 + $0xc8] sm:$0xff] }
 0x201   : > { %v6080_v2 = vpack.c.bf16 %v4267_v31, %v4264_v35  ;;  %v6084_v31 = vpack.c.bf16 %v4273_v14, %v4270_v19 }
 0x241   : > { %v7834_v13 = vpop.f32.mrb[32].mxu0 }
 0x242   : > { %v5488_v57 = vpop.f32.mrb[33].mxu0 }
 0x243   : > { %v4274_v57 = vld [vmem:[%s8897_s4 + $0xe0] sm:$0xff] }
 0x244   : > { %v6082_v20 = vpack.c.bf16 %v4274_v57, %v4271_v9  ;;  %v4276_v57 = vld [vmem:[%s8897_s4 + $0xf0] sm:$0xff] }
 0x245   : > { %v7836_v15 = vpop.f32.mrb[34].mxu0 }
 0x246   : > { %v5491_v27 = vpop.f32.mrb[35].mxu0 }
 0x247   : > { %v6078_v27 = vpack.c.bf16 %v4268_v41, %v4265_v44  ;;  %v4277_v44 = vld [vmem:[%s8897_s4 + $0xf8] sm:$0xff]  ;;  %v4280_v41 = vld [vmem:[%s8897_s4 + $0x110] sm:$0xff] }
 0x248   : > { %v6086_v9 = vpack.c.bf16 %v4280_v41, %v4277_v44 }
 0x249   : > { %v7841_v1 = vpop.f32.mrb[36].mxu0  ;;  %6079 = vmatprep.subr.bf16.mxu1 %v6078_v27  ;;  %v4279_v27 = vld [vmem:[%s8897_s4 + $0x108] sm:$0xff] }
 0x24a   : > { %v5494_v55 = vpop.f32.mrb[37].mxu0  ;;  %6081 = vmatpush1.bf16.msra.mxu1 %v6080_v2  ;;  %v6088_v0 = vpack.c.bf16 %v4279_v27, %v4276_v57 }
 0x24b   : > { %6083 = vmatprep.subr.bf16.mxu1 %v6082_v20 }
 0x24d   : > { %v7870_v35 = vpop.f32.mrb[38].mxu0 }
 0x24e   : > { %v5497_v55 = vpop.f32.mrb[39].mxu0  ;;  %6085 = vmatpush1.bf16.msra.mxu1 %v6084_v31 }
 0x24f   : > { %6087 = vmatprep.subr.bf16.mxu1 %v6086_v9 }
 0x251   : > { %v7878_v5 = vpop.f32.mrb[40].mxu0 }
 0x252   : > { %9067 = vst [vmem:[#allocation53_spill] sm:$0xff] %v7878_v5  ;;  %v5500_v63 = vpop.f32.mrb[41].mxu0  ;;  %6089 = vmatpush1.bf16.msra.mxu1 %v6088_v0 }
 0x255   : > { %v7880_v62 = vpop.f32.mrb[42].mxu0 }
 0x256   : > { %v5503_v14 = vpop.f32.mrb[43].mxu0 }
 0x259   : > { %v7882_v19 = vpop.f32.mrb[44].mxu0 }
 0x25a   : > { %9068 = vst [vmem:[#allocation54_spill] sm:$0xff] %v7882_v19  ;;  %v5506_v20 = vpop.f32.mrb[45].mxu0 }
 0x25d   : > { %v7884_v2 = vpop.f32.mrb[46].mxu0 }
 0x25e   : > { %9069 = vst [vmem:[#allocation55_spill] sm:$0xff] %v7884_v2  ;;  %v5509_v44 = vpop.f32.mrb[47].mxu0 }
 0x261   : > { %v7886_v41 = vpop.f32.mrb[48].mxu0 }
 0x262   : > { %9070 = vst [vmem:[#allocation56_spill] sm:$0xff] %v7886_v41  ;;  %v5512_v55 = vpop.f32.mrb[49].mxu0 }
 0x265   : > { %v4831_v56 = vpop.f32.mrb[50].mxu0 }
 0x266   : > { %v4832_v52 = vpop.f32.mrb[51].mxu0 }
 0x267   : > { %v4833_v5 = vadd.f32 %v4832_v52, %v4831_v56 }
 0x269   : > { %v1396_v31 = vadd.f32 %v4833_v5, %v7794_v61  ;;  %v4834_v63 = vpop.f32.mrb[52].mxu0 }
 0x26a   : > { %v4835_v9 = vpop.f32.mrb[53].mxu0 }
 0x26b   : > { %v1501_v57 = vadd.f32 %v7818_v36, %v1396_v31  ;;  %v4836_v0 = vadd.f32 %v4835_v9, %v4834_v63 }
 0x26d   : > { %v4247_v27 = vmul.f32 -1.442695, %v1501_v57  ;;  %v1401_v14 = vadd.f32 %v4836_v0, %v7799_v10  ;;  %v4837_v20 = vpop.f32.mrb[54].mxu0 }
 0x26e   : > { %v4838_v19 = vpop.f32.mrb[55].mxu0 }
 0x26f   : > { %6633 = vpow2.f32 %v4247_v27  ;;  %v1506_v44 = vadd.f32 %v7820_v60, %v1401_v14  ;;  %v4839_v41 = vadd.f32 %v4838_v19, %v4837_v20 }
 0x271   : > { %v4248_v55 = vmul.f32 -1.442695, %v1506_v44  ;;  %v1406_v2 = vadd.f32 %v4839_v41, %v7802_v46  ;;  %v4840_v52 = vpop.f32.mrb[56].mxu0 }
 0x272   : > { %v4841_v56 = vpop.f32.mrb[57].mxu0 }
 0x273   : > { %6635 = vpow2.f32 %v4248_v55  ;;  %v1511_v5 = vadd.f32 %v7822_v29, %v1406_v2  ;;  %v4842_v61 = vadd.f32 %v4841_v56, %v4840_v52 }
 0x275   : > { %v4249_v36 = vmul.f32 -1.442695, %v1511_v5  ;;  %v1411_v31 = vadd.f32 %v4842_v61, %v7805_v6  ;;  %v4843_v63 = vpop.f32.mrb[58].mxu0 }
 0x276   : > { %v4844_v10 = vpop.f32.mrb[59].mxu0 }
 0x277   : > { %6637 = vpow2.f32 %v4249_v36  ;;  %v1516_v9 = vadd.f32 %v7824_v50, %v1411_v31  ;;  %v4845_v57 = vadd.f32 %v4844_v10, %v4843_v63 }
 0x279   : > { %v6634_v60 = vpop.eup %6633  ;;  %v4250_v19 = vmul.f32 -1.442695, %v1516_v9  ;;  %v1416_v0 = vadd.f32 %v4845_v57, %v7808_v49  ;;  %v4846_v46 = vpop.f32.mrb[60].mxu0 }
 0x27a   : > { %v1563_v41 = vadd.f32 1.0, %v6634_v60  ;;  %v4847_v27 = vpop.f32.mrb[61].mxu0 }
 0x27b   : > { %6639 = vpow2.f32 %v4250_v19  ;;  %v1521_v29 = vadd.f32 %v7826_v59, %v1416_v0  ;;  %v4848_v2 = vadd.f32 %v4847_v27, %v4846_v46 }
 0x27c   : > { %6641 = vrcp.f32 %v1563_v41 }
 0x27d   : > { %v6636_v14 = vpop.eup %6635  ;;  %v4251_v20 = vmul.f32 -1.442695, %v1521_v29  ;;  %v1421_v6 = vadd.f32 %v4848_v2, %v7811_v11  ;;  %v4849_v44 = vpop.f32.mrb[62].mxu0 }
 0x27e   : > { %v1564_v55 = vadd.f32 1.0, %v6636_v14  ;;  %v4850_v50 = vpop.f32.mrb[63].mxu0 }
 0x27f   : > { %6643 = vpow2.f32 %v4251_v20  ;;  %v1526_v52 = vadd.f32 %v7828_v4, %v1421_v6  ;;  %v4851_v56 = vadd.f32 %v4850_v50, %v4849_v44 }
 0x280   : > { %6645 = vrcp.f32 %v1564_v55 }
 0x281   : > { %v6638_v49 = vpop.eup %6637  ;;  %v4252_v5 = vmul.f32 -1.442695, %v1526_v52  ;;  %v1426_v61 = vadd.f32 %v4851_v56, %v7814_v23  ;;  %v4852_v36 = vpop.f32.mrb[64].mxu0 }
 0x282   : > { %v1565_v59 = vadd.f32 1.0, %v6638_v49  ;;  %v4853_v31 = vpop.f32.mrb[65].mxu0 }
 0x283   : > { %6647 = vpow2.f32 %v4252_v5  ;;  %v1531_v63 = vadd.f32 %v7830_v45, %v1426_v61  ;;  %v4854_v11 = vadd.f32 %v4853_v31, %v4852_v36  ;;  %v4266_v5 = vld [vmem:[%s8897_s4 + $0xa0] sm:$0xff]  ;;  %v4269_v61 = vld [vmem:[%s8897_s4 + $0xb8] sm:$0xff]  ;;  %v4272_v31 = vld [vmem:[%s8897_s4 + $0xd0] sm:$0xff] }
 0x284   : > { %6649 = vrcp.f32 %v1565_v59  ;;  %v6091_v59 = vpack.c.bf16 %v4269_v61, %v4266_v5 }
 0x285   : > { %v6640_v10 = vpop.eup %6639  ;;  %v4253_v9 = vmul.f32 -1.442695, %v1531_v63  ;;  %v1431_v57 = vadd.f32 %v4854_v11, %v7816_v32  ;;  %v4275_v63 = vld [vmem:[%s8897_s4 + $0xe8] sm:$0xff] }
 0x286   : > { %v1566_v60 = vadd.f32 1.0, %v6640_v10  ;;  %v6642_v19 = vpop.eup %6641  ;;  %v6094_v11 = vpack.c.bf16 %v4275_v63, %v4272_v31  ;;  %v4278_v10 = vld [vmem:[%s8897_s4 + $0x100] sm:$0xff] }
 0x287   : > { %6651 = vpow2.f32 %v4253_v9  ;;  %v1536_v4 = vadd.f32 %v7832_v30, %v1431_v57  ;;  %v4281_v9 = vld [vmem:[%s8897_s4 + $0x118] sm:$0xff]  ;;  %v1047_v57 = vld [vmem:[%s8897_s4 + $0x50] sm:$0xff] }
 0x288   : > { %6653 = vrcp.f32 %v1566_v60 }
 0x289   : > { %v6644_v0 = vpop.eup %6643  ;;  %v4254_v23 = vmul.f32 -1.442695, %v1536_v4 }
 0x28a   : > { %v6646_v46 = vpop.eup %6645  ;;  %v1567_v41 = vadd.f32 1.0, %v6644_v0 }
 0x28b   : > { %6655 = vpow2.f32 %v4254_v23  ;;  %v6067_v27 = vpack.c.bf16 %v6646_v46, %v6642_v19  ;;  %v1043_v19 = vld [vmem:[%s8897_s4 + $0x30] sm:$0xff]  ;;  %v1046_v46 = vld [vmem:[%s8897_s4 + $0x48] sm:$0xff] }
 0x28c   : > { %6657 = vrcp.f32 %v1567_v41  ;;  %v1045_v41 = vld [vmem:[%s8897_s4 + $0x40] sm:$0xff] }
 0x28d   : > { %v6648_v29 = vpop.eup %6647  ;;  %6068 = vmatpush3.bf16.msra.mxu0 %v6067_v27  ;;  %v1048_v27 = vld [vmem:[%s8897_s4 + $0x58] sm:$0xff] }
 0x28e   : > { %v1568_v45 = vadd.f32 1.0, %v6648_v29  ;;  %6069 = vmatprep.subr.bf16.mxu0 %v9055_v58  ;;  %v6650_v32 = vpop.eup %6649 }
 0x290   : > { %6659 = vrcp.f32 %v1568_v45  ;;  %v1050_v45 = vld [vmem:[%s8897_s4 + $0x68] sm:$0xff] }
 0x291   : > { %v6652_v2 = vpop.eup %6651 }
 0x292   : > { %v6654_v14 = vpop.eup %6653  ;;  %v1569_v20 = vadd.f32 1.0, %v6652_v2  ;;  %v6105_v2 = vpack.c.bf16 %v1046_v46, %v1043_v19  ;;  %v9082_v19 = vld [vmem:[#allocation54_spill] sm:$0xff] }
 0x293   : > { %v6070_v30 = vpack.c.bf16 %v6654_v14, %v6650_v32  ;;  %v1053_v32 = vld [vmem:[%s8897_s4 + $0x80] sm:$0xff]  ;;  %v6115_v14 = vpack.c.bf16 %v1048_v27, %v1045_v41  ;;  %v9086_v46 = vld [vmem:[#allocation18_spill] sm:$0xff] }
 0x294   : > { %6661 = vrcp.f32 %v1569_v20  ;;  %v1049_v20 = vld [vmem:[%s8897_s4 + $0x60] sm:$0xff] }
 0x295   : > { %v6656_v6 = vpop.eup %6655  ;;  %6071 = vmatpush3.bf16.msra.mxu0 %v6070_v30  ;;  %v9087_v41 = vld [vmem:[#allocation55_spill] sm:$0xff] }
 0x296   : > { %v1570_v44 = vadd.f32 1.0, %v6656_v6  ;;  %6072 = vmatprep.subr.bf16.mxu0 %v9055_v58  ;;  %v6658_v55 = vpop.eup %6657  ;;  %v6107_v6 = vpack.c.bf16 %v1053_v32, %v1050_v45  ;;  %v9088_v27 = vld [vmem:[#allocation19_spill] sm:$0xff]  ;;  %v2230_v45 = vld [vmem:[%s7110_s14 + $0x88] sm:$0xff]  ;;  %v2232_v32 = vld [vmem:[%s7110_s14 + $0x98] sm:$0xff] }
 0x298   : > { %6663 = vrcp.f32 %v1570_v44  ;;  %v1052_v44 = vld [vmem:[%s8897_s4 + $0x78] sm:$0xff] }
 0x29a   : > { %v6660_v50 = vpop.eup %6659 }
 0x29b   : > { %v6073_v52 = vpack.c.bf16 %v6660_v50, %v6658_v55  ;;  %v1051_v55 = vld [vmem:[%s8897_s4 + $0x70] sm:$0xff]  ;;  %v1054_v50 = vld [vmem:[%s8897_s4 + $0x88] sm:$0xff] }
 0x29d   : > { %6074 = vmatpush3.bf16.msra.mxu0 %v6073_v52 }
 0x29e   : > { %6075 = vmatprep.subr.bf16.mxu0 %v9055_v58  ;;  %v6662_v56 = vpop.eup %6661 }
 0x2a2   : > { %v6664_v49 = vpop.eup %6663 }
 0x2a3   : > { %v6076_v36 = vpack.c.bf16 %v6664_v49, %v6662_v56  ;;  %v6109_v56 = vpack.c.bf16 %v1052_v44, %v1049_v20  ;;  %v6118_v49 = vpack.c.bf16 %v1054_v50, %v1051_v55  ;;  %v9092_v20 = vld [vmem:[#allocation56_spill] sm:$0xff]  ;;  %v2240_v55 = vld [vmem:[%s7110_s14 + $0x198] sm:$0xff]  ;;  %v9093_v50 = vld [vmem:[#allocation23_spill] sm:$0xff] }
 0x2a4   : > { %v2238_v44 = vld [vmem:[%s7110_s14 + $0x188] sm:$0xff] }
 0x2a5   : > { %6077 = vmatpush3.bf16.msra.mxu0 %v6076_v36 }
 0x2a6   : > { %6090 = vmatprep.subr.bf16.mxu0 %v9055_v58 }
 0x2a8   : > { %5530 = vmatmul.mubr.msk.f32.vlgmr.msra.gmra.mrb[66].mxu0 %vm899_vm1, %v7683_v53  ;;  %v6097_v53 = vpack.c.bf16 %v4281_v9, %v4278_v10 }
 0x2a9   : > { %5532 = vmatprep.mubr.msk.f32.mxu0 %vm6805_vm0, %v9054_v40  ;;  %6092 = vmatpush3.bf16.msra.mxu0 %v6091_v59 }
 0x2aa   : > { %6093 = vmatprep.subr.bf16.mxu0 %v9055_v58 }
 0x2ac   : > { %5533 = vmatmul.mubr.msk.f32.gmra.mrb[68].mxu0 %vm899_vm1, %v7693_v37  ;;  %v1038_v37 = vld [vmem:[%s8897_s4 + $0x8] sm:$0xff] }
 0x2ad   : > { %5535 = vmatprep.mubr.msk.f32.mxu0 %vm6805_vm0, %v9054_v40  ;;  %6095 = vmatpush3.bf16.msra.mxu0 %v6094_v11 }
 0x2ae   : > { %6096 = vmatprep.subr.bf16.mxu0 %v9055_v58 }
 0x2b0   : > { %5536 = vmatmul.mubr.msk.f32.gmra.mrb[70].mxu0 %vm899_vm1, %v7704_v28  ;;  %v1041_v28 = vld [vmem:[%s8897_s4 + $0x20] sm:$0xff] }
 0x2b1   : > { %5538 = vmatprep.mubr.msk.f32.mxu0 %vm6805_vm0, %v9054_v40  ;;  %6098 = vmatpush3.bf16.msra.mxu0 %v6097_v53 }
 0x2b2   : > { %6111 = vmatprep.subr.bf16.mxu0 %v9055_v58 }
 0x2b4   : > { %5539 = vmatmul.mubr.msk.f32.gmra.mrb[72].mxu0 %vm899_vm1, %v7715_v24  ;;  %v6099_v24 = vpack.c.bf16 %v1041_v28, %v1038_v37 }
 0x2b5   : > { %5541 = vmatprep.mubr.msk.f32.mxu0 %vm6805_vm0, %v9054_v40 }
 0x2b6   : > { %6100 = vmatprep.subr.bf16.mxu1 %v6099_v24 }
 0x2b8   : > { %5542 = vmatmul.mubr.msk.f32.gmra.mrb[74].mxu0 %vm899_vm1, %v7726_v42  ;;  %v1037_v42 = vld [vmem:[%s8897_s4] sm:$0xff] }
 0x2b9   : > { %5544 = vmatprep.mubr.msk.f32.mxu0 %vm6805_vm0, %v9054_v40 }
 0x2bc   : > { %5545 = vmatmul.mubr.msk.f32.gmra.mrb[76].mxu0 %vm899_vm1, %v7737_v47  ;;  %v1040_v47 = vld [vmem:[%s8897_s4 + $0x18] sm:$0xff] }
 0x2bd   : > { %5547 = vmatprep.mubr.msk.f32.mxu0 %vm6805_vm0, %v9054_v40  ;;  %v6101_v60 = vpack.c.bf16 %v1040_v47, %v1037_v42  ;;  %v9075_v47 = vld [vmem:[#allocation8_spill] sm:$0xff] }
 0x2c0   : > { %5548 = vmatmul.mubr.msk.f32.gmra.mrb[78].mxu0 %vm899_vm1, %v7748_v22  ;;  %v1039_v22 = vld [vmem:[%s8897_s4 + $0x10] sm:$0xff] }
 0x2c1   : > { %5550 = vmatprep.mubr.msk.f32.mxu0 %vm6805_vm0, %v9054_v40 }
 0x2c4   : > { %5551 = vmatmul.mubr.msk.f32.gmra.mrb[80].mxu0 %vm899_vm1, %v7759_v54  ;;  %v1042_v54 = vld [vmem:[%s8897_s4 + $0x28] sm:$0xff] }
 0x2c5   : > { %5553 = vmatprep.mubr.msk.f32.mxu0 %vm6805_vm0, %v9054_v40  ;;  %v6112_v4 = vpack.c.bf16 %v1042_v54, %v1039_v22  ;;  %v9076_v22 = vld [vmem:[#allocation9_spill] sm:$0xff]  ;;  %v9077_v54 = vld [vmem:[#allocation10_spill] sm:$0xff] }
 0x2c8   : > { %5554 = vmatmul.mubr.msk.f32.gmra.mrb[82].mxu0 %vm899_vm1, %v7770_v18  ;;  %v1044_v18 = vld [vmem:[%s8897_s4 + $0x38] sm:$0xff] }
 0x2c9   : > { %5568 = vmatprep.mubr.msk.f32.mxu0 %vm6805_vm0, %v9054_v40  ;;  %v6103_v23 = vpack.c.bf16 %v1047_v57, %v1044_v18  ;;  %v9078_v18 = vld [vmem:[#allocation11_spill] sm:$0xff]  ;;  %v9079_v57 = vld [vmem:[#allocation12_spill] sm:$0xff] }
 0x37b   : > { %v1653_v0 = vpop.f32.mrb[66].mxu0 }
 0x37c   : > { %v5531_v29 = vpop.f32.mrb[67].mxu0  ;;  %4282 = vmatmul.mubr.msk.f32.vlgmr.msra.gmra.mrb[80].mxu1 %vm1716_vm2, %v1653_v0  ;;  %5569 = vmatmul.mubr.msk.f32.vlgmr.msra.gmra.mrb[84].mxu0 %vm1716_vm2, %v1653_v0  ;;  %v9084_v0 = vld [vmem:[#allocation16_spill] sm:$0xff] }
 0x37d   : > { %1814 = vmatprep.mubr.f32.mxu1 %v9054_v40  ;;  %5571 = vmatprep.mubr.msk.f32.mxu0 %vm6805_vm0, %v9054_v40  ;;  %v9089_v29 = vld [vmem:[#allocation20_spill] sm:$0xff] }
 0x37e   : > { %6102 = vmatpush1.bf16.msra.mxu1 %v6101_v60  ;;  %6113 = vmatpush3.bf16.msra.mxu0 %v6112_v4  ;;  %v9080_v60 = vld [vmem:[#allocation13_spill] sm:$0xff]  ;;  %v9081_v4 = vld [vmem:[#allocation14_spill] sm:$0xff] }
 0x37f   : > { %v1658_v30 = vpop.f32.mrb[68].mxu0  ;;  %6104 = vmatprep.subr.bf16.mxu1 %v6103_v23  ;;  %6114 = vmatprep.subr.bf16.mxu0 %v9055_v58  ;;  %v9085_v23 = vld [vmem:[#allocation17_spill] sm:$0xff] }
 0x380   : > { %v5534_v52 = vpop.f32.mrb[69].mxu0  ;;  %4283 = vmatmul.mubr.msk.f32.gmra.mrb[82].mxu1 %vm1716_vm2, %v1658_v30  ;;  %5572 = vmatmul.mubr.msk.f32.gmra.mrb[86].mxu0 %vm1716_vm2, %v1658_v30  ;;  %v2229_v30 = vld [vmem:[%s7110_s14 + $0x80] sm:$0xff] }
 0x381   : > { %1820 = vmatprep.mubr.f32.mxu1 %v9054_v40  ;;  %5574 = vmatprep.mubr.msk.f32.mxu0 %vm6805_vm0, %v9054_v40  ;;  %v9094_v52 = vld [vmem:[#allocation24_spill] sm:$0xff] }
 0x382   : > { %6106 = vmatpush1.bf16.msra.mxu1 %v6105_v2  ;;  %6116 = vmatpush3.bf16.msra.mxu0 %v6115_v14  ;;  %v9090_v2 = vld [vmem:[#allocation21_spill] sm:$0xff]  ;;  %v9091_v14 = vld [vmem:[#allocation22_spill] sm:$0xff] }
 0x383   : > { %v1663_v5 = vpop.f32.mrb[70].mxu0  ;;  %6108 = vmatprep.subr.bf16.mxu1 %v6107_v6  ;;  %6117 = vmatprep.subr.bf16.mxu0 %v9055_v58  ;;  %v2231_v6 = vld [vmem:[%s7110_s14 + $0x90] sm:$0xff] }
 0x384   : > { %v5537_v61 = vpop.f32.mrb[71].mxu0  ;;  %4284 = vmatmul.mubr.msk.f32.gmra.mrb[84].mxu1 %vm1716_vm2, %v1663_v5  ;;  %5575 = vmatmul.mubr.msk.f32.gmra.mrb[88].mxu0 %vm1716_vm2, %v1663_v5  ;;  %v9095_v5 = vld [vmem:[#allocation25_spill] sm:$0xff] }
 0x385   : > { %1826 = vmatprep.mubr.f32.mxu1 %v9054_v40  ;;  %5577 = vmatprep.mubr.msk.f32.mxu0 %vm6805_vm0, %v9054_v40  ;;  %v9096_v61 = vld [vmem:[#allocation26_spill] sm:$0xff] }
 0x386   : > { %6110 = vmatpush1.bf16.msra.mxu1 %v6109_v56  ;;  %6119 = vmatpush3.bf16.msra.mxu0 %v6118_v49  ;;  %v2237_v56 = vld [vmem:[%s7110_s14 + $0x180] sm:$0xff]  ;;  %v2239_v49 = vld [vmem:[%s7110_s14 + $0x190] sm:$0xff] }
 0x387   : > { %v1668_v36 = vpop.f32.mrb[72].mxu0  ;;  %6121 = vmatprep.subr.bf16.mxu1 %v6897_v3  ;;  %6153 = vmatprep.subr.bf16.mxu0 %v6910_v8 }
 0x388   : > { %v5540_v59 = vpop.f32.mrb[73].mxu0  ;;  %4285 = vmatmul.mubr.msk.f32.gmra.mrb[86].mxu1 %vm1716_vm2, %v1668_v36  ;;  %5578 = vmatmul.mubr.msk.f32.gmra.mrb[90].mxu0 %vm1716_vm2, %v1668_v36  ;;  %v2246_v36 = vld [vmem:[%s7110_s14 + $0x288] sm:$0xff] }
 0x389   : > { %1832 = vmatprep.mubr.f32.mxu1 %v9054_v40  ;;  %5580 = vmatprep.mubr.msk.f32.mxu0 %vm6805_vm0, %v9054_v40  ;;  %v2248_v59 = vld [vmem:[%s7110_s14 + $0x298] sm:$0xff] }
 0x38b   : > { %v1673_v31 = vpop.f32.mrb[74].mxu0 }
 0x38c   : > { %v5543_v63 = vpop.f32.mrb[75].mxu0  ;;  %4286 = vmatmul.mubr.msk.f32.gmra.mrb[88].mxu1 %vm1716_vm2, %v1673_v31  ;;  %5581 = vmatmul.mubr.msk.f32.gmra.mrb[92].mxu0 %vm1716_vm2, %v1673_v31  ;;  %v9097_v31 = vld [vmem:[#allocation27_spill] sm:$0xff] }
 0x38d   : > { %1838 = vmatprep.mubr.f32.mxu1 %v9054_v40  ;;  %5583 = vmatprep.mubr.msk.f32.mxu0 %vm6805_vm0, %v9054_v40  ;;  %v9098_v63 = vld [vmem:[#allocation28_spill] sm:$0xff] }
 0x38f   : > { %v1678_v11 = vpop.f32.mrb[76].mxu0 }
 0x390   : > { %v5546_v10 = vpop.f32.mrb[77].mxu0  ;;  %4287 = vmatmul.mubr.msk.f32.gmra.mrb[90].mxu1 %vm1716_vm2, %v1678_v11  ;;  %5584 = vmatmul.mubr.msk.f32.gmra.mrb[94].mxu0 %vm1716_vm2, %v1678_v11  ;;  %v2245_v11 = vld [vmem:[%s7110_s14 + $0x280] sm:$0xff] }
 0x391   : > { %1844 = vmatprep.mubr.f32.mxu1 %v9054_v40  ;;  %5586 = vmatprep.mubr.msk.f32.mxu0 %vm6805_vm0, %v9054_v40  ;;  %v2247_v10 = vld [vmem:[%s7110_s14 + $0x290] sm:$0xff] }
 0x393   : > { %v1683_v9 = vpop.f32.mrb[78].mxu0 }
 0x394   : > { %v5549_v53 = vpop.f32.mrb[79].mxu0  ;;  %4288 = vmatmul.mubr.msk.f32.gmra.mrb[92].mxu1 %vm1716_vm2, %v1683_v9  ;;  %5587 = vmatmul.mubr.msk.f32.gmra.mrb[96].mxu0 %vm1716_vm2, %v1683_v9  ;;  %v9099_v9 = vld [vmem:[#allocation29_spill] sm:$0xff] }
 0x395   : > { %1850 = vmatprep.mubr.f32.mxu1 %v9054_v40  ;;  %5589 = vmatprep.mubr.msk.f32.mxu0 %vm6805_vm0, %v9054_v40  ;;  %v9100_v53 = vld [vmem:[#allocation30_spill] sm:$0xff] }
 0x397   : > { %v1688_v37 = vpop.f32.mrb[80].mxu0 }
 0x398   : > { %v5552_v28 = vpop.f32.mrb[81].mxu0  ;;  %4289 = vmatmul.mubr.msk.f32.gmra.mrb[94].mxu1 %vm1716_vm2, %v1688_v37  ;;  %5590 = vmatmul.mubr.msk.f32.gmra.mrb[98].mxu0 %vm1716_vm2, %v1688_v37  ;;  %v2254_v37 = vld [vmem:[%s7110_s14 + $0x388] sm:$0xff] }
 0x399   : > { %1856 = vmatprep.mubr.f32.mxu1 %v9054_v40  ;;  %5592 = vmatprep.mubr.msk.f32.mxu0 %vm6805_vm0, %v9054_v40  ;;  %v2256_v28 = vld [vmem:[%s7110_s14 + $0x398] sm:$0xff] }
 0x39b   : > { %v1693_v24 = vpop.f32.mrb[82].mxu0 }
 0x39c   : > { %v5555_v42 = vpop.f32.mrb[83].mxu0  ;;  %4290 = vmatmul.mubr.msk.f32.gmra.mrb[96].mxu1 %vm1716_vm2, %v1693_v24  ;;  %5593 = vmatmul.mubr.msk.f32.gmra.mrb[100].mxu0 %vm1716_vm2, %v1693_v24  ;;  %v9101_v24 = vld [vmem:[#allocation31_spill] sm:$0xff] }
 0x39d   : > { %2064 = vmatprep.mubr.f32.mxu1 %v9054_v40  ;;  %5607 = vmatprep.mubr.msk.f32.mxu0 %vm6805_vm0, %v9054_v40  ;;  %v9102_v42 = vld [vmem:[#allocation32_spill] sm:$0xff] }
 0x3a0   : > { %4300 = vmatmul.mubr.msk.f32.vlgmr.msra.gmra.mrb[80].mxu1 %vm1716_vm2, %v7834_v13  ;;  %5608 = vmatmul.mubr.msk.f32.vlgmr.msra.gmra.mrb[84].mxu0 %vm1716_vm2, %v7834_v13  ;;  %v9071_v13 = vld [vmem:[#allocation5_spill] sm:$0xff] }
 0x3a1   : > { %2070 = vmatprep.mubr.f32.mxu1 %v9054_v40  ;;  %5610 = vmatprep.mubr.msk.f32.mxu0 %vm6805_vm0, %v9054_v40 }
 0x3a2   : > { %6123 = vmatpush3.bf16.msra.mxu1 %v6908_v7  ;;  %6155 = vmatpush3.bf16.msra.mxu0 %v6922_v12 }
 0x3a3   : > { %6125 = vmatprep.subr.bf16.mxu1 %v6935_v16  ;;  %6157 = vmatprep.subr.bf16.mxu0 %v6949_v21 }
 0x3a4   : > { %4301 = vmatmul.mubr.msk.f32.gmra.mrb[82].mxu1 %vm1716_vm2, %v7836_v15  ;;  %5611 = vmatmul.mubr.msk.f32.gmra.mrb[86].mxu0 %vm1716_vm2, %v7836_v15  ;;  %v9072_v15 = vld [vmem:[#allocation6_spill] sm:$0xff] }
 0x3a5   : > { %2076 = vmatprep.mubr.f32.mxu1 %v9054_v40  ;;  %5613 = vmatprep.mubr.msk.f32.mxu0 %vm6805_vm0, %v9054_v40 }
 0x3a6   : > { %6127 = vmatpush3.bf16.msra.mxu1 %v6937_v17  ;;  %6159 = vmatpush3.bf16.msra.mxu0 %v6961_v25 }
 0x3a7   : > { %6129 = vmatprep.subr.bf16.mxu1 %v6963_v26  ;;  %6161 = vmatprep.subr.bf16.mxu0 %v6988_v34 }
 0x3a8   : > { %4302 = vmatmul.mubr.msk.f32.gmra.mrb[84].mxu1 %vm1716_vm2, %v7841_v1  ;;  %5614 = vmatmul.mubr.msk.f32.gmra.mrb[88].mxu0 %vm1716_vm2, %v7841_v1  ;;  %v9073_v1 = vld [vmem:[#allocation53_spill] sm:$0xff] }
 0x3a9   : > { %2082 = vmatprep.mubr.f32.mxu1 %v9054_v40  ;;  %5616 = vmatprep.mubr.msk.f32.mxu0 %vm6805_vm0, %v9054_v40 }
 0x3aa   : > { %6131 = vmatpush3.bf16.msra.mxu1 %v6986_v33  ;;  %6163 = vmatpush3.bf16.msra.mxu0 %v7001_v38 }
 0x3ab   : > { %6133 = vmatprep.subr.bf16.mxu1 %v7003_v39  ;;  %6165 = vmatprep.subr.bf16.mxu0 %v7015_v43 }
 0x3ac   : > { %4303 = vmatmul.mubr.msk.f32.gmra.mrb[86].mxu1 %vm1716_vm2, %v7870_v35  ;;  %5617 = vmatmul.mubr.msk.f32.gmra.mrb[90].mxu0 %vm1716_vm2, %v7870_v35  ;;  %v9074_v35 = vld [vmem:[#allocation7_spill] sm:$0xff] }
 0x3ad   : > { %2088 = vmatprep.mubr.f32.mxu1 %v9054_v40  ;;  %5619 = vmatprep.mubr.msk.f32.mxu0 %vm6805_vm0, %v9054_v40 }
 0x3ae   : > { %6135 = vmatpush3.bf16.msra.mxu1 %v7035_v48  ;;  %6167 = vmatpush3.bf16.msra.mxu0 %v7045_v51 }
 0x3af   : > { %6137 = vmatprep.subr.bf16.mxu1 %v9071_v13  ;;  %6169 = vmatprep.subr.bf16.mxu0 %v9072_v15 }
 0x3b0   : > { %4304 = vmatmul.mubr.msk.f32.gmra.mrb[88].mxu1 %vm1716_vm2, %v9073_v1  ;;  %5620 = vmatmul.mubr.msk.f32.gmra.mrb[92].mxu0 %vm1716_vm2, %v9073_v1  ;;  %v2253_v1 = vld [vmem:[%s7110_s14 + $0x380] sm:$0xff] }
 0x3b1   : > { %2094 = vmatprep.mubr.f32.mxu1 %v9054_v40  ;;  %5622 = vmatprep.mubr.msk.f32.mxu0 %vm6805_vm0, %v9054_v40 }
 0x3b2   : > { %6139 = vmatpush3.bf16.msra.mxu1 %v9074_v35  ;;  %6171 = vmatpush3.bf16.msra.mxu0 %v9075_v47 }
 0x3b3   : > { %6141 = vmatprep.subr.bf16.mxu1 %v9076_v22  ;;  %6173 = vmatprep.subr.bf16.mxu0 %v9077_v54 }
 0x3b4   : > { %4305 = vmatmul.mubr.msk.f32.gmra.mrb[90].mxu1 %vm1716_vm2, %v7880_v62  ;;  %5623 = vmatmul.mubr.msk.f32.gmra.mrb[94].mxu0 %vm1716_vm2, %v7880_v62  ;;  %v9083_v62 = vld [vmem:[#allocation15_spill] sm:$0xff] }
 0x3b5   : > { %2100 = vmatprep.mubr.f32.mxu1 %v9054_v40  ;;  %5625 = vmatprep.mubr.msk.f32.mxu0 %vm6805_vm0, %v9054_v40 }
 0x3b6   : > { %6143 = vmatpush3.bf16.msra.mxu1 %v9078_v18  ;;  %6175 = vmatpush3.bf16.msra.mxu0 %v9079_v57 }
 0x3b7   : > { %6145 = vmatprep.subr.bf16.mxu1 %v9080_v60  ;;  %6177 = vmatprep.subr.bf16.mxu0 %v9081_v4 }
 0x3b8   : > { %4306 = vmatmul.mubr.msk.f32.gmra.mrb[92].mxu1 %vm1716_vm2, %v9082_v19  ;;  %5626 = vmatmul.mubr.msk.f32.gmra.mrb[96].mxu0 %vm1716_vm2, %v9082_v19  ;;  %v2255_v19 = vld [vmem:[%s7110_s14 + $0x390] sm:$0xff] }
 0x3b9   : > { %2106 = vmatprep.mubr.f32.mxu1 %v9054_v40  ;;  %5628 = vmatprep.mubr.msk.f32.mxu0 %vm6805_vm0, %v9054_v40 }
 0x3ba   : > { %6147 = vmatpush3.bf16.msra.mxu1 %v9083_v62  ;;  %6179 = vmatpush3.bf16.msra.mxu0 %v9084_v0 }
 0x3bb   : > { %6149 = vmatprep.subr.bf16.mxu1 %v9085_v23  ;;  %6181 = vmatprep.subr.bf16.mxu0 %v9086_v46 }
 0x3bc   : > { %4307 = vmatmul.mubr.msk.f32.gmra.mrb[94].mxu1 %vm1716_vm2, %v9087_v41  ;;  %5629 = vmatmul.mubr.msk.f32.gmra.mrb[98].mxu0 %vm1716_vm2, %v9087_v41  ;;  %v9103_v41 = vld [vmem:[#allocation33_spill] sm:$0xff] }
 0x3bd   : > { %2112 = vmatprep.mubr.f32.mxu1 %v9054_v40  ;;  %5631 = vmatprep.mubr.msk.f32.mxu0 %vm6805_vm0, %v9054_v40 }
 0x3be   : > { %6151 = vmatpush3.bf16.msra.mxu1 %v9088_v27  ;;  %6183 = vmatpush3.bf16.msra.mxu0 %v9089_v29 }
 0x3bf   : > { %6185 = vmatprep.subr.bf16.mxu1 %v9090_v2  ;;  %6217 = vmatprep.subr.bf16.mxu0 %v9091_v14 }
 0x3c0   : > { %4308 = vmatmul.mubr.msk.f32.gmra.mrb[96].mxu1 %vm1716_vm2, %v9092_v20  ;;  %5632 = vmatmul.mubr.msk.f32.gmra.mrb[100].mxu0 %vm1716_vm2, %v9092_v20  ;;  %v2264_v20 = vld [vmem:[%s7110_s14 + $0x498] sm:$0xff] }
 0x3c1   : > { %2357 = vmatprep.mubr.f32.mxu1 %v2230_v45  ;;  %2462 = vmatprep.mubr.f32.mxu0 %v2232_v32  ;;  %v9104_v45 = vld [vmem:[#allocation34_spill] sm:$0xff]  ;;  %v2262_v32 = vld [vmem:[%s7110_s14 + $0x488] sm:$0xff] }
 0x3c4   : > { %2358 = vmatmul.mubr.f32.vlgmr.msra.gmra.mrb[98].mxu1 %v2229_v30  ;;  %2463 = vmatmul.mubr.f32.vlgmr.msra.gmra.mrb[102].mxu0 %v2231_v6  ;;  %v9105_v30 = vld [vmem:[#allocation35_spill] sm:$0xff]  ;;  %v9106_v6 = vld [vmem:[#allocation36_spill] sm:$0xff] }
 0x3c5   : > { %6187 = vmatpush3.bf16.msra.mxu1 %v9093_v50  ;;  %6219 = vmatpush3.bf16.msra.mxu0 %v9094_v52 }
 0x3c6   : > { %2362 = vmatprep.mubr.f32.mxu1 %v2238_v44  ;;  %2467 = vmatprep.mubr.f32.mxu0 %v2240_v55  ;;  %v2261_v44 = vld [vmem:[%s7110_s14 + $0x480] sm:$0xff]  ;;  %v2263_v55 = vld [vmem:[%s7110_s14 + $0x490] sm:$0xff] }
 0x3c7   : > { %6189 = vmatprep.subr.bf16.mxu1 %v9095_v5  ;;  %6221 = vmatprep.subr.bf16.mxu0 %v9096_v61 }
 0x3c8   : > { %2363 = vmatmul.mubr.f32.gmra.mrb[100].mxu1 %v2237_v56  ;;  %2468 = vmatmul.mubr.f32.gmra.mrb[104].mxu0 %v2239_v49  ;;  %v9107_v56 = vld [vmem:[#allocation37_spill] sm:$0xff]  ;;  %v9108_v49 = vld [vmem:[#allocation38_spill] sm:$0xff] }
 0x3c9   : > { %6191 = vmatpush3.bf16.msra.mxu1 %v9097_v31  ;;  %6223 = vmatpush3.bf16.msra.mxu0 %v9098_v63 }
 0x3ca   : > { %2367 = vmatprep.mubr.f32.mxu1 %v2246_v36  ;;  %2472 = vmatprep.mubr.f32.mxu0 %v2248_v59  ;;  %v2270_v36 = vld [vmem:[%s7110_s14 + $0x588] sm:$0xff]  ;;  %v2272_v59 = vld [vmem:[%s7110_s14 + $0x598] sm:$0xff] }
 0x3cb   : > { %6193 = vmatprep.subr.bf16.mxu1 %v9099_v9  ;;  %6225 = vmatprep.subr.bf16.mxu0 %v9100_v53 }
 0x3cc   : > { %2368 = vmatmul.mubr.f32.gmra.mrb[102].mxu1 %v2245_v11  ;;  %2473 = vmatmul.mubr.f32.gmra.mrb[106].mxu0 %v2247_v10  ;;  %v9109_v11 = vld [vmem:[#allocation39_spill] sm:$0xff]  ;;  %v9110_v10 = vld [vmem:[#allocation40_spill] sm:$0xff] }
 0x3cd   : > { %6195 = vmatpush3.bf16.msra.mxu1 %v9101_v24  ;;  %6227 = vmatpush3.bf16.msra.mxu0 %v9102_v42 }
 0x3ce   : > { %2372 = vmatprep.mubr.f32.mxu1 %v2254_v37  ;;  %2477 = vmatprep.mubr.f32.mxu0 %v2256_v28  ;;  %v2269_v37 = vld [vmem:[%s7110_s14 + $0x580] sm:$0xff]  ;;  %v2271_v28 = vld [vmem:[%s7110_s14 + $0x590] sm:$0xff] }
 0x3cf   : > { %6197 = vmatprep.subr.bf16.mxu1 %v9103_v41  ;;  %6229 = vmatprep.subr.bf16.mxu0 %v9104_v45 }
 0x3d0   : > { %2373 = vmatmul.mubr.f32.gmra.mrb[104].mxu1 %v2253_v1  ;;  %2478 = vmatmul.mubr.f32.gmra.mrb[108].mxu0 %v2255_v19  ;;  %v9111_v1 = vld [vmem:[#allocation41_spill] sm:$0xff]  ;;  %v9112_v19 = vld [vmem:[#allocation42_spill] sm:$0xff] }
 0x3d1   : > { %6199 = vmatpush3.bf16.msra.mxu1 %v9105_v30  ;;  %6231 = vmatpush3.bf16.msra.mxu0 %v9106_v6  ;;  %v4346_v6 = vld [vmem:[%s8897_s4 + $0x178] sm:$0xff] }
 0x3d2   : > { %2377 = vmatprep.mubr.f32.mxu1 %v2262_v32  ;;  %2482 = vmatprep.mubr.f32.mxu0 %v2264_v20  ;;  %v2278_v32 = vld [vmem:[%s7110_s14 + $0x688] sm:$0xff]  ;;  %v2280_v20 = vld [vmem:[%s7110_s14 + $0x698] sm:$0xff] }
 0x3d3   : > { %6201 = vmatprep.subr.bf16.mxu1 %v9107_v56  ;;  %6233 = vmatprep.subr.bf16.mxu0 %v9108_v49 }
 0x3d4   : > { %2378 = vmatmul.mubr.f32.gmra.mrb[106].mxu1 %v2261_v44  ;;  %2483 = vmatmul.mubr.f32.gmra.mrb[110].mxu0 %v2263_v55  ;;  %v9113_v44 = vld [vmem:[#allocation43_spill] sm:$0xff]  ;;  %v9114_v55 = vld [vmem:[#allocation44_spill] sm:$0xff] }
 0x3d5   : > { %6203 = vmatpush3.bf16.msra.mxu1 %v9109_v11  ;;  %6235 = vmatpush3.bf16.msra.mxu0 %v9110_v10  ;;  %v2277_v10 = vld [vmem:[%s7110_s14 + $0x680] sm:$0xff]  ;;  %v2279_v11 = vld [vmem:[%s7110_s14 + $0x690] sm:$0xff] }
 0x3d6   : > { %2382 = vmatprep.mubr.f32.mxu1 %v2270_v36  ;;  %2487 = vmatprep.mubr.f32.mxu0 %v2272_v59  ;;  %v9115_v36 = vld [vmem:[#allocation45_spill] sm:$0xff]  ;;  %v9116_v59 = vld [vmem:[#allocation46_spill] sm:$0xff] }
 0x3d7   : > { %6205 = vmatprep.subr.bf16.mxu1 %v9111_v1  ;;  %6237 = vmatprep.subr.bf16.mxu0 %v9112_v19  ;;  %v2286_v19 = vld [vmem:[%s7110_s14 + $0x788] sm:$0xff]  ;;  %v2288_v1 = vld [vmem:[%s7110_s14 + $0x798] sm:$0xff] }
 0x3d8   : > { %2383 = vmatmul.mubr.f32.gmra.mrb[108].mxu1 %v2269_v37  ;;  %2488 = vmatmul.mubr.f32.gmra.mrb[112].mxu0 %v2271_v28  ;;  %v9117_v37 = vld [vmem:[#allocation47_spill] sm:$0xff]  ;;  %v9118_v28 = vld [vmem:[#allocation48_spill] sm:$0xff] }
 0x3d9   : > { %6207 = vmatpush3.bf16.msra.mxu1 %v9113_v44  ;;  %6239 = vmatpush3.bf16.msra.mxu0 %v9114_v55  ;;  %v2285_v55 = vld [vmem:[%s7110_s14 + $0x780] sm:$0xff]  ;;  %v2236_v44 = vld [vmem:[%s7110_s14 + $0xb8] sm:$0xff] }
 0x3da   : > { %2387 = vmatprep.mubr.f32.mxu1 %v2278_v32  ;;  %2492 = vmatprep.mubr.f32.mxu0 %v2280_v20  ;;  %v2287_v32 = vld [vmem:[%s7110_s14 + $0x790] sm:$0xff] }
 0x3db   : > { %6209 = vmatprep.subr.bf16.mxu1 %v9115_v36  ;;  %6241 = vmatprep.subr.bf16.mxu0 %v9116_v59  ;;  %v9119_v20 = vld [vmem:[#allocation49_spill] sm:$0xff]  ;;  %v9120_v36 = vld [vmem:[#allocation50_spill] sm:$0xff]  ;;  %v2234_v59 = vld [vmem:[%s7110_s14 + $0xa8] sm:$0xff] }
 0x3dc   : > { %2388 = vmatmul.mubr.f32.gmra.mrb[110].mxu1 %v2277_v10  ;;  %2493 = vmatmul.mubr.f32.gmra.mrb[114].mxu0 %v2279_v11  ;;  %v9121_v11 = vld [vmem:[#allocation51_spill] sm:$0xff]  ;;  %v9122_v10 = vld [vmem:[#allocation52_spill] sm:$0xff] }
 0x3dd   : > { %6211 = vmatpush3.bf16.msra.mxu1 %v9117_v37  ;;  %6243 = vmatpush3.bf16.msra.mxu0 %v9118_v28  ;;  %v2233_v28 = vld [vmem:[%s7110_s14 + $0xa0] sm:$0xff]  ;;  %v2235_v37 = vld [vmem:[%s7110_s14 + $0xb0] sm:$0xff] }
 0x3de   : > { %2392 = vmatprep.mubr.f32.mxu1 %v2286_v19  ;;  %2497 = vmatprep.mubr.f32.mxu0 %v2288_v1  ;;  %v2242_v1 = vld [vmem:[%s7110_s14 + $0x1a8] sm:$0xff]  ;;  %v2244_v19 = vld [vmem:[%s7110_s14 + $0x1b8] sm:$0xff] }
 0x3df   : > { %6213 = vmatprep.subr.bf16.mxu1 %v9119_v20  ;;  %6245 = vmatprep.subr.bf16.mxu0 %v9120_v36  ;;  %v2290_v36 = vld [vmem:[%s7110_s14 + $0x7a8] sm:$0xff]  ;;  %v2292_v20 = vld [vmem:[%s7110_s14 + $0x7b8] sm:$0xff] }
 0x3e0   : > { %2393 = vmatmul.mubr.f32.gmra.mrb[112].mxu1 %v2285_v55  ;;  %2498 = vmatmul.mubr.f32.gmra.mrb[116].mxu0 %v2287_v32  ;;  %v2241_v55 = vld [vmem:[%s7110_s14 + $0x1a0] sm:$0xff]  ;;  %v2243_v32 = vld [vmem:[%s7110_s14 + $0x1b0] sm:$0xff] }
 0x3e1   : > { %6215 = vmatpush3.bf16.msra.mxu1 %v9121_v11  ;;  %6247 = vmatpush3.bf16.msra.mxu0 %v9122_v10  ;;  %v2249_v10 = vld [vmem:[%s7110_s14 + $0x2a0] sm:$0xff]  ;;  %v2251_v11 = vld [vmem:[%s7110_s14 + $0x2b0] sm:$0xff] }
 0x3e2   : > { %2567 = vmatprep.mubr.f32.mxu1 %v2234_v59  ;;  %2672 = vmatprep.mubr.f32.mxu0 %v2236_v44  ;;  %v2250_v59 = vld [vmem:[%s7110_s14 + $0x2a8] sm:$0xff]  ;;  %v2252_v44 = vld [vmem:[%s7110_s14 + $0x2b8] sm:$0xff] }
 0x3e3   : > { %6248 = vmatprep.subr.bf16.mxu1 %v9055_v58  ;;  %6272 = vmatprep.subr.bf16.mxu0 %v9055_v58 }
 0x3e4   : > { %2568 = vmatmul.mubr.f32.vlgmr.msra.gmra.mrb[114].mxu1 %v2233_v28  ;;  %2673 = vmatmul.mubr.f32.vlgmr.msra.gmra.mrb[118].mxu0 %v2235_v37  ;;  %v2258_v28 = vld [vmem:[%s7110_s14 + $0x3a8] sm:$0xff]  ;;  %v2260_v37 = vld [vmem:[%s7110_s14 + $0x3b8] sm:$0xff] }
 0x3e5   : > { %2572 = vmatprep.mubr.f32.mxu1 %v2242_v1  ;;  %2677 = vmatprep.mubr.f32.mxu0 %v2244_v19  ;;  %v2257_v1 = vld [vmem:[%s7110_s14 + $0x3a0] sm:$0xff]  ;;  %v2259_v19 = vld [vmem:[%s7110_s14 + $0x3b0] sm:$0xff] }
 0x3e8   : > { %2573 = vmatmul.mubr.f32.gmra.mrb[116].mxu1 %v2241_v55  ;;  %2678 = vmatmul.mubr.f32.gmra.mrb[120].mxu0 %v2243_v32  ;;  %v2266_v55 = vld [vmem:[%s7110_s14 + $0x4a8] sm:$0xff]  ;;  %v2268_v32 = vld [vmem:[%s7110_s14 + $0x4b8] sm:$0xff] }
 0x3e9   : > { %2577 = vmatprep.mubr.f32.mxu1 %v2250_v59  ;;  %2682 = vmatprep.mubr.f32.mxu0 %v2252_v44  ;;  %v2265_v59 = vld [vmem:[%s7110_s14 + $0x4a0] sm:$0xff]  ;;  %v2267_v44 = vld [vmem:[%s7110_s14 + $0x4b0] sm:$0xff] }
 0x3ec   : > { %2578 = vmatmul.mubr.f32.gmra.mrb[118].mxu1 %v2249_v10  ;;  %2683 = vmatmul.mubr.f32.gmra.mrb[122].mxu0 %v2251_v11  ;;  %v2274_v10 = vld [vmem:[%s7110_s14 + $0x5a8] sm:$0xff]  ;;  %v2276_v11 = vld [vmem:[%s7110_s14 + $0x5b8] sm:$0xff] }
 0x3ed   : > { %2582 = vmatprep.mubr.f32.mxu1 %v2258_v28  ;;  %2687 = vmatprep.mubr.f32.mxu0 %v2260_v37  ;;  %v2273_v28 = vld [vmem:[%s7110_s14 + $0x5a0] sm:$0xff]  ;;  %v2275_v37 = vld [vmem:[%s7110_s14 + $0x5b0] sm:$0xff] }
 0x3f0   : > { %2583 = vmatmul.mubr.f32.gmra.mrb[120].mxu1 %v2257_v1  ;;  %2688 = vmatmul.mubr.f32.gmra.mrb[124].mxu0 %v2259_v19  ;;  %v2282_v1 = vld [vmem:[%s7110_s14 + $0x6a8] sm:$0xff]  ;;  %v2284_v19 = vld [vmem:[%s7110_s14 + $0x6b8] sm:$0xff] }
 0x3f1   : > { %2587 = vmatprep.mubr.f32.mxu1 %v2266_v55  ;;  %2692 = vmatprep.mubr.f32.mxu0 %v2268_v32  ;;  %v2281_v55 = vld [vmem:[%s7110_s14 + $0x6a0] sm:$0xff]  ;;  %v2283_v32 = vld [vmem:[%s7110_s14 + $0x6b0] sm:$0xff] }
 0x3f4   : > { %2588 = vmatmul.mubr.f32.gmra.mrb[122].mxu1 %v2265_v59  ;;  %2693 = vmatmul.mubr.f32.gmra.mrb[126].mxu0 %v2267_v44  ;;  %v2289_v59 = vld [vmem:[%s7110_s14 + $0x7a0] sm:$0xff]  ;;  %v2291_v44 = vld [vmem:[%s7110_s14 + $0x7b0] sm:$0xff] }
 0x3f5   : > { %2592 = vmatprep.mubr.f32.mxu1 %v2274_v10  ;;  %2697 = vmatprep.mubr.f32.mxu0 %v2276_v11 }
 0x3f8   : > { %2593 = vmatmul.mubr.f32.gmra.mrb[124].mxu1 %v2273_v28  ;;  %2698 = vmatmul.mubr.f32.gmra.mrb[128].mxu0 %v2275_v37 }
 0x3f9   : > { %2597 = vmatprep.mubr.f32.mxu1 %v2282_v1  ;;  %2702 = vmatprep.mubr.f32.mxu0 %v2284_v19 }
 0x3fc   : > { %2598 = vmatmul.mubr.f32.gmra.mrb[126].mxu1 %v2281_v55  ;;  %2703 = vmatmul.mubr.f32.gmra.mrb[130].mxu0 %v2283_v32 }
 0x3fd   : > { %2602 = vmatprep.mubr.f32.mxu1 %v2290_v36  ;;  %2707 = vmatprep.mubr.f32.mxu0 %v2292_v20  ;;  %v8263_v36 = vld [vmem:[%s8895_s2] ss:$0 sm:$0xff] }
 0x3fe   : > { %9123 = vst [vmem:[#allocation5_spill] sm:$0xff] %v8263_v36 }
 0x400   : > { %2603 = vmatmul.mubr.f32.gmra.mrb[128].mxu1 %v2289_v59  ;;  %2708 = vmatmul.mubr.f32.gmra.mrb[132].mxu0 %v2291_v44  ;;  %v4337_v59 = vld [vmem:[%s8897_s4 + $0x130] sm:$0xff]  ;;  %v4340_v44 = vld [vmem:[%s8897_s4 + $0x148] sm:$0xff] }
 0x401   : > { %5650 = vmatprep.mubr.msk.f32.mxu1 %vm6805_vm0, %v9054_v40  ;;  %5689 = vmatprep.mubr.msk.f32.mxu0 %vm6805_vm0, %v9054_v40 }
 0x497   : > { %v4990_v10 = vpop.f32.mrb[98].mxu1  ;;  %v5046_v11 = vpop.f32.mrb[102].mxu0 }
 0x498   : > { %v4991_v28 = vpop.f32.mrb[99].mxu1  ;;  %v5047_v37 = vpop.f32.mrb[103].mxu0 }
 0x499   : > { %v4992_v1 = vadd.f32 %v4991_v28, %v4990_v10  ;;  %v5048_v19 = vadd.f32 %v5047_v37, %v5046_v11  ;;  %v6273_v11 = vpack.c.bf16 %v4340_v44, %v4337_v59 }
 0x49b   : > { %v2360_v20 = vadd.f32 %v8263_v36, %v4992_v1  ;;  %v4993_v55 = vpop.f32.mrb[100].mxu1  ;;  %v5049_v32 = vpop.f32.mrb[104].mxu0  ;;  %v4343_v1 = vld [vmem:[%s8897_s4 + $0x160] sm:$0xff]  ;;  %6274 = vmatpush3.bf16.msra.mxu0 %v6273_v11 }
 0x49c   : > { %v4994_v49 = vpop.f32.mrb[101].mxu1  ;;  %v5050_v10 = vpop.f32.mrb[105].mxu0  ;;  %v6276_v30 = vpack.c.bf16 %v4346_v6, %v4343_v1  ;;  %6275 = vmatprep.subr.bf16.mxu0 %v9055_v58 }
 0x49d   : > { %v8272_v28 = vadd.f32 %v5048_v19, %v2360_v20  ;;  %v4995_v37 = vadd.f32 %v4994_v49, %v4993_v55  ;;  %v5051_v56 = vadd.f32 %v5050_v10, %v5049_v32  ;;  %v4349_v49 = vld [vmem:[%s8897_s4 + $0x190] sm:$0xff]  ;;  %v4352_v19 = vld [vmem:[%s8897_s4 + $0x1a8] sm:$0xff] }
 0x49e   : > { %v6279_v44 = vpack.c.bf16 %v4352_v19, %v4349_v49 }
 0x49f   : > { %v2365_v45 = vadd.f32 %v8263_v36, %v4995_v37  ;;  %v4996_v41 = vpop.f32.mrb[102].mxu1  ;;  %v5052_v42 = vpop.f32.mrb[106].mxu0  ;;  %6277 = vmatpush3.bf16.msra.mxu0 %v6276_v30 }
 0x4a0   : > { %v4997_v20 = vpop.f32.mrb[103].mxu1  ;;  %v5053_v55 = vpop.f32.mrb[107].mxu0  ;;  %6278 = vmatprep.subr.bf16.mxu0 %v9055_v58 }
 0x4a1   : > { %v8288_v32 = vadd.f32 %v5051_v56, %v2365_v45  ;;  %v4998_v59 = vadd.f32 %v4997_v20, %v4996_v41  ;;  %v5054_v6 = vadd.f32 %v5053_v55, %v5052_v42 }
 0x4a3   : > { %v2370_v10 = vadd.f32 %v8263_v36, %v4998_v59  ;;  %v4999_v11 = vpop.f32.mrb[104].mxu1  ;;  %v5055_v37 = vpop.f32.mrb[108].mxu0  ;;  %6280 = vmatpush3.bf16.msra.mxu0 %v6279_v44 }
 0x4a4   : > { %v5000_v1 = vpop.f32.mrb[105].mxu1  ;;  %v5056_v24 = vpop.f32.mrb[109].mxu0  ;;  %6282 = vmatprep.subr.bf16.mxu0 %v6897_v3 }
 0x4a5   : > { %v8292_v53 = vadd.f32 %v5054_v6, %v2370_v10  ;;  %v5001_v9 = vadd.f32 %v5000_v1, %v4999_v11  ;;  %v5057_v63 = vadd.f32 %v5056_v24, %v5055_v37 }
 0x4a7   : > { %v2375_v45 = vadd.f32 %v8263_v36, %v5001_v9  ;;  %v5002_v56 = vpop.f32.mrb[106].mxu1  ;;  %v5058_v41 = vpop.f32.mrb[110].mxu0 }
 0x4a8   : > { %v5003_v42 = vpop.f32.mrb[107].mxu1  ;;  %v5059_v30 = vpop.f32.mrb[111].mxu0 }
 0x4a9   : > { %v8296_v49 = vadd.f32 %v5057_v63, %v2375_v45  ;;  %v5004_v19 = vadd.f32 %v5003_v42, %v5002_v56  ;;  %v5060_v20 = vadd.f32 %v5059_v30, %v5058_v41 }
 0x4ab   : > { %v2380_v55 = vadd.f32 %v8263_v36, %v5004_v19  ;;  %v5005_v59 = vpop.f32.mrb[108].mxu1  ;;  %v5061_v6 = vpop.f32.mrb[112].mxu0 }
 0x4ac   : > { %v5006_v10 = vpop.f32.mrb[109].mxu1  ;;  %v5062_v11 = vpop.f32.mrb[113].mxu0 }
 0x4ad   : > { %v8299_v24 = vadd.f32 %v5060_v20, %v2380_v55  ;;  %v5007_v44 = vadd.f32 %v5006_v10, %v5005_v59  ;;  %v5063_v9 = vadd.f32 %v5062_v11, %v5061_v6 }
 0x4af   : > { %v2385_v37 = vadd.f32 %v8263_v36, %v5007_v44  ;;  %v5008_v1 = vpop.f32.mrb[110].mxu1  ;;  %v5064_v3 = vpop.f32.mrb[114].mxu0 }
 0x4b0   : > { %v5009_v31 = vpop.f32.mrb[111].mxu1  ;;  %v5065_v61 = vpop.f32.mrb[115].mxu0 }
 0x4b1   : > { %v8302_v63 = vadd.f32 %v5063_v9, %v2385_v37  ;;  %v5010_v45 = vadd.f32 %v5009_v31, %v5008_v1  ;;  %v5066_v56 = vadd.f32 %v5065_v61, %v5064_v3 }
 0x4b3   : > { %v2390_v41 = vadd.f32 %v8263_v36, %v5010_v45  ;;  %v5011_v42 = vpop.f32.mrb[112].mxu1  ;;  %v5067_v30 = vpop.f32.mrb[116].mxu0 }
 0x4b4   : > { %v5012_v19 = vpop.f32.mrb[113].mxu1  ;;  %v5068_v5 = vpop.f32.mrb[117].mxu0 }
 0x4b5   : > { %v8305_v20 = vadd.f32 %v5066_v56, %v2390_v41  ;;  %v5013_v55 = vadd.f32 %v5012_v19, %v5011_v42  ;;  %v5069_v59 = vadd.f32 %v5068_v5, %v5067_v30 }
 0x4b7   : > { %v2395_v6 = vadd.f32 %v8263_v36, %v5013_v55  ;;  %v5102_v10 = vpop.f32.mrb[114].mxu1  ;;  %v5158_v11 = vpop.f32.mrb[118].mxu0 }
 0x4b8   : > { %v5103_v44 = vpop.f32.mrb[115].mxu1  ;;  %v5159_v52 = vpop.f32.mrb[119].mxu0 }
 0x4b9   : > { %v8308_v9 = vadd.f32 %v5069_v59, %v2395_v6  ;;  %v5104_v31 = vadd.f32 %v5103_v44, %v5102_v10  ;;  %v5160_v61 = vadd.f32 %v5159_v52, %v5158_v11 }
 0x4bb   : > { %v2570_v37 = vadd.f32 %v5104_v31, %v8272_v28  ;;  %v5105_v1 = vpop.f32.mrb[116].mxu1  ;;  %v5161_v3 = vpop.f32.mrb[120].mxu0 }
 0x4bc   : > { %v5106_v45 = vpop.f32.mrb[117].mxu1  ;;  %v5162_v50 = vpop.f32.mrb[121].mxu0 }
 0x4bd   : > { %v2675_v56 = vadd.f32 %v5160_v61, %v2570_v37  ;;  %v5107_v41 = vadd.f32 %v5106_v45, %v5105_v1  ;;  %v5163_v42 = vadd.f32 %v5162_v50, %v5161_v3 }
 0x4bf   : > { %v4318_v5 = vmul.f32 -1.442695, %v2675_v56  ;;  %v2575_v30 = vadd.f32 %v5107_v41, %v8288_v32  ;;  %v5108_v19 = vpop.f32.mrb[118].mxu1  ;;  %v5164_v55 = vpop.f32.mrb[122].mxu0 }
 0x4c0   : > { %v5109_v36 = vpop.f32.mrb[119].mxu1  ;;  %v5165_v14 = vpop.f32.mrb[123].mxu0 }
 0x4c1   : > { %6665 = vpow2.f32 %v4318_v5  ;;  %v2680_v59 = vadd.f32 %v5163_v42, %v2575_v30  ;;  %v5110_v6 = vadd.f32 %v5109_v36, %v5108_v19  ;;  %v5166_v52 = vadd.f32 %v5165_v14, %v5164_v55 }
 0x4c3   : > { %v4319_v10 = vmul.f32 -1.442695, %v2680_v59  ;;  %v2580_v28 = vadd.f32 %v5110_v6, %v8292_v53  ;;  %v5111_v11 = vpop.f32.mrb[120].mxu1  ;;  %v5167_v44 = vpop.f32.mrb[124].mxu0 }
 0x4c4   : > { %v5112_v31 = vpop.f32.mrb[121].mxu1  ;;  %v5168_v61 = vpop.f32.mrb[125].mxu0 }
 0x4c5   : > { %6667 = vpow2.f32 %v4319_v10  ;;  %v2685_v50 = vadd.f32 %v5166_v52, %v2580_v28  ;;  %v5113_v37 = vadd.f32 %v5112_v31, %v5111_v11  ;;  %v5169_v1 = vadd.f32 %v5168_v61, %v5167_v44 }
 0x4c7   : > { %v4320_v32 = vmul.f32 -1.442695, %v2685_v50  ;;  %v2585_v3 = vadd.f32 %v5113_v37, %v8296_v49  ;;  %v5114_v45 = vpop.f32.mrb[122].mxu1  ;;  %v5170_v56 = vpop.f32.mrb[126].mxu0 }
 0x4c8   : > { %v5115_v41 = vpop.f32.mrb[123].mxu1  ;;  %v5171_v42 = vpop.f32.mrb[127].mxu0 }
 0x4c9   : > { %6669 = vpow2.f32 %v4320_v32  ;;  %v2690_v14 = vadd.f32 %v5169_v1, %v2585_v3  ;;  %v5116_v36 = vadd.f32 %v5115_v41, %v5114_v45  ;;  %v5172_v5 = vadd.f32 %v5171_v42, %v5170_v56 }
 0x4cb   : > { %v6666_v53 = vpop.eup %6665  ;;  %v4321_v30 = vmul.f32 -1.442695, %v2690_v14  ;;  %v2590_v19 = vadd.f32 %v5116_v36, %v8299_v24  ;;  %v5117_v55 = vpop.f32.mrb[124].mxu1 }
 0x4cc   : > { %v5173_v59 = vpop.f32.mrb[128].mxu0  ;;  %v2737_v6 = vadd.f32 1.0, %v6666_v53  ;;  %v5118_v52 = vpop.f32.mrb[125].mxu1 }
 0x4cd   : > { %v5174_v10 = vpop.f32.mrb[129].mxu0  ;;  %6671 = vpow2.f32 %v4321_v30  ;;  %v2695_v28 = vadd.f32 %v5172_v5, %v2590_v19  ;;  %v5119_v49 = vadd.f32 %v5118_v52, %v5117_v55 }
 0x4ce   : > { %v5175_v11 = vadd.f32 %v5174_v10, %v5173_v59  ;;  %6673 = vrcp.f32 %v2737_v6 }
 0x4cf   : > { %v6668_v44 = vpop.eup %6667  ;;  %v4322_v31 = vmul.f32 -1.442695, %v2695_v28  ;;  %v2595_v61 = vadd.f32 %v5119_v49, %v8302_v63  ;;  %v5120_v50 = vpop.f32.mrb[126].mxu1 }
 0x4d0   : > { %v5176_v37 = vpop.f32.mrb[130].mxu0  ;;  %v2738_v1 = vadd.f32 1.0, %v6668_v44  ;;  %v5121_v32 = vpop.f32.mrb[127].mxu1 }
 0x4d1   : > { %v5177_v3 = vpop.f32.mrb[131].mxu0  ;;  %6675 = vpow2.f32 %v4322_v31  ;;  %v2700_v24 = vadd.f32 %v5175_v11, %v2595_v61  ;;  %v5122_v45 = vadd.f32 %v5121_v32, %v5120_v50 }
 0x4d2   : > { %v5178_v56 = vadd.f32 %v5177_v3, %v5176_v37  ;;  %6677 = vrcp.f32 %v2738_v1 }
 0x4d3   : > { %v6670_v41 = vpop.eup %6669  ;;  %v4323_v42 = vmul.f32 -1.442695, %v2700_v24  ;;  %v2600_v14 = vadd.f32 %v5122_v45, %v8305_v20  ;;  %v5123_v36 = vpop.f32.mrb[128].mxu1 }
 0x4d4   : > { %v5179_v5 = vpop.f32.mrb[132].mxu0  ;;  %v2739_v53 = vadd.f32 1.0, %v6670_v41  ;;  %v5124_v30 = vpop.f32.mrb[129].mxu1 }
 0x4d5   : > { %v5180_v63 = vpop.f32.mrb[133].mxu0  ;;  %6679 = vpow2.f32 %v4323_v42  ;;  %v2705_v19 = vadd.f32 %v5178_v56, %v2600_v14  ;;  %v5125_v55 = vadd.f32 %v5124_v30, %v5123_v36 }
 0x4d6   : > { %v5181_v59 = vadd.f32 %v5180_v63, %v5179_v5  ;;  %6681 = vrcp.f32 %v2739_v53  ;;  %v4336_v5 = vld [vmem:[%s8897_s4 + $0x128] sm:$0xff]  ;;  %v4339_v53 = vld [vmem:[%s8897_s4 + $0x140] sm:$0xff] }
 0x4d7   : > { %v6672_v6 = vpop.eup %6671  ;;  %v4324_v52 = vmul.f32 -1.442695, %v2705_v19  ;;  %v2605_v10 = vadd.f32 %v5125_v55, %v8308_v9  ;;  %v6260_v19 = vpack.c.bf16 %v4339_v53, %v4336_v5  ;;  %v4335_v55 = vld [vmem:[%s8897_s4 + $0x120] sm:$0xff] }
 0x4d8   : > { %v2740_v28 = vadd.f32 1.0, %v6672_v6  ;;  %v6674_v11 = vpop.eup %6673 }
 0x4d9   : > { %6683 = vpow2.f32 %v4324_v52  ;;  %v2710_v49 = vadd.f32 %v5181_v59, %v2605_v10  ;;  %v4338_v59 = vld [vmem:[%s8897_s4 + $0x138] sm:$0xff]  ;;  %v4345_v10 = vld [vmem:[%s8897_s4 + $0x170] sm:$0xff] }
 0x4da   : > { %6685 = vrcp.f32 %v2740_v28  ;;  %v4342_v52 = vld [vmem:[%s8897_s4 + $0x158] sm:$0xff]  ;;  %v6262_v28 = vpack.c.bf16 %v4338_v59, %v4335_v55  ;;  %v9131_v55 = vld [vmem:[#allocation29_spill] sm:$0xff] }
 0x4db   : > { %v6676_v20 = vpop.eup %6675  ;;  %v4325_v44 = vmul.f32 -1.442695, %v2710_v49  ;;  %v6264_v49 = vpack.c.bf16 %v4345_v10, %v4342_v52  ;;  %v9132_v59 = vld [vmem:[#allocation30_spill] sm:$0xff]  ;;  %v9133_v10 = vld [vmem:[#allocation31_spill] sm:$0xff] }
 0x4dc   : > { %v6678_v31 = vpop.eup %6677  ;;  %v2741_v61 = vadd.f32 1.0, %v6676_v20  ;;  %v4344_v20 = vld [vmem:[%s8897_s4 + $0x168] sm:$0xff]  ;;  %v3200_v52 = vld [vmem:[%s7110_s14 + $0x3d8] sm:$0xff] }
 0x4dd   : > { %6687 = vpow2.f32 %v4325_v44  ;;  %v6249_v50 = vpack.c.bf16 %v6678_v31, %v6674_v11  ;;  %v4341_v11 = vld [vmem:[%s8897_s4 + $0x150] sm:$0xff]  ;;  %v4348_v44 = vld [vmem:[%s8897_s4 + $0x188] sm:$0xff]  ;;  %v4351_v31 = vld [vmem:[%s8897_s4 + $0x1a0] sm:$0xff] }
 0x4de   : > { %6689 = vrcp.f32 %v2741_v61  ;;  %v8354_v61 = vld [vmem:[%s8896_s3] sm:$0xff] }
 0x4df   : > { %v6680_v37 = vpop.eup %6679  ;;  %6250 = vmatpush3.bf16.msra.mxu1 %v6249_v50  ;;  %v6266_v50 = vpack.c.bf16 %v4344_v20, %v4341_v11  ;;  %v3199_v11 = vld [vmem:[%s7110_s14 + $0x3d0] sm:$0xff] }
 0x4e0   : > { %v2742_v1 = vadd.f32 1.0, %v6680_v37  ;;  %6251 = vmatprep.subr.bf16.mxu1 %v9055_v58  ;;  %v6682_v32 = vpop.eup %6681  ;;  %v6268_v37 = vpack.c.bf16 %v4351_v31, %v4348_v44  ;;  %v9135_v20 = vld [vmem:[#allocation33_spill] sm:$0xff]  ;;  %v9136_v44 = vld [vmem:[#allocation34_spill] sm:$0xff]  ;;  %v3206_v31 = vld [vmem:[%s7110_s14 + $0x4c8] sm:$0xff] }
 0x4e2   : > { %6691 = vrcp.f32 %v2742_v1  ;;  %v4347_v1 = vld [vmem:[%s8897_s4 + $0x180] sm:$0xff] }
 0x4e3   : > { %v6684_v9 = vpop.eup %6683 }
 0x4e4   : > { %v6686_v3 = vpop.eup %6685  ;;  %v2743_v24 = vadd.f32 1.0, %v6684_v9  ;;  %v8369_v9 = vld [vmem:[%s8896_s3 + $0x8] sm:$0xff] }
 0x4e5   : > { %v6252_v45 = vpack.c.bf16 %v6686_v3, %v6682_v32  ;;  %v4350_v32 = vld [vmem:[%s8897_s4 + $0x198] sm:$0xff] }
 0x4e6   : > { %6693 = vrcp.f32 %v2743_v24  ;;  %v6270_v3 = vpack.c.bf16 %v4350_v32, %v4347_v1  ;;  %v8378_v24 = vld [vmem:[%s8896_s3 + $0x10] sm:$0xff]  ;;  %v9138_v1 = vld [vmem:[#allocation36_spill] sm:$0xff]  ;;  %v3205_v32 = vld [vmem:[%s7110_s14 + $0x4c0] sm:$0xff] }
 0x4e7   : > { %v6688_v56 = vpop.eup %6687  ;;  %6253 = vmatpush3.bf16.msra.mxu1 %v6252_v45  ;;  %v8388_v45 = vld [vmem:[%s8896_s3 + $0x18] sm:$0xff] }
 0x4e8   : > { %v2744_v41 = vadd.f32 1.0, %v6688_v56  ;;  %6254 = vmatprep.subr.bf16.mxu1 %v9055_v58  ;;  %v6690_v42 = vpop.eup %6689  ;;  %v8397_v56 = vld [vmem:[%s8896_s3 + $0x20] sm:$0xff] }
 0x4ea   : > { %6695 = vrcp.f32 %v2744_v41  ;;  %v8415_v41 = vld [vmem:[%s8896_s3 + $0x30] sm:$0xff] }
 0x4ec   : > { %v6692_v14 = vpop.eup %6691 }
 0x4ed   : > { %v6255_v36 = vpack.c.bf16 %v6692_v14, %v6690_v42  ;;  %v8424_v42 = vld [vmem:[%s8896_s3 + $0x38] sm:$0xff]  ;;  %v8433_v14 = vld [vmem:[%s8896_s3 + $0x40] sm:$0xff] }
 0x4ef   : > { %6256 = vmatpush3.bf16.msra.mxu1 %v6255_v36 }
 0x4f0   : > { %6257 = vmatprep.subr.bf16.mxu1 %v9055_v58  ;;  %v6694_v30 = vpop.eup %6693 }
 0x4f4   : > { %v6696_v63 = vpop.eup %6695 }
 0x4f5   : > { %v6258_v6 = vpack.c.bf16 %v6696_v63, %v6694_v30  ;;  %v3189_v63 = vld [vmem:[%s7110_s14 + $0x2c0] sm:$0xff] }
 0x4f7   : > { %6259 = vmatpush3.bf16.msra.mxu1 %v6258_v6  ;;  %v3198_v6 = vld [vmem:[%s7110_s14 + $0x3c8] sm:$0xff] }
 0x4f8   : > { %6261 = vmatprep.subr.bf16.mxu1 %v6260_v19  ;;  %v3191_v19 = vld [vmem:[%s7110_s14 + $0x2d0] sm:$0xff] }
 0x4fa   : > { %5651 = vmatmul.mubr.msk.f32.vlgmr.msra.gmra.mrb[130].mxu1 %vm899_vm1, %v8354_v61 }
 0x4fb   : > { %5653 = vmatprep.mubr.msk.f32.mxu1 %vm6805_vm0, %v9054_v40  ;;  %6263 = vmatpush1.bf16.msra.mxu1 %v6262_v28  ;;  %v9134_v28 = vld [vmem:[#allocation32_spill] sm:$0xff] }
 0x4fc   : > { %6265 = vmatprep.subr.bf16.mxu1 %v6264_v49  ;;  %v3197_v49 = vld [vmem:[%s7110_s14 + $0x3c0] sm:$0xff] }
 0x4fe   : > { %5654 = vmatmul.mubr.msk.f32.gmra.mrb[132].mxu1 %vm899_vm1, %v8369_v9 }
 0x4ff   : > { %5656 = vmatprep.mubr.msk.f32.mxu1 %vm6805_vm0, %v9054_v40  ;;  %6267 = vmatpush1.bf16.msra.mxu1 %v6266_v50  ;;  %v3208_v50 = vld [vmem:[%s7110_s14 + $0x4d8] sm:$0xff] }
 0x500   : > { %6269 = vmatprep.subr.bf16.mxu1 %v6268_v37  ;;  %v9137_v37 = vld [vmem:[#allocation35_spill] sm:$0xff] }
 0x502   : > { %5657 = vmatmul.mubr.msk.f32.gmra.mrb[134].mxu1 %vm899_vm1, %v8378_v24 }
 0x503   : > { %5659 = vmatprep.mubr.msk.f32.mxu1 %vm6805_vm0, %v9054_v40  ;;  %6271 = vmatpush1.bf16.msra.mxu1 %v6270_v3  ;;  %v3207_v3 = vld [vmem:[%s7110_s14 + $0x4d0] sm:$0xff] }
 0x504   : > { %6314 = vmatprep.subr.bf16.mxu1 %v6910_v8  ;;  %v8406_v8 = vld [vmem:[%s8896_s3 + $0x28] sm:$0xff] }
 0x506   : > { %5660 = vmatmul.mubr.msk.f32.gmra.mrb[136].mxu1 %vm899_vm1, %v8388_v45 }
 0x507   : > { %5662 = vmatprep.mubr.msk.f32.mxu1 %vm6805_vm0, %v9054_v40 }
 0x50a   : > { %5663 = vmatmul.mubr.msk.f32.gmra.mrb[138].mxu1 %vm899_vm1, %v8397_v56 }
 0x50b   : > { %5665 = vmatprep.mubr.msk.f32.mxu1 %vm6805_vm0, %v9054_v40 }
 0x50e   : > { %5666 = vmatmul.mubr.msk.f32.gmra.mrb[140].mxu1 %vm899_vm1, %v8406_v8 }
 0x50f   : > { %5668 = vmatprep.mubr.msk.f32.mxu1 %vm6805_vm0, %v9054_v40 }
 0x512   : > { %5669 = vmatmul.mubr.msk.f32.gmra.mrb[142].mxu1 %vm899_vm1, %v8415_v41 }
 0x513   : > { %5671 = vmatprep.mubr.msk.f32.mxu1 %vm6805_vm0, %v9054_v40 }
 0x516   : > { %5672 = vmatmul.mubr.msk.f32.gmra.mrb[144].mxu1 %vm899_vm1, %v8424_v42 }
 0x517   : > { %5674 = vmatprep.mubr.msk.f32.mxu1 %vm6805_vm0, %v9054_v40 }
 0x51a   : > { %5675 = vmatmul.mubr.msk.f32.gmra.mrb[146].mxu1 %vm899_vm1, %v8433_v14 }
 0x51b   : > { %2981 = vmatprep.mubr.f32.mxu1 %v9054_v40 }
 0x5cd   : > { %v2827_v36 = vpop.f32.mrb[130].mxu1 }
 0x5ce   : > { %v5652_v5 = vpop.f32.mrb[131].mxu1  ;;  %4353 = vmatmul.mubr.msk.f32.vlgmr.msra.gmra.mrb[80].mxu1 %vm1716_vm2, %v2827_v36  ;;  %5690 = vmatmul.mubr.msk.f32.vlgmr.msra.gmra.mrb[84].mxu0 %vm1716_vm2, %v2827_v36  ;;  %v9139_v36 = vld [vmem:[#allocation37_spill] sm:$0xff] }
 0x5cf   : > { %2987 = vmatprep.mubr.f32.mxu1 %v9054_v40  ;;  %5692 = vmatprep.mubr.msk.f32.mxu0 %vm6805_vm0, %v9054_v40  ;;  %v9140_v5 = vld [vmem:[#allocation38_spill] sm:$0xff] }
 0x5d0   : > { %6284 = vmatpush3.bf16.msra.mxu0 %v6908_v7  ;;  %6316 = vmatpush3.bf16.msra.mxu1 %v6922_v12 }
 0x5d1   : > { %v2832_v53 = vpop.f32.mrb[132].mxu1  ;;  %6286 = vmatprep.subr.bf16.mxu0 %v6935_v16  ;;  %6318 = vmatprep.subr.bf16.mxu1 %v6949_v21 }
 0x5d2   : > { %v5655_v30 = vpop.f32.mrb[133].mxu1  ;;  %4354 = vmatmul.mubr.msk.f32.gmra.mrb[82].mxu1 %vm1716_vm2, %v2832_v53  ;;  %5693 = vmatmul.mubr.msk.f32.gmra.mrb[86].mxu0 %vm1716_vm2, %v2832_v53  ;;  %v3214_v53 = vld [vmem:[%s7110_s14 + $0x5c8] sm:$0xff] }
 0x5d3   : > { %2993 = vmatprep.mubr.f32.mxu1 %v9054_v40  ;;  %5695 = vmatprep.mubr.msk.f32.mxu0 %vm6805_vm0, %v9054_v40  ;;  %v3216_v30 = vld [vmem:[%s7110_s14 + $0x5d8] sm:$0xff] }
 0x5d4   : > { %6288 = vmatpush3.bf16.msra.mxu0 %v6937_v17  ;;  %6320 = vmatpush3.bf16.msra.mxu1 %v6961_v25 }
 0x5d5   : > { %v2837_v7 = vpop.f32.mrb[134].mxu1  ;;  %6290 = vmatprep.subr.bf16.mxu0 %v6963_v26  ;;  %6322 = vmatprep.subr.bf16.mxu1 %v6988_v34 }
 0x5d6   : > { %v5658_v12 = vpop.f32.mrb[135].mxu1  ;;  %4355 = vmatmul.mubr.msk.f32.gmra.mrb[84].mxu1 %vm1716_vm2, %v2837_v7  ;;  %5696 = vmatmul.mubr.msk.f32.gmra.mrb[88].mxu0 %vm1716_vm2, %v2837_v7  ;;  %v9141_v7 = vld [vmem:[#allocation39_spill] sm:$0xff] }
 0x5d7   : > { %2999 = vmatprep.mubr.f32.mxu1 %v9054_v40  ;;  %5698 = vmatprep.mubr.msk.f32.mxu0 %vm6805_vm0, %v9054_v40  ;;  %v9142_v12 = vld [vmem:[#allocation40_spill] sm:$0xff] }
 0x5d8   : > { %6292 = vmatpush3.bf16.msra.mxu0 %v6986_v33  ;;  %6324 = vmatpush3.bf16.msra.mxu1 %v7001_v38 }
 0x5d9   : > { %v2842_v16 = vpop.f32.mrb[136].mxu1  ;;  %6294 = vmatprep.subr.bf16.mxu0 %v7003_v39  ;;  %6326 = vmatprep.subr.bf16.mxu1 %v7015_v43 }
 0x5da   : > { %v5661_v17 = vpop.f32.mrb[137].mxu1  ;;  %4356 = vmatmul.mubr.msk.f32.gmra.mrb[86].mxu1 %vm1716_vm2, %v2842_v16  ;;  %5699 = vmatmul.mubr.msk.f32.gmra.mrb[90].mxu0 %vm1716_vm2, %v2842_v16  ;;  %v3213_v16 = vld [vmem:[%s7110_s14 + $0x5c0] sm:$0xff] }
 0x5db   : > { %3005 = vmatprep.mubr.f32.mxu1 %v9054_v40  ;;  %5701 = vmatprep.mubr.msk.f32.mxu0 %vm6805_vm0, %v9054_v40  ;;  %v3215_v17 = vld [vmem:[%s7110_s14 + $0x5d0] sm:$0xff] }
 0x5dc   : > { %6296 = vmatpush3.bf16.msra.mxu0 %v7035_v48  ;;  %6328 = vmatpush3.bf16.msra.mxu1 %v7045_v51  ;;  %v3174_v48 = vld [vmem:[%s7110_s14 + $0xc8] sm:$0xff]  ;;  %v3176_v51 = vld [vmem:[%s7110_s14 + $0xd8] sm:$0xff] }
 0x5dd   : > { %v2847_v21 = vpop.f32.mrb[138].mxu1  ;;  %6298 = vmatprep.subr.bf16.mxu0 %v9071_v13  ;;  %6330 = vmatprep.subr.bf16.mxu1 %v9072_v15  ;;  %v9124_v15 = vld [vmem:[#allocation22_spill] sm:$0xff] }
 0x5de   : > { %v5664_v25 = vpop.f32.mrb[139].mxu1  ;;  %4357 = vmatmul.mubr.msk.f32.gmra.mrb[88].mxu1 %vm1716_vm2, %v2847_v21  ;;  %5702 = vmatmul.mubr.msk.f32.gmra.mrb[92].mxu0 %vm1716_vm2, %v2847_v21  ;;  %v9143_v21 = vld [vmem:[#allocation41_spill] sm:$0xff] }
 0x5df   : > { %3011 = vmatprep.mubr.f32.mxu1 %v9054_v40  ;;  %5704 = vmatprep.mubr.msk.f32.mxu0 %vm6805_vm0, %v9054_v40  ;;  %v9144_v25 = vld [vmem:[#allocation42_spill] sm:$0xff] }
 0x5e0   : > { %6300 = vmatpush3.bf16.msra.mxu0 %v9074_v35  ;;  %6332 = vmatpush3.bf16.msra.mxu1 %v9075_v47  ;;  %v3173_v47 = vld [vmem:[%s7110_s14 + $0xc0] sm:$0xff] }
 0x5e1   : > { %v2852_v26 = vpop.f32.mrb[140].mxu1  ;;  %6302 = vmatprep.subr.bf16.mxu0 %v9076_v22  ;;  %6334 = vmatprep.subr.bf16.mxu1 %v9077_v54  ;;  %v3175_v22 = vld [vmem:[%s7110_s14 + $0xd0] sm:$0xff]  ;;  %v3182_v54 = vld [vmem:[%s7110_s14 + $0x1c8] sm:$0xff] }
 0x5e2   : > { %v5667_v33 = vpop.f32.mrb[141].mxu1  ;;  %4358 = vmatmul.mubr.msk.f32.gmra.mrb[90].mxu1 %vm1716_vm2, %v2852_v26  ;;  %5705 = vmatmul.mubr.msk.f32.gmra.mrb[94].mxu0 %vm1716_vm2, %v2852_v26  ;;  %v3222_v26 = vld [vmem:[%s7110_s14 + $0x6c8] sm:$0xff] }
 0x5e3   : > { %3017 = vmatprep.mubr.f32.mxu1 %v9054_v40  ;;  %5707 = vmatprep.mubr.msk.f32.mxu0 %vm6805_vm0, %v9054_v40  ;;  %v3224_v33 = vld [vmem:[%s7110_s14 + $0x6d8] sm:$0xff] }
 0x5e4   : > { %6304 = vmatpush3.bf16.msra.mxu0 %v9078_v18  ;;  %6336 = vmatpush3.bf16.msra.mxu1 %v9079_v57  ;;  %v3184_v18 = vld [vmem:[%s7110_s14 + $0x1d8] sm:$0xff]  ;;  %v9125_v57 = vld [vmem:[#allocation23_spill] sm:$0xff] }
 0x5e5   : > { %v2857_v34 = vpop.f32.mrb[142].mxu1  ;;  %6306 = vmatprep.subr.bf16.mxu0 %v9080_v60  ;;  %6338 = vmatprep.subr.bf16.mxu1 %v9081_v4  ;;  %v9126_v60 = vld [vmem:[#allocation24_spill] sm:$0xff]  ;;  %v3181_v4 = vld [vmem:[%s7110_s14 + $0x1c0] sm:$0xff] }
 0x5e6   : > { %v5670_v38 = vpop.f32.mrb[143].mxu1  ;;  %4359 = vmatmul.mubr.msk.f32.gmra.mrb[92].mxu1 %vm1716_vm2, %v2857_v34  ;;  %5708 = vmatmul.mubr.msk.f32.gmra.mrb[96].mxu0 %vm1716_vm2, %v2857_v34  ;;  %v9145_v34 = vld [vmem:[#allocation43_spill] sm:$0xff] }
 0x5e7   : > { %3023 = vmatprep.mubr.f32.mxu1 %v9054_v40  ;;  %5710 = vmatprep.mubr.msk.f32.mxu0 %vm6805_vm0, %v9054_v40  ;;  %v9146_v38 = vld [vmem:[#allocation44_spill] sm:$0xff] }
 0x5e8   : > { %6308 = vmatpush3.bf16.msra.mxu0 %v9083_v62  ;;  %6340 = vmatpush3.bf16.msra.mxu1 %v9084_v0  ;;  %v3183_v62 = vld [vmem:[%s7110_s14 + $0x1d0] sm:$0xff] }
 0x5e9   : > { %v2862_v39 = vpop.f32.mrb[144].mxu1  ;;  %6310 = vmatprep.subr.bf16.mxu0 %v9085_v23  ;;  %6342 = vmatprep.subr.bf16.mxu1 %v9086_v46  ;;  %v9127_v0 = vld [vmem:[#allocation25_spill] sm:$0xff]  ;;  %v9128_v23 = vld [vmem:[#allocation26_spill] sm:$0xff]  ;;  %v3190_v46 = vld [vmem:[%s7110_s14 + $0x2c8] sm:$0xff] }
 0x5ea   : > { %v5673_v43 = vpop.f32.mrb[145].mxu1  ;;  %4360 = vmatmul.mubr.msk.f32.gmra.mrb[94].mxu1 %vm1716_vm2, %v2862_v39  ;;  %5711 = vmatmul.mubr.msk.f32.gmra.mrb[98].mxu0 %vm1716_vm2, %v2862_v39  ;;  %v3221_v39 = vld [vmem:[%s7110_s14 + $0x6c0] sm:$0xff] }
 0x5eb   : > { %3029 = vmatprep.mubr.f32.mxu1 %v9054_v40  ;;  %5713 = vmatprep.mubr.msk.f32.mxu0 %vm6805_vm0, %v9054_v40  ;;  %v3223_v43 = vld [vmem:[%s7110_s14 + $0x6d0] sm:$0xff] }
 0x5ec   : > { %6312 = vmatpush3.bf16.msra.mxu0 %v9088_v27  ;;  %6344 = vmatpush3.bf16.msra.mxu1 %v9089_v29  ;;  %v3192_v27 = vld [vmem:[%s7110_s14 + $0x2d8] sm:$0xff]  ;;  %v9129_v29 = vld [vmem:[#allocation27_spill] sm:$0xff] }
 0x5ed   : > { %v2867_v13 = vpop.f32.mrb[146].mxu1  ;;  %6346 = vmatprep.subr.bf16.mxu0 %v9090_v2  ;;  %6378 = vmatprep.subr.bf16.mxu1 %v9124_v15  ;;  %v9130_v2 = vld [vmem:[#allocation28_spill] sm:$0xff]  ;;  %v3232_v15 = vld [vmem:[%s7110_s14 + $0x7d8] sm:$0xff] }
 0x5ee   : > { %v5676_v35 = vpop.f32.mrb[147].mxu1  ;;  %4361 = vmatmul.mubr.msk.f32.gmra.mrb[96].mxu1 %vm1716_vm2, %v2867_v13  ;;  %5714 = vmatmul.mubr.msk.f32.gmra.mrb[100].mxu0 %vm1716_vm2, %v2867_v13  ;;  %v3230_v13 = vld [vmem:[%s7110_s14 + $0x7c8] sm:$0xff] }
 0x5ef   : > { %3301 = vmatprep.mubr.f32.mxu0 %v3174_v48  ;;  %3406 = vmatprep.mubr.f32.mxu1 %v3176_v51  ;;  %v9147_v48 = vld [vmem:[#allocation45_spill] sm:$0xff]  ;;  %v9148_v51 = vld [vmem:[#allocation46_spill] sm:$0xff]  ;;  %v9149_v35 = vld [vmem:[#allocation47_spill] sm:$0xff] }
 0x5f2   : > { %3302 = vmatmul.mubr.f32.vlgmr.msra.gmra.mrb[134].mxu0 %v3173_v47  ;;  %3407 = vmatmul.mubr.f32.vlgmr.msra.gmra.mrb[148].mxu1 %v3175_v22  ;;  %v9150_v47 = vld [vmem:[#allocation48_spill] sm:$0xff]  ;;  %v3229_v22 = vld [vmem:[%s7110_s14 + $0x7c0] sm:$0xff] }
 0x5f3   : > { %6348 = vmatpush3.bf16.msra.mxu0 %v9125_v57  ;;  %6380 = vmatpush3.bf16.msra.mxu1 %v9126_v60  ;;  %v9152_v57 = vld [vmem:[#allocation50_spill] sm:$0xff]  ;;  %v3178_v60 = vld [vmem:[%s7110_s14 + $0xe8] sm:$0xff] }
 0x5f4   : > { %3306 = vmatprep.mubr.f32.mxu0 %v3182_v54  ;;  %3411 = vmatprep.mubr.f32.mxu1 %v3184_v18  ;;  %v3231_v54 = vld [vmem:[%s7110_s14 + $0x7d0] sm:$0xff] }
 0x5f5   : > { %6350 = vmatprep.subr.bf16.mxu0 %v9127_v0  ;;  %6382 = vmatprep.subr.bf16.mxu1 %v9128_v23  ;;  %v9151_v18 = vld [vmem:[#allocation49_spill] sm:$0xff]  ;;  %v9154_v0 = vld [vmem:[#allocation52_spill] sm:$0xff]  ;;  %v3177_v23 = vld [vmem:[%s7110_s14 + $0xe0] sm:$0xff] }
 0x5f6   : > { %3307 = vmatmul.mubr.f32.gmra.mrb[136].mxu0 %v3181_v4  ;;  %3412 = vmatmul.mubr.f32.gmra.mrb[150].mxu1 %v3183_v62  ;;  %v3180_v4 = vld [vmem:[%s7110_s14 + $0xf8] sm:$0xff]  ;;  %v9153_v62 = vld [vmem:[#allocation51_spill] sm:$0xff] }
 0x5f7   : > { %6352 = vmatpush3.bf16.msra.mxu0 %v9129_v29  ;;  %6384 = vmatpush3.bf16.msra.mxu1 %v9130_v2  ;;  %v3188_v29 = vld [vmem:[%s7110_s14 + $0x1f8] sm:$0xff]  ;;  %v3185_v2 = vld [vmem:[%s7110_s14 + $0x1e0] sm:$0xff] }
 0x5f8   : > { %3311 = vmatprep.mubr.f32.mxu0 %v3190_v46  ;;  %3416 = vmatprep.mubr.f32.mxu1 %v3192_v27  ;;  %v3179_v46 = vld [vmem:[%s7110_s14 + $0xf0] sm:$0xff]  ;;  %v3186_v27 = vld [vmem:[%s7110_s14 + $0x1e8] sm:$0xff] }
 0x5f9   : > { %6354 = vmatprep.subr.bf16.mxu0 %v9131_v55  ;;  %6386 = vmatprep.subr.bf16.mxu1 %v9132_v59  ;;  %v3196_v55 = vld [vmem:[%s7110_s14 + $0x2f8] sm:$0xff]  ;;  %v3193_v59 = vld [vmem:[%s7110_s14 + $0x2e0] sm:$0xff] }
 0x5fa   : > { %3312 = vmatmul.mubr.f32.gmra.mrb[138].mxu0 %v3189_v63  ;;  %3417 = vmatmul.mubr.f32.gmra.mrb[152].mxu1 %v3191_v19  ;;  %v3187_v63 = vld [vmem:[%s7110_s14 + $0x1f0] sm:$0xff]  ;;  %v3194_v19 = vld [vmem:[%s7110_s14 + $0x2e8] sm:$0xff] }
 0x5fb   : > { %6356 = vmatpush3.bf16.msra.mxu0 %v9133_v10  ;;  %6388 = vmatpush3.bf16.msra.mxu1 %v9134_v28  ;;  %v3204_v10 = vld [vmem:[%s7110_s14 + $0x3f8] sm:$0xff]  ;;  %v3201_v28 = vld [vmem:[%s7110_s14 + $0x3e0] sm:$0xff] }
 0x5fc   : > { %3316 = vmatprep.mubr.f32.mxu0 %v3198_v6  ;;  %3421 = vmatprep.mubr.f32.mxu1 %v3200_v52  ;;  %v3195_v6 = vld [vmem:[%s7110_s14 + $0x2f0] sm:$0xff]  ;;  %v3202_v52 = vld [vmem:[%s7110_s14 + $0x3e8] sm:$0xff] }
 0x5fd   : > { %6358 = vmatprep.subr.bf16.mxu0 %v9135_v20  ;;  %6390 = vmatprep.subr.bf16.mxu1 %v9136_v44  ;;  %v3212_v20 = vld [vmem:[%s7110_s14 + $0x4f8] sm:$0xff]  ;;  %v3209_v44 = vld [vmem:[%s7110_s14 + $0x4e0] sm:$0xff] }
 0x5fe   : > { %3317 = vmatmul.mubr.f32.gmra.mrb[140].mxu0 %v3197_v49  ;;  %3422 = vmatmul.mubr.f32.gmra.mrb[154].mxu1 %v3199_v11  ;;  %v3203_v49 = vld [vmem:[%s7110_s14 + $0x3f0] sm:$0xff]  ;;  %v3210_v11 = vld [vmem:[%s7110_s14 + $0x4e8] sm:$0xff] }
 0x5ff   : > { %6360 = vmatpush3.bf16.msra.mxu0 %v9137_v37  ;;  %6392 = vmatpush3.bf16.msra.mxu1 %v9138_v1  ;;  %v3220_v37 = vld [vmem:[%s7110_s14 + $0x5f8] sm:$0xff]  ;;  %v3217_v1 = vld [vmem:[%s7110_s14 + $0x5e0] sm:$0xff] }
 0x600   : > { %3321 = vmatprep.mubr.f32.mxu0 %v3206_v31  ;;  %3426 = vmatprep.mubr.f32.mxu1 %v3208_v50  ;;  %v3211_v31 = vld [vmem:[%s7110_s14 + $0x4f0] sm:$0xff]  ;;  %v3218_v50 = vld [vmem:[%s7110_s14 + $0x5e8] sm:$0xff] }
 0x601   : > { %6362 = vmatprep.subr.bf16.mxu0 %v9139_v36  ;;  %6394 = vmatprep.subr.bf16.mxu1 %v9140_v5  ;;  %v3228_v36 = vld [vmem:[%s7110_s14 + $0x6f8] sm:$0xff]  ;;  %v3225_v5 = vld [vmem:[%s7110_s14 + $0x6e0] sm:$0xff] }
 0x602   : > { %3322 = vmatmul.mubr.f32.gmra.mrb[142].mxu0 %v3205_v32  ;;  %3427 = vmatmul.mubr.f32.gmra.mrb[156].mxu1 %v3207_v3  ;;  %v3219_v32 = vld [vmem:[%s7110_s14 + $0x5f0] sm:$0xff]  ;;  %v3226_v3 = vld [vmem:[%s7110_s14 + $0x6e8] sm:$0xff] }
 0x603   : > { %6364 = vmatpush3.bf16.msra.mxu0 %v9141_v7  ;;  %6396 = vmatpush3.bf16.msra.mxu1 %v9142_v12  ;;  %v3236_v7 = vld [vmem:[%s7110_s14 + $0x7f8] sm:$0xff]  ;;  %v3233_v12 = vld [vmem:[%s7110_s14 + $0x7e0] sm:$0xff] }
 0x604   : > { %3326 = vmatprep.mubr.f32.mxu0 %v3214_v53  ;;  %3431 = vmatprep.mubr.f32.mxu1 %v3216_v30  ;;  %v3227_v53 = vld [vmem:[%s7110_s14 + $0x6f0] sm:$0xff]  ;;  %v3234_v30 = vld [vmem:[%s7110_s14 + $0x7e8] sm:$0xff] }
 0x605   : > { %6366 = vmatprep.subr.bf16.mxu0 %v9143_v21  ;;  %6398 = vmatprep.subr.bf16.mxu1 %v9144_v25 }
 0x606   : > { %3327 = vmatmul.mubr.f32.gmra.mrb[144].mxu0 %v3213_v16  ;;  %3432 = vmatmul.mubr.f32.gmra.mrb[158].mxu1 %v3215_v17  ;;  %v3235_v16 = vld [vmem:[%s7110_s14 + $0x7f0] sm:$0xff] }
 0x607   : > { %6368 = vmatpush3.bf16.msra.mxu0 %v9145_v34  ;;  %6400 = vmatpush3.bf16.msra.mxu1 %v9146_v38 }
 0x608   : > { %3331 = vmatprep.mubr.f32.mxu0 %v3222_v26  ;;  %3436 = vmatprep.mubr.f32.mxu1 %v3224_v33 }
 0x609   : > { %6370 = vmatprep.subr.bf16.mxu0 %v9147_v48  ;;  %6402 = vmatprep.subr.bf16.mxu1 %v9148_v51  ;;  %v4392_v48 = vld [vmem:[%s8897_s4 + $0x1d0] sm:$0xff] }
 0x60a   : > { %3332 = vmatmul.mubr.f32.gmra.mrb[146].mxu0 %v3221_v39  ;;  %3437 = vmatmul.mubr.f32.gmra.mrb[160].mxu1 %v3223_v43  ;;  %v4389_v43 = vld [vmem:[%s8897_s4 + $0x1b8] sm:$0xff]  ;;  %v4388_v51 = vld [vmem:[%s8897_s4 + $0x1b0] sm:$0xff] }
 0x60b   : > { %6372 = vmatpush3.bf16.msra.mxu0 %v9149_v35  ;;  %6404 = vmatpush3.bf16.msra.mxu1 %v9150_v47 }
 0x60c   : > { %3336 = vmatprep.mubr.f32.mxu0 %v3230_v13  ;;  %3441 = vmatprep.mubr.f32.mxu1 %v3232_v15  ;;  %v9155_v13 = vld [vmem:[#allocation5_spill] sm:$0xff] }
 0x60d   : > { %6374 = vmatprep.subr.bf16.mxu0 %v9151_v18  ;;  %6406 = vmatprep.subr.bf16.mxu1 %v9152_v57 }
 0x60e   : > { %3337 = vmatmul.mubr.f32.gmra.mrb[148].mxu0 %v3229_v22  ;;  %3442 = vmatmul.mubr.f32.gmra.mrb[162].mxu1 %v3231_v54  ;;  %v6421_v22 = vpack.c.bf16 %v4392_v48, %v4389_v43  ;;  %v4391_v54 = vld [vmem:[%s8897_s4 + $0x1c8] sm:$0xff] }
 0x60f   : > { %6376 = vmatpush3.bf16.msra.mxu0 %v9153_v62  ;;  %6408 = vmatpush3.bf16.msra.mxu1 %v9154_v0  ;;  %v4398_v62 = vld [vmem:[%s8897_s4 + $0x200] sm:$0xff] }
 0x610   : > { %3511 = vmatprep.mubr.f32.mxu0 %v3178_v60  ;;  %3616 = vmatprep.mubr.f32.mxu1 %v3180_v4  ;;  %v6423_v60 = vpack.c.bf16 %v4391_v54, %v4388_v51  ;;  %v4395_v4 = vld [vmem:[%s8897_s4 + $0x1e8] sm:$0xff]  ;;  %v4394_v0 = vld [vmem:[%s8897_s4 + $0x1e0] sm:$0xff] }
 0x611   : > { %6409 = vmatprep.subr.bf16.mxu0 %v9055_v58  ;;  %6422 = vmatprep.subr.bf16.mxu1 %v6421_v22 }
 0x612   : > { %3512 = vmatmul.mubr.f32.vlgmr.msra.gmra.mrb[150].mxu0 %v3177_v23  ;;  %3617 = vmatmul.mubr.f32.vlgmr.msra.gmra.mrb[164].mxu1 %v3179_v46 }
 0x613   : > { %3516 = vmatprep.mubr.f32.mxu0 %v3186_v27  ;;  %3621 = vmatprep.mubr.f32.mxu1 %v3188_v29  ;;  %v6425_v29 = vpack.c.bf16 %v4398_v62, %v4395_v4 }
 0x614   : > { %6424 = vmatpush1.bf16.msra.mxu1 %v6423_v60 }
 0x615   : > { %6426 = vmatprep.subr.bf16.mxu1 %v6425_v29 }
 0x616   : > { %3517 = vmatmul.mubr.f32.gmra.mrb[152].mxu0 %v3185_v2  ;;  %3622 = vmatmul.mubr.f32.gmra.mrb[166].mxu1 %v3187_v63  ;;  %v4397_v2 = vld [vmem:[%s8897_s4 + $0x1f8] sm:$0xff] }
 0x617   : > { %3521 = vmatprep.mubr.f32.mxu0 %v3194_v19  ;;  %3626 = vmatprep.mubr.f32.mxu1 %v3196_v55  ;;  %v6427_v63 = vpack.c.bf16 %v4397_v2, %v4394_v0  ;;  %v4401_v19 = vld [vmem:[%s8897_s4 + $0x218] sm:$0xff]  ;;  %v4404_v55 = vld [vmem:[%s8897_s4 + $0x230] sm:$0xff] }
 0x619   : > { %6428 = vmatpush1.bf16.msra.mxu1 %v6427_v63 }
 0x61a   : > { %3522 = vmatmul.mubr.f32.gmra.mrb[154].mxu0 %v3193_v59  ;;  %3627 = vmatmul.mubr.f32.gmra.mrb[168].mxu1 %v3195_v6  ;;  %v6739_v59 = vld [vmem:[%s8895_s2] ss:$0 sm:$0xff] }
 0x61b   : > { %3526 = vmatprep.mubr.f32.mxu0 %v3202_v52  ;;  %3631 = vmatprep.mubr.f32.mxu1 %v3204_v10 }
 0x61e   : > { %3527 = vmatmul.mubr.f32.gmra.mrb[156].mxu0 %v3201_v28  ;;  %3632 = vmatmul.mubr.f32.gmra.mrb[170].mxu1 %v3203_v49  ;;  %v6429_v28 = vpack.c.bf16 %v4404_v55, %v4401_v19  ;;  %v4400_v49 = vld [vmem:[%s8897_s4 + $0x210] sm:$0xff] }
 0x61f   : > { %3531 = vmatprep.mubr.f32.mxu0 %v3210_v11  ;;  %3636 = vmatprep.mubr.f32.mxu1 %v3212_v20  ;;  %v4403_v11 = vld [vmem:[%s8897_s4 + $0x228] sm:$0xff] }
 0x620   : > { %6430 = vmatprep.subr.bf16.mxu1 %v6429_v28 }
 0x622   : > { %3532 = vmatmul.mubr.f32.gmra.mrb[158].mxu0 %v3209_v44  ;;  %3637 = vmatmul.mubr.f32.gmra.mrb[172].mxu1 %v3211_v31 }
 0x623   : > { %3536 = vmatprep.mubr.f32.mxu0 %v3218_v50  ;;  %3641 = vmatprep.mubr.f32.mxu1 %v3220_v37 }
 0x626   : > { %3537 = vmatmul.mubr.f32.gmra.mrb[160].mxu0 %v3217_v1  ;;  %3642 = vmatmul.mubr.f32.gmra.mrb[174].mxu1 %v3219_v32  ;;  %v6431_v1 = vpack.c.bf16 %v4403_v11, %v4400_v49 }
 0x627   : > { %3541 = vmatprep.mubr.f32.mxu0 %v3226_v3  ;;  %3646 = vmatprep.mubr.f32.mxu1 %v3228_v36 }
 0x628   : > { %6432 = vmatpush1.bf16.msra.mxu1 %v6431_v1 }
 0x629   : > { %6442 = vmatprep.subr.bf16.mxu1 %v9055_v58 }
 0x62a   : > { %3542 = vmatmul.mubr.f32.gmra.mrb[162].mxu0 %v3225_v5  ;;  %3647 = vmatmul.mubr.f32.gmra.mrb[176].mxu1 %v3227_v53 }
 0x62b   : > { %3546 = vmatprep.mubr.f32.mxu0 %v3234_v30  ;;  %3651 = vmatprep.mubr.f32.mxu1 %v3236_v7 }
 0x62e   : > { %3547 = vmatmul.mubr.f32.gmra.mrb[164].mxu0 %v3233_v12  ;;  %3652 = vmatmul.mubr.f32.gmra.mrb[178].mxu1 %v3235_v16 }
 0x62f   : > { %5732 = vmatprep.mubr.msk.f32.mxu0 %vm6805_vm0, %v9054_v40  ;;  %3925 = vmatprep.mubr.f32.mxu1 %v9054_v40 }
 0x6c1   : > { %v8610_v17 = vpop.f32.mrb[100].mxu0 }
 0x6c2   : > { %v5715_v21 = vpop.f32.mrb[101].mxu0 }
 0x6c5   : > { %v5246_v25 = vpop.f32.mrb[134].mxu0  ;;  %v5302_v26 = vpop.f32.mrb[148].mxu1 }
 0x6c6   : > { %v5247_v33 = vpop.f32.mrb[135].mxu0  ;;  %v5303_v34 = vpop.f32.mrb[149].mxu1 }
 0x6c7   : > { %v5248_v38 = vadd.f32 %v5247_v33, %v5246_v25  ;;  %v5304_v39 = vadd.f32 %v5303_v34, %v5302_v26 }
 0x6c9   : > { %v3304_v15 = vadd.f32 %v9155_v13, %v5248_v38  ;;  %v5249_v35 = vpop.f32.mrb[136].mxu0  ;;  %v5305_v47 = vpop.f32.mrb[150].mxu1 }
 0x6ca   : > { %v5250_v18 = vpop.f32.mrb[137].mxu0  ;;  %v5306_v57 = vpop.f32.mrb[151].mxu1 }
 0x6cb   : > { %v8634_v23 = vadd.f32 %v5304_v39, %v3304_v15  ;;  %v5251_v46 = vadd.f32 %v5250_v18, %v5249_v35  ;;  %v5307_v27 = vadd.f32 %v5306_v57, %v5305_v47 }
 0x6cd   : > { %v3309_v6 = vadd.f32 %v6739_v59, %v5251_v46  ;;  %v5252_v52 = vpop.f32.mrb[138].mxu0  ;;  %v5308_v10 = vpop.f32.mrb[152].mxu1 }
 0x6ce   : > { %v5253_v20 = vpop.f32.mrb[139].mxu0  ;;  %v5309_v44 = vpop.f32.mrb[153].mxu1 }
 0x6cf   : > { %v8654_v31 = vadd.f32 %v5307_v27, %v3309_v6  ;;  %v5254_v50 = vadd.f32 %v5253_v20, %v5252_v52  ;;  %v5310_v37 = vadd.f32 %v5309_v44, %v5308_v10 }
 0x6d1   : > { %v3314_v32 = vadd.f32 %v6739_v59, %v5254_v50  ;;  %v5255_v3 = vpop.f32.mrb[140].mxu0  ;;  %v5311_v36 = vpop.f32.mrb[154].mxu1 }
 0x6d2   : > { %v5256_v5 = vpop.f32.mrb[141].mxu0  ;;  %v5312_v53 = vpop.f32.mrb[155].mxu1 }
 0x6d3   : > { %v8656_v30 = vadd.f32 %v5310_v37, %v3314_v32  ;;  %v5257_v7 = vadd.f32 %v5256_v5, %v5255_v3  ;;  %v5313_v12 = vadd.f32 %v5312_v53, %v5311_v36 }
 0x6d5   : > { %v3319_v16 = vadd.f32 %v6739_v59, %v5257_v7  ;;  %v5258_v21 = vpop.f32.mrb[142].mxu0  ;;  %v5314_v25 = vpop.f32.mrb[156].mxu1 }
 0x6d6   : > { %v5259_v26 = vpop.f32.mrb[143].mxu0  ;;  %v5315_v33 = vpop.f32.mrb[157].mxu1 }
 0x6d7   : > { %v8659_v34 = vadd.f32 %v5313_v12, %v3319_v16  ;;  %v5260_v38 = vadd.f32 %v5259_v26, %v5258_v21  ;;  %v5316_v39 = vadd.f32 %v5315_v33, %v5314_v25 }
 0x6d9   : > { %v3324_v43 = vadd.f32 %v6739_v59, %v5260_v38  ;;  %v5261_v48 = vpop.f32.mrb[144].mxu0  ;;  %v5317_v51 = vpop.f32.mrb[158].mxu1 }
 0x6da   : > { %v5262_v13 = vpop.f32.mrb[145].mxu0  ;;  %v5318_v15 = vpop.f32.mrb[159].mxu1 }
 0x6db   : > { %v8661_v35 = vadd.f32 %v5316_v39, %v3324_v43  ;;  %v5263_v47 = vadd.f32 %v5262_v13, %v5261_v48  ;;  %v5319_v22 = vadd.f32 %v5318_v15, %v5317_v51 }
 0x6dd   : > { %v3329_v54 = vadd.f32 %v6739_v59, %v5263_v47  ;;  %v5264_v18 = vpop.f32.mrb[146].mxu0  ;;  %v5320_v57 = vpop.f32.mrb[160].mxu1 }
 0x6de   : > { %v5265_v60 = vpop.f32.mrb[147].mxu0  ;;  %v5321_v4 = vpop.f32.mrb[161].mxu1 }
 0x6df   : > { %v8663_v62 = vadd.f32 %v5319_v22, %v3329_v54  ;;  %v5266_v0 = vadd.f32 %v5265_v60, %v5264_v18  ;;  %v5322_v46 = vadd.f32 %v5321_v4, %v5320_v57 }
 0x6e1   : > { %v3334_v27 = vadd.f32 %v6739_v59, %v5266_v0  ;;  %v5267_v29 = vpop.f32.mrb[148].mxu0  ;;  %v5323_v2 = vpop.f32.mrb[162].mxu1 }
 0x6e2   : > { %v5268_v63 = vpop.f32.mrb[149].mxu0  ;;  %v5324_v19 = vpop.f32.mrb[163].mxu1 }
 0x6e3   : > { %v8665_v55 = vadd.f32 %v5322_v46, %v3334_v27  ;;  %v5269_v6 = vadd.f32 %v5268_v63, %v5267_v29  ;;  %v5325_v52 = vadd.f32 %v5324_v19, %v5323_v2 }
 0x6e5   : > { %v3339_v10 = vadd.f32 %v6739_v59, %v5269_v6  ;;  %v5358_v28 = vpop.f32.mrb[150].mxu0  ;;  %v5414_v49 = vpop.f32.mrb[164].mxu1 }
 0x6e6   : > { %v5359_v11 = vpop.f32.mrb[151].mxu0  ;;  %v5415_v20 = vpop.f32.mrb[165].mxu1 }
 0x6e7   : > { %v8667_v44 = vadd.f32 %v5325_v52, %v3339_v10  ;;  %v5360_v50 = vadd.f32 %v5359_v11, %v5358_v28  ;;  %v5416_v37 = vadd.f32 %v5415_v20, %v5414_v49 }
 0x6e9   : > { %v3514_v1 = vadd.f32 %v5360_v50, %v8634_v23  ;;  %v5361_v32 = vpop.f32.mrb[152].mxu0  ;;  %v5417_v3 = vpop.f32.mrb[166].mxu1 }
 0x6ea   : > { %v5362_v36 = vpop.f32.mrb[153].mxu0  ;;  %v5418_v5 = vpop.f32.mrb[167].mxu1 }
 0x6eb   : > { %v3619_v53 = vadd.f32 %v5416_v37, %v3514_v1  ;;  %v5363_v7 = vadd.f32 %v5362_v36, %v5361_v32  ;;  %v5419_v12 = vadd.f32 %v5418_v5, %v5417_v3 }
 0x6ed   : > { %v4371_v16 = vmul.f32 -1.442695, %v3619_v53  ;;  %v3519_v59 = vadd.f32 %v5363_v7, %v8654_v31  ;;  %v5364_v21 = vpop.f32.mrb[154].mxu0  ;;  %v5420_v25 = vpop.f32.mrb[168].mxu1 }
 0x6ee   : > { %v5365_v26 = vpop.f32.mrb[155].mxu0  ;;  %v5421_v33 = vpop.f32.mrb[169].mxu1 }
 0x6ef   : > { %6697 = vpow2.f32 %v4371_v16  ;;  %v3624_v38 = vadd.f32 %v5419_v12, %v3519_v59  ;;  %v5366_v39 = vadd.f32 %v5365_v26, %v5364_v21  ;;  %v5422_v43 = vadd.f32 %v5421_v33, %v5420_v25 }
 0x6f1   : > { %v4372_v48 = vmul.f32 -1.442695, %v3624_v38  ;;  %v3524_v23 = vadd.f32 %v5366_v39, %v8656_v30  ;;  %v5367_v51 = vpop.f32.mrb[156].mxu0  ;;  %v5423_v13 = vpop.f32.mrb[170].mxu1 }
 0x6f2   : > { %v5368_v15 = vpop.f32.mrb[157].mxu0  ;;  %v5424_v47 = vpop.f32.mrb[171].mxu1 }
 0x6f3   : > { %6699 = vpow2.f32 %v4372_v48  ;;  %v3629_v22 = vadd.f32 %v5422_v43, %v3524_v23  ;;  %v5369_v54 = vadd.f32 %v5368_v15, %v5367_v51  ;;  %v5425_v18 = vadd.f32 %v5424_v47, %v5423_v13 }
 0x6f5   : > { %v4373_v31 = vmul.f32 -1.442695, %v3629_v22  ;;  %v3529_v57 = vadd.f32 %v5369_v54, %v8659_v34  ;;  %v5370_v60 = vpop.f32.mrb[158].mxu0  ;;  %v5426_v4 = vpop.f32.mrb[172].mxu1 }
 0x6f6   : > { %v5371_v0 = vpop.f32.mrb[159].mxu0  ;;  %v5427_v46 = vpop.f32.mrb[173].mxu1 }
 0x6f7   : > { %6701 = vpow2.f32 %v4373_v31  ;;  %v3634_v27 = vadd.f32 %v5425_v18, %v3529_v57  ;;  %v5372_v29 = vadd.f32 %v5371_v0, %v5370_v60  ;;  %v5428_v2 = vadd.f32 %v5427_v46, %v5426_v4 }
 0x6f9   : > { %v6698_v30 = vpop.eup %6697  ;;  %v4374_v63 = vmul.f32 -1.442695, %v3634_v27  ;;  %v3534_v19 = vadd.f32 %v5372_v29, %v8661_v35  ;;  %v5373_v6 = vpop.f32.mrb[160].mxu0 }
 0x6fa   : > { %v5429_v52 = vpop.f32.mrb[174].mxu1  ;;  %v3681_v10 = vadd.f32 1.0, %v6698_v30  ;;  %v5374_v28 = vpop.f32.mrb[161].mxu0 }
 0x6fb   : > { %v5430_v49 = vpop.f32.mrb[175].mxu1  ;;  %6703 = vpow2.f32 %v4374_v63  ;;  %v3639_v11 = vadd.f32 %v5428_v2, %v3534_v19  ;;  %v5375_v34 = vadd.f32 %v5374_v28, %v5373_v6  ;;  %v4390_v28 = vld [vmem:[%s8897_s4 + $0x1c0] sm:$0xff] }
 0x6fc   : > { %v5431_v20 = vadd.f32 %v5430_v49, %v5429_v52  ;;  %6705 = vrcp.f32 %v3681_v10  ;;  %v4393_v49 = vld [vmem:[%s8897_s4 + $0x1d8] sm:$0xff] }
 0x6fd   : > { %v6700_v50 = vpop.eup %6699  ;;  %v4375_v37 = vmul.f32 -1.442695, %v3639_v11  ;;  %v3539_v1 = vadd.f32 %v5375_v34, %v8663_v62  ;;  %v5376_v32 = vpop.f32.mrb[162].mxu0  ;;  %v6434_v34 = vpack.c.bf16 %v4393_v49, %v4390_v28 }
 0x6fe   : > { %v5432_v3 = vpop.f32.mrb[176].mxu1  ;;  %v3682_v36 = vadd.f32 1.0, %v6700_v50  ;;  %v5377_v5 = vpop.f32.mrb[163].mxu0  ;;  %v4399_v50 = vld [vmem:[%s8897_s4 + $0x208] sm:$0xff] }
 0x6ff   : > { %v5433_v53 = vpop.f32.mrb[177].mxu1  ;;  %6707 = vpow2.f32 %v4375_v37  ;;  %v3644_v35 = vadd.f32 %v5431_v20, %v3539_v1  ;;  %v5378_v7 = vadd.f32 %v5377_v5, %v5376_v32  ;;  %v4396_v20 = vld [vmem:[%s8897_s4 + $0x1f0] sm:$0xff]  ;;  %v4402_v1 = vld [vmem:[%s8897_s4 + $0x220] sm:$0xff]  ;;  %v4405_v32 = vld [vmem:[%s8897_s4 + $0x238] sm:$0xff] }
 0x700   : > { %v5434_v12 = vadd.f32 %v5433_v53, %v5432_v3  ;;  %6709 = vrcp.f32 %v3682_v36  ;;  %v6437_v37 = vpack.c.bf16 %v4399_v50, %v4396_v20 }
 0x701   : > { %v6702_v16 = vpop.eup %6701  ;;  %v4376_v59 = vmul.f32 -1.442695, %v3644_v35  ;;  %v3544_v21 = vadd.f32 %v5378_v7, %v8665_v55  ;;  %v5379_v25 = vpop.f32.mrb[164].mxu0 }
 0x702   : > { %v5435_v26 = vpop.f32.mrb[178].mxu1  ;;  %v3683_v33 = vadd.f32 1.0, %v6702_v16  ;;  %v5380_v38 = vpop.f32.mrb[165].mxu0 }
 0x703   : > { %v5436_v62 = vpop.f32.mrb[179].mxu1  ;;  %6711 = vpow2.f32 %v4376_v59  ;;  %v3649_v39 = vadd.f32 %v5434_v12, %v3544_v21  ;;  %v5381_v43 = vadd.f32 %v5380_v38, %v5379_v25 }
 0x704   : > { %v5437_v48 = vadd.f32 %v5436_v62, %v5435_v26  ;;  %6713 = vrcp.f32 %v3683_v33 }
 0x705   : > { %v6704_v23 = vpop.eup %6703  ;;  %v4377_v51 = vmul.f32 -1.442695, %v3649_v39  ;;  %v3549_v13 = vadd.f32 %v5381_v43, %v8667_v44 }
 0x706   : > { %v3684_v15 = vadd.f32 1.0, %v6704_v23  ;;  %v6706_v22 = vpop.eup %6705 }
 0x707   : > { %6715 = vpow2.f32 %v4377_v51  ;;  %v3654_v47 = vadd.f32 %v5437_v48, %v3549_v13 }
 0x708   : > { %6717 = vrcp.f32 %v3684_v15 }
 0x709   : > { %v6708_v55 = vpop.eup %6707  ;;  %v4378_v54 = vmul.f32 -1.442695, %v3654_v47 }
 0x70a   : > { %v6710_v18 = vpop.eup %6709  ;;  %v3685_v31 = vadd.f32 1.0, %v6708_v55 }
 0x70b   : > { %6719 = vpow2.f32 %v4378_v54  ;;  %v6410_v57 = vpack.c.bf16 %v6710_v18, %v6706_v22 }
 0x70c   : > { %6721 = vrcp.f32 %v3685_v31 }
 0x70d   : > { %v6712_v60 = vpop.eup %6711  ;;  %6411 = vmatpush3.bf16.msra.mxu0 %v6410_v57 }
 0x70e   : > { %v3686_v4 = vadd.f32 1.0, %v6712_v60  ;;  %6412 = vmatprep.subr.bf16.mxu0 %v9055_v58  ;;  %v6714_v0 = vpop.eup %6713 }
 0x710   : > { %6723 = vrcp.f32 %v3686_v4 }
 0x711   : > { %v6716_v44 = vpop.eup %6715 }
 0x712   : > { %v6718_v46 = vpop.eup %6717  ;;  %v3687_v27 = vadd.f32 1.0, %v6716_v44 }
 0x713   : > { %v6413_v29 = vpack.c.bf16 %v6718_v46, %v6714_v0 }
 0x714   : > { %6725 = vrcp.f32 %v3687_v27 }
 0x715   : > { %v6720_v2 = vpop.eup %6719  ;;  %6414 = vmatpush3.bf16.msra.mxu0 %v6413_v29 }
 0x716   : > { %v3688_v30 = vadd.f32 1.0, %v6720_v2  ;;  %6415 = vmatprep.subr.bf16.mxu0 %v9055_v58  ;;  %v6722_v63 = vpop.eup %6721 }
 0x718   : > { %6727 = vrcp.f32 %v3688_v30 }
 0x71a   : > { %v6724_v19 = vpop.eup %6723 }
 0x71b   : > { %v6416_v6 = vpack.c.bf16 %v6724_v19, %v6722_v63 }
 0x71d   : > { %6417 = vmatpush3.bf16.msra.mxu0 %v6416_v6 }
 0x71e   : > { %6418 = vmatprep.subr.bf16.mxu0 %v9055_v58  ;;  %v6726_v52 = vpop.eup %6725 }
 0x722   : > { %v6728_v10 = vpop.eup %6727 }
 0x723   : > { %v6419_v11 = vpack.c.bf16 %v6728_v10, %v6726_v52 }
 0x725   : > { %6420 = vmatpush3.bf16.msra.mxu0 %v6419_v11 }
 0x726   : > { %6433 = vmatprep.subr.bf16.mxu0 %v9055_v58 }
 0x728   : > { %5733 = vmatmul.mubr.msk.f32.vlgmr.msra.gmra.mrb[166].mxu0 %vm899_vm1, %v8354_v61  ;;  %v6440_v61 = vpack.c.bf16 %v4405_v32, %v4402_v1 }
 0x729   : > { %5735 = vmatprep.mubr.msk.f32.mxu0 %vm6805_vm0, %v9054_v40  ;;  %6435 = vmatpush3.bf16.msra.mxu0 %v6434_v34 }
 0x72a   : > { %6436 = vmatprep.subr.bf16.mxu0 %v9055_v58 }
 0x72c   : > { %5736 = vmatmul.mubr.msk.f32.gmra.mrb[168].mxu0 %vm899_vm1, %v8369_v9 }
 0x72d   : > { %5738 = vmatprep.mubr.msk.f32.mxu0 %vm6805_vm0, %v9054_v40  ;;  %6438 = vmatpush3.bf16.msra.mxu0 %v6437_v37 }
 0x72e   : > { %6439 = vmatprep.subr.bf16.mxu0 %v9055_v58 }
 0x730   : > { %5739 = vmatmul.mubr.msk.f32.gmra.mrb[170].mxu0 %vm899_vm1, %v8378_v24 }
 0x731   : > { %5741 = vmatprep.mubr.msk.f32.mxu0 %vm6805_vm0, %v9054_v40  ;;  %6441 = vmatpush3.bf16.msra.mxu0 %v6440_v61 }
 0x734   : > { %5742 = vmatmul.mubr.msk.f32.gmra.mrb[172].mxu0 %vm899_vm1, %v8388_v45 }
 0x735   : > { %5744 = vmatprep.mubr.msk.f32.mxu0 %vm6805_vm0, %v9054_v40 }
 0x738   : > { %5745 = vmatmul.mubr.msk.f32.gmra.mrb[174].mxu0 %vm899_vm1, %v8397_v56 }
 0x739   : > { %5747 = vmatprep.mubr.msk.f32.mxu0 %vm6805_vm0, %v9054_v40 }
 0x73c   : > { %5748 = vmatmul.mubr.msk.f32.gmra.mrb[176].mxu0 %vm899_vm1, %v8406_v8 }
 0x73d   : > { %5750 = vmatprep.mubr.msk.f32.mxu0 %vm6805_vm0, %v9054_v40 }
 0x740   : > { %5751 = vmatmul.mubr.msk.f32.gmra.mrb[178].mxu0 %vm899_vm1, %v8415_v41 }
 0x741   : > { %5753 = vmatprep.mubr.msk.f32.mxu0 %vm6805_vm0, %v9054_v40 }
 0x744   : > { %5754 = vmatmul.mubr.msk.f32.gmra.mrb[180].mxu0 %vm899_vm1, %v8424_v42 }
 0x745   : > { %5756 = vmatprep.mubr.msk.f32.mxu0 %vm6805_vm0, %v9054_v40 }
 0x748   : > { %5757 = vmatmul.mubr.msk.f32.gmra.mrb[182].mxu0 %vm899_vm1, %v8433_v14 }
 0x749   : > { %5771 = vmatprep.mubr.msk.f32.mxu0 %vm6805_vm0, %v9054_v40 }
 0x7fb   : > { %v3771_v9 = vpop.f32.mrb[166].mxu0 }
 0x7fc   : > { %4406 = vmatmul.mubr.msk.f32.vlgmr.msra.gmra.mrb[80].mxu1 %vm1716_vm2, %v3771_v9  ;;  %5772 = vmatmul.mubr.msk.f32.vlgmr.msra.gmra.mrb[84].mxu0 %vm1716_vm2, %v3771_v9  ;;  %v5734_v24 = vpop.f32.mrb[167].mxu0 }
 0x7fd   : > { %3931 = vmatprep.mubr.f32.mxu1 %v9054_v40  ;;  %5774 = vmatprep.mubr.msk.f32.mxu0 %vm6805_vm0, %v9054_v40 }
 0x7fe   : > { %6445 = vmatpush3.bf16.msra.mxu1 %v6434_v34 }
 0x7ff   : > { %v3776_v45 = vpop.f32.mrb[168].mxu0  ;;  %6443 = vmatprep.subr.bf16.mxu1 %v9055_v58 }
 0x800   : > { %4407 = vmatmul.mubr.msk.f32.gmra.mrb[82].mxu1 %vm1716_vm2, %v3776_v45  ;;  %5775 = vmatmul.mubr.msk.f32.gmra.mrb[86].mxu0 %vm1716_vm2, %v3776_v45  ;;  %v5737_v56 = vpop.f32.mrb[169].mxu0 }
 0x801   : > { %3937 = vmatprep.mubr.f32.mxu1 %v9054_v40  ;;  %5777 = vmatprep.mubr.msk.f32.mxu0 %vm6805_vm0, %v9054_v40 }
 0x802   : > { %6446 = vmatpush3.bf16.msra.mxu1 %v6437_v37 }
 0x803   : > { %v3781_v8 = vpop.f32.mrb[170].mxu0  ;;  %6444 = vmatprep.subr.bf16.mxu1 %v9055_v58 }
 0x804   : > { %4408 = vmatmul.mubr.msk.f32.gmra.mrb[84].mxu1 %vm1716_vm2, %v3781_v8  ;;  %5778 = vmatmul.mubr.msk.f32.gmra.mrb[88].mxu0 %vm1716_vm2, %v3781_v8  ;;  %v5740_v41 = vpop.f32.mrb[171].mxu0 }
 0x805   : > { %3943 = vmatprep.mubr.f32.mxu1 %v9054_v40  ;;  %5780 = vmatprep.mubr.msk.f32.mxu0 %vm6805_vm0, %v9054_v40 }
 0x806   : > { %6447 = vmatpush3.bf16.msra.mxu1 %v6440_v61 }
 0x807   : > { %v3786_v42 = vpop.f32.mrb[172].mxu0 }
 0x808   : > { %4409 = vmatmul.mubr.msk.f32.gmra.mrb[86].mxu1 %vm1716_vm2, %v3786_v42  ;;  %5781 = vmatmul.mubr.msk.f32.gmra.mrb[90].mxu0 %vm1716_vm2, %v3786_v42  ;;  %v5743_v14 = vpop.f32.mrb[173].mxu0 }
 0x809   : > { %3949 = vmatprep.mubr.f32.mxu1 %v9054_v40  ;;  %5783 = vmatprep.mubr.msk.f32.mxu0 %vm6805_vm0, %v9054_v40 }
 0x80b   : > { %v3791_v58 = vpop.f32.mrb[174].mxu0 }
 0x80c   : > { %4410 = vmatmul.mubr.msk.f32.gmra.mrb[88].mxu1 %vm1716_vm2, %v3791_v58  ;;  %5784 = vmatmul.mubr.msk.f32.gmra.mrb[92].mxu0 %vm1716_vm2, %v3791_v58  ;;  %v5746_v3 = vpop.f32.mrb[175].mxu0 }
 0x80d   : > { %3955 = vmatprep.mubr.f32.mxu1 %v9054_v40  ;;  %5786 = vmatprep.mubr.msk.f32.mxu0 %vm6805_vm0, %v9054_v40 }
 0x80f   : > { %v3796_v36 = vpop.f32.mrb[176].mxu0 }
 0x810   : > { %4411 = vmatmul.mubr.msk.f32.gmra.mrb[90].mxu1 %vm1716_vm2, %v3796_v36  ;;  %5787 = vmatmul.mubr.msk.f32.gmra.mrb[94].mxu0 %vm1716_vm2, %v3796_v36  ;;  %v5749_v5 = vpop.f32.mrb[177].mxu0 }
 0x811   : > { %3961 = vmatprep.mubr.f32.mxu1 %v9054_v40  ;;  %5789 = vmatprep.mubr.msk.f32.mxu0 %vm6805_vm0, %v9054_v40 }
 0x813   : > { %v3801_v53 = vpop.f32.mrb[178].mxu0 }
 0x814   : > { %4412 = vmatmul.mubr.msk.f32.gmra.mrb[92].mxu1 %vm1716_vm2, %v3801_v53  ;;  %5790 = vmatmul.mubr.msk.f32.gmra.mrb[96].mxu0 %vm1716_vm2, %v3801_v53  ;;  %v5752_v35 = vpop.f32.mrb[179].mxu0 }
 0x815   : > { %3967 = vmatprep.mubr.f32.mxu1 %v9054_v40  ;;  %5792 = vmatprep.mubr.msk.f32.mxu0 %vm6805_vm0, %v9054_v40 }
 0x817   : > { %v3806_v7 = vpop.f32.mrb[180].mxu0 }
 0x818   : > { %4413 = vmatmul.mubr.msk.f32.gmra.mrb[94].mxu1 %vm1716_vm2, %v3806_v7  ;;  %5793 = vmatmul.mubr.msk.f32.gmra.mrb[98].mxu0 %vm1716_vm2, %v3806_v7  ;;  %v5755_v12 = vpop.f32.mrb[181].mxu0 }
 0x819   : > { %3973 = vmatprep.mubr.f32.mxu1 %v9054_v40 }
 0x81b   : > { %v3811_v16 = vpop.f32.mrb[182].mxu0 }
 0x81c   : > { %4414 = vmatmul.mubr.msk.f32.gmra.mrb[96].mxu1 %vm1716_vm2, %v3811_v16  ;;  %v5758_v59 = vpop.f32.mrb[183].mxu0 }
 0x81d   : > { %5795 = vmatprep.mubr.msk.f32.mxu1 %vm6805_vm0, %v9054_v40 }
 0x820   : > { %5796 = vmatmul.mubr.msk.f32.vlgmr.msra.gmra.mrb[180].mxu1 %vm1716_vm2, %v3811_v16 }
 0x8cf   : > { %v3927_v21 = vpop.f32.mrb[80].mxu1  ;;  %v4046_v25 = vpop.f32.mrb[84].mxu0 }
 0x8d0   : > { %4118 = vst.msk [vmem:[%s8784_s10] sm:$0xff] %vm4117_vm3, %v3927_v21  ;;  %4433 = vst.msk [vmem:[%s8784_s10 + $0x90] sm:$0xff] %vm4117_vm3, %v4046_v25  ;;  %v3929_v40 = vpop.f32.mrb[81].mxu1  ;;  %v5773_v26 = vpop.f32.mrb[85].mxu0 }
 0x8d1   : > { %4424 = vst.msk [vmem:[%s8784_s10 + $0x48] sm:$0xff] %vm4117_vm3, %v3929_v40 }
 0x8d3   : > { %v3933_v33 = vpop.f32.mrb[82].mxu1  ;;  %v4051_v38 = vpop.f32.mrb[86].mxu0 }
 0x8d4   : > { %4119 = vst.msk [vmem:[%s8784_s10 + $0x8] sm:$0xff] %vm4117_vm3, %v3933_v33  ;;  %4434 = vst.msk [vmem:[%s8784_s10 + $0x98] sm:$0xff] %vm4117_vm3, %v4051_v38  ;;  %v3935_v62 = vpop.f32.mrb[83].mxu1  ;;  %v5776_v39 = vpop.f32.mrb[87].mxu0 }
 0x8d5   : > { %4425 = vst.msk [vmem:[%s8784_s10 + $0x50] sm:$0xff] %vm4117_vm3, %v3935_v62 }
 0x8d7   : > { %v3939_v43 = vpop.f32.mrb[84].mxu1  ;;  %v4056_v48 = vpop.f32.mrb[88].mxu0 }
 0x8d8   : > { %4120 = vst.msk [vmem:[%s8784_s10 + $0x10] sm:$0xff] %vm4117_vm3, %v3939_v43  ;;  %4435 = vst.msk [vmem:[%s8784_s10 + $0xa0] sm:$0xff] %vm4117_vm3, %v4056_v48  ;;  %v3941_v23 = vpop.f32.mrb[85].mxu1  ;;  %v5779_v51 = vpop.f32.mrb[89].mxu0 }
 0x8d9   : > { %4426 = vst.msk [vmem:[%s8784_s10 + $0x58] sm:$0xff] %vm4117_vm3, %v3941_v23 }
 0x8db   : > { %v3945_v13 = vpop.f32.mrb[86].mxu1  ;;  %v4061_v15 = vpop.f32.mrb[90].mxu0 }
 0x8dc   : > { %4121 = vst.msk [vmem:[%s8784_s10 + $0x18] sm:$0xff] %vm4117_vm3, %v3945_v13  ;;  %4436 = vst.msk [vmem:[%s8784_s10 + $0xa8] sm:$0xff] %vm4117_vm3, %v4061_v15  ;;  %v3947_v47 = vpop.f32.mrb[87].mxu1  ;;  %v5782_v22 = vpop.f32.mrb[91].mxu0 }
 0x8dd   : > { %4427 = vst.msk [vmem:[%s8784_s10 + $0x60] sm:$0xff] %vm4117_vm3, %v3947_v47 }
 0x8df   : > { %v3951_v55 = vpop.f32.mrb[88].mxu1  ;;  %v4066_v54 = vpop.f32.mrb[92].mxu0 }
 0x8e0   : > { %4122 = vst.msk [vmem:[%s8784_s10 + $0x20] sm:$0xff] %vm4117_vm3, %v3951_v55  ;;  %4437 = vst.msk [vmem:[%s8784_s10 + $0xb0] sm:$0xff] %vm4117_vm3, %v4066_v54  ;;  %v3953_v18 = vpop.f32.mrb[89].mxu1  ;;  %v5785_v31 = vpop.f32.mrb[93].mxu0 }
 0x8e1   : > { %4428 = vst.msk [vmem:[%s8784_s10 + $0x68] sm:$0xff] %vm4117_vm3, %v3953_v18 }
 0x8e3   : > { %v3957_v57 = vpop.f32.mrb[90].mxu1  ;;  %v4071_v60 = vpop.f32.mrb[94].mxu0 }
 0x8e4   : > { %4123 = vst.msk [vmem:[%s8784_s10 + $0x28] sm:$0xff] %vm4117_vm3, %v3957_v57  ;;  %4438 = vst.msk [vmem:[%s8784_s10 + $0xb8] sm:$0xff] %vm4117_vm3, %v4071_v60  ;;  %v3959_v4 = vpop.f32.mrb[91].mxu1  ;;  %v5788_v0 = vpop.f32.mrb[95].mxu0 }
 0x8e5   : > { %4429 = vst.msk [vmem:[%s8784_s10 + $0x70] sm:$0xff] %vm4117_vm3, %v3959_v4 }
 0x8e7   : > { %v3963_v44 = vpop.f32.mrb[92].mxu1  ;;  %v4076_v46 = vpop.f32.mrb[96].mxu0 }
 0x8e8   : > { %4124 = vst.msk [vmem:[%s8784_s10 + $0x30] sm:$0xff] %vm4117_vm3, %v3963_v44  ;;  %4439 = vst.msk [vmem:[%s8784_s10 + $0xc0] sm:$0xff] %vm4117_vm3, %v4076_v46  ;;  %v3965_v27 = vpop.f32.mrb[93].mxu1  ;;  %v5791_v29 = vpop.f32.mrb[97].mxu0 }
 0x8e9   : > { %4430 = vst.msk [vmem:[%s8784_s10 + $0x78] sm:$0xff] %vm4117_vm3, %v3965_v27 }
 0x8eb   : > { %v3969_v2 = vpop.f32.mrb[94].mxu1  ;;  %v4081_v30 = vpop.f32.mrb[98].mxu0 }
 0x8ec   : > { %4125 = vst.msk [vmem:[%s8784_s10 + $0x38] sm:$0xff] %vm4117_vm3, %v3969_v2  ;;  %4440 = vst.msk [vmem:[%s8784_s10 + $0xc8] sm:$0xff] %vm4117_vm3, %v4081_v30  ;;  %v3971_v63 = vpop.f32.mrb[95].mxu1  ;;  %v5794_v19 = vpop.f32.mrb[99].mxu0 }
 0x8ed   : > { %4431 = vst.msk [vmem:[%s8784_s10 + $0x80] sm:$0xff] %vm4117_vm3, %v3971_v63 }
 0x8ef   : > { %v3975_v6 = vpop.f32.mrb[96].mxu1 }
 0x8f0   : > { %4126 = vst.msk [vmem:[%s8784_s10 + $0x40] sm:$0xff] %vm4117_vm3, %v3975_v6  ;;  %v3977_v52 = vpop.f32.mrb[97].mxu1 }
 0x8f1   : > { %4432 = vst.msk [vmem:[%s8784_s10 + $0x88] sm:$0xff] %vm4117_vm3, %v3977_v52 }
 0x8f3   : > { %v4086_v10 = vpop.f32.mrb[180].mxu1 }
 0x8f4   : > { %v6448_v28 = vadd.f32 %v4086_v10, %v8610_v17  ;;  %v5797_v49 = vpop.f32.mrb[181].mxu1 }
 0x8f6   : > { %4441 = vst.msk [vmem:[%s8784_s10 + $0xd0] sm:$0xff] %vm4117_vm3, %v6448_v28 }
 0x8f7   : > { %6753 = shalt.err (!%p6750_p3)
}
 0x8f8   : > { %s6754_s14 = scalar_lea.hbm %s8843_s17, 3456  ;;  %s6758_s6 = scalar_lea.hbm %s8898_s5, 6912 }
 0x8f9   : > { %p6755_p4 = scmp.ne.s32.totalorder %s8843_s17, %s6754_s14  ;;  %p6759_p9 = scmp.lt.u32.totalorder %s8843_s17, %s8898_s5 }
 0x8fa   : > { %p6760_p10 = scmp.lt.u32.totalorder %s6758_s6, %s6754_s14  ;;  %p6762_p12 = scmp.lt.u32.totalorder %s6754_s14, %s8843_s17 }
 0x8fb   : > { %p6756_p7 = pnand %p6755_p4, %p6878_p5 }
 0x8fc   : > { %p6761_p11 = por %p6760_p10, %p6759_p9 }
 0x8fd   : > { %p6757_p8 = pneg %p6756_p7 }
 0x8fe   : > { %p6763_p13 = por %p6762_p12, %p6761_p11 }
 0x900   : > { %p6764_p0 = pnand %p6763_p13, %p6757_p8 }
 0x902   : > { %6767 = shalt.err (!%p6764_p0)
}
 0x903   : > { %s6808_s10 = smov 128   ;;  %s6809_s11 = smov 8  }
 0x904   : > { %6557 = dma.vmem_to_hbm [thread:$0]  (%p6878_p5), %s8845_s12, 3456, %s8843_s17, %s8852_s22, %s6808_s10, %s6808_s10, %s6809_s11  }
 0x905 PF: > { %p6563_p1 = scmp.ge.s32.totalorder %s6802_s21, 2  ;;  %s4176_s13 = sand.u32 1, %s6790_s18  }
 0x906   : > { %s4177_s16 = scalar_lea.sflag [#allocation3], %s4176_s13 }
 0x907   : > { %p6560_p2 = pnand %p6563_p1, %p6882_p6 }
 0x909   : > { %6785 = dma.done.wait (!%p6560_p2), %s4177_s16, 3456  }
 0x90a   : > { %6787 = vsyncadd (!%p6560_p2), %s4177_s16, 4294963840  ;;  %p15_p3 = scmp.ge.s32.totalorder %s6865_s24, 4   ;;  %s9156_s18 = smov %s6794_s19 }
 0x90b   : > { %s9157_s19 = smov %s6798_s20  ;;  %s9158_s20 = smov %s6876_s27 }
 0x90c   : > { %s9159_s21 = smov %s6865_s24  ;;  %17 = sbr.rel (!%p15_p3) target bundleno = 3 (0x3), region = 80 }
 0x913   :  { %4182 = vsyncpa [#allocation3], 1 }
 0x914   :  { %4184 = vsyncpa [#allocation3 + $0x1], 1 }

</bundles_post_ra>
